<compile_context>
chip_gen: v7x
topology: tpu7x:2x2x1
jax: 0.10.0
libtpu: 0.0.40
codegen_flags: <defaults>
</compile_context>

<pallas_src>
import functools

import jax
import jax.numpy as jnp
from jax.experimental import pallas as pl
from jax.experimental.pallas import tpu as pltpu

# ---------------- model configuration (small synthetic ViT) -----------------
IN_CHANS = 3
IMG = 16
PATCH = 4
NUM_PATCHES = (IMG // PATCH) ** 2          # 16
PATCH_DIM = IN_CHANS * PATCH * PATCH       # 48
DIM = 32
DEPTH = 2
HEADS = 4
HEAD_DIM = DIM // HEADS                    # 8
MLP_HIDDEN = DIM * 4                       # 128
NUM_CLASSES = 8
TOKENS = NUM_PATCHES + 1                   # 17 valid tokens (patches + cls)
T_PAD = 24                                 # tokens padded to a multiple of 8
CLS_ROW = NUM_PATCHES                      # cls token at row 16 (8-aligned)
LN_EPS = 1e-6

# ---------------- packed-slab layout constants -------------------------------
SLAB_W = 128                               # lane width of both slabs
# bf16 weight slab rows
HEAD_W0 = PATCH_DIM                        # 48: head_w rows 48..79
BLK_W0 = HEAD_W0 + DIM                     # 80: per-block weights start
BLK_W_ROWS = DIM + DIM + MLP_HIDDEN        # 192: qkv(32) + fc1(32) + fc2(128)
WROWS = BLK_W0 + DEPTH * BLK_W_ROWS        # 464
# f32 slab rows
BIAS0 = 3                                  # rows 0..2: norm_g, norm_b, head_b
BIAS_ROWS = 8                              # per-block bias rows
PROJ0 = 24                                 # proj_w (DEPTH * DIM rows), 8-aligned
POS0 = PROJ0 + DEPTH * DIM                 # 88: pos(+cls+patch_b) slab


# ------------------------------ fused Pallas kernel --------------------------
def _make_kernel(block_batch):
    BB = block_batch
    N = BB * T_PAD

    def kernel(patches_ref, w_ref, f_ref, out_ref):
        f32, bf16 = jnp.float32, jnp.bfloat16

        def mm(x, w_bf16, bias=None):
            acc = jnp.dot(x.astype(bf16), w_bf16, preferred_element_type=f32)
            if bias is not None:
                acc = acc + bias
            return acc

        def ln(x, g, b):
            mu = jnp.mean(x, axis=-1, keepdims=True)
            var = jnp.mean(jnp.square(x - mu), axis=-1, keepdims=True)
            return (x - mu) * jax.lax.rsqrt(var + LN_EPS) * g + b

        # ---- static slab slices ----
        patch_w = w_ref[0:PATCH_DIM, 0:DIM]                         # (48, 32) bf16
        head_w = w_ref[HEAD_W0:HEAD_W0 + DIM, 0:NUM_CLASSES]        # (32, 8)  bf16
        pos = f_ref[POS0:POS0 + N, 0:DIM]                           # (N, 32)  f32

        # ---- patch embed + token assembly ----
        # patches_ref: (N, PATCH_DIM), rows [img*24+16 .. img*24+23] are zero.
        # `pos` already contains pos-emb + patch bias (patch rows), cls token
        # + its pos-emb (row 16 per image), zeros (pad rows).
        x = mm(patches_ref[...], patch_w) + pos                     # (N, DIM) f32

        # padded key columns (>= TOKENS) never receive attention mass
        col = jax.lax.broadcasted_iota(jnp.int32, (T_PAD, T_PAD), 1)
        key_mask = col < TOKENS

        for d in range(DEPTH):                                      # static unroll
            wb = BLK_W0 + d * BLK_W_ROWS
            fb = BIAS0 + d * BIAS_ROWS
            pbase = PROJ0 + d * DIM

            qkv_w = w_ref[wb:wb + DIM, 0:3 * DIM]                   # head-major, q pre-scaled
            fc1_w = w_ref[wb + DIM:wb + 2 * DIM, 0:MLP_HIDDEN]
            fc2_w = w_ref[wb + 2 * DIM:wb + 2 * DIM + MLP_HIDDEN, 0:DIM]
            ln1_g = f_ref[fb + 0:fb + 1, 0:DIM]
            ln1_b = f_ref[fb + 1:fb + 2, 0:DIM]
            qkv_bias = f_ref[fb + 2:fb + 3, 0:3 * DIM]
            proj_bias = f_ref[fb + 3:fb + 4, 0:DIM]
            ln2_g = f_ref[fb + 4:fb + 5, 0:DIM]
            ln2_b = f_ref[fb + 5:fb + 6, 0:DIM]
            fc1_bias = f_ref[fb + 6:fb + 7, 0:MLP_HIDDEN]
            fc2_bias = f_ref[fb + 7:fb + 8, 0:DIM]

            # -------- multi-head self-attention --------
            h = ln(x, ln1_g, ln1_b)
            qkv = mm(h, qkv_w, qkv_bias)                            # (N, 3*DIM)
            deltas = []
            for img in range(BB):                                   # per-image scores only
                qkv_i = qkv[img * T_PAD:(img + 1) * T_PAD, :]       # (24, 96)
                acc = None
                for hh in range(HEADS):
                    c = hh * 3 * HEAD_DIM                           # head-major columns
                    q = qkv_i[:, c:c + HEAD_DIM]                    # already scaled
                    k = qkv_i[:, c + HEAD_DIM:c + 2 * HEAD_DIM]
                    v = qkv_i[:, c + 2 * HEAD_DIM:c + 3 * HEAD_DIM]
                    # q @ k^T without materializing a transpose
                    s = jax.lax.dot_general(q.astype(bf16), k.astype(bf16),
                                            (((1,), (1,)), ((), ())),
                                            preferred_element_type=f32)  # (24, 24) f32
                    s = jnp.where(key_mask, s, -1e30)
                    s = s - jnp.max(s, axis=-1, keepdims=True)
                    p = jnp.exp(s)
                    p = p * pl.reciprocal(jnp.sum(p, axis=-1, keepdims=True),
                                          approx=True)
                    o = jnp.dot(p.astype(bf16), v.astype(bf16),
                                preferred_element_type=f32)         # (24, 8)
                    proj_h = f_ref[pbase + hh * HEAD_DIM:
                                   pbase + (hh + 1) * HEAD_DIM, 0:DIM]  # (8, 32) f32
                    contrib = jnp.dot(o, proj_h, preferred_element_type=f32)  # (24, 32)
                    acc = contrib if acc is None else acc + contrib
                deltas.append(acc)
            attn = deltas[0] if BB == 1 else jnp.concatenate(deltas, axis=0)
            x = x + attn + proj_bias

            # -------- MLP --------
            h = ln(x, ln2_g, ln2_b)
            h = mm(h, fc1_w, fc1_bias)
            # TODO(synk): timm ViT uses erf GELU; tanh approximation kept for a
            #             robust TPU lowering (difference ~1e-3).
            h = jax.nn.gelu(h, approximate=True)
            x = x + mm(h, fc2_w, fc2_bias)

        # -------- final LayerNorm + head on the cls rows only --------
        norm_g = f_ref[0:1, 0:DIM]
        norm_b = f_ref[1:2, 0:DIM]
        head_b = f_ref[2:3, 0:NUM_CLASSES]
        cls_rows = [x[img * T_PAD + CLS_ROW: img * T_PAD + CLS_ROW + 1, :]
                    for img in range(BB)]
        cls_x = cls_rows[0] if BB == 1 else jnp.concatenate(cls_rows, axis=0)  # (BB, DIM)
        cls_x = ln(cls_x, norm_g, norm_b)
        logits = mm(cls_x, head_w, head_b)                          # (BB, NUM_CLASSES)
        out_ref[0] = logits.astype(out_ref.dtype)

    return kernel


# ------------------------------ parameters ------------------------------------
def _normal(key, shape, scale=0.02):
    return scale * jax.random.normal(key, shape, dtype=jnp.float32)


def init_params(key):
    keys = jax.random.split(key, 8 + DEPTH)
    params = {
        "patch_w": _normal(keys[0], (PATCH_DIM, DIM)),
        "patch_b": jnp.zeros((DIM,), jnp.float32),
        "cls": _normal(keys[1], (1, 1, DIM)),
        "pos": _normal(keys[2], (1, TOKENS, DIM)),
        "norm_g": jnp.ones((DIM,), jnp.float32),
        "norm_b": jnp.zeros((DIM,), jnp.float32),
        "head_w": _normal(keys[3], (DIM, NUM_CLASSES)),
        "head_b": jnp.zeros((NUM_CLASSES,), jnp.float32),
        "blocks": [],
    }
    for d in range(DEPTH):
        bk = jax.random.split(keys[8 + d], 4)
        params["blocks"].append({
            "ln1_g": jnp.ones((DIM,), jnp.float32),
            "ln1_b": jnp.zeros((DIM,), jnp.float32),
            "qkv_w": _normal(bk[0], (DIM, 3 * DIM)),
            "qkv_b": jnp.zeros((3 * DIM,), jnp.float32),
            "proj_w": _normal(bk[1], (DIM, DIM)),
            "proj_b": jnp.zeros((DIM,), jnp.float32),
            "ln2_g": jnp.ones((DIM,), jnp.float32),
            "ln2_b": jnp.zeros((DIM,), jnp.float32),
            "fc1_w": _normal(bk[2], (DIM, MLP_HIDDEN)),
            "fc1_b": jnp.zeros((MLP_HIDDEN,), jnp.float32),
            "fc2_w": _normal(bk[3], (MLP_HIDDEN, DIM)),
            "fc2_b": jnp.zeros((DIM,), jnp.float32),
        })
    return params


def prep_weights(params, block_batch):
    """Pack all weights into 2 resident slabs. Runs ONCE, outside the hot path."""
    scale = HEAD_DIM ** -0.5

    def reorder_qkv(w, b):
        # [Q|K|V] columns -> head-major [q0 k0 v0 | q1 k1 v1 | ...]; fold scale into q.
        w_cols, b_cols = [], []
        for h in range(HEADS):
            qs = slice(h * HEAD_DIM, (h + 1) * HEAD_DIM)
            ks = slice(DIM + h * HEAD_DIM, DIM + (h + 1) * HEAD_DIM)
            vs = slice(2 * DIM + h * HEAD_DIM, 2 * DIM + (h + 1) * HEAD_DIM)
            w_cols += [w[:, qs] * scale, w[:, ks], w[:, vs]]
            b_cols += [b[qs] * scale, b[ks], b[vs]]
        return jnp.concatenate(w_cols, axis=1), jnp.concatenate(b_cols, axis=0)

    # ---- bf16 matmul-weight slab ----
    w_slab = jnp.zeros((WROWS, SLAB_W), jnp.float32)
    w_slab = w_slab.at[0:PATCH_DIM, 0:DIM].set(params["patch_w"])
    w_slab = w_slab.at[HEAD_W0:HEAD_W0 + DIM, 0:NUM_CLASSES].set(params["head_w"])
    for d, blk in enumerate(params["blocks"]):
        qkv_w, _ = reorder_qkv(blk["qkv_w"], blk["qkv_b"])
        base = BLK_W0 + d * BLK_W_ROWS
        w_slab = w_slab.at[base:base + DIM, 0:3 * DIM].set(qkv_w)
        w_slab = w_slab.at[base + DIM:base + 2 * DIM, 0:MLP_HIDDEN].set(blk["fc1_w"])
        w_slab = w_slab.at[base + 2 * DIM:base + 2 * DIM + MLP_HIDDEN, 0:DIM].set(blk["fc2_w"])
    w_slab = w_slab.astype(jnp.bfloat16)

    # ---- f32 bias / LN / proj / pos slab ----
    frows = POS0 + block_batch * T_PAD
    f_slab = jnp.zeros((frows, SLAB_W), jnp.float32)
    f_slab = f_slab.at[0, 0:DIM].set(params["norm_g"])
    f_slab = f_slab.at[1, 0:DIM].set(params["norm_b"])
    f_slab = f_slab.at[2, 0:NUM_CLASSES].set(params["head_b"])
    for d, blk in enumerate(params["blocks"]):
        _, qkv_b = reorder_qkv(blk["qkv_w"], blk["qkv_b"])
        base = BIAS0 + d * BIAS_ROWS
        f_slab = f_slab.at[base + 0, 0:DIM].set(blk["ln1_g"])
        f_slab = f_slab.at[base + 1, 0:DIM].set(blk["ln1_b"])
        f_slab = f_slab.at[base + 2, 0:3 * DIM].set(qkv_b)
        f_slab = f_slab.at[base + 3, 0:DIM].set(blk["proj_b"])
        f_slab = f_slab.at[base + 4, 0:DIM].set(blk["ln2_g"])
        f_slab = f_slab.at[base + 5, 0:DIM].set(blk["ln2_b"])
        f_slab = f_slab.at[base + 6, 0:MLP_HIDDEN].set(blk["fc1_b"])
        f_slab = f_slab.at[base + 7, 0:DIM].set(blk["fc2_b"])
        f_slab = f_slab.at[PROJ0 + d * DIM:PROJ0 + (d + 1) * DIM, 0:DIM].set(blk["proj_w"])
    # pos slab, token order [patches | cls | pad]; fold patch bias / cls token / pos emb.
    pos_img = jnp.zeros((T_PAD, DIM), jnp.float32)
    pos_img = pos_img.at[0:NUM_PATCHES].set(params["pos"][0, 1:] + params["patch_b"][None, :])
    pos_img = pos_img.at[CLS_ROW].set(params["cls"].reshape(DIM) + params["pos"][0, 0])
    f_slab = f_slab.at[POS0:POS0 + block_batch * T_PAD, 0:DIM].set(
        jnp.tile(pos_img, (block_batch, 1)))
    return w_slab, f_slab


# ------------------------------ forward pass ----------------------------------
@functools.partial(jax.jit, static_argnames=("block_batch",))
def model_forward(w_slab, f_slab, x_nchw, *, block_batch=4):
    """Equivalent of Model.forward: logits = base_model(input)."""
    B, C, H, W = x_nchw.shape
    BB = block_batch
    nb = pl.cdiv(B, BB)
    Bp = nb * BB

    # Patchify (pure layout glue); pad tokens 16->24 and batch to a multiple of BB.
    p = x_nchw.reshape(B, C, H // PATCH, PATCH, W // PATCH, PATCH)
    p = p.transpose(0, 2, 4, 1, 3, 5).reshape(B, NUM_PATCHES, PATCH_DIM)
    p = jnp.pad(p, ((0, Bp - B), (0, T_PAD - NUM_PATCHES), (0, 0)))
    p = p.reshape(Bp * T_PAD, PATCH_DIM)

    frows = f_slab.shape[0]
    out = pl.pallas_call(
        _make_kernel(BB),
        out_shape=jax.ShapeDtypeStruct((nb, BB, NUM_CLASSES), jnp.float32),
        grid=(nb,),
        in_specs=[
            pl.BlockSpec((BB * T_PAD, PATCH_DIM), lambda i: (i, 0)),   # per-step patches
            pl.BlockSpec((WROWS, SLAB_W), lambda i: (0, 0)),           # resident bf16 weights
            pl.BlockSpec((frows, SLAB_W), lambda i: (0, 0)),           # resident f32 biases
        ],
        out_specs=pl.BlockSpec((1, BB, NUM_CLASSES), lambda i: (i, 0, 0)),
        compiler_params=pltpu.CompilerParams(dimension_semantics=("parallel",)),
    )(p, w_slab, f_slab)
    return out.reshape(Bp, NUM_CLASSES)[:B]


# TODO(synk): checkpoint loading (Model.load_weights / timm pretrained weights)
#             has no Pallas equivalent; parameters are initialized
#             deterministically in-script instead.

if __name__ == "__main__":
    BB = 4                                   # per-grid-step batch (grid = 2 -> both v7x cores)
    params = init_params(jax.random.PRNGKey(1))
    w_slab, f_slab = prep_weights(params, BB)         # hoisted out of the per-call path
    jax.block_until_ready((w_slab, f_slab))

    x = jax.random.normal(jax.random.PRNGKey(0), (8, IN_CHANS, IMG, IMG),
                          dtype=jnp.float32)
    logits = model_forward(w_slab, f_slab, x, block_batch=BB)
    jax.block_until_ready(logits)

    assert logits.shape == (8, NUM_CLASSES) and logits.dtype == jnp.float32
    assert bool(jnp.all(jnp.isfinite(logits)))
    print("KERNEL_OK")
</pallas_src>

<mosaic_0001>
module attributes {stable_mosaic.version = 11 : i64} {
  func.func @kernel(%arg0: i32, %arg1: memref<96x48xf32, #tpu.memory_space<vmem>>, %arg2: memref<464x128xbf16, #tpu.memory_space<vmem>>, %arg3: memref<184x128xf32, #tpu.memory_space<vmem>>, %arg4: memref<1x4x8xf32, #tpu.memory_space<vmem>>) attributes {dimension_semantics = [#tpu.dimension_semantics<parallel>], iteration_bounds = array<i64: 2>, scalar_prefetch = 0 : i64, scratch_operands = 0 : i64, tpu.core_type = #tpu.core_type<tc>, window_params = [{transform_indices = @transform_0, window_bounds = array<i64: 96, 48>}, {pipeline_mode = #tpu.pipeline_mode<synchronous>, transform_indices = @transform_1, window_bounds = array<i64: 464, 128>}, {pipeline_mode = #tpu.pipeline_mode<synchronous>, transform_indices = @transform_2, window_bounds = array<i64: 184, 128>}, {transform_indices = @transform_3, window_bounds = array<i64: 1, 4, 8>}]} {
    %c0 = arith.constant 0 : index
    %c0_0 = arith.constant 0 : index
    %0 = vector.load %arg2[%c0, %c0_0] : memref<464x128xbf16, #tpu.memory_space<vmem>>, vector<48x32xbf16>
    %c48 = arith.constant 48 : index
    %c0_1 = arith.constant 0 : index
    %1 = vector.load %arg2[%c48, %c0_1] : memref<464x128xbf16, #tpu.memory_space<vmem>>, vector<32x8xbf16>
    %c88 = arith.constant 88 : index
    %c0_2 = arith.constant 0 : index
    %2 = vector.load %arg3[%c88, %c0_2] : memref<184x128xf32, #tpu.memory_space<vmem>>, vector<96x32xf32>
    %c0_3 = arith.constant 0 : index
    %c0_4 = arith.constant 0 : index
    %3 = vector.load %arg1[%c0_3, %c0_4] : memref<96x48xf32, #tpu.memory_space<vmem>>, vector<96x48xf32>
    %4 = arith.truncf %3 : vector<96x48xf32> to vector<96x48xbf16>
    %cst = arith.constant dense<0.000000e+00> : vector<96x32xf32>
    %5 = tpu.matmul %4, %0, %cst {dimension_numbers = #tpu.dot_dimension_numbers<[1], [0], [0], [1], [0, 0, 1, 1], [], []>} : vector<96x48xbf16>, vector<48x32xbf16>, vector<96x32xf32> -> vector<96x32xf32>
    %6 = arith.addf %5, %2 : vector<96x32xf32>
    %7 = tpu.iota {dimensions = array<i32: 1>} : vector<24x24xi32>
    %c17_i32 = arith.constant 17 : i32
    %8 = vector.broadcast %c17_i32 : i32 to vector<24x24xi32>
    %9 = arith.cmpi slt, %7, %8 : vector<24x24xi32>
    %c80 = arith.constant 80 : index
    %c0_5 = arith.constant 0 : index
    %10 = vector.load %arg2[%c80, %c0_5] : memref<464x128xbf16, #tpu.memory_space<vmem>>, vector<32x96xbf16>
    %c112 = arith.constant 112 : index
    %c0_6 = arith.constant 0 : index
    %11 = vector.load %arg2[%c112, %c0_6] : memref<464x128xbf16, #tpu.memory_space<vmem>>, vector<32x128xbf16>
    %c144 = arith.constant 144 : index
    %c0_7 = arith.constant 0 : index
    %12 = vector.load %arg2[%c144, %c0_7] : memref<464x128xbf16, #tpu.memory_space<vmem>>, vector<128x32xbf16>
    %c3 = arith.constant 3 : index
    %c0_8 = arith.constant 0 : index
    %13 = vector.load %arg3[%c3, %c0_8] : memref<184x128xf32, #tpu.memory_space<vmem>>, vector<1x32xf32>
    %c4 = arith.constant 4 : index
    %c0_9 = arith.constant 0 : index
    %14 = vector.load %arg3[%c4, %c0_9] : memref<184x128xf32, #tpu.memory_space<vmem>>, vector<1x32xf32>
    %c5 = arith.constant 5 : index
    %c0_10 = arith.constant 0 : index
    %15 = vector.load %arg3[%c5, %c0_10] : memref<184x128xf32, #tpu.memory_space<vmem>>, vector<1x96xf32>
    %c6 = arith.constant 6 : index
    %c0_11 = arith.constant 0 : index
    %16 = vector.load %arg3[%c6, %c0_11] : memref<184x128xf32, #tpu.memory_space<vmem>>, vector<1x32xf32>
    %c7 = arith.constant 7 : index
    %c0_12 = arith.constant 0 : index
    %17 = vector.load %arg3[%c7, %c0_12] : memref<184x128xf32, #tpu.memory_space<vmem>>, vector<1x32xf32>
    %c8 = arith.constant 8 : index
    %c0_13 = arith.constant 0 : index
    %18 = vector.load %arg3[%c8, %c0_13] : memref<184x128xf32, #tpu.memory_space<vmem>>, vector<1x32xf32>
    %c9 = arith.constant 9 : index
    %c0_14 = arith.constant 0 : index
    %19 = vector.load %arg3[%c9, %c0_14] : memref<184x128xf32, #tpu.memory_space<vmem>>, vector<1x128xf32>
    %c10 = arith.constant 10 : index
    %c0_15 = arith.constant 0 : index
    %20 = vector.load %arg3[%c10, %c0_15] : memref<184x128xf32, #tpu.memory_space<vmem>>, vector<1x32xf32>
    %cst_16 = arith.constant dense<0.000000e+00> : vector<96xf32>
    %21 = vector.multi_reduction <add>, %6, %cst_16 [1] : vector<96x32xf32> to vector<96xf32>
    %22 = vector.shape_cast %21 : vector<96xf32> to vector<96x1xf32>
    %cst_17 = arith.constant 3.200000e+01 : f32
    %23 = vector.broadcast %cst_17 : f32 to vector<96x1xf32>
    %24 = arith.divf %22, %23 : vector<96x1xf32>
    %25 = vector.broadcast %24 : vector<96x1xf32> to vector<96x32xf32>
    %26 = arith.subf %6, %25 : vector<96x32xf32>
    %27 = arith.mulf %26, %26 : vector<96x32xf32>
    %cst_18 = arith.constant dense<0.000000e+00> : vector<96xf32>
    %28 = vector.multi_reduction <add>, %27, %cst_18 [1] : vector<96x32xf32> to vector<96xf32>
    %29 = vector.shape_cast %28 : vector<96xf32> to vector<96x1xf32>
    %cst_19 = arith.constant 3.200000e+01 : f32
    %30 = vector.broadcast %cst_19 : f32 to vector<96x1xf32>
    %31 = arith.divf %29, %30 : vector<96x1xf32>
    %32 = vector.broadcast %24 : vector<96x1xf32> to vector<96x32xf32>
    %33 = arith.subf %6, %32 : vector<96x32xf32>
    %cst_20 = arith.constant 9.99999997E-7 : f32
    %34 = vector.broadcast %cst_20 : f32 to vector<96x1xf32>
    %35 = arith.addf %31, %34 : vector<96x1xf32>
    %36 = math.rsqrt %35 : vector<96x1xf32>
    %37 = vector.broadcast %36 : vector<96x1xf32> to vector<96x32xf32>
    %38 = arith.mulf %33, %37 : vector<96x32xf32>
    %39 = vector.broadcast %13 : vector<1x32xf32> to vector<96x32xf32>
    %40 = arith.mulf %38, %39 : vector<96x32xf32>
    %41 = vector.broadcast %14 : vector<1x32xf32> to vector<96x32xf32>
    %42 = arith.addf %40, %41 : vector<96x32xf32>
    %43 = arith.truncf %42 : vector<96x32xf32> to vector<96x32xbf16>
    %cst_21 = arith.constant dense<0.000000e+00> : vector<96x96xf32>
    %44 = tpu.matmul %43, %10, %cst_21 {dimension_numbers = #tpu.dot_dimension_numbers<[1], [0], [0], [1], [0, 0, 1, 1], [], []>} : vector<96x32xbf16>, vector<32x96xbf16>, vector<96x96xf32> -> vector<96x96xf32>
    %45 = vector.broadcast %15 : vector<1x96xf32> to vector<96x96xf32>
    %46 = arith.addf %44, %45 : vector<96x96xf32>
    %47 = vector.extract_strided_slice %46 {offsets = [0, 0], sizes = [24, 96], strides = [1, 1]} : vector<96x96xf32> to vector<24x96xf32>
    %48 = vector.extract_strided_slice %47 {offsets = [0, 0], sizes = [24, 8], strides = [1, 1]} : vector<24x96xf32> to vector<24x8xf32>
    %49 = vector.extract_strided_slice %47 {offsets = [0, 8], sizes = [24, 8], strides = [1, 1]} : vector<24x96xf32> to vector<24x8xf32>
    %50 = vector.extract_strided_slice %47 {offsets = [0, 16], sizes = [24, 8], strides = [1, 1]} : vector<24x96xf32> to vector<24x8xf32>
    %51 = arith.truncf %48 : vector<24x8xf32> to vector<24x8xbf16>
    %52 = arith.truncf %49 : vector<24x8xf32> to vector<24x8xbf16>
    %cst_22 = arith.constant dense<0.000000e+00> : vector<24x24xf32>
    %53 = tpu.matmul %51, %52, %cst_22 {dimension_numbers = #tpu.dot_dimension_numbers<[1], [1], [0], [0], [0, 0, 1, 0], [], []>} : vector<24x8xbf16>, vector<24x8xbf16>, vector<24x24xf32> -> vector<24x24xf32>
    %cst_23 = arith.constant -1.000000e+30 : f32
    %54 = vector.broadcast %cst_23 : f32 to vector<24x24xf32>
    %55 = arith.select %9, %53, %54 : vector<24x24xi1>, vector<24x24xf32>
    %cst_24 = arith.constant dense<0xFF800000> : vector<24xf32>
    %56 = vector.multi_reduction <maximumf>, %55, %cst_24 [1] : vector<24x24xf32> to vector<24xf32>
    %57 = vector.shape_cast %56 : vector<24xf32> to vector<24x1xf32>
    %58 = vector.broadcast %57 : vector<24x1xf32> to vector<24x24xf32>
    %59 = arith.subf %55, %58 : vector<24x24xf32>
    %60 = math.exp %59 : vector<24x24xf32>
    %cst_25 = arith.constant dense<0.000000e+00> : vector<24xf32>
    %61 = vector.multi_reduction <add>, %60, %cst_25 [1] : vector<24x24xf32> to vector<24xf32>
    %62 = vector.shape_cast %61 : vector<24xf32> to vector<24x1xf32>
    %63 = tpu.reciprocal %62 {approx = true} : vector<24x1xf32> -> vector<24x1xf32>
    %64 = vector.broadcast %63 : vector<24x1xf32> to vector<24x24xf32>
    %65 = arith.mulf %60, %64 : vector<24x24xf32>
    %66 = arith.truncf %65 : vector<24x24xf32> to vector<24x24xbf16>
    %67 = arith.truncf %50 : vector<24x8xf32> to vector<24x8xbf16>
    %cst_26 = arith.constant dense<0.000000e+00> : vector<24x8xf32>
    %68 = tpu.matmul %66, %67, %cst_26 {dimension_numbers = #tpu.dot_dimension_numbers<[1], [0], [0], [1], [0, 0, 1, 1], [], []>} : vector<24x24xbf16>, vector<24x8xbf16>, vector<24x8xf32> -> vector<24x8xf32>
    %c24 = arith.constant 24 : index
    %c0_27 = arith.constant 0 : index
    %69 = vector.load %arg3[%c24, %c0_27] : memref<184x128xf32, #tpu.memory_space<vmem>>, vector<8x32xf32>
    %cst_28 = arith.constant dense<0.000000e+00> : vector<24x32xf32>
    %70 = tpu.matmul %68, %69, %cst_28 {dimension_numbers = #tpu.dot_dimension_numbers<[1], [0], [0], [1], [0, 0, 1, 1], [], []>} : vector<24x8xf32>, vector<8x32xf32>, vector<24x32xf32> -> vector<24x32xf32>
    %71 = vector.extract_strided_slice %47 {offsets = [0, 24], sizes = [24, 8], strides = [1, 1]} : vector<24x96xf32> to vector<24x8xf32>
    %72 = vector.extract_strided_slice %47 {offsets = [0, 32], sizes = [24, 8], strides = [1, 1]} : vector<24x96xf32> to vector<24x8xf32>
    %73 = vector.extract_strided_slice %47 {offsets = [0, 40], sizes = [24, 8], strides = [1, 1]} : vector<24x96xf32> to vector<24x8xf32>
    %74 = arith.truncf %71 : vector<24x8xf32> to vector<24x8xbf16>
    %75 = arith.truncf %72 : vector<24x8xf32> to vector<24x8xbf16>
    %cst_29 = arith.constant dense<0.000000e+00> : vector<24x24xf32>
    %76 = tpu.matmul %74, %75, %cst_29 {dimension_numbers = #tpu.dot_dimension_numbers<[1], [1], [0], [0], [0, 0, 1, 0], [], []>} : vector<24x8xbf16>, vector<24x8xbf16>, vector<24x24xf32> -> vector<24x24xf32>
    %cst_30 = arith.constant -1.000000e+30 : f32
    %77 = vector.broadcast %cst_30 : f32 to vector<24x24xf32>
    %78 = arith.select %9, %76, %77 : vector<24x24xi1>, vector<24x24xf32>
    %cst_31 = arith.constant dense<0xFF800000> : vector<24xf32>
    %79 = vector.multi_reduction <maximumf>, %78, %cst_31 [1] : vector<24x24xf32> to vector<24xf32>
    %80 = vector.shape_cast %79 : vector<24xf32> to vector<24x1xf32>
    %81 = vector.broadcast %80 : vector<24x1xf32> to vector<24x24xf32>
    %82 = arith.subf %78, %81 : vector<24x24xf32>
    %83 = math.exp %82 : vector<24x24xf32>
    %cst_32 = arith.constant dense<0.000000e+00> : vector<24xf32>
    %84 = vector.multi_reduction <add>, %83, %cst_32 [1] : vector<24x24xf32> to vector<24xf32>
    %85 = vector.shape_cast %84 : vector<24xf32> to vector<24x1xf32>
    %86 = tpu.reciprocal %85 {approx = true} : vector<24x1xf32> -> vector<24x1xf32>
    %87 = vector.broadcast %86 : vector<24x1xf32> to vector<24x24xf32>
    %88 = arith.mulf %83, %87 : vector<24x24xf32>
    %89 = arith.truncf %88 : vector<24x24xf32> to vector<24x24xbf16>
    %90 = arith.truncf %73 : vector<24x8xf32> to vector<24x8xbf16>
    %cst_33 = arith.constant dense<0.000000e+00> : vector<24x8xf32>
    %91 = tpu.matmul %89, %90, %cst_33 {dimension_numbers = #tpu.dot_dimension_numbers<[1], [0], [0], [1], [0, 0, 1, 1], [], []>} : vector<24x24xbf16>, vector<24x8xbf16>, vector<24x8xf32> -> vector<24x8xf32>
    %c32 = arith.constant 32 : index
    %c0_34 = arith.constant 0 : index
    %92 = vector.load %arg3[%c32, %c0_34] : memref<184x128xf32, #tpu.memory_space<vmem>>, vector<8x32xf32>
    %cst_35 = arith.constant dense<0.000000e+00> : vector<24x32xf32>
    %93 = tpu.matmul %91, %92, %cst_35 {dimension_numbers = #tpu.dot_dimension_numbers<[1], [0], [0], [1], [0, 0, 1, 1], [], []>} : vector<24x8xf32>, vector<8x32xf32>, vector<24x32xf32> -> vector<24x32xf32>
    %94 = arith.addf %70, %93 : vector<24x32xf32>
    %95 = vector.extract_strided_slice %47 {offsets = [0, 48], sizes = [24, 8], strides = [1, 1]} : vector<24x96xf32> to vector<24x8xf32>
    %96 = vector.extract_strided_slice %47 {offsets = [0, 56], sizes = [24, 8], strides = [1, 1]} : vector<24x96xf32> to vector<24x8xf32>
    %97 = vector.extract_strided_slice %47 {offsets = [0, 64], sizes = [24, 8], strides = [1, 1]} : vector<24x96xf32> to vector<24x8xf32>
    %98 = arith.truncf %95 : vector<24x8xf32> to vector<24x8xbf16>
    %99 = arith.truncf %96 : vector<24x8xf32> to vector<24x8xbf16>
    %cst_36 = arith.constant dense<0.000000e+00> : vector<24x24xf32>
    %100 = tpu.matmul %98, %99, %cst_36 {dimension_numbers = #tpu.dot_dimension_numbers<[1], [1], [0], [0], [0, 0, 1, 0], [], []>} : vector<24x8xbf16>, vector<24x8xbf16>, vector<24x24xf32> -> vector<24x24xf32>
    %cst_37 = arith.constant -1.000000e+30 : f32
    %101 = vector.broadcast %cst_37 : f32 to vector<24x24xf32>
    %102 = arith.select %9, %100, %101 : vector<24x24xi1>, vector<24x24xf32>
    %cst_38 = arith.constant dense<0xFF800000> : vector<24xf32>
    %103 = vector.multi_reduction <maximumf>, %102, %cst_38 [1] : vector<24x24xf32> to vector<24xf32>
    %104 = vector.shape_cast %103 : vector<24xf32> to vector<24x1xf32>
    %105 = vector.broadcast %104 : vector<24x1xf32> to vector<24x24xf32>
    %106 = arith.subf %102, %105 : vector<24x24xf32>
    %107 = math.exp %106 : vector<24x24xf32>
    %cst_39 = arith.constant dense<0.000000e+00> : vector<24xf32>
    %108 = vector.multi_reduction <add>, %107, %cst_39 [1] : vector<24x24xf32> to vector<24xf32>
    %109 = vector.shape_cast %108 : vector<24xf32> to vector<24x1xf32>
    %110 = tpu.reciprocal %109 {approx = true} : vector<24x1xf32> -> vector<24x1xf32>
    %111 = vector.broadcast %110 : vector<24x1xf32> to vector<24x24xf32>
    %112 = arith.mulf %107, %111 : vector<24x24xf32>
    %113 = arith.truncf %112 : vector<24x24xf32> to vector<24x24xbf16>
    %114 = arith.truncf %97 : vector<24x8xf32> to vector<24x8xbf16>
    %cst_40 = arith.constant dense<0.000000e+00> : vector<24x8xf32>
    %115 = tpu.matmul %113, %114, %cst_40 {dimension_numbers = #tpu.dot_dimension_numbers<[1], [0], [0], [1], [0, 0, 1, 1], [], []>} : vector<24x24xbf16>, vector<24x8xbf16>, vector<24x8xf32> -> vector<24x8xf32>
    %c40 = arith.constant 40 : index
    %c0_41 = arith.constant 0 : index
    %116 = vector.load %arg3[%c40, %c0_41] : memref<184x128xf32, #tpu.memory_space<vmem>>, vector<8x32xf32>
    %cst_42 = arith.constant dense<0.000000e+00> : vector<24x32xf32>
    %117 = tpu.matmul %115, %116, %cst_42 {dimension_numbers = #tpu.dot_dimension_numbers<[1], [0], [0], [1], [0, 0, 1, 1], [], []>} : vector<24x8xf32>, vector<8x32xf32>, vector<24x32xf32> -> vector<24x32xf32>
    %118 = arith.addf %94, %117 : vector<24x32xf32>
    %119 = vector.extract_strided_slice %47 {offsets = [0, 72], sizes = [24, 8], strides = [1, 1]} : vector<24x96xf32> to vector<24x8xf32>
    %120 = vector.extract_strided_slice %47 {offsets = [0, 80], sizes = [24, 8], strides = [1, 1]} : vector<24x96xf32> to vector<24x8xf32>
    %121 = vector.extract_strided_slice %47 {offsets = [0, 88], sizes = [24, 8], strides = [1, 1]} : vector<24x96xf32> to vector<24x8xf32>
    %122 = arith.truncf %119 : vector<24x8xf32> to vector<24x8xbf16>
    %123 = arith.truncf %120 : vector<24x8xf32> to vector<24x8xbf16>
    %cst_43 = arith.constant dense<0.000000e+00> : vector<24x24xf32>
    %124 = tpu.matmul %122, %123, %cst_43 {dimension_numbers = #tpu.dot_dimension_numbers<[1], [1], [0], [0], [0, 0, 1, 0], [], []>} : vector<24x8xbf16>, vector<24x8xbf16>, vector<24x24xf32> -> vector<24x24xf32>
    %cst_44 = arith.constant -1.000000e+30 : f32
    %125 = vector.broadcast %cst_44 : f32 to vector<24x24xf32>
    %126 = arith.select %9, %124, %125 : vector<24x24xi1>, vector<24x24xf32>
    %cst_45 = arith.constant dense<0xFF800000> : vector<24xf32>
    %127 = vector.multi_reduction <maximumf>, %126, %cst_45 [1] : vector<24x24xf32> to vector<24xf32>
    %128 = vector.shape_cast %127 : vector<24xf32> to vector<24x1xf32>
    %129 = vector.broadcast %128 : vector<24x1xf32> to vector<24x24xf32>
    %130 = arith.subf %126, %129 : vector<24x24xf32>
    %131 = math.exp %130 : vector<24x24xf32>
    %cst_46 = arith.constant dense<0.000000e+00> : vector<24xf32>
    %132 = vector.multi_reduction <add>, %131, %cst_46 [1] : vector<24x24xf32> to vector<24xf32>
    %133 = vector.shape_cast %132 : vector<24xf32> to vector<24x1xf32>
    %134 = tpu.reciprocal %133 {approx = true} : vector<24x1xf32> -> vector<24x1xf32>
    %135 = vector.broadcast %134 : vector<24x1xf32> to vector<24x24xf32>
    %136 = arith.mulf %131, %135 : vector<24x24xf32>
    %137 = arith.truncf %136 : vector<24x24xf32> to vector<24x24xbf16>
    %138 = arith.truncf %121 : vector<24x8xf32> to vector<24x8xbf16>
    %cst_47 = arith.constant dense<0.000000e+00> : vector<24x8xf32>
    %139 = tpu.matmul %137, %138, %cst_47 {dimension_numbers = #tpu.dot_dimension_numbers<[1], [0], [0], [1], [0, 0, 1, 1], [], []>} : vector<24x24xbf16>, vector<24x8xbf16>, vector<24x8xf32> -> vector<24x8xf32>
    %c48_48 = arith.constant 48 : index
    %c0_49 = arith.constant 0 : index
    %140 = vector.load %arg3[%c48_48, %c0_49] : memref<184x128xf32, #tpu.memory_space<vmem>>, vector<8x32xf32>
    %cst_50 = arith.constant dense<0.000000e+00> : vector<24x32xf32>
    %141 = tpu.matmul %139, %140, %cst_50 {dimension_numbers = #tpu.dot_dimension_numbers<[1], [0], [0], [1], [0, 0, 1, 1], [], []>} : vector<24x8xf32>, vector<8x32xf32>, vector<24x32xf32> -> vector<24x32xf32>
    %142 = arith.addf %118, %141 : vector<24x32xf32>
    %143 = vector.extract_strided_slice %46 {offsets = [24, 0], sizes = [24, 96], strides = [1, 1]} : vector<96x96xf32> to vector<24x96xf32>
    %144 = vector.extract_strided_slice %143 {offsets = [0, 0], sizes = [24, 8], strides = [1, 1]} : vector<24x96xf32> to vector<24x8xf32>
    %145 = vector.extract_strided_slice %143 {offsets = [0, 8], sizes = [24, 8], strides = [1, 1]} : vector<24x96xf32> to vector<24x8xf32>
    %146 = vector.extract_strided_slice %143 {offsets = [0, 16], sizes = [24, 8], strides = [1, 1]} : vector<24x96xf32> to vector<24x8xf32>
    %147 = arith.truncf %144 : vector<24x8xf32> to vector<24x8xbf16>
    %148 = arith.truncf %145 : vector<24x8xf32> to vector<24x8xbf16>
    %cst_51 = arith.constant dense<0.000000e+00> : vector<24x24xf32>
    %149 = tpu.matmul %147, %148, %cst_51 {dimension_numbers = #tpu.dot_dimension_numbers<[1], [1], [0], [0], [0, 0, 1, 0], [], []>} : vector<24x8xbf16>, vector<24x8xbf16>, vector<24x24xf32> -> vector<24x24xf32>
    %cst_52 = arith.constant -1.000000e+30 : f32
    %150 = vector.broadcast %cst_52 : f32 to vector<24x24xf32>
    %151 = arith.select %9, %149, %150 : vector<24x24xi1>, vector<24x24xf32>
    %cst_53 = arith.constant dense<0xFF800000> : vector<24xf32>
    %152 = vector.multi_reduction <maximumf>, %151, %cst_53 [1] : vector<24x24xf32> to vector<24xf32>
    %153 = vector.shape_cast %152 : vector<24xf32> to vector<24x1xf32>
    %154 = vector.broadcast %153 : vector<24x1xf32> to vector<24x24xf32>
    %155 = arith.subf %151, %154 : vector<24x24xf32>
    %156 = math.exp %155 : vector<24x24xf32>
    %cst_54 = arith.constant dense<0.000000e+00> : vector<24xf32>
    %157 = vector.multi_reduction <add>, %156, %cst_54 [1] : vector<24x24xf32> to vector<24xf32>
    %158 = vector.shape_cast %157 : vector<24xf32> to vector<24x1xf32>
    %159 = tpu.reciprocal %158 {approx = true} : vector<24x1xf32> -> vector<24x1xf32>
    %160 = vector.broadcast %159 : vector<24x1xf32> to vector<24x24xf32>
    %161 = arith.mulf %156, %160 : vector<24x24xf32>
    %162 = arith.truncf %161 : vector<24x24xf32> to vector<24x24xbf16>
    %163 = arith.truncf %146 : vector<24x8xf32> to vector<24x8xbf16>
    %cst_55 = arith.constant dense<0.000000e+00> : vector<24x8xf32>
    %164 = tpu.matmul %162, %163, %cst_55 {dimension_numbers = #tpu.dot_dimension_numbers<[1], [0], [0], [1], [0, 0, 1, 1], [], []>} : vector<24x24xbf16>, vector<24x8xbf16>, vector<24x8xf32> -> vector<24x8xf32>
    %c24_56 = arith.constant 24 : index
    %c0_57 = arith.constant 0 : index
    %165 = vector.load %arg3[%c24_56, %c0_57] : memref<184x128xf32, #tpu.memory_space<vmem>>, vector<8x32xf32>
    %cst_58 = arith.constant dense<0.000000e+00> : vector<24x32xf32>
    %166 = tpu.matmul %164, %165, %cst_58 {dimension_numbers = #tpu.dot_dimension_numbers<[1], [0], [0], [1], [0, 0, 1, 1], [], []>} : vector<24x8xf32>, vector<8x32xf32>, vector<24x32xf32> -> vector<24x32xf32>
    %167 = vector.extract_strided_slice %143 {offsets = [0, 24], sizes = [24, 8], strides = [1, 1]} : vector<24x96xf32> to vector<24x8xf32>
    %168 = vector.extract_strided_slice %143 {offsets = [0, 32], sizes = [24, 8], strides = [1, 1]} : vector<24x96xf32> to vector<24x8xf32>
    %169 = vector.extract_strided_slice %143 {offsets = [0, 40], sizes = [24, 8], strides = [1, 1]} : vector<24x96xf32> to vector<24x8xf32>
    %170 = arith.truncf %167 : vector<24x8xf32> to vector<24x8xbf16>
    %171 = arith.truncf %168 : vector<24x8xf32> to vector<24x8xbf16>
    %cst_59 = arith.constant dense<0.000000e+00> : vector<24x24xf32>
    %172 = tpu.matmul %170, %171, %cst_59 {dimension_numbers = #tpu.dot_dimension_numbers<[1], [1], [0], [0], [0, 0, 1, 0], [], []>} : vector<24x8xbf16>, vector<24x8xbf16>, vector<24x24xf32> -> vector<24x24xf32>
    %cst_60 = arith.constant -1.000000e+30 : f32
    %173 = vector.broadcast %cst_60 : f32 to vector<24x24xf32>
    %174 = arith.select %9, %172, %173 : vector<24x24xi1>, vector<24x24xf32>
    %cst_61 = arith.constant dense<0xFF800000> : vector<24xf32>
    %175 = vector.multi_reduction <maximumf>, %174, %cst_61 [1] : vector<24x24xf32> to vector<24xf32>
    %176 = vector.shape_cast %175 : vector<24xf32> to vector<24x1xf32>
    %177 = vector.broadcast %176 : vector<24x1xf32> to vector<24x24xf32>
    %178 = arith.subf %174, %177 : vector<24x24xf32>
    %179 = math.exp %178 : vector<24x24xf32>
    %cst_62 = arith.constant dense<0.000000e+00> : vector<24xf32>
    %180 = vector.multi_reduction <add>, %179, %cst_62 [1] : vector<24x24xf32> to vector<24xf32>
    %181 = vector.shape_cast %180 : vector<24xf32> to vector<24x1xf32>
    %182 = tpu.reciprocal %181 {approx = true} : vector<24x1xf32> -> vector<24x1xf32>
    %183 = vector.broadcast %182 : vector<24x1xf32> to vector<24x24xf32>
    %184 = arith.mulf %179, %183 : vector<24x24xf32>
    %185 = arith.truncf %184 : vector<24x24xf32> to vector<24x24xbf16>
    %186 = arith.truncf %169 : vector<24x8xf32> to vector<24x8xbf16>
    %cst_63 = arith.constant dense<0.000000e+00> : vector<24x8xf32>
    %187 = tpu.matmul %185, %186, %cst_63 {dimension_numbers = #tpu.dot_dimension_numbers<[1], [0], [0], [1], [0, 0, 1, 1], [], []>} : vector<24x24xbf16>, vector<24x8xbf16>, vector<24x8xf32> -> vector<24x8xf32>
    %c32_64 = arith.constant 32 : index
    %c0_65 = arith.constant 0 : index
    %188 = vector.load %arg3[%c32_64, %c0_65] : memref<184x128xf32, #tpu.memory_space<vmem>>, vector<8x32xf32>
    %cst_66 = arith.constant dense<0.000000e+00> : vector<24x32xf32>
    %189 = tpu.matmul %187, %188, %cst_66 {dimension_numbers = #tpu.dot_dimension_numbers<[1], [0], [0], [1], [0, 0, 1, 1], [], []>} : vector<24x8xf32>, vector<8x32xf32>, vector<24x32xf32> -> vector<24x32xf32>
    %190 = arith.addf %166, %189 : vector<24x32xf32>
    %191 = vector.extract_strided_slice %143 {offsets = [0, 48], sizes = [24, 8], strides = [1, 1]} : vector<24x96xf32> to vector<24x8xf32>
    %192 = vector.extract_strided_slice %143 {offsets = [0, 56], sizes = [24, 8], strides = [1, 1]} : vector<24x96xf32> to vector<24x8xf32>
    %193 = vector.extract_strided_slice %143 {offsets = [0, 64], sizes = [24, 8], strides = [1, 1]} : vector<24x96xf32> to vector<24x8xf32>
    %194 = arith.truncf %191 : vector<24x8xf32> to vector<24x8xbf16>
    %195 = arith.truncf %192 : vector<24x8xf32> to vector<24x8xbf16>
    %cst_67 = arith.constant dense<0.000000e+00> : vector<24x24xf32>
    %196 = tpu.matmul %194, %195, %cst_67 {dimension_numbers = #tpu.dot_dimension_numbers<[1], [1], [0], [0], [0, 0, 1, 0], [], []>} : vector<24x8xbf16>, vector<24x8xbf16>, vector<24x24xf32> -> vector<24x24xf32>
    %cst_68 = arith.constant -1.000000e+30 : f32
    %197 = vector.broadcast %cst_68 : f32 to vector<24x24xf32>
    %198 = arith.select %9, %196, %197 : vector<24x24xi1>, vector<24x24xf32>
    %cst_69 = arith.constant dense<0xFF800000> : vector<24xf32>
    %199 = vector.multi_reduction <maximumf>, %198, %cst_69 [1] : vector<24x24xf32> to vector<24xf32>
    %200 = vector.shape_cast %199 : vector<24xf32> to vector<24x1xf32>
    %201 = vector.broadcast %200 : vector<24x1xf32> to vector<24x24xf32>
    %202 = arith.subf %198, %201 : vector<24x24xf32>
    %203 = math.exp %202 : vector<24x24xf32>
    %cst_70 = arith.constant dense<0.000000e+00> : vector<24xf32>
    %204 = vector.multi_reduction <add>, %203, %cst_70 [1] : vector<24x24xf32> to vector<24xf32>
    %205 = vector.shape_cast %204 : vector<24xf32> to vector<24x1xf32>
    %206 = tpu.reciprocal %205 {approx = true} : vector<24x1xf32> -> vector<24x1xf32>
    %207 = vector.broadcast %206 : vector<24x1xf32> to vector<24x24xf32>
    %208 = arith.mulf %203, %207 : vector<24x24xf32>
    %209 = arith.truncf %208 : vector<24x24xf32> to vector<24x24xbf16>
    %210 = arith.truncf %193 : vector<24x8xf32> to vector<24x8xbf16>
    %cst_71 = arith.constant dense<0.000000e+00> : vector<24x8xf32>
    %211 = tpu.matmul %209, %210, %cst_71 {dimension_numbers = #tpu.dot_dimension_numbers<[1], [0], [0], [1], [0, 0, 1, 1], [], []>} : vector<24x24xbf16>, vector<24x8xbf16>, vector<24x8xf32> -> vector<24x8xf32>
    %c40_72 = arith.constant 40 : index
    %c0_73 = arith.constant 0 : index
    %212 = vector.load %arg3[%c40_72, %c0_73] : memref<184x128xf32, #tpu.memory_space<vmem>>, vector<8x32xf32>
    %cst_74 = arith.constant dense<0.000000e+00> : vector<24x32xf32>
    %213 = tpu.matmul %211, %212, %cst_74 {dimension_numbers = #tpu.dot_dimension_numbers<[1], [0], [0], [1], [0, 0, 1, 1], [], []>} : vector<24x8xf32>, vector<8x32xf32>, vector<24x32xf32> -> vector<24x32xf32>
    %214 = arith.addf %190, %213 : vector<24x32xf32>
    %215 = vector.extract_strided_slice %143 {offsets = [0, 72], sizes = [24, 8], strides = [1, 1]} : vector<24x96xf32> to vector<24x8xf32>
    %216 = vector.extract_strided_slice %143 {offsets = [0, 80], sizes = [24, 8], strides = [1, 1]} : vector<24x96xf32> to vector<24x8xf32>
    %217 = vector.extract_strided_slice %143 {offsets = [0, 88], sizes = [24, 8], strides = [1, 1]} : vector<24x96xf32> to vector<24x8xf32>
    %218 = arith.truncf %215 : vector<24x8xf32> to vector<24x8xbf16>
    %219 = arith.truncf %216 : vector<24x8xf32> to vector<24x8xbf16>
    %cst_75 = arith.constant dense<0.000000e+00> : vector<24x24xf32>
    %220 = tpu.matmul %218, %219, %cst_75 {dimension_numbers = #tpu.dot_dimension_numbers<[1], [1], [0], [0], [0, 0, 1, 0], [], []>} : vector<24x8xbf16>, vector<24x8xbf16>, vector<24x24xf32> -> vector<24x24xf32>
    %cst_76 = arith.constant -1.000000e+30 : f32
    %221 = vector.broadcast %cst_76 : f32 to vector<24x24xf32>
    %222 = arith.select %9, %220, %221 : vector<24x24xi1>, vector<24x24xf32>
    %cst_77 = arith.constant dense<0xFF800000> : vector<24xf32>
    %223 = vector.multi_reduction <maximumf>, %222, %cst_77 [1] : vector<24x24xf32> to vector<24xf32>
    %224 = vector.shape_cast %223 : vector<24xf32> to vector<24x1xf32>
    %225 = vector.broadcast %224 : vector<24x1xf32> to vector<24x24xf32>
    %226 = arith.subf %222, %225 : vector<24x24xf32>
    %227 = math.exp %226 : vector<24x24xf32>
    %cst_78 = arith.constant dense<0.000000e+00> : vector<24xf32>
    %228 = vector.multi_reduction <add>, %227, %cst_78 [1] : vector<24x24xf32> to vector<24xf32>
    %229 = vector.shape_cast %228 : vector<24xf32> to vector<24x1xf32>
    %230 = tpu.reciprocal %229 {approx = true} : vector<24x1xf32> -> vector<24x1xf32>
    %231 = vector.broadcast %230 : vector<24x1xf32> to vector<24x24xf32>
    %232 = arith.mulf %227, %231 : vector<24x24xf32>
    %233 = arith.truncf %232 : vector<24x24xf32> to vector<24x24xbf16>
    %234 = arith.truncf %217 : vector<24x8xf32> to vector<24x8xbf16>
    %cst_79 = arith.constant dense<0.000000e+00> : vector<24x8xf32>
    %235 = tpu.matmul %233, %234, %cst_79 {dimension_numbers = #tpu.dot_dimension_numbers<[1], [0], [0], [1], [0, 0, 1, 1], [], []>} : vector<24x24xbf16>, vector<24x8xbf16>, vector<24x8xf32> -> vector<24x8xf32>
    %c48_80 = arith.constant 48 : index
    %c0_81 = arith.constant 0 : index
    %236 = vector.load %arg3[%c48_80, %c0_81] : memref<184x128xf32, #tpu.memory_space<vmem>>, vector<8x32xf32>
    %cst_82 = arith.constant dense<0.000000e+00> : vector<24x32xf32>
    %237 = tpu.matmul %235, %236, %cst_82 {dimension_numbers = #tpu.dot_dimension_numbers<[1], [0], [0], [1], [0, 0, 1, 1], [], []>} : vector<24x8xf32>, vector<8x32xf32>, vector<24x32xf32> -> vector<24x32xf32>
    %238 = arith.addf %214, %237 : vector<24x32xf32>
    %239 = vector.extract_strided_slice %46 {offsets = [48, 0], sizes = [24, 96], strides = [1, 1]} : vector<96x96xf32> to vector<24x96xf32>
    %240 = vector.extract_strided_slice %239 {offsets = [0, 0], sizes = [24, 8], strides = [1, 1]} : vector<24x96xf32> to vector<24x8xf32>
    %241 = vector.extract_strided_slice %239 {offsets = [0, 8], sizes = [24, 8], strides = [1, 1]} : vector<24x96xf32> to vector<24x8xf32>
    %242 = vector.extract_strided_slice %239 {offsets = [0, 16], sizes = [24, 8], strides = [1, 1]} : vector<24x96xf32> to vector<24x8xf32>
    %243 = arith.truncf %240 : vector<24x8xf32> to vector<24x8xbf16>
    %244 = arith.truncf %241 : vector<24x8xf32> to vector<24x8xbf16>
    %cst_83 = arith.constant dense<0.000000e+00> : vector<24x24xf32>
    %245 = tpu.matmul %243, %244, %cst_83 {dimension_numbers = #tpu.dot_dimension_numbers<[1], [1], [0], [0], [0, 0, 1, 0], [], []>} : vector<24x8xbf16>, vector<24x8xbf16>, vector<24x24xf32> -> vector<24x24xf32>
    %cst_84 = arith.constant -1.000000e+30 : f32
    %246 = vector.broadcast %cst_84 : f32 to vector<24x24xf32>
    %247 = arith.select %9, %245, %246 : vector<24x24xi1>, vector<24x24xf32>
    %cst_85 = arith.constant dense<0xFF800000> : vector<24xf32>
    %248 = vector.multi_reduction <maximumf>, %247, %cst_85 [1] : vector<24x24xf32> to vector<24xf32>
    %249 = vector.shape_cast %248 : vector<24xf32> to vector<24x1xf32>
    %250 = vector.broadcast %249 : vector<24x1xf32> to vector<24x24xf32>
    %251 = arith.subf %247, %250 : vector<24x24xf32>
    %252 = math.exp %251 : vector<24x24xf32>
    %cst_86 = arith.constant dense<0.000000e+00> : vector<24xf32>
    %253 = vector.multi_reduction <add>, %252, %cst_86 [1] : vector<24x24xf32> to vector<24xf32>
    %254 = vector.shape_cast %253 : vector<24xf32> to vector<24x1xf32>
    %255 = tpu.reciprocal %254 {approx = true} : vector<24x1xf32> -> vector<24x1xf32>
    %256 = vector.broadcast %255 : vector<24x1xf32> to vector<24x24xf32>
    %257 = arith.mulf %252, %256 : vector<24x24xf32>
    %258 = arith.truncf %257 : vector<24x24xf32> to vector<24x24xbf16>
    %259 = arith.truncf %242 : vector<24x8xf32> to vector<24x8xbf16>
    %cst_87 = arith.constant dense<0.000000e+00> : vector<24x8xf32>
    %260 = tpu.matmul %258, %259, %cst_87 {dimension_numbers = #tpu.dot_dimension_numbers<[1], [0], [0], [1], [0, 0, 1, 1], [], []>} : vector<24x24xbf16>, vector<24x8xbf16>, vector<24x8xf32> -> vector<24x8xf32>
    %c24_88 = arith.constant 24 : index
    %c0_89 = arith.constant 0 : index
    %261 = vector.load %arg3[%c24_88, %c0_89] : memref<184x128xf32, #tpu.memory_space<vmem>>, vector<8x32xf32>
    %cst_90 = arith.constant dense<0.000000e+00> : vector<24x32xf32>
    %262 = tpu.matmul %260, %261, %cst_90 {dimension_numbers = #tpu.dot_dimension_numbers<[1], [0], [0], [1], [0, 0, 1, 1], [], []>} : vector<24x8xf32>, vector<8x32xf32>, vector<24x32xf32> -> vector<24x32xf32>
    %263 = vector.extract_strided_slice %239 {offsets = [0, 24], sizes = [24, 8], strides = [1, 1]} : vector<24x96xf32> to vector<24x8xf32>
    %264 = vector.extract_strided_slice %239 {offsets = [0, 32], sizes = [24, 8], strides = [1, 1]} : vector<24x96xf32> to vector<24x8xf32>
    %265 = vector.extract_strided_slice %239 {offsets = [0, 40], sizes = [24, 8], strides = [1, 1]} : vector<24x96xf32> to vector<24x8xf32>
    %266 = arith.truncf %263 : vector<24x8xf32> to vector<24x8xbf16>
    %267 = arith.truncf %264 : vector<24x8xf32> to vector<24x8xbf16>
    %cst_91 = arith.constant dense<0.000000e+00> : vector<24x24xf32>
    %268 = tpu.matmul %266, %267, %cst_91 {dimension_numbers = #tpu.dot_dimension_numbers<[1], [1], [0], [0], [0, 0, 1, 0], [], []>} : vector<24x8xbf16>, vector<24x8xbf16>, vector<24x24xf32> -> vector<24x24xf32>
    %cst_92 = arith.constant -1.000000e+30 : f32
    %269 = vector.broadcast %cst_92 : f32 to vector<24x24xf32>
    %270 = arith.select %9, %268, %269 : vector<24x24xi1>, vector<24x24xf32>
    %cst_93 = arith.constant dense<0xFF800000> : vector<24xf32>
    %271 = vector.multi_reduction <maximumf>, %270, %cst_93 [1] : vector<24x24xf32> to vector<24xf32>
    %272 = vector.shape_cast %271 : vector<24xf32> to vector<24x1xf32>
    %273 = vector.broadcast %272 : vector<24x1xf32> to vector<24x24xf32>
    %274 = arith.subf %270, %273 : vector<24x24xf32>
    %275 = math.exp %274 : vector<24x24xf32>
    %cst_94 = arith.constant dense<0.000000e+00> : vector<24xf32>
    %276 = vector.multi_reduction <add>, %275, %cst_94 [1] : vector<24x24xf32> to vector<24xf32>
    %277 = vector.shape_cast %276 : vector<24xf32> to vector<24x1xf32>
    %278 = tpu.reciprocal %277 {approx = true} : vector<24x1xf32> -> vector<24x1xf32>
    %279 = vector.broadcast %278 : vector<24x1xf32> to vector<24x24xf32>
    %280 = arith.mulf %275, %279 : vector<24x24xf32>
    %281 = arith.truncf %280 : vector<24x24xf32> to vector<24x24xbf16>
    %282 = arith.truncf %265 : vector<24x8xf32> to vector<24x8xbf16>
    %cst_95 = arith.constant dense<0.000000e+00> : vector<24x8xf32>
    %283 = tpu.matmul %281, %282, %cst_95 {dimension_numbers = #tpu.dot_dimension_numbers<[1], [0], [0], [1], [0, 0, 1, 1], [], []>} : vector<24x24xbf16>, vector<24x8xbf16>, vector<24x8xf32> -> vector<24x8xf32>
    %c32_96 = arith.constant 32 : index
    %c0_97 = arith.constant 0 : index
    %284 = vector.load %arg3[%c32_96, %c0_97] : memref<184x128xf32, #tpu.memory_space<vmem>>, vector<8x32xf32>
    %cst_98 = arith.constant dense<0.000000e+00> : vector<24x32xf32>
    %285 = tpu.matmul %283, %284, %cst_98 {dimension_numbers = #tpu.dot_dimension_numbers<[1], [0], [0], [1], [0, 0, 1, 1], [], []>} : vector<24x8xf32>, vector<8x32xf32>, vector<24x32xf32> -> vector<24x32xf32>
    %286 = arith.addf %262, %285 : vector<24x32xf32>
    %287 = vector.extract_strided_slice %239 {offsets = [0, 48], sizes = [24, 8], strides = [1, 1]} : vector<24x96xf32> to vector<24x8xf32>
    %288 = vector.extract_strided_slice %239 {offsets = [0, 56], sizes = [24, 8], strides = [1, 1]} : vector<24x96xf32> to vector<24x8xf32>
    %289 = vector.extract_strided_slice %239 {offsets = [0, 64], sizes = [24, 8], strides = [1, 1]} : vector<24x96xf32> to vector<24x8xf32>
    %290 = arith.truncf %287 : vector<24x8xf32> to vector<24x8xbf16>
    %291 = arith.truncf %288 : vector<24x8xf32> to vector<24x8xbf16>
    %cst_99 = arith.constant dense<0.000000e+00> : vector<24x24xf32>
    %292 = tpu.matmul %290, %291, %cst_99 {dimension_numbers = #tpu.dot_dimension_numbers<[1], [1], [0], [0], [0, 0, 1, 0], [], []>} : vector<24x8xbf16>, vector<24x8xbf16>, vector<24x24xf32> -> vector<24x24xf32>
    %cst_100 = arith.constant -1.000000e+30 : f32
    %293 = vector.broadcast %cst_100 : f32 to vector<24x24xf32>
    %294 = arith.select %9, %292, %293 : vector<24x24xi1>, vector<24x24xf32>
    %cst_101 = arith.constant dense<0xFF800000> : vector<24xf32>
    %295 = vector.multi_reduction <maximumf>, %294, %cst_101 [1] : vector<24x24xf32> to vector<24xf32>
    %296 = vector.shape_cast %295 : vector<24xf32> to vector<24x1xf32>
    %297 = vector.broadcast %296 : vector<24x1xf32> to vector<24x24xf32>
    %298 = arith.subf %294, %297 : vector<24x24xf32>
    %299 = math.exp %298 : vector<24x24xf32>
    %cst_102 = arith.constant dense<0.000000e+00> : vector<24xf32>
    %300 = vector.multi_reduction <add>, %299, %cst_102 [1] : vector<24x24xf32> to vector<24xf32>
    %301 = vector.shape_cast %300 : vector<24xf32> to vector<24x1xf32>
    %302 = tpu.reciprocal %301 {approx = true} : vector<24x1xf32> -> vector<24x1xf32>
    %303 = vector.broadcast %302 : vector<24x1xf32> to vector<24x24xf32>
    %304 = arith.mulf %299, %303 : vector<24x24xf32>
    %305 = arith.truncf %304 : vector<24x24xf32> to vector<24x24xbf16>
    %306 = arith.truncf %289 : vector<24x8xf32> to vector<24x8xbf16>
    %cst_103 = arith.constant dense<0.000000e+00> : vector<24x8xf32>
    %307 = tpu.matmul %305, %306, %cst_103 {dimension_numbers = #tpu.dot_dimension_numbers<[1], [0], [0], [1], [0, 0, 1, 1], [], []>} : vector<24x24xbf16>, vector<24x8xbf16>, vector<24x8xf32> -> vector<24x8xf32>
    %c40_104 = arith.constant 40 : index
    %c0_105 = arith.constant 0 : index
    %308 = vector.load %arg3[%c40_104, %c0_105] : memref<184x128xf32, #tpu.memory_space<vmem>>, vector<8x32xf32>
    %cst_106 = arith.constant dense<0.000000e+00> : vector<24x32xf32>
    %309 = tpu.matmul %307, %308, %cst_106 {dimension_numbers = #tpu.dot_dimension_numbers<[1], [0], [0], [1], [0, 0, 1, 1], [], []>} : vector<24x8xf32>, vector<8x32xf32>, vector<24x32xf32> -> vector<24x32xf32>
    %310 = arith.addf %286, %309 : vector<24x32xf32>
    %311 = vector.extract_strided_slice %239 {offsets = [0, 72], sizes = [24, 8], strides = [1, 1]} : vector<24x96xf32> to vector<24x8xf32>
    %312 = vector.extract_strided_slice %239 {offsets = [0, 80], sizes = [24, 8], strides = [1, 1]} : vector<24x96xf32> to vector<24x8xf32>
    %313 = vector.extract_strided_slice %239 {offsets = [0, 88], sizes = [24, 8], strides = [1, 1]} : vector<24x96xf32> to vector<24x8xf32>
    %314 = arith.truncf %311 : vector<24x8xf32> to vector<24x8xbf16>
    %315 = arith.truncf %312 : vector<24x8xf32> to vector<24x8xbf16>
    %cst_107 = arith.constant dense<0.000000e+00> : vector<24x24xf32>
    %316 = tpu.matmul %314, %315, %cst_107 {dimension_numbers = #tpu.dot_dimension_numbers<[1], [1], [0], [0], [0, 0, 1, 0], [], []>} : vector<24x8xbf16>, vector<24x8xbf16>, vector<24x24xf32> -> vector<24x24xf32>
    %cst_108 = arith.constant -1.000000e+30 : f32
    %317 = vector.broadcast %cst_108 : f32 to vector<24x24xf32>
    %318 = arith.select %9, %316, %317 : vector<24x24xi1>, vector<24x24xf32>
    %cst_109 = arith.constant dense<0xFF800000> : vector<24xf32>
    %319 = vector.multi_reduction <maximumf>, %318, %cst_109 [1] : vector<24x24xf32> to vector<24xf32>
    %320 = vector.shape_cast %319 : vector<24xf32> to vector<24x1xf32>
    %321 = vector.broadcast %320 : vector<24x1xf32> to vector<24x24xf32>
    %322 = arith.subf %318, %321 : vector<24x24xf32>
    %323 = math.exp %322 : vector<24x24xf32>
    %cst_110 = arith.constant dense<0.000000e+00> : vector<24xf32>
    %324 = vector.multi_reduction <add>, %323, %cst_110 [1] : vector<24x24xf32> to vector<24xf32>
    %325 = vector.shape_cast %324 : vector<24xf32> to vector<24x1xf32>
    %326 = tpu.reciprocal %325 {approx = true} : vector<24x1xf32> -> vector<24x1xf32>
    %327 = vector.broadcast %326 : vector<24x1xf32> to vector<24x24xf32>
    %328 = arith.mulf %323, %327 : vector<24x24xf32>
    %329 = arith.truncf %328 : vector<24x24xf32> to vector<24x24xbf16>
    %330 = arith.truncf %313 : vector<24x8xf32> to vector<24x8xbf16>
    %cst_111 = arith.constant dense<0.000000e+00> : vector<24x8xf32>
    %331 = tpu.matmul %329, %330, %cst_111 {dimension_numbers = #tpu.dot_dimension_numbers<[1], [0], [0], [1], [0, 0, 1, 1], [], []>} : vector<24x24xbf16>, vector<24x8xbf16>, vector<24x8xf32> -> vector<24x8xf32>
    %c48_112 = arith.constant 48 : index
    %c0_113 = arith.constant 0 : index
    %332 = vector.load %arg3[%c48_112, %c0_113] : memref<184x128xf32, #tpu.memory_space<vmem>>, vector<8x32xf32>
    %cst_114 = arith.constant dense<0.000000e+00> : vector<24x32xf32>
    %333 = tpu.matmul %331, %332, %cst_114 {dimension_numbers = #tpu.dot_dimension_numbers<[1], [0], [0], [1], [0, 0, 1, 1], [], []>} : vector<24x8xf32>, vector<8x32xf32>, vector<24x32xf32> -> vector<24x32xf32>
    %334 = arith.addf %310, %333 : vector<24x32xf32>
    %335 = vector.extract_strided_slice %46 {offsets = [72, 0], sizes = [24, 96], strides = [1, 1]} : vector<96x96xf32> to vector<24x96xf32>
    %336 = vector.extract_strided_slice %335 {offsets = [0, 0], sizes = [24, 8], strides = [1, 1]} : vector<24x96xf32> to vector<24x8xf32>
    %337 = vector.extract_strided_slice %335 {offsets = [0, 8], sizes = [24, 8], strides = [1, 1]} : vector<24x96xf32> to vector<24x8xf32>
    %338 = vector.extract_strided_slice %335 {offsets = [0, 16], sizes = [24, 8], strides = [1, 1]} : vector<24x96xf32> to vector<24x8xf32>
    %339 = arith.truncf %336 : vector<24x8xf32> to vector<24x8xbf16>
    %340 = arith.truncf %337 : vector<24x8xf32> to vector<24x8xbf16>
    %cst_115 = arith.constant dense<0.000000e+00> : vector<24x24xf32>
    %341 = tpu.matmul %339, %340, %cst_115 {dimension_numbers = #tpu.dot_dimension_numbers<[1], [1], [0], [0], [0, 0, 1, 0], [], []>} : vector<24x8xbf16>, vector<24x8xbf16>, vector<24x24xf32> -> vector<24x24xf32>
    %cst_116 = arith.constant -1.000000e+30 : f32
    %342 = vector.broadcast %cst_116 : f32 to vector<24x24xf32>
    %343 = arith.select %9, %341, %342 : vector<24x24xi1>, vector<24x24xf32>
    %cst_117 = arith.constant dense<0xFF800000> : vector<24xf32>
    %344 = vector.multi_reduction <maximumf>, %343, %cst_117 [1] : vector<24x24xf32> to vector<24xf32>
    %345 = vector.shape_cast %344 : vector<24xf32> to vector<24x1xf32>
    %346 = vector.broadcast %345 : vector<24x1xf32> to vector<24x24xf32>
    %347 = arith.subf %343, %346 : vector<24x24xf32>
    %348 = math.exp %347 : vector<24x24xf32>
    %cst_118 = arith.constant dense<0.000000e+00> : vector<24xf32>
    %349 = vector.multi_reduction <add>, %348, %cst_118 [1] : vector<24x24xf32> to vector<24xf32>
    %350 = vector.shape_cast %349 : vector<24xf32> to vector<24x1xf32>
    %351 = tpu.reciprocal %350 {approx = true} : vector<24x1xf32> -> vector<24x1xf32>
    %352 = vector.broadcast %351 : vector<24x1xf32> to vector<24x24xf32>
    %353 = arith.mulf %348, %352 : vector<24x24xf32>
    %354 = arith.truncf %353 : vector<24x24xf32> to vector<24x24xbf16>
    %355 = arith.truncf %338 : vector<24x8xf32> to vector<24x8xbf16>
    %cst_119 = arith.constant dense<0.000000e+00> : vector<24x8xf32>
    %356 = tpu.matmul %354, %355, %cst_119 {dimension_numbers = #tpu.dot_dimension_numbers<[1], [0], [0], [1], [0, 0, 1, 1], [], []>} : vector<24x24xbf16>, vector<24x8xbf16>, vector<24x8xf32> -> vector<24x8xf32>
    %c24_120 = arith.constant 24 : index
    %c0_121 = arith.constant 0 : index
    %357 = vector.load %arg3[%c24_120, %c0_121] : memref<184x128xf32, #tpu.memory_space<vmem>>, vector<8x32xf32>
    %cst_122 = arith.constant dense<0.000000e+00> : vector<24x32xf32>
    %358 = tpu.matmul %356, %357, %cst_122 {dimension_numbers = #tpu.dot_dimension_numbers<[1], [0], [0], [1], [0, 0, 1, 1], [], []>} : vector<24x8xf32>, vector<8x32xf32>, vector<24x32xf32> -> vector<24x32xf32>
    %359 = vector.extract_strided_slice %335 {offsets = [0, 24], sizes = [24, 8], strides = [1, 1]} : vector<24x96xf32> to vector<24x8xf32>
    %360 = vector.extract_strided_slice %335 {offsets = [0, 32], sizes = [24, 8], strides = [1, 1]} : vector<24x96xf32> to vector<24x8xf32>
    %361 = vector.extract_strided_slice %335 {offsets = [0, 40], sizes = [24, 8], strides = [1, 1]} : vector<24x96xf32> to vector<24x8xf32>
    %362 = arith.truncf %359 : vector<24x8xf32> to vector<24x8xbf16>
    %363 = arith.truncf %360 : vector<24x8xf32> to vector<24x8xbf16>
    %cst_123 = arith.constant dense<0.000000e+00> : vector<24x24xf32>
    %364 = tpu.matmul %362, %363, %cst_123 {dimension_numbers = #tpu.dot_dimension_numbers<[1], [1], [0], [0], [0, 0, 1, 0], [], []>} : vector<24x8xbf16>, vector<24x8xbf16>, vector<24x24xf32> -> vector<24x24xf32>
    %cst_124 = arith.constant -1.000000e+30 : f32
    %365 = vector.broadcast %cst_124 : f32 to vector<24x24xf32>
    %366 = arith.select %9, %364, %365 : vector<24x24xi1>, vector<24x24xf32>
    %cst_125 = arith.constant dense<0xFF800000> : vector<24xf32>
    %367 = vector.multi_reduction <maximumf>, %366, %cst_125 [1] : vector<24x24xf32> to vector<24xf32>
    %368 = vector.shape_cast %367 : vector<24xf32> to vector<24x1xf32>
    %369 = vector.broadcast %368 : vector<24x1xf32> to vector<24x24xf32>
    %370 = arith.subf %366, %369 : vector<24x24xf32>
    %371 = math.exp %370 : vector<24x24xf32>
    %cst_126 = arith.constant dense<0.000000e+00> : vector<24xf32>
    %372 = vector.multi_reduction <add>, %371, %cst_126 [1] : vector<24x24xf32> to vector<24xf32>
    %373 = vector.shape_cast %372 : vector<24xf32> to vector<24x1xf32>
    %374 = tpu.reciprocal %373 {approx = true} : vector<24x1xf32> -> vector<24x1xf32>
    %375 = vector.broadcast %374 : vector<24x1xf32> to vector<24x24xf32>
    %376 = arith.mulf %371, %375 : vector<24x24xf32>
    %377 = arith.truncf %376 : vector<24x24xf32> to vector<24x24xbf16>
    %378 = arith.truncf %361 : vector<24x8xf32> to vector<24x8xbf16>
    %cst_127 = arith.constant dense<0.000000e+00> : vector<24x8xf32>
    %379 = tpu.matmul %377, %378, %cst_127 {dimension_numbers = #tpu.dot_dimension_numbers<[1], [0], [0], [1], [0, 0, 1, 1], [], []>} : vector<24x24xbf16>, vector<24x8xbf16>, vector<24x8xf32> -> vector<24x8xf32>
    %c32_128 = arith.constant 32 : index
    %c0_129 = arith.constant 0 : index
    %380 = vector.load %arg3[%c32_128, %c0_129] : memref<184x128xf32, #tpu.memory_space<vmem>>, vector<8x32xf32>
    %cst_130 = arith.constant dense<0.000000e+00> : vector<24x32xf32>
    %381 = tpu.matmul %379, %380, %cst_130 {dimension_numbers = #tpu.dot_dimension_numbers<[1], [0], [0], [1], [0, 0, 1, 1], [], []>} : vector<24x8xf32>, vector<8x32xf32>, vector<24x32xf32> -> vector<24x32xf32>
    %382 = arith.addf %358, %381 : vector<24x32xf32>
    %383 = vector.extract_strided_slice %335 {offsets = [0, 48], sizes = [24, 8], strides = [1, 1]} : vector<24x96xf32> to vector<24x8xf32>
    %384 = vector.extract_strided_slice %335 {offsets = [0, 56], sizes = [24, 8], strides = [1, 1]} : vector<24x96xf32> to vector<24x8xf32>
    %385 = vector.extract_strided_slice %335 {offsets = [0, 64], sizes = [24, 8], strides = [1, 1]} : vector<24x96xf32> to vector<24x8xf32>
    %386 = arith.truncf %383 : vector<24x8xf32> to vector<24x8xbf16>
    %387 = arith.truncf %384 : vector<24x8xf32> to vector<24x8xbf16>
    %cst_131 = arith.constant dense<0.000000e+00> : vector<24x24xf32>
    %388 = tpu.matmul %386, %387, %cst_131 {dimension_numbers = #tpu.dot_dimension_numbers<[1], [1], [0], [0], [0, 0, 1, 0], [], []>} : vector<24x8xbf16>, vector<24x8xbf16>, vector<24x24xf32> -> vector<24x24xf32>
    %cst_132 = arith.constant -1.000000e+30 : f32
    %389 = vector.broadcast %cst_132 : f32 to vector<24x24xf32>
    %390 = arith.select %9, %388, %389 : vector<24x24xi1>, vector<24x24xf32>
    %cst_133 = arith.constant dense<0xFF800000> : vector<24xf32>
    %391 = vector.multi_reduction <maximumf>, %390, %cst_133 [1] : vector<24x24xf32> to vector<24xf32>
    %392 = vector.shape_cast %391 : vector<24xf32> to vector<24x1xf32>
    %393 = vector.broadcast %392 : vector<24x1xf32> to vector<24x24xf32>
    %394 = arith.subf %390, %393 : vector<24x24xf32>
    %395 = math.exp %394 : vector<24x24xf32>
    %cst_134 = arith.constant dense<0.000000e+00> : vector<24xf32>
    %396 = vector.multi_reduction <add>, %395, %cst_134 [1] : vector<24x24xf32> to vector<24xf32>
    %397 = vector.shape_cast %396 : vector<24xf32> to vector<24x1xf32>
    %398 = tpu.reciprocal %397 {approx = true} : vector<24x1xf32> -> vector<24x1xf32>
    %399 = vector.broadcast %398 : vector<24x1xf32> to vector<24x24xf32>
    %400 = arith.mulf %395, %399 : vector<24x24xf32>
    %401 = arith.truncf %400 : vector<24x24xf32> to vector<24x24xbf16>
    %402 = arith.truncf %385 : vector<24x8xf32> to vector<24x8xbf16>
    %cst_135 = arith.constant dense<0.000000e+00> : vector<24x8xf32>
    %403 = tpu.matmul %401, %402, %cst_135 {dimension_numbers = #tpu.dot_dimension_numbers<[1], [0], [0], [1], [0, 0, 1, 1], [], []>} : vector<24x24xbf16>, vector<24x8xbf16>, vector<24x8xf32> -> vector<24x8xf32>
    %c40_136 = arith.constant 40 : index
    %c0_137 = arith.constant 0 : index
    %404 = vector.load %arg3[%c40_136, %c0_137] : memref<184x128xf32, #tpu.memory_space<vmem>>, vector<8x32xf32>
    %cst_138 = arith.constant dense<0.000000e+00> : vector<24x32xf32>
    %405 = tpu.matmul %403, %404, %cst_138 {dimension_numbers = #tpu.dot_dimension_numbers<[1], [0], [0], [1], [0, 0, 1, 1], [], []>} : vector<24x8xf32>, vector<8x32xf32>, vector<24x32xf32> -> vector<24x32xf32>
    %406 = arith.addf %382, %405 : vector<24x32xf32>
    %407 = vector.extract_strided_slice %335 {offsets = [0, 72], sizes = [24, 8], strides = [1, 1]} : vector<24x96xf32> to vector<24x8xf32>
    %408 = vector.extract_strided_slice %335 {offsets = [0, 80], sizes = [24, 8], strides = [1, 1]} : vector<24x96xf32> to vector<24x8xf32>
    %409 = vector.extract_strided_slice %335 {offsets = [0, 88], sizes = [24, 8], strides = [1, 1]} : vector<24x96xf32> to vector<24x8xf32>
    %410 = arith.truncf %407 : vector<24x8xf32> to vector<24x8xbf16>
    %411 = arith.truncf %408 : vector<24x8xf32> to vector<24x8xbf16>
    %cst_139 = arith.constant dense<0.000000e+00> : vector<24x24xf32>
    %412 = tpu.matmul %410, %411, %cst_139 {dimension_numbers = #tpu.dot_dimension_numbers<[1], [1], [0], [0], [0, 0, 1, 0], [], []>} : vector<24x8xbf16>, vector<24x8xbf16>, vector<24x24xf32> -> vector<24x24xf32>
    %cst_140 = arith.constant -1.000000e+30 : f32
    %413 = vector.broadcast %cst_140 : f32 to vector<24x24xf32>
    %414 = arith.select %9, %412, %413 : vector<24x24xi1>, vector<24x24xf32>
    %cst_141 = arith.constant dense<0xFF800000> : vector<24xf32>
    %415 = vector.multi_reduction <maximumf>, %414, %cst_141 [1] : vector<24x24xf32> to vector<24xf32>
    %416 = vector.shape_cast %415 : vector<24xf32> to vector<24x1xf32>
    %417 = vector.broadcast %416 : vector<24x1xf32> to vector<24x24xf32>
    %418 = arith.subf %414, %417 : vector<24x24xf32>
    %419 = math.exp %418 : vector<24x24xf32>
    %cst_142 = arith.constant dense<0.000000e+00> : vector<24xf32>
    %420 = vector.multi_reduction <add>, %419, %cst_142 [1] : vector<24x24xf32> to vector<24xf32>
    %421 = vector.shape_cast %420 : vector<24xf32> to vector<24x1xf32>
    %422 = tpu.reciprocal %421 {approx = true} : vector<24x1xf32> -> vector<24x1xf32>
    %423 = vector.broadcast %422 : vector<24x1xf32> to vector<24x24xf32>
    %424 = arith.mulf %419, %423 : vector<24x24xf32>
    %425 = arith.truncf %424 : vector<24x24xf32> to vector<24x24xbf16>
    %426 = arith.truncf %409 : vector<24x8xf32> to vector<24x8xbf16>
    %cst_143 = arith.constant dense<0.000000e+00> : vector<24x8xf32>
    %427 = tpu.matmul %425, %426, %cst_143 {dimension_numbers = #tpu.dot_dimension_numbers<[1], [0], [0], [1], [0, 0, 1, 1], [], []>} : vector<24x24xbf16>, vector<24x8xbf16>, vector<24x8xf32> -> vector<24x8xf32>
    %c48_144 = arith.constant 48 : index
    %c0_145 = arith.constant 0 : index
    %428 = vector.load %arg3[%c48_144, %c0_145] : memref<184x128xf32, #tpu.memory_space<vmem>>, vector<8x32xf32>
    %cst_146 = arith.constant dense<0.000000e+00> : vector<24x32xf32>
    %429 = tpu.matmul %427, %428, %cst_146 {dimension_numbers = #tpu.dot_dimension_numbers<[1], [0], [0], [1], [0, 0, 1, 1], [], []>} : vector<24x8xf32>, vector<8x32xf32>, vector<24x32xf32> -> vector<24x32xf32>
    %430 = arith.addf %406, %429 : vector<24x32xf32>
    %431 = tpu.concatenate %142, %238, %334, %430 in 0 : vector<24x32xf32>, vector<24x32xf32>, vector<24x32xf32>, vector<24x32xf32> -> vector<96x32xf32>
    %432 = arith.addf %6, %431 : vector<96x32xf32>
    %433 = vector.broadcast %16 : vector<1x32xf32> to vector<96x32xf32>
    %434 = arith.addf %432, %433 : vector<96x32xf32>
    %cst_147 = arith.constant dense<0.000000e+00> : vector<96xf32>
    %435 = vector.multi_reduction <add>, %434, %cst_147 [1] : vector<96x32xf32> to vector<96xf32>
    %436 = vector.shape_cast %435 : vector<96xf32> to vector<96x1xf32>
    %cst_148 = arith.constant 3.200000e+01 : f32
    %437 = vector.broadcast %cst_148 : f32 to vector<96x1xf32>
    %438 = arith.divf %436, %437 : vector<96x1xf32>
    %439 = vector.broadcast %438 : vector<96x1xf32> to vector<96x32xf32>
    %440 = arith.subf %434, %439 : vector<96x32xf32>
    %441 = arith.mulf %440, %440 : vector<96x32xf32>
    %cst_149 = arith.constant dense<0.000000e+00> : vector<96xf32>
    %442 = vector.multi_reduction <add>, %441, %cst_149 [1] : vector<96x32xf32> to vector<96xf32>
    %443 = vector.shape_cast %442 : vector<96xf32> to vector<96x1xf32>
    %cst_150 = arith.constant 3.200000e+01 : f32
    %444 = vector.broadcast %cst_150 : f32 to vector<96x1xf32>
    %445 = arith.divf %443, %444 : vector<96x1xf32>
    %446 = vector.broadcast %438 : vector<96x1xf32> to vector<96x32xf32>
    %447 = arith.subf %434, %446 : vector<96x32xf32>
    %cst_151 = arith.constant 9.99999997E-7 : f32
    %448 = vector.broadcast %cst_151 : f32 to vector<96x1xf32>
    %449 = arith.addf %445, %448 : vector<96x1xf32>
    %450 = math.rsqrt %449 : vector<96x1xf32>
    %451 = vector.broadcast %450 : vector<96x1xf32> to vector<96x32xf32>
    %452 = arith.mulf %447, %451 : vector<96x32xf32>
    %453 = vector.broadcast %17 : vector<1x32xf32> to vector<96x32xf32>
    %454 = arith.mulf %452, %453 : vector<96x32xf32>
    %455 = vector.broadcast %18 : vector<1x32xf32> to vector<96x32xf32>
    %456 = arith.addf %454, %455 : vector<96x32xf32>
    %457 = arith.truncf %456 : vector<96x32xf32> to vector<96x32xbf16>
    %cst_152 = arith.constant dense<0.000000e+00> : vector<96x128xf32>
    %458 = tpu.matmul %457, %11, %cst_152 {dimension_numbers = #tpu.dot_dimension_numbers<[1], [0], [0], [1], [0, 0, 1, 1], [], []>} : vector<96x32xbf16>, vector<32x128xbf16>, vector<96x128xf32> -> vector<96x128xf32>
    %459 = vector.broadcast %19 : vector<1x128xf32> to vector<96x128xf32>
    %460 = arith.addf %458, %459 : vector<96x128xf32>
    %461 = arith.mulf %460, %460 : vector<96x128xf32>
    %462 = arith.mulf %460, %461 : vector<96x128xf32>
    %cst_153 = arith.constant 4.471500e-02 : f32
    %463 = vector.broadcast %cst_153 : f32 to vector<96x128xf32>
    %464 = arith.mulf %463, %462 : vector<96x128xf32>
    %465 = arith.addf %460, %464 : vector<96x128xf32>
    %cst_154 = arith.constant 0.797884583 : f32
    %466 = vector.broadcast %cst_154 : f32 to vector<96x128xf32>
    %467 = arith.mulf %466, %465 : vector<96x128xf32>
    %468 = math.tanh %467 : vector<96x128xf32>
    %cst_155 = arith.constant 1.000000e+00 : f32
    %469 = vector.broadcast %cst_155 : f32 to vector<96x128xf32>
    %470 = arith.addf %469, %468 : vector<96x128xf32>
    %cst_156 = arith.constant 5.000000e-01 : f32
    %471 = vector.broadcast %cst_156 : f32 to vector<96x128xf32>
    %472 = arith.mulf %471, %470 : vector<96x128xf32>
    %473 = arith.mulf %460, %472 : vector<96x128xf32>
    %474 = arith.truncf %473 : vector<96x128xf32> to vector<96x128xbf16>
    %cst_157 = arith.constant dense<0.000000e+00> : vector<96x32xf32>
    %475 = tpu.matmul %474, %12, %cst_157 {dimension_numbers = #tpu.dot_dimension_numbers<[1], [0], [0], [1], [0, 0, 1, 1], [], []>} : vector<96x128xbf16>, vector<128x32xbf16>, vector<96x32xf32> -> vector<96x32xf32>
    %476 = vector.broadcast %20 : vector<1x32xf32> to vector<96x32xf32>
    %477 = arith.addf %475, %476 : vector<96x32xf32>
    %478 = arith.addf %434, %477 : vector<96x32xf32>
    %c272 = arith.constant 272 : index
    %c0_158 = arith.constant 0 : index
    %479 = vector.load %arg2[%c272, %c0_158] : memref<464x128xbf16, #tpu.memory_space<vmem>>, vector<32x96xbf16>
    %c304 = arith.constant 304 : index
    %c0_159 = arith.constant 0 : index
    %480 = vector.load %arg2[%c304, %c0_159] : memref<464x128xbf16, #tpu.memory_space<vmem>>, vector<32x128xbf16>
    %c336 = arith.constant 336 : index
    %c0_160 = arith.constant 0 : index
    %481 = vector.load %arg2[%c336, %c0_160] : memref<464x128xbf16, #tpu.memory_space<vmem>>, vector<128x32xbf16>
    %c11 = arith.constant 11 : index
    %c0_161 = arith.constant 0 : index
    %482 = vector.load %arg3[%c11, %c0_161] : memref<184x128xf32, #tpu.memory_space<vmem>>, vector<1x32xf32>
    %c12 = arith.constant 12 : index
    %c0_162 = arith.constant 0 : index
    %483 = vector.load %arg3[%c12, %c0_162] : memref<184x128xf32, #tpu.memory_space<vmem>>, vector<1x32xf32>
    %c13 = arith.constant 13 : index
    %c0_163 = arith.constant 0 : index
    %484 = vector.load %arg3[%c13, %c0_163] : memref<184x128xf32, #tpu.memory_space<vmem>>, vector<1x96xf32>
    %c14 = arith.constant 14 : index
    %c0_164 = arith.constant 0 : index
    %485 = vector.load %arg3[%c14, %c0_164] : memref<184x128xf32, #tpu.memory_space<vmem>>, vector<1x32xf32>
    %c15 = arith.constant 15 : index
    %c0_165 = arith.constant 0 : index
    %486 = vector.load %arg3[%c15, %c0_165] : memref<184x128xf32, #tpu.memory_space<vmem>>, vector<1x32xf32>
    %c16 = arith.constant 16 : index
    %c0_166 = arith.constant 0 : index
    %487 = vector.load %arg3[%c16, %c0_166] : memref<184x128xf32, #tpu.memory_space<vmem>>, vector<1x32xf32>
    %c17 = arith.constant 17 : index
    %c0_167 = arith.constant 0 : index
    %488 = vector.load %arg3[%c17, %c0_167] : memref<184x128xf32, #tpu.memory_space<vmem>>, vector<1x128xf32>
    %c18 = arith.constant 18 : index
    %c0_168 = arith.constant 0 : index
    %489 = vector.load %arg3[%c18, %c0_168] : memref<184x128xf32, #tpu.memory_space<vmem>>, vector<1x32xf32>
    %cst_169 = arith.constant dense<0.000000e+00> : vector<96xf32>
    %490 = vector.multi_reduction <add>, %478, %cst_169 [1] : vector<96x32xf32> to vector<96xf32>
    %491 = vector.shape_cast %490 : vector<96xf32> to vector<96x1xf32>
    %cst_170 = arith.constant 3.200000e+01 : f32
    %492 = vector.broadcast %cst_170 : f32 to vector<96x1xf32>
    %493 = arith.divf %491, %492 : vector<96x1xf32>
    %494 = vector.broadcast %493 : vector<96x1xf32> to vector<96x32xf32>
    %495 = arith.subf %478, %494 : vector<96x32xf32>
    %496 = arith.mulf %495, %495 : vector<96x32xf32>
    %cst_171 = arith.constant dense<0.000000e+00> : vector<96xf32>
    %497 = vector.multi_reduction <add>, %496, %cst_171 [1] : vector<96x32xf32> to vector<96xf32>
    %498 = vector.shape_cast %497 : vector<96xf32> to vector<96x1xf32>
    %cst_172 = arith.constant 3.200000e+01 : f32
    %499 = vector.broadcast %cst_172 : f32 to vector<96x1xf32>
    %500 = arith.divf %498, %499 : vector<96x1xf32>
    %501 = vector.broadcast %493 : vector<96x1xf32> to vector<96x32xf32>
    %502 = arith.subf %478, %501 : vector<96x32xf32>
    %cst_173 = arith.constant 9.99999997E-7 : f32
    %503 = vector.broadcast %cst_173 : f32 to vector<96x1xf32>
    %504 = arith.addf %500, %503 : vector<96x1xf32>
    %505 = math.rsqrt %504 : vector<96x1xf32>
    %506 = vector.broadcast %505 : vector<96x1xf32> to vector<96x32xf32>
    %507 = arith.mulf %502, %506 : vector<96x32xf32>
    %508 = vector.broadcast %482 : vector<1x32xf32> to vector<96x32xf32>
    %509 = arith.mulf %507, %508 : vector<96x32xf32>
    %510 = vector.broadcast %483 : vector<1x32xf32> to vector<96x32xf32>
    %511 = arith.addf %509, %510 : vector<96x32xf32>
    %512 = arith.truncf %511 : vector<96x32xf32> to vector<96x32xbf16>
    %cst_174 = arith.constant dense<0.000000e+00> : vector<96x96xf32>
    %513 = tpu.matmul %512, %479, %cst_174 {dimension_numbers = #tpu.dot_dimension_numbers<[1], [0], [0], [1], [0, 0, 1, 1], [], []>} : vector<96x32xbf16>, vector<32x96xbf16>, vector<96x96xf32> -> vector<96x96xf32>
    %514 = vector.broadcast %484 : vector<1x96xf32> to vector<96x96xf32>
    %515 = arith.addf %513, %514 : vector<96x96xf32>
    %516 = vector.extract_strided_slice %515 {offsets = [0, 0], sizes = [24, 96], strides = [1, 1]} : vector<96x96xf32> to vector<24x96xf32>
    %517 = vector.extract_strided_slice %516 {offsets = [0, 0], sizes = [24, 8], strides = [1, 1]} : vector<24x96xf32> to vector<24x8xf32>
    %518 = vector.extract_strided_slice %516 {offsets = [0, 8], sizes = [24, 8], strides = [1, 1]} : vector<24x96xf32> to vector<24x8xf32>
    %519 = vector.extract_strided_slice %516 {offsets = [0, 16], sizes = [24, 8], strides = [1, 1]} : vector<24x96xf32> to vector<24x8xf32>
    %520 = arith.truncf %517 : vector<24x8xf32> to vector<24x8xbf16>
    %521 = arith.truncf %518 : vector<24x8xf32> to vector<24x8xbf16>
    %cst_175 = arith.constant dense<0.000000e+00> : vector<24x24xf32>
    %522 = tpu.matmul %520, %521, %cst_175 {dimension_numbers = #tpu.dot_dimension_numbers<[1], [1], [0], [0], [0, 0, 1, 0], [], []>} : vector<24x8xbf16>, vector<24x8xbf16>, vector<24x24xf32> -> vector<24x24xf32>
    %cst_176 = arith.constant -1.000000e+30 : f32
    %523 = vector.broadcast %cst_176 : f32 to vector<24x24xf32>
    %524 = arith.select %9, %522, %523 : vector<24x24xi1>, vector<24x24xf32>
    %cst_177 = arith.constant dense<0xFF800000> : vector<24xf32>
    %525 = vector.multi_reduction <maximumf>, %524, %cst_177 [1] : vector<24x24xf32> to vector<24xf32>
    %526 = vector.shape_cast %525 : vector<24xf32> to vector<24x1xf32>
    %527 = vector.broadcast %526 : vector<24x1xf32> to vector<24x24xf32>
    %528 = arith.subf %524, %527 : vector<24x24xf32>
    %529 = math.exp %528 : vector<24x24xf32>
    %cst_178 = arith.constant dense<0.000000e+00> : vector<24xf32>
    %530 = vector.multi_reduction <add>, %529, %cst_178 [1] : vector<24x24xf32> to vector<24xf32>
    %531 = vector.shape_cast %530 : vector<24xf32> to vector<24x1xf32>
    %532 = tpu.reciprocal %531 {approx = true} : vector<24x1xf32> -> vector<24x1xf32>
    %533 = vector.broadcast %532 : vector<24x1xf32> to vector<24x24xf32>
    %534 = arith.mulf %529, %533 : vector<24x24xf32>
    %535 = arith.truncf %534 : vector<24x24xf32> to vector<24x24xbf16>
    %536 = arith.truncf %519 : vector<24x8xf32> to vector<24x8xbf16>
    %cst_179 = arith.constant dense<0.000000e+00> : vector<24x8xf32>
    %537 = tpu.matmul %535, %536, %cst_179 {dimension_numbers = #tpu.dot_dimension_numbers<[1], [0], [0], [1], [0, 0, 1, 1], [], []>} : vector<24x24xbf16>, vector<24x8xbf16>, vector<24x8xf32> -> vector<24x8xf32>
    %c56 = arith.constant 56 : index
    %c0_180 = arith.constant 0 : index
    %538 = vector.load %arg3[%c56, %c0_180] : memref<184x128xf32, #tpu.memory_space<vmem>>, vector<8x32xf32>
    %cst_181 = arith.constant dense<0.000000e+00> : vector<24x32xf32>
    %539 = tpu.matmul %537, %538, %cst_181 {dimension_numbers = #tpu.dot_dimension_numbers<[1], [0], [0], [1], [0, 0, 1, 1], [], []>} : vector<24x8xf32>, vector<8x32xf32>, vector<24x32xf32> -> vector<24x32xf32>
    %540 = vector.extract_strided_slice %516 {offsets = [0, 24], sizes = [24, 8], strides = [1, 1]} : vector<24x96xf32> to vector<24x8xf32>
    %541 = vector.extract_strided_slice %516 {offsets = [0, 32], sizes = [24, 8], strides = [1, 1]} : vector<24x96xf32> to vector<24x8xf32>
    %542 = vector.extract_strided_slice %516 {offsets = [0, 40], sizes = [24, 8], strides = [1, 1]} : vector<24x96xf32> to vector<24x8xf32>
    %543 = arith.truncf %540 : vector<24x8xf32> to vector<24x8xbf16>
    %544 = arith.truncf %541 : vector<24x8xf32> to vector<24x8xbf16>
    %cst_182 = arith.constant dense<0.000000e+00> : vector<24x24xf32>
    %545 = tpu.matmul %543, %544, %cst_182 {dimension_numbers = #tpu.dot_dimension_numbers<[1], [1], [0], [0], [0, 0, 1, 0], [], []>} : vector<24x8xbf16>, vector<24x8xbf16>, vector<24x24xf32> -> vector<24x24xf32>
    %cst_183 = arith.constant -1.000000e+30 : f32
    %546 = vector.broadcast %cst_183 : f32 to vector<24x24xf32>
    %547 = arith.select %9, %545, %546 : vector<24x24xi1>, vector<24x24xf32>
    %cst_184 = arith.constant dense<0xFF800000> : vector<24xf32>
    %548 = vector.multi_reduction <maximumf>, %547, %cst_184 [1] : vector<24x24xf32> to vector<24xf32>
    %549 = vector.shape_cast %548 : vector<24xf32> to vector<24x1xf32>
    %550 = vector.broadcast %549 : vector<24x1xf32> to vector<24x24xf32>
    %551 = arith.subf %547, %550 : vector<24x24xf32>
    %552 = math.exp %551 : vector<24x24xf32>
    %cst_185 = arith.constant dense<0.000000e+00> : vector<24xf32>
    %553 = vector.multi_reduction <add>, %552, %cst_185 [1] : vector<24x24xf32> to vector<24xf32>
    %554 = vector.shape_cast %553 : vector<24xf32> to vector<24x1xf32>
    %555 = tpu.reciprocal %554 {approx = true} : vector<24x1xf32> -> vector<24x1xf32>
    %556 = vector.broadcast %555 : vector<24x1xf32> to vector<24x24xf32>
    %557 = arith.mulf %552, %556 : vector<24x24xf32>
    %558 = arith.truncf %557 : vector<24x24xf32> to vector<24x24xbf16>
    %559 = arith.truncf %542 : vector<24x8xf32> to vector<24x8xbf16>
    %cst_186 = arith.constant dense<0.000000e+00> : vector<24x8xf32>
    %560 = tpu.matmul %558, %559, %cst_186 {dimension_numbers = #tpu.dot_dimension_numbers<[1], [0], [0], [1], [0, 0, 1, 1], [], []>} : vector<24x24xbf16>, vector<24x8xbf16>, vector<24x8xf32> -> vector<24x8xf32>
    %c64 = arith.constant 64 : index
    %c0_187 = arith.constant 0 : index
    %561 = vector.load %arg3[%c64, %c0_187] : memref<184x128xf32, #tpu.memory_space<vmem>>, vector<8x32xf32>
    %cst_188 = arith.constant dense<0.000000e+00> : vector<24x32xf32>
    %562 = tpu.matmul %560, %561, %cst_188 {dimension_numbers = #tpu.dot_dimension_numbers<[1], [0], [0], [1], [0, 0, 1, 1], [], []>} : vector<24x8xf32>, vector<8x32xf32>, vector<24x32xf32> -> vector<24x32xf32>
    %563 = arith.addf %539, %562 : vector<24x32xf32>
    %564 = vector.extract_strided_slice %516 {offsets = [0, 48], sizes = [24, 8], strides = [1, 1]} : vector<24x96xf32> to vector<24x8xf32>
    %565 = vector.extract_strided_slice %516 {offsets = [0, 56], sizes = [24, 8], strides = [1, 1]} : vector<24x96xf32> to vector<24x8xf32>
    %566 = vector.extract_strided_slice %516 {offsets = [0, 64], sizes = [24, 8], strides = [1, 1]} : vector<24x96xf32> to vector<24x8xf32>
    %567 = arith.truncf %564 : vector<24x8xf32> to vector<24x8xbf16>
    %568 = arith.truncf %565 : vector<24x8xf32> to vector<24x8xbf16>
    %cst_189 = arith.constant dense<0.000000e+00> : vector<24x24xf32>
    %569 = tpu.matmul %567, %568, %cst_189 {dimension_numbers = #tpu.dot_dimension_numbers<[1], [1], [0], [0], [0, 0, 1, 0], [], []>} : vector<24x8xbf16>, vector<24x8xbf16>, vector<24x24xf32> -> vector<24x24xf32>
    %cst_190 = arith.constant -1.000000e+30 : f32
    %570 = vector.broadcast %cst_190 : f32 to vector<24x24xf32>
    %571 = arith.select %9, %569, %570 : vector<24x24xi1>, vector<24x24xf32>
    %cst_191 = arith.constant dense<0xFF800000> : vector<24xf32>
    %572 = vector.multi_reduction <maximumf>, %571, %cst_191 [1] : vector<24x24xf32> to vector<24xf32>
    %573 = vector.shape_cast %572 : vector<24xf32> to vector<24x1xf32>
    %574 = vector.broadcast %573 : vector<24x1xf32> to vector<24x24xf32>
    %575 = arith.subf %571, %574 : vector<24x24xf32>
    %576 = math.exp %575 : vector<24x24xf32>
    %cst_192 = arith.constant dense<0.000000e+00> : vector<24xf32>
    %577 = vector.multi_reduction <add>, %576, %cst_192 [1] : vector<24x24xf32> to vector<24xf32>
    %578 = vector.shape_cast %577 : vector<24xf32> to vector<24x1xf32>
    %579 = tpu.reciprocal %578 {approx = true} : vector<24x1xf32> -> vector<24x1xf32>
    %580 = vector.broadcast %579 : vector<24x1xf32> to vector<24x24xf32>
    %581 = arith.mulf %576, %580 : vector<24x24xf32>
    %582 = arith.truncf %581 : vector<24x24xf32> to vector<24x24xbf16>
    %583 = arith.truncf %566 : vector<24x8xf32> to vector<24x8xbf16>
    %cst_193 = arith.constant dense<0.000000e+00> : vector<24x8xf32>
    %584 = tpu.matmul %582, %583, %cst_193 {dimension_numbers = #tpu.dot_dimension_numbers<[1], [0], [0], [1], [0, 0, 1, 1], [], []>} : vector<24x24xbf16>, vector<24x8xbf16>, vector<24x8xf32> -> vector<24x8xf32>
    %c72 = arith.constant 72 : index
    %c0_194 = arith.constant 0 : index
    %585 = vector.load %arg3[%c72, %c0_194] : memref<184x128xf32, #tpu.memory_space<vmem>>, vector<8x32xf32>
    %cst_195 = arith.constant dense<0.000000e+00> : vector<24x32xf32>
    %586 = tpu.matmul %584, %585, %cst_195 {dimension_numbers = #tpu.dot_dimension_numbers<[1], [0], [0], [1], [0, 0, 1, 1], [], []>} : vector<24x8xf32>, vector<8x32xf32>, vector<24x32xf32> -> vector<24x32xf32>
    %587 = arith.addf %563, %586 : vector<24x32xf32>
    %588 = vector.extract_strided_slice %516 {offsets = [0, 72], sizes = [24, 8], strides = [1, 1]} : vector<24x96xf32> to vector<24x8xf32>
    %589 = vector.extract_strided_slice %516 {offsets = [0, 80], sizes = [24, 8], strides = [1, 1]} : vector<24x96xf32> to vector<24x8xf32>
    %590 = vector.extract_strided_slice %516 {offsets = [0, 88], sizes = [24, 8], strides = [1, 1]} : vector<24x96xf32> to vector<24x8xf32>
    %591 = arith.truncf %588 : vector<24x8xf32> to vector<24x8xbf16>
    %592 = arith.truncf %589 : vector<24x8xf32> to vector<24x8xbf16>
    %cst_196 = arith.constant dense<0.000000e+00> : vector<24x24xf32>
    %593 = tpu.matmul %591, %592, %cst_196 {dimension_numbers = #tpu.dot_dimension_numbers<[1], [1], [0], [0], [0, 0, 1, 0], [], []>} : vector<24x8xbf16>, vector<24x8xbf16>, vector<24x24xf32> -> vector<24x24xf32>
    %cst_197 = arith.constant -1.000000e+30 : f32
    %594 = vector.broadcast %cst_197 : f32 to vector<24x24xf32>
    %595 = arith.select %9, %593, %594 : vector<24x24xi1>, vector<24x24xf32>
    %cst_198 = arith.constant dense<0xFF800000> : vector<24xf32>
    %596 = vector.multi_reduction <maximumf>, %595, %cst_198 [1] : vector<24x24xf32> to vector<24xf32>
    %597 = vector.shape_cast %596 : vector<24xf32> to vector<24x1xf32>
    %598 = vector.broadcast %597 : vector<24x1xf32> to vector<24x24xf32>
    %599 = arith.subf %595, %598 : vector<24x24xf32>
    %600 = math.exp %599 : vector<24x24xf32>
    %cst_199 = arith.constant dense<0.000000e+00> : vector<24xf32>
    %601 = vector.multi_reduction <add>, %600, %cst_199 [1] : vector<24x24xf32> to vector<24xf32>
    %602 = vector.shape_cast %601 : vector<24xf32> to vector<24x1xf32>
    %603 = tpu.reciprocal %602 {approx = true} : vector<24x1xf32> -> vector<24x1xf32>
    %604 = vector.broadcast %603 : vector<24x1xf32> to vector<24x24xf32>
    %605 = arith.mulf %600, %604 : vector<24x24xf32>
    %606 = arith.truncf %605 : vector<24x24xf32> to vector<24x24xbf16>
    %607 = arith.truncf %590 : vector<24x8xf32> to vector<24x8xbf16>
    %cst_200 = arith.constant dense<0.000000e+00> : vector<24x8xf32>
    %608 = tpu.matmul %606, %607, %cst_200 {dimension_numbers = #tpu.dot_dimension_numbers<[1], [0], [0], [1], [0, 0, 1, 1], [], []>} : vector<24x24xbf16>, vector<24x8xbf16>, vector<24x8xf32> -> vector<24x8xf32>
    %c80_201 = arith.constant 80 : index
    %c0_202 = arith.constant 0 : index
    %609 = vector.load %arg3[%c80_201, %c0_202] : memref<184x128xf32, #tpu.memory_space<vmem>>, vector<8x32xf32>
    %cst_203 = arith.constant dense<0.000000e+00> : vector<24x32xf32>
    %610 = tpu.matmul %608, %609, %cst_203 {dimension_numbers = #tpu.dot_dimension_numbers<[1], [0], [0], [1], [0, 0, 1, 1], [], []>} : vector<24x8xf32>, vector<8x32xf32>, vector<24x32xf32> -> vector<24x32xf32>
    %611 = arith.addf %587, %610 : vector<24x32xf32>
    %612 = vector.extract_strided_slice %515 {offsets = [24, 0], sizes = [24, 96], strides = [1, 1]} : vector<96x96xf32> to vector<24x96xf32>
    %613 = vector.extract_strided_slice %612 {offsets = [0, 0], sizes = [24, 8], strides = [1, 1]} : vector<24x96xf32> to vector<24x8xf32>
    %614 = vector.extract_strided_slice %612 {offsets = [0, 8], sizes = [24, 8], strides = [1, 1]} : vector<24x96xf32> to vector<24x8xf32>
    %615 = vector.extract_strided_slice %612 {offsets = [0, 16], sizes = [24, 8], strides = [1, 1]} : vector<24x96xf32> to vector<24x8xf32>
    %616 = arith.truncf %613 : vector<24x8xf32> to vector<24x8xbf16>
    %617 = arith.truncf %614 : vector<24x8xf32> to vector<24x8xbf16>
    %cst_204 = arith.constant dense<0.000000e+00> : vector<24x24xf32>
    %618 = tpu.matmul %616, %617, %cst_204 {dimension_numbers = #tpu.dot_dimension_numbers<[1], [1], [0], [0], [0, 0, 1, 0], [], []>} : vector<24x8xbf16>, vector<24x8xbf16>, vector<24x24xf32> -> vector<24x24xf32>
    %cst_205 = arith.constant -1.000000e+30 : f32
    %619 = vector.broadcast %cst_205 : f32 to vector<24x24xf32>
    %620 = arith.select %9, %618, %619 : vector<24x24xi1>, vector<24x24xf32>
    %cst_206 = arith.constant dense<0xFF800000> : vector<24xf32>
    %621 = vector.multi_reduction <maximumf>, %620, %cst_206 [1] : vector<24x24xf32> to vector<24xf32>
    %622 = vector.shape_cast %621 : vector<24xf32> to vector<24x1xf32>
    %623 = vector.broadcast %622 : vector<24x1xf32> to vector<24x24xf32>
    %624 = arith.subf %620, %623 : vector<24x24xf32>
    %625 = math.exp %624 : vector<24x24xf32>
    %cst_207 = arith.constant dense<0.000000e+00> : vector<24xf32>
    %626 = vector.multi_reduction <add>, %625, %cst_207 [1] : vector<24x24xf32> to vector<24xf32>
    %627 = vector.shape_cast %626 : vector<24xf32> to vector<24x1xf32>
    %628 = tpu.reciprocal %627 {approx = true} : vector<24x1xf32> -> vector<24x1xf32>
    %629 = vector.broadcast %628 : vector<24x1xf32> to vector<24x24xf32>
    %630 = arith.mulf %625, %629 : vector<24x24xf32>
    %631 = arith.truncf %630 : vector<24x24xf32> to vector<24x24xbf16>
    %632 = arith.truncf %615 : vector<24x8xf32> to vector<24x8xbf16>
    %cst_208 = arith.constant dense<0.000000e+00> : vector<24x8xf32>
    %633 = tpu.matmul %631, %632, %cst_208 {dimension_numbers = #tpu.dot_dimension_numbers<[1], [0], [0], [1], [0, 0, 1, 1], [], []>} : vector<24x24xbf16>, vector<24x8xbf16>, vector<24x8xf32> -> vector<24x8xf32>
    %c56_209 = arith.constant 56 : index
    %c0_210 = arith.constant 0 : index
    %634 = vector.load %arg3[%c56_209, %c0_210] : memref<184x128xf32, #tpu.memory_space<vmem>>, vector<8x32xf32>
    %cst_211 = arith.constant dense<0.000000e+00> : vector<24x32xf32>
    %635 = tpu.matmul %633, %634, %cst_211 {dimension_numbers = #tpu.dot_dimension_numbers<[1], [0], [0], [1], [0, 0, 1, 1], [], []>} : vector<24x8xf32>, vector<8x32xf32>, vector<24x32xf32> -> vector<24x32xf32>
    %636 = vector.extract_strided_slice %612 {offsets = [0, 24], sizes = [24, 8], strides = [1, 1]} : vector<24x96xf32> to vector<24x8xf32>
    %637 = vector.extract_strided_slice %612 {offsets = [0, 32], sizes = [24, 8], strides = [1, 1]} : vector<24x96xf32> to vector<24x8xf32>
    %638 = vector.extract_strided_slice %612 {offsets = [0, 40], sizes = [24, 8], strides = [1, 1]} : vector<24x96xf32> to vector<24x8xf32>
    %639 = arith.truncf %636 : vector<24x8xf32> to vector<24x8xbf16>
    %640 = arith.truncf %637 : vector<24x8xf32> to vector<24x8xbf16>
    %cst_212 = arith.constant dense<0.000000e+00> : vector<24x24xf32>
    %641 = tpu.matmul %639, %640, %cst_212 {dimension_numbers = #tpu.dot_dimension_numbers<[1], [1], [0], [0], [0, 0, 1, 0], [], []>} : vector<24x8xbf16>, vector<24x8xbf16>, vector<24x24xf32> -> vector<24x24xf32>
    %cst_213 = arith.constant -1.000000e+30 : f32
    %642 = vector.broadcast %cst_213 : f32 to vector<24x24xf32>
    %643 = arith.select %9, %641, %642 : vector<24x24xi1>, vector<24x24xf32>
    %cst_214 = arith.constant dense<0xFF800000> : vector<24xf32>
    %644 = vector.multi_reduction <maximumf>, %643, %cst_214 [1] : vector<24x24xf32> to vector<24xf32>
    %645 = vector.shape_cast %644 : vector<24xf32> to vector<24x1xf32>
    %646 = vector.broadcast %645 : vector<24x1xf32> to vector<24x24xf32>
    %647 = arith.subf %643, %646 : vector<24x24xf32>
    %648 = math.exp %647 : vector<24x24xf32>
    %cst_215 = arith.constant dense<0.000000e+00> : vector<24xf32>
    %649 = vector.multi_reduction <add>, %648, %cst_215 [1] : vector<24x24xf32> to vector<24xf32>
    %650 = vector.shape_cast %649 : vector<24xf32> to vector<24x1xf32>
    %651 = tpu.reciprocal %650 {approx = true} : vector<24x1xf32> -> vector<24x1xf32>
    %652 = vector.broadcast %651 : vector<24x1xf32> to vector<24x24xf32>
    %653 = arith.mulf %648, %652 : vector<24x24xf32>
    %654 = arith.truncf %653 : vector<24x24xf32> to vector<24x24xbf16>
    %655 = arith.truncf %638 : vector<24x8xf32> to vector<24x8xbf16>
    %cst_216 = arith.constant dense<0.000000e+00> : vector<24x8xf32>
    %656 = tpu.matmul %654, %655, %cst_216 {dimension_numbers = #tpu.dot_dimension_numbers<[1], [0], [0], [1], [0, 0, 1, 1], [], []>} : vector<24x24xbf16>, vector<24x8xbf16>, vector<24x8xf32> -> vector<24x8xf32>
    %c64_217 = arith.constant 64 : index
    %c0_218 = arith.constant 0 : index
    %657 = vector.load %arg3[%c64_217, %c0_218] : memref<184x128xf32, #tpu.memory_space<vmem>>, vector<8x32xf32>
    %cst_219 = arith.constant dense<0.000000e+00> : vector<24x32xf32>
    %658 = tpu.matmul %656, %657, %cst_219 {dimension_numbers = #tpu.dot_dimension_numbers<[1], [0], [0], [1], [0, 0, 1, 1], [], []>} : vector<24x8xf32>, vector<8x32xf32>, vector<24x32xf32> -> vector<24x32xf32>
    %659 = arith.addf %635, %658 : vector<24x32xf32>
    %660 = vector.extract_strided_slice %612 {offsets = [0, 48], sizes = [24, 8], strides = [1, 1]} : vector<24x96xf32> to vector<24x8xf32>
    %661 = vector.extract_strided_slice %612 {offsets = [0, 56], sizes = [24, 8], strides = [1, 1]} : vector<24x96xf32> to vector<24x8xf32>
    %662 = vector.extract_strided_slice %612 {offsets = [0, 64], sizes = [24, 8], strides = [1, 1]} : vector<24x96xf32> to vector<24x8xf32>
    %663 = arith.truncf %660 : vector<24x8xf32> to vector<24x8xbf16>
    %664 = arith.truncf %661 : vector<24x8xf32> to vector<24x8xbf16>
    %cst_220 = arith.constant dense<0.000000e+00> : vector<24x24xf32>
    %665 = tpu.matmul %663, %664, %cst_220 {dimension_numbers = #tpu.dot_dimension_numbers<[1], [1], [0], [0], [0, 0, 1, 0], [], []>} : vector<24x8xbf16>, vector<24x8xbf16>, vector<24x24xf32> -> vector<24x24xf32>
    %cst_221 = arith.constant -1.000000e+30 : f32
    %666 = vector.broadcast %cst_221 : f32 to vector<24x24xf32>
    %667 = arith.select %9, %665, %666 : vector<24x24xi1>, vector<24x24xf32>
    %cst_222 = arith.constant dense<0xFF800000> : vector<24xf32>
    %668 = vector.multi_reduction <maximumf>, %667, %cst_222 [1] : vector<24x24xf32> to vector<24xf32>
    %669 = vector.shape_cast %668 : vector<24xf32> to vector<24x1xf32>
    %670 = vector.broadcast %669 : vector<24x1xf32> to vector<24x24xf32>
    %671 = arith.subf %667, %670 : vector<24x24xf32>
    %672 = math.exp %671 : vector<24x24xf32>
    %cst_223 = arith.constant dense<0.000000e+00> : vector<24xf32>
    %673 = vector.multi_reduction <add>, %672, %cst_223 [1] : vector<24x24xf32> to vector<24xf32>
    %674 = vector.shape_cast %673 : vector<24xf32> to vector<24x1xf32>
    %675 = tpu.reciprocal %674 {approx = true} : vector<24x1xf32> -> vector<24x1xf32>
    %676 = vector.broadcast %675 : vector<24x1xf32> to vector<24x24xf32>
    %677 = arith.mulf %672, %676 : vector<24x24xf32>
    %678 = arith.truncf %677 : vector<24x24xf32> to vector<24x24xbf16>
    %679 = arith.truncf %662 : vector<24x8xf32> to vector<24x8xbf16>
    %cst_224 = arith.constant dense<0.000000e+00> : vector<24x8xf32>
    %680 = tpu.matmul %678, %679, %cst_224 {dimension_numbers = #tpu.dot_dimension_numbers<[1], [0], [0], [1], [0, 0, 1, 1], [], []>} : vector<24x24xbf16>, vector<24x8xbf16>, vector<24x8xf32> -> vector<24x8xf32>
    %c72_225 = arith.constant 72 : index
    %c0_226 = arith.constant 0 : index
    %681 = vector.load %arg3[%c72_225, %c0_226] : memref<184x128xf32, #tpu.memory_space<vmem>>, vector<8x32xf32>
    %cst_227 = arith.constant dense<0.000000e+00> : vector<24x32xf32>
    %682 = tpu.matmul %680, %681, %cst_227 {dimension_numbers = #tpu.dot_dimension_numbers<[1], [0], [0], [1], [0, 0, 1, 1], [], []>} : vector<24x8xf32>, vector<8x32xf32>, vector<24x32xf32> -> vector<24x32xf32>
    %683 = arith.addf %659, %682 : vector<24x32xf32>
    %684 = vector.extract_strided_slice %612 {offsets = [0, 72], sizes = [24, 8], strides = [1, 1]} : vector<24x96xf32> to vector<24x8xf32>
    %685 = vector.extract_strided_slice %612 {offsets = [0, 80], sizes = [24, 8], strides = [1, 1]} : vector<24x96xf32> to vector<24x8xf32>
    %686 = vector.extract_strided_slice %612 {offsets = [0, 88], sizes = [24, 8], strides = [1, 1]} : vector<24x96xf32> to vector<24x8xf32>
    %687 = arith.truncf %684 : vector<24x8xf32> to vector<24x8xbf16>
    %688 = arith.truncf %685 : vector<24x8xf32> to vector<24x8xbf16>
    %cst_228 = arith.constant dense<0.000000e+00> : vector<24x24xf32>
    %689 = tpu.matmul %687, %688, %cst_228 {dimension_numbers = #tpu.dot_dimension_numbers<[1], [1], [0], [0], [0, 0, 1, 0], [], []>} : vector<24x8xbf16>, vector<24x8xbf16>, vector<24x24xf32> -> vector<24x24xf32>
    %cst_229 = arith.constant -1.000000e+30 : f32
    %690 = vector.broadcast %cst_229 : f32 to vector<24x24xf32>
    %691 = arith.select %9, %689, %690 : vector<24x24xi1>, vector<24x24xf32>
    %cst_230 = arith.constant dense<0xFF800000> : vector<24xf32>
    %692 = vector.multi_reduction <maximumf>, %691, %cst_230 [1] : vector<24x24xf32> to vector<24xf32>
    %693 = vector.shape_cast %692 : vector<24xf32> to vector<24x1xf32>
    %694 = vector.broadcast %693 : vector<24x1xf32> to vector<24x24xf32>
    %695 = arith.subf %691, %694 : vector<24x24xf32>
    %696 = math.exp %695 : vector<24x24xf32>
    %cst_231 = arith.constant dense<0.000000e+00> : vector<24xf32>
    %697 = vector.multi_reduction <add>, %696, %cst_231 [1] : vector<24x24xf32> to vector<24xf32>
    %698 = vector.shape_cast %697 : vector<24xf32> to vector<24x1xf32>
    %699 = tpu.reciprocal %698 {approx = true} : vector<24x1xf32> -> vector<24x1xf32>
    %700 = vector.broadcast %699 : vector<24x1xf32> to vector<24x24xf32>
    %701 = arith.mulf %696, %700 : vector<24x24xf32>
    %702 = arith.truncf %701 : vector<24x24xf32> to vector<24x24xbf16>
    %703 = arith.truncf %686 : vector<24x8xf32> to vector<24x8xbf16>
    %cst_232 = arith.constant dense<0.000000e+00> : vector<24x8xf32>
    %704 = tpu.matmul %702, %703, %cst_232 {dimension_numbers = #tpu.dot_dimension_numbers<[1], [0], [0], [1], [0, 0, 1, 1], [], []>} : vector<24x24xbf16>, vector<24x8xbf16>, vector<24x8xf32> -> vector<24x8xf32>
    %c80_233 = arith.constant 80 : index
    %c0_234 = arith.constant 0 : index
    %705 = vector.load %arg3[%c80_233, %c0_234] : memref<184x128xf32, #tpu.memory_space<vmem>>, vector<8x32xf32>
    %cst_235 = arith.constant dense<0.000000e+00> : vector<24x32xf32>
    %706 = tpu.matmul %704, %705, %cst_235 {dimension_numbers = #tpu.dot_dimension_numbers<[1], [0], [0], [1], [0, 0, 1, 1], [], []>} : vector<24x8xf32>, vector<8x32xf32>, vector<24x32xf32> -> vector<24x32xf32>
    %707 = arith.addf %683, %706 : vector<24x32xf32>
    %708 = vector.extract_strided_slice %515 {offsets = [48, 0], sizes = [24, 96], strides = [1, 1]} : vector<96x96xf32> to vector<24x96xf32>
    %709 = vector.extract_strided_slice %708 {offsets = [0, 0], sizes = [24, 8], strides = [1, 1]} : vector<24x96xf32> to vector<24x8xf32>
    %710 = vector.extract_strided_slice %708 {offsets = [0, 8], sizes = [24, 8], strides = [1, 1]} : vector<24x96xf32> to vector<24x8xf32>
    %711 = vector.extract_strided_slice %708 {offsets = [0, 16], sizes = [24, 8], strides = [1, 1]} : vector<24x96xf32> to vector<24x8xf32>
    %712 = arith.truncf %709 : vector<24x8xf32> to vector<24x8xbf16>
    %713 = arith.truncf %710 : vector<24x8xf32> to vector<24x8xbf16>
    %cst_236 = arith.constant dense<0.000000e+00> : vector<24x24xf32>
    %714 = tpu.matmul %712, %713, %cst_236 {dimension_numbers = #tpu.dot_dimension_numbers<[1], [1], [0], [0], [0, 0, 1, 0], [], []>} : vector<24x8xbf16>, vector<24x8xbf16>, vector<24x24xf32> -> vector<24x24xf32>
    %cst_237 = arith.constant -1.000000e+30 : f32
    %715 = vector.broadcast %cst_237 : f32 to vector<24x24xf32>
    %716 = arith.select %9, %714, %715 : vector<24x24xi1>, vector<24x24xf32>
    %cst_238 = arith.constant dense<0xFF800000> : vector<24xf32>
    %717 = vector.multi_reduction <maximumf>, %716, %cst_238 [1] : vector<24x24xf32> to vector<24xf32>
    %718 = vector.shape_cast %717 : vector<24xf32> to vector<24x1xf32>
    %719 = vector.broadcast %718 : vector<24x1xf32> to vector<24x24xf32>
    %720 = arith.subf %716, %719 : vector<24x24xf32>
    %721 = math.exp %720 : vector<24x24xf32>
    %cst_239 = arith.constant dense<0.000000e+00> : vector<24xf32>
    %722 = vector.multi_reduction <add>, %721, %cst_239 [1] : vector<24x24xf32> to vector<24xf32>
    %723 = vector.shape_cast %722 : vector<24xf32> to vector<24x1xf32>
    %724 = tpu.reciprocal %723 {approx = true} : vector<24x1xf32> -> vector<24x1xf32>
    %725 = vector.broadcast %724 : vector<24x1xf32> to vector<24x24xf32>
    %726 = arith.mulf %721, %725 : vector<24x24xf32>
    %727 = arith.truncf %726 : vector<24x24xf32> to vector<24x24xbf16>
    %728 = arith.truncf %711 : vector<24x8xf32> to vector<24x8xbf16>
    %cst_240 = arith.constant dense<0.000000e+00> : vector<24x8xf32>
    %729 = tpu.matmul %727, %728, %cst_240 {dimension_numbers = #tpu.dot_dimension_numbers<[1], [0], [0], [1], [0, 0, 1, 1], [], []>} : vector<24x24xbf16>, vector<24x8xbf16>, vector<24x8xf32> -> vector<24x8xf32>
    %c56_241 = arith.constant 56 : index
    %c0_242 = arith.constant 0 : index
    %730 = vector.load %arg3[%c56_241, %c0_242] : memref<184x128xf32, #tpu.memory_space<vmem>>, vector<8x32xf32>
    %cst_243 = arith.constant dense<0.000000e+00> : vector<24x32xf32>
    %731 = tpu.matmul %729, %730, %cst_243 {dimension_numbers = #tpu.dot_dimension_numbers<[1], [0], [0], [1], [0, 0, 1, 1], [], []>} : vector<24x8xf32>, vector<8x32xf32>, vector<24x32xf32> -> vector<24x32xf32>
    %732 = vector.extract_strided_slice %708 {offsets = [0, 24], sizes = [24, 8], strides = [1, 1]} : vector<24x96xf32> to vector<24x8xf32>
    %733 = vector.extract_strided_slice %708 {offsets = [0, 32], sizes = [24, 8], strides = [1, 1]} : vector<24x96xf32> to vector<24x8xf32>
    %734 = vector.extract_strided_slice %708 {offsets = [0, 40], sizes = [24, 8], strides = [1, 1]} : vector<24x96xf32> to vector<24x8xf32>
    %735 = arith.truncf %732 : vector<24x8xf32> to vector<24x8xbf16>
    %736 = arith.truncf %733 : vector<24x8xf32> to vector<24x8xbf16>
    %cst_244 = arith.constant dense<0.000000e+00> : vector<24x24xf32>
    %737 = tpu.matmul %735, %736, %cst_244 {dimension_numbers = #tpu.dot_dimension_numbers<[1], [1], [0], [0], [0, 0, 1, 0], [], []>} : vector<24x8xbf16>, vector<24x8xbf16>, vector<24x24xf32> -> vector<24x24xf32>
    %cst_245 = arith.constant -1.000000e+30 : f32
    %738 = vector.broadcast %cst_245 : f32 to vector<24x24xf32>
    %739 = arith.select %9, %737, %738 : vector<24x24xi1>, vector<24x24xf32>
    %cst_246 = arith.constant dense<0xFF800000> : vector<24xf32>
    %740 = vector.multi_reduction <maximumf>, %739, %cst_246 [1] : vector<24x24xf32> to vector<24xf32>
    %741 = vector.shape_cast %740 : vector<24xf32> to vector<24x1xf32>
    %742 = vector.broadcast %741 : vector<24x1xf32> to vector<24x24xf32>
    %743 = arith.subf %739, %742 : vector<24x24xf32>
    %744 = math.exp %743 : vector<24x24xf32>
    %cst_247 = arith.constant dense<0.000000e+00> : vector<24xf32>
    %745 = vector.multi_reduction <add>, %744, %cst_247 [1] : vector<24x24xf32> to vector<24xf32>
    %746 = vector.shape_cast %745 : vector<24xf32> to vector<24x1xf32>
    %747 = tpu.reciprocal %746 {approx = true} : vector<24x1xf32> -> vector<24x1xf32>
    %748 = vector.broadcast %747 : vector<24x1xf32> to vector<24x24xf32>
    %749 = arith.mulf %744, %748 : vector<24x24xf32>
    %750 = arith.truncf %749 : vector<24x24xf32> to vector<24x24xbf16>
    %751 = arith.truncf %734 : vector<24x8xf32> to vector<24x8xbf16>
    %cst_248 = arith.constant dense<0.000000e+00> : vector<24x8xf32>
    %752 = tpu.matmul %750, %751, %cst_248 {dimension_numbers = #tpu.dot_dimension_numbers<[1], [0], [0], [1], [0, 0, 1, 1], [], []>} : vector<24x24xbf16>, vector<24x8xbf16>, vector<24x8xf32> -> vector<24x8xf32>
    %c64_249 = arith.constant 64 : index
    %c0_250 = arith.constant 0 : index
    %753 = vector.load %arg3[%c64_249, %c0_250] : memref<184x128xf32, #tpu.memory_space<vmem>>, vector<8x32xf32>
    %cst_251 = arith.constant dense<0.000000e+00> : vector<24x32xf32>
    %754 = tpu.matmul %752, %753, %cst_251 {dimension_numbers = #tpu.dot_dimension_numbers<[1], [0], [0], [1], [0, 0, 1, 1], [], []>} : vector<24x8xf32>, vector<8x32xf32>, vector<24x32xf32> -> vector<24x32xf32>
    %755 = arith.addf %731, %754 : vector<24x32xf32>
    %756 = vector.extract_strided_slice %708 {offsets = [0, 48], sizes = [24, 8], strides = [1, 1]} : vector<24x96xf32> to vector<24x8xf32>
    %757 = vector.extract_strided_slice %708 {offsets = [0, 56], sizes = [24, 8], strides = [1, 1]} : vector<24x96xf32> to vector<24x8xf32>
    %758 = vector.extract_strided_slice %708 {offsets = [0, 64], sizes = [24, 8], strides = [1, 1]} : vector<24x96xf32> to vector<24x8xf32>
    %759 = arith.truncf %756 : vector<24x8xf32> to vector<24x8xbf16>
    %760 = arith.truncf %757 : vector<24x8xf32> to vector<24x8xbf16>
    %cst_252 = arith.constant dense<0.000000e+00> : vector<24x24xf32>
    %761 = tpu.matmul %759, %760, %cst_252 {dimension_numbers = #tpu.dot_dimension_numbers<[1], [1], [0], [0], [0, 0, 1, 0], [], []>} : vector<24x8xbf16>, vector<24x8xbf16>, vector<24x24xf32> -> vector<24x24xf32>
    %cst_253 = arith.constant -1.000000e+30 : f32
    %762 = vector.broadcast %cst_253 : f32 to vector<24x24xf32>
    %763 = arith.select %9, %761, %762 : vector<24x24xi1>, vector<24x24xf32>
    %cst_254 = arith.constant dense<0xFF800000> : vector<24xf32>
    %764 = vector.multi_reduction <maximumf>, %763, %cst_254 [1] : vector<24x24xf32> to vector<24xf32>
    %765 = vector.shape_cast %764 : vector<24xf32> to vector<24x1xf32>
    %766 = vector.broadcast %765 : vector<24x1xf32> to vector<24x24xf32>
    %767 = arith.subf %763, %766 : vector<24x24xf32>
    %768 = math.exp %767 : vector<24x24xf32>
    %cst_255 = arith.constant dense<0.000000e+00> : vector<24xf32>
    %769 = vector.multi_reduction <add>, %768, %cst_255 [1] : vector<24x24xf32> to vector<24xf32>
    %770 = vector.shape_cast %769 : vector<24xf32> to vector<24x1xf32>
    %771 = tpu.reciprocal %770 {approx = true} : vector<24x1xf32> -> vector<24x1xf32>
    %772 = vector.broadcast %771 : vector<24x1xf32> to vector<24x24xf32>
    %773 = arith.mulf %768, %772 : vector<24x24xf32>
    %774 = arith.truncf %773 : vector<24x24xf32> to vector<24x24xbf16>
    %775 = arith.truncf %758 : vector<24x8xf32> to vector<24x8xbf16>
    %cst_256 = arith.constant dense<0.000000e+00> : vector<24x8xf32>
    %776 = tpu.matmul %774, %775, %cst_256 {dimension_numbers = #tpu.dot_dimension_numbers<[1], [0], [0], [1], [0, 0, 1, 1], [], []>} : vector<24x24xbf16>, vector<24x8xbf16>, vector<24x8xf32> -> vector<24x8xf32>
    %c72_257 = arith.constant 72 : index
    %c0_258 = arith.constant 0 : index
    %777 = vector.load %arg3[%c72_257, %c0_258] : memref<184x128xf32, #tpu.memory_space<vmem>>, vector<8x32xf32>
    %cst_259 = arith.constant dense<0.000000e+00> : vector<24x32xf32>
    %778 = tpu.matmul %776, %777, %cst_259 {dimension_numbers = #tpu.dot_dimension_numbers<[1], [0], [0], [1], [0, 0, 1, 1], [], []>} : vector<24x8xf32>, vector<8x32xf32>, vector<24x32xf32> -> vector<24x32xf32>
    %779 = arith.addf %755, %778 : vector<24x32xf32>
    %780 = vector.extract_strided_slice %708 {offsets = [0, 72], sizes = [24, 8], strides = [1, 1]} : vector<24x96xf32> to vector<24x8xf32>
    %781 = vector.extract_strided_slice %708 {offsets = [0, 80], sizes = [24, 8], strides = [1, 1]} : vector<24x96xf32> to vector<24x8xf32>
    %782 = vector.extract_strided_slice %708 {offsets = [0, 88], sizes = [24, 8], strides = [1, 1]} : vector<24x96xf32> to vector<24x8xf32>
    %783 = arith.truncf %780 : vector<24x8xf32> to vector<24x8xbf16>
    %784 = arith.truncf %781 : vector<24x8xf32> to vector<24x8xbf16>
    %cst_260 = arith.constant dense<0.000000e+00> : vector<24x24xf32>
    %785 = tpu.matmul %783, %784, %cst_260 {dimension_numbers = #tpu.dot_dimension_numbers<[1], [1], [0], [0], [0, 0, 1, 0], [], []>} : vector<24x8xbf16>, vector<24x8xbf16>, vector<24x24xf32> -> vector<24x24xf32>
    %cst_261 = arith.constant -1.000000e+30 : f32
    %786 = vector.broadcast %cst_261 : f32 to vector<24x24xf32>
    %787 = arith.select %9, %785, %786 : vector<24x24xi1>, vector<24x24xf32>
    %cst_262 = arith.constant dense<0xFF800000> : vector<24xf32>
    %788 = vector.multi_reduction <maximumf>, %787, %cst_262 [1] : vector<24x24xf32> to vector<24xf32>
    %789 = vector.shape_cast %788 : vector<24xf32> to vector<24x1xf32>
    %790 = vector.broadcast %789 : vector<24x1xf32> to vector<24x24xf32>
    %791 = arith.subf %787, %790 : vector<24x24xf32>
    %792 = math.exp %791 : vector<24x24xf32>
    %cst_263 = arith.constant dense<0.000000e+00> : vector<24xf32>
    %793 = vector.multi_reduction <add>, %792, %cst_263 [1] : vector<24x24xf32> to vector<24xf32>
    %794 = vector.shape_cast %793 : vector<24xf32> to vector<24x1xf32>
    %795 = tpu.reciprocal %794 {approx = true} : vector<24x1xf32> -> vector<24x1xf32>
    %796 = vector.broadcast %795 : vector<24x1xf32> to vector<24x24xf32>
    %797 = arith.mulf %792, %796 : vector<24x24xf32>
    %798 = arith.truncf %797 : vector<24x24xf32> to vector<24x24xbf16>
    %799 = arith.truncf %782 : vector<24x8xf32> to vector<24x8xbf16>
    %cst_264 = arith.constant dense<0.000000e+00> : vector<24x8xf32>
    %800 = tpu.matmul %798, %799, %cst_264 {dimension_numbers = #tpu.dot_dimension_numbers<[1], [0], [0], [1], [0, 0, 1, 1], [], []>} : vector<24x24xbf16>, vector<24x8xbf16>, vector<24x8xf32> -> vector<24x8xf32>
    %c80_265 = arith.constant 80 : index
    %c0_266 = arith.constant 0 : index
    %801 = vector.load %arg3[%c80_265, %c0_266] : memref<184x128xf32, #tpu.memory_space<vmem>>, vector<8x32xf32>
    %cst_267 = arith.constant dense<0.000000e+00> : vector<24x32xf32>
    %802 = tpu.matmul %800, %801, %cst_267 {dimension_numbers = #tpu.dot_dimension_numbers<[1], [0], [0], [1], [0, 0, 1, 1], [], []>} : vector<24x8xf32>, vector<8x32xf32>, vector<24x32xf32> -> vector<24x32xf32>
    %803 = arith.addf %779, %802 : vector<24x32xf32>
    %804 = vector.extract_strided_slice %515 {offsets = [72, 0], sizes = [24, 96], strides = [1, 1]} : vector<96x96xf32> to vector<24x96xf32>
    %805 = vector.extract_strided_slice %804 {offsets = [0, 0], sizes = [24, 8], strides = [1, 1]} : vector<24x96xf32> to vector<24x8xf32>
    %806 = vector.extract_strided_slice %804 {offsets = [0, 8], sizes = [24, 8], strides = [1, 1]} : vector<24x96xf32> to vector<24x8xf32>
    %807 = vector.extract_strided_slice %804 {offsets = [0, 16], sizes = [24, 8], strides = [1, 1]} : vector<24x96xf32> to vector<24x8xf32>
    %808 = arith.truncf %805 : vector<24x8xf32> to vector<24x8xbf16>
    %809 = arith.truncf %806 : vector<24x8xf32> to vector<24x8xbf16>
    %cst_268 = arith.constant dense<0.000000e+00> : vector<24x24xf32>
    %810 = tpu.matmul %808, %809, %cst_268 {dimension_numbers = #tpu.dot_dimension_numbers<[1], [1], [0], [0], [0, 0, 1, 0], [], []>} : vector<24x8xbf16>, vector<24x8xbf16>, vector<24x24xf32> -> vector<24x24xf32>
    %cst_269 = arith.constant -1.000000e+30 : f32
    %811 = vector.broadcast %cst_269 : f32 to vector<24x24xf32>
    %812 = arith.select %9, %810, %811 : vector<24x24xi1>, vector<24x24xf32>
    %cst_270 = arith.constant dense<0xFF800000> : vector<24xf32>
    %813 = vector.multi_reduction <maximumf>, %812, %cst_270 [1] : vector<24x24xf32> to vector<24xf32>
    %814 = vector.shape_cast %813 : vector<24xf32> to vector<24x1xf32>
    %815 = vector.broadcast %814 : vector<24x1xf32> to vector<24x24xf32>
    %816 = arith.subf %812, %815 : vector<24x24xf32>
    %817 = math.exp %816 : vector<24x24xf32>
    %cst_271 = arith.constant dense<0.000000e+00> : vector<24xf32>
    %818 = vector.multi_reduction <add>, %817, %cst_271 [1] : vector<24x24xf32> to vector<24xf32>
    %819 = vector.shape_cast %818 : vector<24xf32> to vector<24x1xf32>
    %820 = tpu.reciprocal %819 {approx = true} : vector<24x1xf32> -> vector<24x1xf32>
    %821 = vector.broadcast %820 : vector<24x1xf32> to vector<24x24xf32>
    %822 = arith.mulf %817, %821 : vector<24x24xf32>
    %823 = arith.truncf %822 : vector<24x24xf32> to vector<24x24xbf16>
    %824 = arith.truncf %807 : vector<24x8xf32> to vector<24x8xbf16>
    %cst_272 = arith.constant dense<0.000000e+00> : vector<24x8xf32>
    %825 = tpu.matmul %823, %824, %cst_272 {dimension_numbers = #tpu.dot_dimension_numbers<[1], [0], [0], [1], [0, 0, 1, 1], [], []>} : vector<24x24xbf16>, vector<24x8xbf16>, vector<24x8xf32> -> vector<24x8xf32>
    %c56_273 = arith.constant 56 : index
    %c0_274 = arith.constant 0 : index
    %826 = vector.load %arg3[%c56_273, %c0_274] : memref<184x128xf32, #tpu.memory_space<vmem>>, vector<8x32xf32>
    %cst_275 = arith.constant dense<0.000000e+00> : vector<24x32xf32>
    %827 = tpu.matmul %825, %826, %cst_275 {dimension_numbers = #tpu.dot_dimension_numbers<[1], [0], [0], [1], [0, 0, 1, 1], [], []>} : vector<24x8xf32>, vector<8x32xf32>, vector<24x32xf32> -> vector<24x32xf32>
    %828 = vector.extract_strided_slice %804 {offsets = [0, 24], sizes = [24, 8], strides = [1, 1]} : vector<24x96xf32> to vector<24x8xf32>
    %829 = vector.extract_strided_slice %804 {offsets = [0, 32], sizes = [24, 8], strides = [1, 1]} : vector<24x96xf32> to vector<24x8xf32>
    %830 = vector.extract_strided_slice %804 {offsets = [0, 40], sizes = [24, 8], strides = [1, 1]} : vector<24x96xf32> to vector<24x8xf32>
    %831 = arith.truncf %828 : vector<24x8xf32> to vector<24x8xbf16>
    %832 = arith.truncf %829 : vector<24x8xf32> to vector<24x8xbf16>
    %cst_276 = arith.constant dense<0.000000e+00> : vector<24x24xf32>
    %833 = tpu.matmul %831, %832, %cst_276 {dimension_numbers = #tpu.dot_dimension_numbers<[1], [1], [0], [0], [0, 0, 1, 0], [], []>} : vector<24x8xbf16>, vector<24x8xbf16>, vector<24x24xf32> -> vector<24x24xf32>
    %cst_277 = arith.constant -1.000000e+30 : f32
    %834 = vector.broadcast %cst_277 : f32 to vector<24x24xf32>
    %835 = arith.select %9, %833, %834 : vector<24x24xi1>, vector<24x24xf32>
    %cst_278 = arith.constant dense<0xFF800000> : vector<24xf32>
    %836 = vector.multi_reduction <maximumf>, %835, %cst_278 [1] : vector<24x24xf32> to vector<24xf32>
    %837 = vector.shape_cast %836 : vector<24xf32> to vector<24x1xf32>
    %838 = vector.broadcast %837 : vector<24x1xf32> to vector<24x24xf32>
    %839 = arith.subf %835, %838 : vector<24x24xf32>
    %840 = math.exp %839 : vector<24x24xf32>
    %cst_279 = arith.constant dense<0.000000e+00> : vector<24xf32>
    %841 = vector.multi_reduction <add>, %840, %cst_279 [1] : vector<24x24xf32> to vector<24xf32>
    %842 = vector.shape_cast %841 : vector<24xf32> to vector<24x1xf32>
    %843 = tpu.reciprocal %842 {approx = true} : vector<24x1xf32> -> vector<24x1xf32>
    %844 = vector.broadcast %843 : vector<24x1xf32> to vector<24x24xf32>
    %845 = arith.mulf %840, %844 : vector<24x24xf32>
    %846 = arith.truncf %845 : vector<24x24xf32> to vector<24x24xbf16>
    %847 = arith.truncf %830 : vector<24x8xf32> to vector<24x8xbf16>
    %cst_280 = arith.constant dense<0.000000e+00> : vector<24x8xf32>
    %848 = tpu.matmul %846, %847, %cst_280 {dimension_numbers = #tpu.dot_dimension_numbers<[1], [0], [0], [1], [0, 0, 1, 1], [], []>} : vector<24x24xbf16>, vector<24x8xbf16>, vector<24x8xf32> -> vector<24x8xf32>
    %c64_281 = arith.constant 64 : index
    %c0_282 = arith.constant 0 : index
    %849 = vector.load %arg3[%c64_281, %c0_282] : memref<184x128xf32, #tpu.memory_space<vmem>>, vector<8x32xf32>
    %cst_283 = arith.constant dense<0.000000e+00> : vector<24x32xf32>
    %850 = tpu.matmul %848, %849, %cst_283 {dimension_numbers = #tpu.dot_dimension_numbers<[1], [0], [0], [1], [0, 0, 1, 1], [], []>} : vector<24x8xf32>, vector<8x32xf32>, vector<24x32xf32> -> vector<24x32xf32>
    %851 = arith.addf %827, %850 : vector<24x32xf32>
    %852 = vector.extract_strided_slice %804 {offsets = [0, 48], sizes = [24, 8], strides = [1, 1]} : vector<24x96xf32> to vector<24x8xf32>
    %853 = vector.extract_strided_slice %804 {offsets = [0, 56], sizes = [24, 8], strides = [1, 1]} : vector<24x96xf32> to vector<24x8xf32>
    %854 = vector.extract_strided_slice %804 {offsets = [0, 64], sizes = [24, 8], strides = [1, 1]} : vector<24x96xf32> to vector<24x8xf32>
    %855 = arith.truncf %852 : vector<24x8xf32> to vector<24x8xbf16>
    %856 = arith.truncf %853 : vector<24x8xf32> to vector<24x8xbf16>
    %cst_284 = arith.constant dense<0.000000e+00> : vector<24x24xf32>
    %857 = tpu.matmul %855, %856, %cst_284 {dimension_numbers = #tpu.dot_dimension_numbers<[1], [1], [0], [0], [0, 0, 1, 0], [], []>} : vector<24x8xbf16>, vector<24x8xbf16>, vector<24x24xf32> -> vector<24x24xf32>
    %cst_285 = arith.constant -1.000000e+30 : f32
    %858 = vector.broadcast %cst_285 : f32 to vector<24x24xf32>
    %859 = arith.select %9, %857, %858 : vector<24x24xi1>, vector<24x24xf32>
    %cst_286 = arith.constant dense<0xFF800000> : vector<24xf32>
    %860 = vector.multi_reduction <maximumf>, %859, %cst_286 [1] : vector<24x24xf32> to vector<24xf32>
    %861 = vector.shape_cast %860 : vector<24xf32> to vector<24x1xf32>
    %862 = vector.broadcast %861 : vector<24x1xf32> to vector<24x24xf32>
    %863 = arith.subf %859, %862 : vector<24x24xf32>
    %864 = math.exp %863 : vector<24x24xf32>
    %cst_287 = arith.constant dense<0.000000e+00> : vector<24xf32>
    %865 = vector.multi_reduction <add>, %864, %cst_287 [1] : vector<24x24xf32> to vector<24xf32>
    %866 = vector.shape_cast %865 : vector<24xf32> to vector<24x1xf32>
    %867 = tpu.reciprocal %866 {approx = true} : vector<24x1xf32> -> vector<24x1xf32>
    %868 = vector.broadcast %867 : vector<24x1xf32> to vector<24x24xf32>
    %869 = arith.mulf %864, %868 : vector<24x24xf32>
    %870 = arith.truncf %869 : vector<24x24xf32> to vector<24x24xbf16>
    %871 = arith.truncf %854 : vector<24x8xf32> to vector<24x8xbf16>
    %cst_288 = arith.constant dense<0.000000e+00> : vector<24x8xf32>
    %872 = tpu.matmul %870, %871, %cst_288 {dimension_numbers = #tpu.dot_dimension_numbers<[1], [0], [0], [1], [0, 0, 1, 1], [], []>} : vector<24x24xbf16>, vector<24x8xbf16>, vector<24x8xf32> -> vector<24x8xf32>
    %c72_289 = arith.constant 72 : index
    %c0_290 = arith.constant 0 : index
    %873 = vector.load %arg3[%c72_289, %c0_290] : memref<184x128xf32, #tpu.memory_space<vmem>>, vector<8x32xf32>
    %cst_291 = arith.constant dense<0.000000e+00> : vector<24x32xf32>
    %874 = tpu.matmul %872, %873, %cst_291 {dimension_numbers = #tpu.dot_dimension_numbers<[1], [0], [0], [1], [0, 0, 1, 1], [], []>} : vector<24x8xf32>, vector<8x32xf32>, vector<24x32xf32> -> vector<24x32xf32>
    %875 = arith.addf %851, %874 : vector<24x32xf32>
    %876 = vector.extract_strided_slice %804 {offsets = [0, 72], sizes = [24, 8], strides = [1, 1]} : vector<24x96xf32> to vector<24x8xf32>
    %877 = vector.extract_strided_slice %804 {offsets = [0, 80], sizes = [24, 8], strides = [1, 1]} : vector<24x96xf32> to vector<24x8xf32>
    %878 = vector.extract_strided_slice %804 {offsets = [0, 88], sizes = [24, 8], strides = [1, 1]} : vector<24x96xf32> to vector<24x8xf32>
    %879 = arith.truncf %876 : vector<24x8xf32> to vector<24x8xbf16>
    %880 = arith.truncf %877 : vector<24x8xf32> to vector<24x8xbf16>
    %cst_292 = arith.constant dense<0.000000e+00> : vector<24x24xf32>
    %881 = tpu.matmul %879, %880, %cst_292 {dimension_numbers = #tpu.dot_dimension_numbers<[1], [1], [0], [0], [0, 0, 1, 0], [], []>} : vector<24x8xbf16>, vector<24x8xbf16>, vector<24x24xf32> -> vector<24x24xf32>
    %cst_293 = arith.constant -1.000000e+30 : f32
    %882 = vector.broadcast %cst_293 : f32 to vector<24x24xf32>
    %883 = arith.select %9, %881, %882 : vector<24x24xi1>, vector<24x24xf32>
    %cst_294 = arith.constant dense<0xFF800000> : vector<24xf32>
    %884 = vector.multi_reduction <maximumf>, %883, %cst_294 [1] : vector<24x24xf32> to vector<24xf32>
    %885 = vector.shape_cast %884 : vector<24xf32> to vector<24x1xf32>
    %886 = vector.broadcast %885 : vector<24x1xf32> to vector<24x24xf32>
    %887 = arith.subf %883, %886 : vector<24x24xf32>
    %888 = math.exp %887 : vector<24x24xf32>
    %cst_295 = arith.constant dense<0.000000e+00> : vector<24xf32>
    %889 = vector.multi_reduction <add>, %888, %cst_295 [1] : vector<24x24xf32> to vector<24xf32>
    %890 = vector.shape_cast %889 : vector<24xf32> to vector<24x1xf32>
    %891 = tpu.reciprocal %890 {approx = true} : vector<24x1xf32> -> vector<24x1xf32>
    %892 = vector.broadcast %891 : vector<24x1xf32> to vector<24x24xf32>
    %893 = arith.mulf %888, %892 : vector<24x24xf32>
    %894 = arith.truncf %893 : vector<24x24xf32> to vector<24x24xbf16>
    %895 = arith.truncf %878 : vector<24x8xf32> to vector<24x8xbf16>
    %cst_296 = arith.constant dense<0.000000e+00> : vector<24x8xf32>
    %896 = tpu.matmul %894, %895, %cst_296 {dimension_numbers = #tpu.dot_dimension_numbers<[1], [0], [0], [1], [0, 0, 1, 1], [], []>} : vector<24x24xbf16>, vector<24x8xbf16>, vector<24x8xf32> -> vector<24x8xf32>
    %c80_297 = arith.constant 80 : index
    %c0_298 = arith.constant 0 : index
    %897 = vector.load %arg3[%c80_297, %c0_298] : memref<184x128xf32, #tpu.memory_space<vmem>>, vector<8x32xf32>
    %cst_299 = arith.constant dense<0.000000e+00> : vector<24x32xf32>
    %898 = tpu.matmul %896, %897, %cst_299 {dimension_numbers = #tpu.dot_dimension_numbers<[1], [0], [0], [1], [0, 0, 1, 1], [], []>} : vector<24x8xf32>, vector<8x32xf32>, vector<24x32xf32> -> vector<24x32xf32>
    %899 = arith.addf %875, %898 : vector<24x32xf32>
    %900 = tpu.concatenate %611, %707, %803, %899 in 0 : vector<24x32xf32>, vector<24x32xf32>, vector<24x32xf32>, vector<24x32xf32> -> vector<96x32xf32>
    %901 = arith.addf %478, %900 : vector<96x32xf32>
    %902 = vector.broadcast %485 : vector<1x32xf32> to vector<96x32xf32>
    %903 = arith.addf %901, %902 : vector<96x32xf32>
    %cst_300 = arith.constant dense<0.000000e+00> : vector<96xf32>
    %904 = vector.multi_reduction <add>, %903, %cst_300 [1] : vector<96x32xf32> to vector<96xf32>
    %905 = vector.shape_cast %904 : vector<96xf32> to vector<96x1xf32>
    %cst_301 = arith.constant 3.200000e+01 : f32
    %906 = vector.broadcast %cst_301 : f32 to vector<96x1xf32>
    %907 = arith.divf %905, %906 : vector<96x1xf32>
    %908 = vector.broadcast %907 : vector<96x1xf32> to vector<96x32xf32>
    %909 = arith.subf %903, %908 : vector<96x32xf32>
    %910 = arith.mulf %909, %909 : vector<96x32xf32>
    %cst_302 = arith.constant dense<0.000000e+00> : vector<96xf32>
    %911 = vector.multi_reduction <add>, %910, %cst_302 [1] : vector<96x32xf32> to vector<96xf32>
    %912 = vector.shape_cast %911 : vector<96xf32> to vector<96x1xf32>
    %cst_303 = arith.constant 3.200000e+01 : f32
    %913 = vector.broadcast %cst_303 : f32 to vector<96x1xf32>
    %914 = arith.divf %912, %913 : vector<96x1xf32>
    %915 = vector.broadcast %907 : vector<96x1xf32> to vector<96x32xf32>
    %916 = arith.subf %903, %915 : vector<96x32xf32>
    %cst_304 = arith.constant 9.99999997E-7 : f32
    %917 = vector.broadcast %cst_304 : f32 to vector<96x1xf32>
    %918 = arith.addf %914, %917 : vector<96x1xf32>
    %919 = math.rsqrt %918 : vector<96x1xf32>
    %920 = vector.broadcast %919 : vector<96x1xf32> to vector<96x32xf32>
    %921 = arith.mulf %916, %920 : vector<96x32xf32>
    %922 = vector.broadcast %486 : vector<1x32xf32> to vector<96x32xf32>
    %923 = arith.mulf %921, %922 : vector<96x32xf32>
    %924 = vector.broadcast %487 : vector<1x32xf32> to vector<96x32xf32>
    %925 = arith.addf %923, %924 : vector<96x32xf32>
    %926 = arith.truncf %925 : vector<96x32xf32> to vector<96x32xbf16>
    %cst_305 = arith.constant dense<0.000000e+00> : vector<96x128xf32>
    %927 = tpu.matmul %926, %480, %cst_305 {dimension_numbers = #tpu.dot_dimension_numbers<[1], [0], [0], [1], [0, 0, 1, 1], [], []>} : vector<96x32xbf16>, vector<32x128xbf16>, vector<96x128xf32> -> vector<96x128xf32>
    %928 = vector.broadcast %488 : vector<1x128xf32> to vector<96x128xf32>
    %929 = arith.addf %927, %928 : vector<96x128xf32>
    %930 = arith.mulf %929, %929 : vector<96x128xf32>
    %931 = arith.mulf %929, %930 : vector<96x128xf32>
    %cst_306 = arith.constant 4.471500e-02 : f32
    %932 = vector.broadcast %cst_306 : f32 to vector<96x128xf32>
    %933 = arith.mulf %932, %931 : vector<96x128xf32>
    %934 = arith.addf %929, %933 : vector<96x128xf32>
    %cst_307 = arith.constant 0.797884583 : f32
    %935 = vector.broadcast %cst_307 : f32 to vector<96x128xf32>
    %936 = arith.mulf %935, %934 : vector<96x128xf32>
    %937 = math.tanh %936 : vector<96x128xf32>
    %cst_308 = arith.constant 1.000000e+00 : f32
    %938 = vector.broadcast %cst_308 : f32 to vector<96x128xf32>
    %939 = arith.addf %938, %937 : vector<96x128xf32>
    %cst_309 = arith.constant 5.000000e-01 : f32
    %940 = vector.broadcast %cst_309 : f32 to vector<96x128xf32>
    %941 = arith.mulf %940, %939 : vector<96x128xf32>
    %942 = arith.mulf %929, %941 : vector<96x128xf32>
    %943 = arith.truncf %942 : vector<96x128xf32> to vector<96x128xbf16>
    %cst_310 = arith.constant dense<0.000000e+00> : vector<96x32xf32>
    %944 = tpu.matmul %943, %481, %cst_310 {dimension_numbers = #tpu.dot_dimension_numbers<[1], [0], [0], [1], [0, 0, 1, 1], [], []>} : vector<96x128xbf16>, vector<128x32xbf16>, vector<96x32xf32> -> vector<96x32xf32>
    %945 = vector.broadcast %489 : vector<1x32xf32> to vector<96x32xf32>
    %946 = arith.addf %944, %945 : vector<96x32xf32>
    %947 = arith.addf %903, %946 : vector<96x32xf32>
    %c0_311 = arith.constant 0 : index
    %c0_312 = arith.constant 0 : index
    %948 = vector.load %arg3[%c0_311, %c0_312] : memref<184x128xf32, #tpu.memory_space<vmem>>, vector<1x32xf32>
    %c1 = arith.constant 1 : index
    %c0_313 = arith.constant 0 : index
    %949 = vector.load %arg3[%c1, %c0_313] : memref<184x128xf32, #tpu.memory_space<vmem>>, vector<1x32xf32>
    %c2 = arith.constant 2 : index
    %c0_314 = arith.constant 0 : index
    %950 = vector.load %arg3[%c2, %c0_314] : memref<184x128xf32, #tpu.memory_space<vmem>>, vector<1x8xf32>
    %951 = vector.extract_strided_slice %947 {offsets = [16, 0], sizes = [1, 32], strides = [1, 1]} : vector<96x32xf32> to vector<1x32xf32>
    %952 = vector.extract_strided_slice %947 {offsets = [40, 0], sizes = [1, 32], strides = [1, 1]} : vector<96x32xf32> to vector<1x32xf32>
    %953 = vector.extract_strided_slice %947 {offsets = [64, 0], sizes = [1, 32], strides = [1, 1]} : vector<96x32xf32> to vector<1x32xf32>
    %954 = vector.extract_strided_slice %947 {offsets = [88, 0], sizes = [1, 32], strides = [1, 1]} : vector<96x32xf32> to vector<1x32xf32>
    %955 = tpu.concatenate %951, %952, %953, %954 in 0 : vector<1x32xf32>, vector<1x32xf32>, vector<1x32xf32>, vector<1x32xf32> -> vector<4x32xf32>
    %cst_315 = arith.constant dense<0.000000e+00> : vector<4xf32>
    %956 = vector.multi_reduction <add>, %955, %cst_315 [1] : vector<4x32xf32> to vector<4xf32>
    %957 = vector.shape_cast %956 : vector<4xf32> to vector<4x1xf32>
    %cst_316 = arith.constant 3.200000e+01 : f32
    %958 = vector.broadcast %cst_316 : f32 to vector<4x1xf32>
    %959 = arith.divf %957, %958 : vector<4x1xf32>
    %960 = vector.broadcast %959 : vector<4x1xf32> to vector<4x32xf32>
    %961 = arith.subf %955, %960 : vector<4x32xf32>
    %962 = arith.mulf %961, %961 : vector<4x32xf32>
    %cst_317 = arith.constant dense<0.000000e+00> : vector<4xf32>
    %963 = vector.multi_reduction <add>, %962, %cst_317 [1] : vector<4x32xf32> to vector<4xf32>
    %964 = vector.shape_cast %963 : vector<4xf32> to vector<4x1xf32>
    %cst_318 = arith.constant 3.200000e+01 : f32
    %965 = vector.broadcast %cst_318 : f32 to vector<4x1xf32>
    %966 = arith.divf %964, %965 : vector<4x1xf32>
    %967 = vector.broadcast %959 : vector<4x1xf32> to vector<4x32xf32>
    %968 = arith.subf %955, %967 : vector<4x32xf32>
    %cst_319 = arith.constant 9.99999997E-7 : f32
    %969 = vector.broadcast %cst_319 : f32 to vector<4x1xf32>
    %970 = arith.addf %966, %969 : vector<4x1xf32>
    %971 = math.rsqrt %970 : vector<4x1xf32>
    %972 = vector.broadcast %971 : vector<4x1xf32> to vector<4x32xf32>
    %973 = arith.mulf %968, %972 : vector<4x32xf32>
    %974 = vector.broadcast %948 : vector<1x32xf32> to vector<4x32xf32>
    %975 = arith.mulf %973, %974 : vector<4x32xf32>
    %976 = vector.broadcast %949 : vector<1x32xf32> to vector<4x32xf32>
    %977 = arith.addf %975, %976 : vector<4x32xf32>
    %978 = arith.truncf %977 : vector<4x32xf32> to vector<4x32xbf16>
    %cst_320 = arith.constant dense<0.000000e+00> : vector<4x8xf32>
    %979 = tpu.matmul %978, %1, %cst_320 {dimension_numbers = #tpu.dot_dimension_numbers<[1], [0], [0], [1], [0, 0, 1, 1], [], []>} : vector<4x32xbf16>, vector<32x8xbf16>, vector<4x8xf32> -> vector<4x8xf32>
    %980 = vector.broadcast %950 : vector<1x8xf32> to vector<4x8xf32>
    %981 = arith.addf %979, %980 : vector<4x8xf32>
    %c0_321 = arith.constant 0 : index
    %c0_322 = arith.constant 0 : index
    %c0_323 = arith.constant 0 : index
    %982 = vector.load %arg4[%c0_321, %c0_322, %c0_323] : memref<1x4x8xf32, #tpu.memory_space<vmem>>, vector<1x4x8xf32>
    %983 = vector.shape_cast %982 : vector<1x4x8xf32> to vector<4x8xf32>
    %984 = vector.shape_cast %981 : vector<4x8xf32> to vector<1x4x8xf32>
    tpu.vector_store %arg4[%c0_321, %c0_322, %c0_323], %984 {strides = array<i32>} : memref<1x4x8xf32, #tpu.memory_space<vmem>>, vector<1x4x8xf32>,
    return
  }
  func.func @transform_0(%arg0: i32) -> (i32, i32) {
    %c0_i32 = arith.constant 0 : i32
    %c0_i32_0 = arith.constant 0 : i32
    return %arg0, %c0_i32 : i32, i32
  }
  func.func @transform_1(%arg0: i32) -> (i32, i32) {
    %c0_i32 = arith.constant 0 : i32
    %c0_i32_0 = arith.constant 0 : i32
    %c0_i32_1 = arith.constant 0 : i32
    return %c0_i32, %c0_i32_0 : i32, i32
  }
  func.func @transform_2(%arg0: i32) -> (i32, i32) {
    %c0_i32 = arith.constant 0 : i32
    %c0_i32_0 = arith.constant 0 : i32
    %c0_i32_1 = arith.constant 0 : i32
    return %c0_i32, %c0_i32_0 : i32, i32
  }
  func.func @transform_3(%arg0: i32) -> (i32, i32, i32) {
    %c0_i32 = arith.constant 0 : i32
    %c0_i32_0 = arith.constant 0 : i32
    %c0_i32_1 = arith.constant 0 : i32
    return %arg0, %c0_i32, %c0_i32_0 : i32, i32, i32
  }
}

</mosaic_0001>

<bundles_post_ra>
// kernel: model_forward.1
= control target key start
LH: loop header
LB: loop body
LE: loop exit
PB: predicated region body
PF: predicated region fallthrough
CT: control target
= control target key end

     0   :  { %8 = vsyncpa [#allocation3], 0  ;;  %s16281_s0 = inlined_call_operand.vmem [shape: f32[192,48], index: 0, kind: input, shape index: {}]   ;;  %s16282_s1 = inlined_call_operand.vmem [shape: bf16[464,128], index: 1, kind: input, shape index: {}]   ;;  %s16283_s2 = inlined_call_operand.vmem [shape: f32[184,128], index: 2, kind: input, shape index: {}]   ;;  %s16284_s3 = inlined_call_operand.hbm [shape: f32[2,4,8], index: 3, kind: output, shape index: {}]  }
   0x1   :  { %10 = vsyncpa [#allocation3 + $0x1], 0  ;;  %s13247_s12 = smov 0   ;;  %s13249_s13 = smov 0  }
   0x2   :  { %s13251_s14 = smov 0   ;;  %s13253_s15 = smov 0  }
   0x3 LB: > { %s13268_s16 = sadd.s32 4294967295, %s13211_s15   ;;  %s10653_s17 = sadd.s32 4294967294, %s13211_s15   ;;  %s13211_s15 = sphi %s13253_s15, %s16293_s15   ;;  %s13207_s14 = sphi %s13251_s14, %s16292_s14   ;;  %s13203_s13 = sphi %s13249_s13, %s16291_s13   ;;  %s13199_s12 = sphi %s13247_s12, %s16290_s12  }
   0x4   : > { %s13272_s18 = sadd.s32 1, %s13211_s15   ;;  %s91_s19 = sadd.s32 1, %s13207_s14 }
   0x5   : > { %s88_s20 = ssub.s32 %s13211_s15, %s13272_s18  ;;  %p101_p0 = scmp.ne.s32.totalorder %s13207_s14, %s13203_s13 }
   0x6   : > { %p89_p1 = scmp.eq.s32.totalorder %s88_s20, 0  ;;  %p102_p2 = scmp.eq.s32.totalorder %s13268_s16, 1 }
   0x7   : > { %p107_p3 = scmp.ne.s32.totalorder %s13203_s13, %s13199_s12  ;;  %p108_p4 = scmp.eq.s32.totalorder %s10653_s17, 1 }
   0x8   : > { %s13283_s21 = scalar_select %p89_p1, %s13207_s14, %s91_s19  }
   0x9   : > { %p13285_p5 = por %p102_p2, %p101_p0  ;;  %p13289_p6 = por %p108_p4, %p107_p3 }
   0xa   : > { %p10656_p7 = scmp.ge.s32.totalorder %s13211_s15, 1  ;;  %p141_p8 = scmp.lt.s32.totalorder %s13211_s15, 3 }
   0xc   : > { %p142_p9 = pnand %p10656_p7, %p141_p8 }
   0xd   : > { %v12580_v0 = vld [vmem:[%s16282_s1] sm:$0xff] (!%p142_p9)   ;;  %s165_s26 = smul.u32 (!%p142_p9), 12, %s13268_s16  ;;  %v12581_v1 = vld [vmem:[%s16282_s1 + $0x8] sm:$0xff] (!%p142_p9)   ;;  %v12582_v2 = vld [vmem:[%s16282_s1 + $0x10] sm:$0xff] (!%p142_p9)   ;;  %vm230_vm0 = vcmask (!%p142_p9), 392192   ;;  %vm365_vm1 = vcmask (!%p142_p9), 261120  }
   0xe   : > { %145 = sbr.rel (%p142_p9) target bundleno = 18972 (0x4a1c), region = 32  ;;  %11422 = vmatprep.subr.bf16.mxu0 (!%p142_p9), %v12580_v0  ;;  %v184_v21 = vld [vmem:[%s16283_s2 + $0x68] sm:$0xff] (!%p142_p9)  ;;  %v182_v22 = vld [vmem:[%s16283_s2 + $0x58] sm:$0xff] (!%p142_p9)  ;;  %v185_v24 = vld [vmem:[%s16283_s2 + $0x70] sm:$0xff] (!%p142_p9)  ;;  %s13213_s6 = smov (!%p142_p9), 120   ;;  %vm684_vm2 = vcmask (!%p142_p9), 64512  }
   0xf   : > { %p166_p10 = scmp.lt.s32.totalorder (!%p142_p9), %s165_s26, 23  ;;  %11423 = vmatpush3.bf16.msra.mxu0 (!%p142_p9), %v12580_v0  ;;  %v183_v27 = vld [vmem:[%s16283_s2 + $0x60] sm:$0xff] (!%p142_p9)  ;;  %v186_v56 = vld [vmem:[%s16283_s2 + $0x78] sm:$0xff] (!%p142_p9)  ;;  %v188_v63 = vld [vmem:[%s16283_s2 + $0x88] sm:$0xff] (!%p142_p9)  ;;  %s13215_s8 = smov (!%p142_p9), 104   ;;  %vm748_vm4 = vcmask (!%p142_p9), 195584  }
  0x10   : > { %11424 = vmatprep.subr.bf16.mxu0 (!%p142_p9), %v12581_v1  ;;  %v187_v0 = vld [vmem:[%s16283_s2 + $0x80] sm:$0xff] (!%p142_p9)  ;;  %s13216_s9 = smov (!%p142_p9), 112   ;;  %s13217_s10 = smov (!%p142_p9), 88   ;;  %vm795_vm5 = vcmask (!%p142_p9), 1043456   ;;  %vm13221_vm6 = vmmov (!%p142_p9), 0   ;;  %vm10488_vm7 = vcmask (!%p142_p9), 1040384  }
  0x11   : > { %s13218_s11 = smov (!%p142_p9), 72   ;;  %s13219_s17 = smov (!%p142_p9), 80   ;;  %vm10490_vm8 = vcmask (!%p142_p9), 1041408   ;;  %vm10492_vm9 = vcmask (!%p142_p9), 1042432   ;;  %vm10494_vm10 = vcmask (!%p142_p9), 257024   ;;  %vm10578_vm11 = vcmask (!%p142_p9), 60416  }
  0x12   : > { %s13223_s27 = smov (!%p142_p9), 48   ;;  %s13224_s28 = smov (!%p142_p9), 56  }
  0x13   : > { %11425 = vmatpush3.bf16.msra.mxu0 (!%p142_p9), %v12581_v1  ;;  %s16289_s29 = smov (!%p142_p9), 40   ;;  %s13226_s30 = smov (!%p142_p9), [#allocation2]  }
  0x14   : > { %11426 = vmatprep.subr.bf16.mxu0 (!%p142_p9), %v12582_v2 }
  0x15   : > { %s16295_s26 = smov (!%p166_p10, %s165_s26), 23 }
  0x16   : > { %s10658_s4 = sshll.u32 %s16295_s26, 3  ;;  %s13222_s26 = smov 64  }
  0x17   : > { %s169_s7 = scalar_lea.vmem %s16281_s0, %s10658_s4  ;;  %11427 = vmatpush3.bf16.msra.mxu0 %v12582_v2  ;;  %s16285_s4 = smov 40  }
  0x18   : > { %v194_v3 = vld [vmem:[%s169_s7] sm:$0xff]  ;;  %v195_v4 = vld [vmem:[%s169_s7 + $0x8] sm:$0xff]  ;;  %v196_v5 = vld [vmem:[%s169_s7 + $0x10] sm:$0xff] }
  0x19   : > { %v206_v6 = vpack.c.bf16 %v195_v4, %v194_v3  ;;  %v197_v7 = vld [vmem:[%s169_s7 + $0x18] sm:$0xff]  ;;  %v198_v8 = vld [vmem:[%s169_s7 + $0x20] sm:$0xff]  ;;  %v199_v9 = vld [vmem:[%s169_s7 + $0x28] sm:$0xff] }
  0x1a   : > { %v207_v10 = vpack.c.bf16 %v197_v7, %v196_v5  ;;  %v208_v11 = vpack.c.bf16 %v199_v9, %v198_v8  ;;  %v200_v12 = vld [vmem:[%s169_s7 + $0x30] sm:$0xff]  ;;  %v201_v13 = vld [vmem:[%s169_s7 + $0x38] sm:$0xff]  ;;  %v202_v14 = vld [vmem:[%s169_s7 + $0x40] sm:$0xff] }
  0x1b   : > { %11428 = vmatprep.mubr.msk.bf16.mxu0 %vm230_vm0, %v206_v6  ;;  %v203_v15 = vld [vmem:[%s169_s7 + $0x48] sm:$0xff]  ;;  %v209_v16 = vpack.c.bf16 %v201_v13, %v200_v12  ;;  %v204_v18 = vld [vmem:[%s169_s7 + $0x50] sm:$0xff]  ;;  %v205_v19 = vld [vmem:[%s169_s7 + $0x58] sm:$0xff]  ;;  %s13214_s7 = smov 96  }
  0x1c   : > { %11429 = vmatmul.mubr.msk.bf16.vlgmr.msra.gmra.mrb[0].mxu0 %vm230_vm0, %v207_v10  ;;  %v210_v17 = vpack.c.bf16 %v203_v15, %v202_v14  ;;  %v211_v20 = vpack.c.bf16 %v205_v19, %v204_v18  ;;  %v189_v7 = vld [vmem:[%s16283_s2 + $0x90] sm:$0xff]  ;;  %v190_v8 = vld [vmem:[%s16283_s2 + $0x98] sm:$0xff]  ;;  %v192_v14 = vld [vmem:[%s16283_s2 + $0xa8] sm:$0xff] }
  0x1d   : > { %11432 = vmatprep.mubr.msk.bf16.mxu0 %vm230_vm0, %v208_v11  ;;  %v191_v15 = vld [vmem:[%s16283_s2 + $0xa0] sm:$0xff] }
  0x24   : > { %11433 = vmatmul.mubr.msk.bf16.gmra.mrb[4].mxu0 %vm230_vm0, %v209_v16 }
  0x25   : > { %11436 = vmatprep.mubr.msk.bf16.mxu0 %vm230_vm0, %v210_v17 }
  0x2c   : > { %11437 = vmatmul.mubr.msk.bf16.gmra.mrb[8].mxu0 %vm230_vm0, %v211_v20  ;;  %v193_v20 = vld [vmem:[%s16283_s2 + $0xb0] sm:$0xff] }
  0xef   : > { %v11430_v23 = vpop.f32.mrb[0].mxu0 }
  0xf0   : > { %v13323_v25 = vadd.f32 %v11430_v23, %v184_v21  ;;  %v283_v26 = vpop.f32.mrb[1].mxu0 }
  0xf1   : > { %v13328_v28 = vadd.f32 %v283_v26, %v182_v22  ;;  %v11431_v29 = vpop.f32.mrb[2].mxu0  ;;  %v12583_v26 = vld [vmem:[%s16282_s1 + $0x28] sm:$0xff]  }
  0xf2   : > { %v13330_v30 = vadd.f32 %v11431_v29, %v185_v24  ;;  %v286_v31 = vpop.f32.mrb[3].mxu0  ;;  %v372_v32 = vsel %vm365_vm1, %v13323_v25, 0.0  ;;  %11440 = vmatprep.subr.bf16.mxu1 %v12583_v26 }
  0xf3   : > { %v13334_v33 = vadd.f32 %v286_v31, %v183_v27  ;;  %373 = vadd.xlane.f32.xlu1 %v372_v32  ;;  %v366_v34 = vsel %vm365_vm1, %v13328_v28, 0.0  ;;  %11441 = vmatpush3.bf16.msra.mxu1 %v12583_v26  ;;  %v12584_v27 = vld [vmem:[%s16282_s1 + $0x30] sm:$0xff]  }
  0xf4   : > { %367 = vadd.xlane.f32.xlu0 %v366_v34  ;;  %v375_v35 = vsel %vm365_vm1, %v13330_v30, 0.0  ;;  %11442 = vmatprep.subr.bf16.mxu1 %v12584_v27 }
  0xf5   : > { %v369_v36 = vsel %vm365_vm1, %v13334_v33, 0.0 }
  0xf7   : > { %376 = vadd.xlane.f32.xlu1 %v375_v35  ;;  %v11434_v37 = vpop.f32.mrb[4].mxu0  ;;  %11443 = vmatpush3.bf16.msra.mxu1 %v12584_v27 }
  0xf8   : > { %370 = vadd.xlane.f32.xlu0 %v369_v36  ;;  %v299_v38 = vpop.f32.mrb[5].mxu0  ;;  %v13376_v4 = vadd.f32 %v11434_v37, %v188_v63 }
  0xf9   : > { %v11435_v39 = vpop.f32.mrb[6].mxu0  ;;  %v13362_v61 = vadd.f32 %v299_v38, %v186_v56 }
  0xfa   : > { %v302_v40 = vpop.f32.mrb[7].mxu0  ;;  %v13389_v10 = vadd.f32 %v11435_v39, %v189_v7  ;;  %v384_v12 = vsel %vm365_vm1, %v13376_v4, 0.0 }
  0xfb   : > { %v13378_v5 = vadd.f32 %v302_v40, %v187_v0  ;;  %v378_v6 = vsel %vm365_vm1, %v13362_v61, 0.0 }
  0xfc   : > { %v387_v19 = vsel %vm365_vm1, %v13389_v10, 0.0 }
  0xfd   : > { %v381_v13 = vsel %vm365_vm1, %v13378_v5, 0.0 }
  0xff   : > { %v11438_v41 = vpop.f32.mrb[8].mxu0 }
 0x100   : > { %v315_v42 = vpop.f32.mrb[9].mxu0  ;;  %v13403_v16 = vadd.f32 %v11438_v41, %v192_v14  ;;  %v13458_v14 = vld [vmem:[%s16283_s2 + $0x4] ss:$0 sm:$0xff] }
 0x101   : > { %v11439_v43 = vpop.f32.mrb[10].mxu0  ;;  %v13391_v11 = vadd.f32 %v315_v42, %v190_v8 }
 0x102   : > { %v318_v44 = vpop.f32.mrb[11].mxu0  ;;  %v13414_v21 = vadd.f32 %v11439_v43, %v193_v20  ;;  %v396_v22 = vsel %vm365_vm1, %v13403_v16, 0.0 }
 0x103   : > { %v13405_v17 = vadd.f32 %v318_v44, %v191_v15  ;;  %v390_v18 = vsel %vm365_vm1, %v13391_v11, 0.0 }
 0x104   : > { %v399_v24 = vsel %vm365_vm1, %v13414_v21, 0.0 }
 0x105   : > { %v393_v23 = vsel %vm365_vm1, %v13405_v17, 0.0 }
 0x180   : > { %v374_v45 = vpop.xlane.xlu1 %373 }
 0x181   : > { %v405_v46 = vmul.f32 0.03125, %v374_v45  ;;  %v368_v47 = vpop.xlane.xlu0 %367 }
 0x182   : > { %v403_v48 = vmul.f32 0.03125, %v368_v47 }
 0x183   : > { %v13343_v49 = vsub.f32 %v13323_v25, %v405_v46 }
 0x184   : > { %v13346_v50 = vsub.f32 %v13328_v28, %v403_v48  ;;  %v377_v51 = vpop.xlane.xlu1 %376 }
 0x185   : > { %v406_v52 = vmul.f32 0.03125, %v377_v51  ;;  %v371_v53 = vpop.xlane.xlu0 %370  ;;  %v429_v60 = vmul.f32 %v13343_v49, %v13343_v49 }
 0x186   : > { %v404_v54 = vmul.f32 0.03125, %v371_v53  ;;  %v427_v55 = vmul.f32 %v13346_v50, %v13346_v50 }
 0x187   : > { %v13354_v57 = vsub.f32 %v13330_v30, %v406_v52  ;;  %v445_v1 = vsel %vm365_vm1, %v429_v60, 0.0  ;;  %v13442_v60 = vld [vmem:[%s16283_s2 + $0x3] ss:$0 sm:$0xff] }
 0x188   : > { %v13357_v58 = vsub.f32 %v13334_v33, %v404_v54  ;;  %v439_v59 = vsel %vm365_vm1, %v427_v55, 0.0 }
 0x189   : > { %440 = vadd.xlane.f32.xlu0 %v439_v59  ;;  %v430_v3 = vmul.f32 %v13354_v57, %v13354_v57 }
 0x18a   : > { %v428_v62 = vmul.f32 %v13357_v58, %v13357_v58 }
 0x18b   : > { %v448_v9 = vsel %vm365_vm1, %v430_v3, 0.0 }
 0x18c   : > { %v442_v2 = vsel %vm365_vm1, %v428_v62, 0.0 }
 0x18d   : > { %446 = vadd.xlane.f32.xlu0 %v445_v1  ;;  %443 = vadd.xlane.f32.xlu1 %v442_v2 }
 0x191   : > { %379 = vadd.xlane.f32.xlu0 %v378_v6  ;;  %449 = vadd.xlane.f32.xlu1 %v448_v9 }
 0x195   : > { %385 = vadd.xlane.f32.xlu0 %v384_v12  ;;  %382 = vadd.xlane.f32.xlu1 %v381_v13 }
 0x199   : > { %391 = vadd.xlane.f32.xlu0 %v390_v18  ;;  %388 = vadd.xlane.f32.xlu1 %v387_v19 }
 0x19d   : > { %397 = vadd.xlane.f32.xlu0 %v396_v22  ;;  %394 = vadd.xlane.f32.xlu1 %v393_v23 }
 0x1a1   : > { %400 = vadd.xlane.f32.xlu1 %v399_v24 }
 0x216   : > { %v441_v29 = vpop.xlane.xlu0 %440 }
 0x217   : > { %v475_v31 = vmul.f32 0.03125, %v441_v29 }
 0x219   : > { %v487_v32 = vadd.f32 1e-06, %v475_v31 }
 0x21a   : > { %v444_v34 = vpop.xlane.xlu1 %443  ;;  %v447_v35 = vpop.xlane.xlu0 %446 }
 0x21b   : > { %12609 = vrsqrt.f32 %v487_v32  ;;  %v476_v36 = vmul.f32 0.03125, %v444_v34  ;;  %v477_v37 = vmul.f32 0.03125, %v447_v35 }
 0x21d   : > { %v488_v38 = vadd.f32 1e-06, %v476_v36  ;;  %v489_v39 = vadd.f32 1e-06, %v477_v37 }
 0x21e   : > { %v450_v40 = vpop.xlane.xlu1 %449  ;;  %v380_v41 = vpop.xlane.xlu0 %379 }
 0x21f   : > { %12611 = vrsqrt.f32 %v488_v38  ;;  %v478_v42 = vmul.f32 0.03125, %v450_v40  ;;  %v407_v43 = vmul.f32 0.03125, %v380_v41 }
 0x220   : > { %12613 = vrsqrt.f32 %v489_v39 }
 0x221   : > { %v490_v44 = vadd.f32 1e-06, %v478_v42  ;;  %v13429_v45 = vsub.f32 %v13362_v61, %v407_v43 }
 0x222   : > { %v383_v46 = vpop.xlane.xlu1 %382  ;;  %v386_v47 = vpop.xlane.xlu0 %385 }
 0x223   : > { %12615 = vrsqrt.f32 %v490_v44  ;;  %v408_v48 = vmul.f32 0.03125, %v383_v46  ;;  %v409_v51 = vmul.f32 0.03125, %v386_v47  ;;  %v431_v59 = vmul.f32 %v13429_v45, %v13429_v45 }
 0x225   : > { %v12610_v52 = vpop.eup %12609  ;;  %v13432_v53 = vsub.f32 %v13376_v4, %v409_v51  ;;  %v13435_v54 = vsub.f32 %v13378_v5, %v408_v48  ;;  %v451_v13 = vsel %vm365_vm1, %v431_v59, 0.0 }
 0x226   : > { %v389_v55 = vpop.xlane.xlu1 %388  ;;  %v392_v56 = vpop.xlane.xlu0 %391  ;;  %v511_v62 = vmul.f32 %v12610_v52, %v13346_v50 }
 0x227   : > { %v410_v63 = vmul.f32 0.03125, %v389_v55  ;;  %v433_v0 = vmul.f32 %v13432_v53, %v13432_v53  ;;  %v411_v1 = vmul.f32 0.03125, %v392_v56  ;;  %v432_v50 = vmul.f32 %v13435_v54, %v13435_v54 }
 0x228   : > { %v527_v7 = vmul.f32 %v13442_v60, %v511_v62 }
 0x229   : > { %v12612_v2 = vpop.eup %12611  ;;  %v13448_v3 = vsub.f32 %v13389_v10, %v410_v63  ;;  %v457_v6 = vsel %vm365_vm1, %v433_v0, 0.0  ;;  %v13465_v23 = vsub.f32 %v13391_v11, %v411_v1  ;;  %v454_v37 = vsel %vm365_vm1, %v432_v50, 0.0 }
 0x22a   : > { %v12614_v8 = vpop.eup %12613  ;;  %v395_v9 = vpop.xlane.xlu1 %394  ;;  %458 = vadd.xlane.f32.xlu0 %v457_v6  ;;  %v512_v15 = vmul.f32 %v12612_v2, %v13357_v58  ;;  %v543_v58 = vadd.f32 %v13458_v14, %v527_v7 }
 0x22b   : > { %v398_v12 = vpop.xlane.xlu0 %397  ;;  %v412_v18 = vmul.f32 0.03125, %v395_v9  ;;  %v434_v20 = vmul.f32 %v13448_v3, %v13448_v3  ;;  %v513_v22 = vmul.f32 %v12614_v8, %v13343_v49  ;;  %v435_v41 = vmul.f32 %v13465_v23, %v13465_v23 }
 0x22c   : > { %v413_v19 = vmul.f32 0.03125, %v398_v12  ;;  %v528_v24 = vmul.f32 %v13442_v60, %v512_v15 }
 0x22d   : > { %v12616_v26 = vpop.eup %12615  ;;  %v460_v29 = vsel %vm365_vm1, %v434_v20, 0.0  ;;  %v529_v34 = vmul.f32 %v13442_v60, %v513_v22  ;;  %v13477_v35 = vsub.f32 %v13405_v17, %v412_v18  ;;  %v463_v51 = vsel %vm365_vm1, %v435_v41, 0.0 }
 0x22e   : > { %v13469_v27 = vsub.f32 %v13403_v16, %v413_v19  ;;  %461 = vadd.xlane.f32.xlu1 %v460_v29  ;;  %v401_v31 = vpop.xlane.xlu1 %400  ;;  %452 = vadd.xlane.f32.xlu0 %v451_v13  ;;  %v544_v32 = vadd.f32 %v13458_v14, %v528_v24  ;;  %v514_v49 = vmul.f32 %v12616_v26, %v13354_v57 }
 0x22f   : > { %v414_v36 = vmul.f32 0.03125, %v401_v31  ;;  %v545_v43 = vadd.f32 %v13458_v14, %v529_v34  ;;  %v436_v47 = vmul.f32 %v13477_v35, %v13477_v35 }
 0x230   : > { %v437_v38 = vmul.f32 %v13469_v27, %v13469_v27  ;;  %v555_v39 = vpack.c.bf16 %v544_v32, %v543_v58  ;;  %v530_v40 = vmul.f32 %v13442_v60, %v514_v49 }
 0x231   : > { %v13486_v42 = vsub.f32 %v13414_v21, %v414_v36  ;;  %v466_v55 = vsel %vm365_vm1, %v436_v47, 0.0 }
 0x232   : > { %v469_v57 = vsel %vm365_vm1, %v437_v38, 0.0  ;;  %455 = vadd.xlane.f32.xlu1 %v454_v37  ;;  %11444 = vmatprep.mubr.msk.bf16.mxu1 %vm365_vm1, %v555_v39  ;;  %v546_v44 = vadd.f32 %v13458_v14, %v530_v40 }
 0x233   : > { %470 = vadd.xlane.f32.xlu0 %v469_v57  ;;  %v438_v46 = vmul.f32 %v13486_v42, %v13486_v42 }
 0x234   : > { %v556_v48 = vpack.c.bf16 %v546_v44, %v545_v43 }
 0x235   : > { %v472_v52 = vsel %vm365_vm1, %v438_v46, 0.0 }
 0x236   : > { %473 = vadd.xlane.f32.xlu1 %v472_v52  ;;  %11445 = vmatmul.mubr.msk.bf16.vlgmr.msra.gmra.mrb[0].mxu1 %vm365_vm1, %v556_v48 }
 0x237   : > { %464 = vadd.xlane.f32.xlu0 %v463_v51 }
 0x23a   : > { %467 = vadd.xlane.f32.xlu1 %v466_v55 }
 0x2b7   : > { %v459_v56 = vpop.xlane.xlu0 %458 }
 0x2b8   : > { %v481_v59 = vmul.f32 0.03125, %v459_v56 }
 0x2ba   : > { %v493_v62 = vadd.f32 1e-06, %v481_v59 }
 0x2bb   : > { %v462_v63 = vpop.xlane.xlu1 %461  ;;  %v453_v0 = vpop.xlane.xlu0 %452 }
 0x2bc   : > { %v482_v1 = vmul.f32 0.03125, %v462_v63  ;;  %v479_v2 = vmul.f32 0.03125, %v453_v0  ;;  %12617 = vrsqrt.f32 %v493_v62 }
 0x2be   : > { %v494_v6 = vadd.f32 1e-06, %v482_v1  ;;  %v491_v7 = vadd.f32 1e-06, %v479_v2 }
 0x2bf   : > { %v456_v8 = vpop.xlane.xlu1 %455 }
 0x2c0   : > { %12619 = vrsqrt.f32 %v494_v6  ;;  %v480_v9 = vmul.f32 0.03125, %v456_v8  ;;  %v471_v12 = vpop.xlane.xlu0 %470 }
 0x2c1   : > { %12621 = vrsqrt.f32 %v491_v7  ;;  %v485_v13 = vmul.f32 0.03125, %v471_v12 }
 0x2c2   : > { %v492_v50 = vadd.f32 1e-06, %v480_v9 }
 0x2c3   : > { %v497_v15 = vadd.f32 1e-06, %v485_v13  ;;  %v474_v18 = vpop.xlane.xlu1 %473 }
 0x2c4   : > { %12623 = vrsqrt.f32 %v492_v50  ;;  %v486_v19 = vmul.f32 0.03125, %v474_v18  ;;  %v465_v20 = vpop.xlane.xlu0 %464 }
 0x2c5   : > { %v483_v22 = vmul.f32 0.03125, %v465_v20  ;;  %12625 = vrsqrt.f32 %v497_v15 }
 0x2c6   : > { %v498_v24 = vadd.f32 1e-06, %v486_v19  ;;  %v12618_v31 = vpop.eup %12617 }
 0x2c7   : > { %v495_v26 = vadd.f32 1e-06, %v483_v22  ;;  %v468_v29 = vpop.xlane.xlu1 %467  ;;  %v517_v38 = vmul.f32 %v12618_v31, %v13432_v53 }
 0x2c8   : > { %12627 = vrsqrt.f32 %v498_v24  ;;  %v484_v58 = vmul.f32 0.03125, %v468_v29 }
 0x2c9   : > { %12629 = vrsqrt.f32 %v495_v26  ;;  %v533_v43 = vmul.f32 %v13442_v60, %v517_v38 }
 0x2ca   : > { %v12620_v32 = vpop.eup %12619  ;;  %v496_v49 = vadd.f32 1e-06, %v484_v58 }
 0x2cb   : > { %v12622_v34 = vpop.eup %12621  ;;  %v518_v36 = vmul.f32 %v12620_v32, %v13448_v3  ;;  %v549_v52 = vadd.f32 %v13458_v14, %v533_v43 }
 0x2cc   : > { %12631 = vrsqrt.f32 %v496_v49  ;;  %v515_v37 = vmul.f32 %v12622_v34, %v13429_v45 }
 0x2cd   : > { %v534_v40 = vmul.f32 %v13442_v60, %v518_v36 }
 0x2ce   : > { %v12624_v39 = vpop.eup %12623  ;;  %v531_v57 = vmul.f32 %v13442_v60, %v515_v37 }
 0x2cf   : > { %v516_v41 = vmul.f32 %v12624_v39, %v13435_v54  ;;  %v12626_v44 = vpop.eup %12625  ;;  %v550_v3 = vadd.f32 %v13458_v14, %v534_v40 }
 0x2d0   : > { %v547_v45 = vadd.f32 %v13458_v14, %v531_v57  ;;  %v521_v55 = vmul.f32 %v12626_v44, %v13469_v27 }
 0x2d1   : > { %v532_v46 = vmul.f32 %v13442_v60, %v516_v41  ;;  %v558_v62 = vpack.c.bf16 %v550_v3, %v549_v52 }
 0x2d2   : > { %v12628_v47 = vpop.eup %12627 }
 0x2d3   : > { %v12630_v48 = vpop.eup %12629  ;;  %v548_v53 = vadd.f32 %v13458_v14, %v532_v46  ;;  %v522_v51 = vmul.f32 %v12628_v47, %v13486_v42  ;;  %v537_v42 = vmul.f32 %v13442_v60, %v521_v55  ;;  %v330_v55 = vlaneseq }
 0x2d4   : > { %v519_v54 = vmul.f32 %v12630_v48, %v13465_v23 }
 0x2d5   : > { %v557_v56 = vpack.c.bf16 %v548_v53, %v547_v45  ;;  %v538_v63 = vmul.f32 %v13442_v60, %v522_v51  ;;  %v553_v7 = vadd.f32 %v13458_v14, %v537_v42 }
 0x2d6   : > { %v12632_v59 = vpop.eup %12631  ;;  %v535_v1 = vmul.f32 %v13442_v60, %v519_v54 }
 0x2d7   : > { %11448 = vmatprep.mubr.msk.bf16.mxu1 %vm365_vm1, %v557_v56  ;;  %v520_v0 = vmul.f32 %v12632_v59, %v13477_v35  ;;  %v554_v23 = vadd.f32 %v13458_v14, %v538_v63  ;;  %v13531_v35 = vld [vmem:[%s16283_s2 + $0x5] ss:$0 sm:$0xff]  ;;  %v13584_v56 = vand.u32 127, %v330_v55 }
 0x2d8   : > { %11449 = vmatmul.mubr.msk.bf16.gmra.mrb[4].mxu1 %vm365_vm1, %v558_v62  ;;  %v551_v27 = vadd.f32 %v13458_v14, %v535_v1 }
 0x2d9   : > { %v536_v2 = vmul.f32 %v13442_v60, %v520_v0  ;;  %v560_v9 = vpack.c.bf16 %v554_v23, %v553_v7  ;;  %vm332_vm3 = vcmp.lt.s32.totalorder %v13584_v56, 17 }
 0x2db   : > { %v552_v6 = vadd.f32 %v13458_v14, %v536_v2 }
 0x2dd   : > { %v559_v8 = vpack.c.bf16 %v552_v6, %v551_v27 }
 0x2df   : > { %11452 = vmatprep.mubr.msk.bf16.mxu1 %vm365_vm1, %v559_v8 }
 0x2e0   : > { %11453 = vmatmul.mubr.msk.bf16.gmra.mrb[8].mxu1 %vm365_vm1, %v560_v9 }
 0x309   : > { %v11446_v60 = vpop.f32.mrb[0].mxu1 }
 0x30a   : > { %v638_v12 = vadd.f32 %v11446_v60, %v13531_v35  ;;  %v629_v13 = vpop.f32.mrb[1].mxu1 }
 0x30b   : > { %v11447_v50 = vpop.f32.mrb[2].mxu1  ;;  %v630_v14 = vadd.f32 %v13531_v35, %v629_v13 }
 0x30c   : > { %v13534_v15 = vpack.c.bf16 %v638_v12, %v638_v12  ;;  %v632_v18 = vpop.f32.mrb[3].mxu1  ;;  %v641_v39 = vadd.f32 %v11447_v50, %v13531_v35 }
 0x30d   : > { %v633_v19 = vadd.f32 %v13531_v35, %v632_v18 }
 0x30e   : > { %682 = vrot.lane.b32.xlu1 %v13534_v15, %s13213_s6 }
 0x30f   : > { %v13540_v20 = vpack.c.bf16 %v633_v19, %v630_v14 }
 0x311   : > { %11460 = vmatprep.mubr.msk.bf16.mxu0 %vm684_vm2, %v13540_v20  ;;  %680 = vrot.lane.b32.xlu0 %v13540_v20, %s13213_s6 }
 0x312   : > { %852 = vrot.lane.b32.xlu1 %v13540_v20, %s13214_s7 }
 0x315   : > { %848 = vrot.lane.b32.xlu0 %v13540_v20, %s13215_s8 }
 0x316   : > { %854 = vrot.lane.b32.xlu1 %v13534_v15, %s13214_s7 }
 0x31a   : > { %850 = vrot.lane.b32.xlu1 %v13534_v15, %s13215_s8 }
 0x380   : > { %v683_v22 = vpop.permute.xlu1 %682 }
 0x381   : > { %v695_v49 = vsel %vm684_vm2, %v683_v22, 0 }
 0x383   : > { %v681_v24 = vpop.permute.xlu0 %680 }
 0x384   : > { %v853_v26 = vpop.permute.xlu1 %852  ;;  %12432 = vmatprep.subr.msk.bf16.mxu0 %vm684_vm2, %v681_v24  ;;  %v692_v29 = vsel %vm684_vm2, %v681_v24, 0 }
 0x385   : > { %11457 = vmatpush3.bf16.xpose.msra.mxu0 %v692_v29  ;;  %12435 = vmatprep.subr.msk.bf16.mxu1 %vm684_vm2, %v853_v26  ;;  %v863_v58 = vsel %vm684_vm2, %v853_v26, 0 }
 0x386   : > { %12433 = vmatprep.subr.msk.bf16.mxu0 %vm684_vm2, %v683_v22  ;;  %11473 = vmatpush3.bf16.xpose.msra.mxu1 %v863_v58 }
 0x387   : > { %v849_v31 = vpop.permute.xlu0 %848 }
 0x388   : > { %v855_v32 = vpop.permute.xlu1 %854  ;;  %11476 = vmatprep.mubr.msk.bf16.mxu1 %vm684_vm2, %v849_v31 }
 0x389   : > { %12436 = vmatprep.subr.msk.bf16.mxu1 %vm684_vm2, %v855_v32  ;;  %v866_v34 = vsel %vm684_vm2, %v855_v32, 0 }
 0x38c   : > { %v851_v36 = vpop.permute.xlu1 %850 }
 0x38d   : > { %11459 = vmatpush3.bf16.xpose.msra.mxu0 %v695_v49 }
 0x38e   : > { %11475 = vmatpush3.bf16.xpose.msra.mxu1 %v866_v34 }
 0x394   : > { %11461 = vmatmul.mubr.msk.bf16.vlgmr.msra.gmra.mrb[12].mxu0 %vm684_vm2, %v13534_v15 }
 0x395   : > { %11477 = vmatmul.mubr.msk.bf16.vlgmr.msra.gmra.mrb[12].mxu1 %vm684_vm2, %v851_v36 }
 0x3ab   : > { %v11450_v37 = vpop.f32.mrb[4].mxu1 }
 0x3ac   : > { %v645_v38 = vpop.f32.mrb[5].mxu1  ;;  %v654_v57 = vadd.f32 %v11450_v37, %v13531_v35 }
 0x3ad   : > { %v646_v40 = vadd.f32 %v13531_v35, %v645_v38  ;;  %v11451_v41 = vpop.f32.mrb[6].mxu1 }
 0x3ae   : > { %v657_v43 = vadd.f32 %v11451_v41, %v13531_v35  ;;  %v13570_v44 = vpop.f32.mrb[7].mxu1 }
 0x3af   : > { %v13572_v46 = vpack.c.bf16 %v646_v40, %v641_v39 }
 0x3b0   : > { %v13574_v47 = vpack.c.bf16 %v657_v43, %v654_v57 }
 0x3b3   : > { %v11454_v3 = vpop.f32.mrb[8].mxu1 }
 0x3b4   : > { %v13576_v48 = vpop.f32.mrb[9].mxu1  ;;  %v670_v51 = vadd.f32 %v11454_v3, %v13531_v35 }
 0x3b5   : > { %v13578_v45 = vpop.f32.mrb[10].mxu1 }
 0x3b6   : > { %v664_v53 = vpop.f32.mrb[11].mxu1 }
 0x3b7   : > { %v665_v52 = vadd.f32 %v13531_v35, %v664_v53 }
 0x3b9   : > { %v13582_v54 = vpack.c.bf16 %v670_v51, %v665_v52 }
 0x467   : > { %v11462_v59 = vpop.f32.mrb[12].mxu0 }
 0x468   : > { %v731_v62 = vpop.f32.mrb[13].mxu0  ;;  %v11478_v63 = vpop.f32.mrb[12].mxu1  ;;  %v747_v6 = vsel %vm332_vm3, %v11462_v59, -1e+30 }
 0x469   : > { %v745_v0 = vsel %vm332_vm3, %v731_v62, -1e+30  ;;  %v11463_v1 = vpop.f32.mrb[14].mxu0  ;;  %v902_v42 = vpop.f32.mrb[13].mxu1  ;;  %v918_v60 = vsel %vm332_vm3, %v11478_v63, -1e+30 }
 0x46a   : > { %v734_v2 = vpop.f32.mrb[15].mxu0  ;;  %v11479_v23 = vpop.f32.mrb[14].mxu1  ;;  %v749_v27 = vsel %vm748_vm4, %v745_v0, -inf  ;;  %v755_v12 = vsel %vm748_vm4, %v747_v6, -inf  ;;  %v916_v13 = vsel %vm332_vm3, %v902_v42, -1e+30 }
 0x46b   : > { %v746_v7 = vsel %vm332_vm3, %v734_v2, -1e+30  ;;  %750 = vmax.xlane.f32.xlu0 %v749_v27  ;;  %v905_v8 = vpop.f32.mrb[15].mxu1  ;;  %v925_v50 = vsel %vm748_vm4, %v918_v60, -inf  ;;  %v919_v18 = vsel %vm748_vm4, %v916_v13, -inf  ;;  %v13220_v27 = vmov 0.0  }
 0x46c   : > { %v752_v9 = vsel %vm748_vm4, %v746_v7, -inf  ;;  %v917_v14 = vsel %vm332_vm3, %v905_v8, -1e+30  ;;  %11499 = vmatprep.subr.mxu1 %v13220_v27  ;;  %11501 = vmatprep.mubr.msk.f32.mxu1 %vm13221_vm6, %v13220_v27 }
 0x46d   : > { %753 = vmax.xlane.f32.xlu1 %v752_v9  ;;  %v922_v19 = vsel %vm748_vm4, %v917_v14, -inf }
 0x46f   : > { %756 = vmax.xlane.f32.xlu0 %v755_v12 }
 0x471   : > { %926 = vmax.xlane.f32.xlu1 %v925_v50 }
 0x473   : > { %920 = vmax.xlane.f32.xlu0 %v919_v18 }
 0x477   : > { %923 = vmax.xlane.f32.xlu0 %v922_v19 }
 0x4f8   : > { %v751_v22 = vpop.xlane.xlu0 %750 }
 0x4f9   : > { %v758_v24 = vsub.f32 %v745_v0, %v751_v22 }
 0x4fa   : > { %v754_v26 = vpop.xlane.xlu1 %753 }
 0x4fb   : > { %v761_v31 = vmul.f32 1.442695, %v758_v24  ;;  %v759_v36 = vsub.f32 %v746_v7, %v754_v26 }
 0x4fc   : > { %v757_v29 = vpop.xlane.xlu0 %756 }
 0x4fd   : > { %v760_v58 = vsub.f32 %v747_v6, %v757_v29  ;;  %v763_v41 = vmul.f32 1.442695, %v759_v36 }
 0x4fe   : > { %v927_v32 = vpop.xlane.xlu1 %926 }
 0x4ff   : > { %v765_v49 = vmul.f32 1.442695, %v760_v58  ;;  %v930_v34 = vsub.f32 %v918_v60, %v927_v32 }
 0x500   : > { %v921_v37 = vpop.xlane.xlu0 %920 }
 0x501   : > { %12633 = vpow2.f32 %v765_v49  ;;  %v935_v38 = vmul.f32 1.442695, %v930_v34  ;;  %v928_v39 = vsub.f32 %v916_v13, %v921_v37 }
 0x502   : > { %12635 = vpow2.f32 %v761_v31 }
 0x503   : > { %12637 = vpow2.f32 %v935_v38  ;;  %v931_v40 = vmul.f32 1.442695, %v928_v39 }
 0x504   : > { %v924_v57 = vpop.xlane.xlu0 %923 }
 0x505   : > { %12639 = vpow2.f32 %v931_v40  ;;  %v929_v43 = vsub.f32 %v917_v14, %v924_v57 }
 0x506   : > { %12641 = vpow2.f32 %v763_v41 }
 0x507   : > { %v933_v3 = vmul.f32 1.442695, %v929_v43 }
 0x509   : > { %12643 = vpow2.f32 %v933_v3  ;;  %v13643_v3 = vld [vmem:[%s16283_s2 + $0x20] sm:$0xff] }
 0x50b   : > { %v12634_v53 = vpop.eup %12633 }
 0x50c   : > { %v12636_v51 = vpop.eup %12635  ;;  %v773_v52 = vsel %vm748_vm4, %v12634_v53, 0.0 }
 0x50d   : > { %v13606_v55 = vpop.eup %12637  ;;  %774 = vadd.xlane.f32.xlu0 %v773_v52  ;;  %v767_v63 = vsel %vm748_vm4, %v12636_v51, 0.0 }
 0x50e   : > { %v943_v59 = vsel %vm748_vm4, %v13606_v55, 0.0 }
 0x50f   : > { %v12640_v62 = vpop.eup %12639  ;;  %944 = vadd.xlane.f32.xlu1 %v943_v59 }
 0x510   : > { %v12642_v0 = vpop.eup %12641  ;;  %v937_v1 = vsel %vm748_vm4, %v12640_v62, 0.0 }
 0x511   : > { %768 = vadd.xlane.f32.xlu0 %v767_v63  ;;  %v770_v23 = vsel %vm748_vm4, %v12642_v0, 0.0 }
 0x513   : > { %v12644_v42 = vpop.eup %12643  ;;  %938 = vadd.xlane.f32.xlu1 %v937_v1 }
 0x514   : > { %v940_v2 = vsel %vm748_vm4, %v12644_v42, 0.0 }
 0x515   : > { %941 = vadd.xlane.f32.xlu0 %v940_v2 }
 0x517   : > { %771 = vadd.xlane.f32.xlu1 %v770_v23 }
 0x528   : > { %786 = vrot.lane.b32.xlu1 %v13534_v15, %s13216_s9 }
 0x52b   : > { %784 = vrot.lane.b32.xlu0 %v13540_v20, %s13216_s9 }
 0x52c   : > { %954 = vrot.lane.b32.xlu1 %v13540_v20, %s13217_s10 }
 0x52f   : > { %1199 = vrot.lane.b32.xlu0 %v13540_v20, %s13218_s11 }
 0x530   : > { %956 = vrot.lane.b32.xlu1 %v13534_v15, %s13217_s10 }
 0x533   : > { %1195 = vrot.lane.b32.xlu0 %v13540_v20, %s13219_s17 }
 0x534   : > { %1201 = vrot.lane.b32.xlu1 %v13534_v15, %s13218_s11 }
 0x538   : > { %1197 = vrot.lane.b32.xlu1 %v13534_v15, %s13219_s17 }
 0x59a   : > { %v775_v6 = vpop.xlane.xlu0 %774 }
 0x59b   : > { %12645 = vrcp.f32 %v775_v6 }
 0x59c   : > { %v945_v7 = vpop.xlane.xlu1 %944 }
 0x59e   : > { %v769_v8 = vpop.xlane.xlu0 %768 }
 0x59f   : > { %12647 = vrcp.f32 %v769_v8 }
 0x5a0   : > { %v939_v9 = vpop.xlane.xlu1 %938 }
 0x5a2   : > { %v942_v60 = vpop.xlane.xlu0 %941 }
 0x5a3   : > { %12649 = vrcp.f32 %v942_v60 }
 0x5a4   : > { %12651 = vrcp.f32 %v939_v9  ;;  %v772_v12 = vpop.xlane.xlu1 %771 }
 0x5a5   : > { %12653 = vrcp.f32 %v772_v12  ;;  %v12646_v18 = vpop.eup %12645 }
 0x5a6   : > { %v785_v13 = vpop.permute.xlu0 %784  ;;  %12655 = vrcp.f32 %v945_v7  ;;  %v781_v58 = vmul.f32 %v12646_v18, %v12634_v53 }
 0x5a7   : > { %11464 = vmatprep.subr.bf16.mxu0 %v785_v13 }
 0x5a8   : > { %v787_v50 = vpop.permute.xlu1 %786  ;;  %11465 = vmatpush3.bf16.msra.mxu0 %v785_v13  ;;  %v783_v37 = vpack.c.bf16 %v781_v58, %v781_v58 }
 0x5a9   : > { %12434 = vmatprep.subr.msk.bf16.mxu0 %vm795_vm5, %v787_v50  ;;  %v797_v14 = vsel %vm795_vm5, %v787_v50, 0  ;;  %v12648_v19 = vpop.eup %12647 }
 0x5aa   : > { %v779_v31 = vmul.f32 %v12648_v19, %v12636_v51  ;;  %v1200_v53 = vpop.permute.xlu0 %1199  ;;  %v13651_v51 = vld [vmem:[%s16283_s2 + $0x18] sm:$0xff] }
 0x5ab   : > { %11500 = vmatpush3.msra.mxu1 %v13651_v51 }
 0x5ac   : > { %v955_v22 = vpop.permute.xlu1 %954  ;;  %11467 = vmatpush3.bf16.msra.mxu0 %v797_v14 }
 0x5ad   : > { %v12650_v24 = vpop.eup %12649  ;;  %11480 = vmatprep.subr.bf16.mxu0 %v955_v22 }
 0x5ae   : > { %v12652_v26 = vpop.eup %12651  ;;  %v950_v49 = vmul.f32 %v12650_v24, %v12644_v42  ;;  %v1210_v42 = vsel %vm684_vm2, %v1200_v53, 0  ;;  %v1196_v6 = vpop.permute.xlu0 %1195 }
 0x5af   : > { %v12654_v29 = vpop.eup %12653  ;;  %v949_v36 = vmul.f32 %v12652_v26, %v12640_v62 }
 0x5b0   : > { %v780_v32 = vmul.f32 %v12654_v29, %v12642_v0  ;;  %v12656_v38 = vpop.eup %12655  ;;  %v957_v40 = vpop.permute.xlu1 %956 }
 0x5b1   : > { %v952_v39 = vpack.c.bf16 %v950_v49, %v949_v36  ;;  %v951_v41 = vmul.f32 %v12656_v38, %v13606_v55  ;;  %v966_v57 = vsel %vm795_vm5, %v957_v40, 0 }
 0x5b2   : > { %v782_v34 = vpack.c.bf16 %v780_v32, %v779_v31 }
 0x5b3   : > { %v953_v43 = vpack.c.bf16 %v951_v41, %v951_v41 }
 0x5b4   : > { %11468 = vmatprep.mubr.msk.bf16.mxu0 %vm748_vm4, %v782_v34  ;;  %v1202_v2 = vpop.permute.xlu1 %1201 }
 0x5b5   : > { %11469 = vmatmul.mubr.msk.bf16.vlgmr.msra.gmra.mrb[16].mxu0 %vm748_vm4, %v783_v37  ;;  %v1213_v7 = vsel %vm684_vm2, %v1202_v2, 0 }
 0x5b6   : > { %11481 = vmatpush3.bf16.msra.mxu0 %v955_v22  ;;  %11484 = vmatprep.mubr.msk.bf16.mxu0 %vm748_vm4, %v952_v39 }
 0x5b7   : > { %12437 = vmatprep.subr.msk.bf16.mxu0 %vm795_vm5, %v957_v40 }
 0x5b8   : > { %v1198_v8 = vpop.permute.xlu1 %1197 }
 0x5ba   : > { %11483 = vmatpush3.bf16.msra.mxu0 %v966_v57 }
 0x5bb   : > { %11488 = vmatprep.subr.mxu0 %v13220_v27 }
 0x5bd   : > { %11485 = vmatmul.mubr.msk.bf16.vlgmr.msra.gmra.mrb[20].mxu0 %vm748_vm4, %v953_v43 }
 0x5be   : > { %11489 = vmatpush3.msra.mxu0 %v13643_v3  ;;  %11490 = vmatprep.mubr.msk.f32.mxu0 %vm13221_vm6, %v13220_v27 }
 0x5bf   : > { %12438 = vmatprep.subr.msk.bf16.mxu0 %vm684_vm2, %v1200_v53 }
 0x688   : > { %v11470_v52 = vpop.f32.mrb[16].mxu0 }
 0x689   : > { %v833_v55 = vpop.f32.mrb[17].mxu0 }
 0x68a   : > { %v11471_v59 = vpop.f32.mrb[18].mxu0  ;;  %11502 = vmatmul.mubr.msk.f32.vlgmr.msra.gmra.mrb[16].mxu1 %vm684_vm2, %v833_v55 }
 0x68b   : > { %v836_v62 = vpop.f32.mrb[19].mxu0  ;;  %11504 = vmatprep.mubr.msk.f32.mxu1 %vm13221_vm6, %v13220_v27 }
 0x68e   : > { %11505 = vmatmul.mubr.msk.f32.gmra.mrb[18].mxu1 %vm684_vm2, %v836_v62 }
 0x68f   : > { %11507 = vmatprep.mubr.msk.f32.mxu1 %vm13221_vm6, %v13220_v27 }
 0x690   : > { %v11486_v63 = vpop.f32.mrb[20].mxu0 }
 0x691   : > { %v1002_v0 = vpop.f32.mrb[21].mxu0 }
 0x692   : > { %v11487_v1 = vpop.f32.mrb[22].mxu0  ;;  %11491 = vmatmul.mubr.msk.f32.vlgmr.msra.gmra.mrb[24].mxu0 %vm684_vm2, %v1002_v0  ;;  %11508 = vmatmul.mubr.msk.f32.gmra.mrb[20].mxu1 %vm684_vm2, %v11470_v52 }
 0x693   : > { %11511 = vmatpush3.bf16.xpose.msra.mxu0 %v1210_v42  ;;  %v1005_v23 = vpop.f32.mrb[23].mxu0  ;;  %11493 = vmatprep.mubr.msk.f32.mxu0 %vm13221_vm6, %v13220_v27 }
 0x694   : > { %12439 = vmatprep.subr.msk.bf16.mxu0 %vm684_vm2, %v1202_v2 }
 0x696   : > { %11494 = vmatmul.mubr.msk.f32.gmra.mrb[26].mxu0 %vm684_vm2, %v1005_v23 }
 0x697   : > { %11496 = vmatprep.mubr.msk.f32.mxu0 %vm13221_vm6, %v13220_v27 }
 0x69a   : > { %11497 = vmatmul.mubr.msk.f32.gmra.mrb[28].mxu0 %vm684_vm2, %v11486_v63 }
 0x69b   : > { %11513 = vmatpush3.bf16.xpose.msra.mxu0 %v1213_v7  ;;  %11514 = vmatprep.mubr.msk.bf16.mxu0 %vm684_vm2, %v1196_v6 }
 0x69c   : > { %11526 = vmatprep.subr.mxu0 %v13220_v27 }
 0x6a2   : > { %11515 = vmatmul.mubr.msk.bf16.vlgmr.msra.gmra.mrb[32].mxu0 %vm684_vm2, %v1198_v8 }
 0x6a3   : > { %11528 = vmatprep.mubr.msk.f32.mxu0 %vm13221_vm6, %v13220_v27 }
 0x75d   : > { %v1181_v9 = vpop.f32.mrb[16].mxu1 }
 0x75e   : > { %v11503_v60 = vpop.f32.mrb[17].mxu1 }
 0x761   : > { %v1186_v12 = vpop.f32.mrb[18].mxu1 }
 0x762   : > { %v11506_v13 = vpop.f32.mrb[19].mxu1 }
 0x765   : > { %v1092_v50 = vpop.f32.mrb[24].mxu0  ;;  %v1191_v18 = vpop.f32.mrb[20].mxu1 }
 0x766   : > { %v13680_v14 = vadd.f32 %v1181_v9, %v1092_v50  ;;  %v11492_v19 = vpop.f32.mrb[25].mxu0  ;;  %v11509_v22 = vpop.f32.mrb[21].mxu1 }
 0x769   : > { %v1097_v24 = vpop.f32.mrb[26].mxu0 }
 0x76a   : > { %v13682_v26 = vadd.f32 %v1186_v12, %v1097_v24  ;;  %v11495_v29 = vpop.f32.mrb[27].mxu0 }
 0x76d   : > { %v1102_v58 = vpop.f32.mrb[28].mxu0 }
 0x76e   : > { %v13684_v31 = vadd.f32 %v1191_v18, %v1102_v58  ;;  %v11498_v32 = vpop.f32.mrb[29].mxu0 }
 0x775   : > { %v11516_v49 = vpop.f32.mrb[32].mxu0 }
 0x776   : > { %v1249_v34 = vpop.f32.mrb[33].mxu0  ;;  %v1265_v40 = vsel %vm332_vm3, %v11516_v49, -1e+30 }
 0x777   : > { %v1263_v36 = vsel %vm332_vm3, %v1249_v34, -1e+30  ;;  %v11517_v37 = vpop.f32.mrb[34].mxu0  ;;  %v1272_v43 = vsel %vm748_vm4, %v1265_v40, -inf }
 0x778   : > { %v1252_v38 = vpop.f32.mrb[35].mxu0  ;;  %v1266_v39 = vsel %vm748_vm4, %v1263_v36, -inf }
 0x779   : > { %v1264_v41 = vsel %vm332_vm3, %v1252_v38, -1e+30  ;;  %1267 = vmax.xlane.f32.xlu0 %v1266_v39 }
 0x77a   : > { %v1269_v57 = vsel %vm748_vm4, %v1264_v41, -inf }
 0x77b   : > { %1270 = vmax.xlane.f32.xlu1 %v1269_v57 }
 0x77d   : > { %1273 = vmax.xlane.f32.xlu0 %v1272_v43  ;;  %v13726_v43 = vld [vmem:[%s16283_s2 + $0x28] sm:$0xff] }
 0x77e   : > { %11527 = vmatpush3.msra.mxu0 %v13726_v43 }
 0x806   : > { %v1268_v53 = vpop.xlane.xlu0 %1267 }
 0x807   : > { %v1275_v52 = vsub.f32 %v1263_v36, %v1268_v53 }
 0x808   : > { %v1271_v55 = vpop.xlane.xlu1 %1270 }
 0x809   : > { %v1278_v59 = vmul.f32 1.442695, %v1275_v52  ;;  %v1276_v62 = vsub.f32 %v1264_v41, %v1271_v55 }
 0x80a   : > { %v1274_v63 = vpop.xlane.xlu0 %1273 }
 0x80b   : > { %12657 = vpow2.f32 %v1278_v59  ;;  %v1280_v0 = vmul.f32 1.442695, %v1276_v62  ;;  %v1277_v1 = vsub.f32 %v1265_v40, %v1274_v63 }
 0x80d   : > { %12659 = vpow2.f32 %v1280_v0  ;;  %v1282_v42 = vmul.f32 1.442695, %v1277_v1 }
 0x80f   : > { %12661 = vpow2.f32 %v1282_v42 }
 0x815   : > { %v12658_v2 = vpop.eup %12657 }
 0x816   : > { %v1284_v23 = vsel %vm748_vm4, %v12658_v2, 0.0 }
 0x817   : > { %v12660_v6 = vpop.eup %12659  ;;  %1285 = vadd.xlane.f32.xlu0 %v1284_v23 }
 0x818   : > { %v1287_v9 = vsel %vm748_vm4, %v12660_v6, 0.0 }
 0x819   : > { %v12662_v7 = vpop.eup %12661 }
 0x81a   : > { %v1290_v8 = vsel %vm748_vm4, %v12662_v7, 0.0 }
 0x81b   : > { %1291 = vadd.xlane.f32.xlu1 %v1290_v8  ;;  %1288 = vadd.xlane.f32.xlu0 %v1287_v9 }
 0x82c   : > { %1303 = vrot.lane.b32.xlu1 %v13534_v15, %s13222_s26 }
 0x830   : > { %1460 = vrot.lane.b32.xlu1 %v13540_v20, %s13223_s27 }
 0x831   : > { %1301 = vrot.lane.b32.xlu0 %v13540_v20, %s13222_s26 }
 0x834   : > { %1462 = vrot.lane.b32.xlu1 %v13534_v15, %s13223_s27 }
 0x835   : > { %1456 = vrot.lane.b32.xlu0 %v13540_v20, %s13224_s28 }
 0x838   : > { %1458 = vrot.lane.b32.xlu1 %v13534_v15, %s13224_s28 }
 0x8a4   : > { %v1286_v60 = vpop.xlane.xlu0 %1285 }
 0x8a5   : > { %12663 = vrcp.f32 %v1286_v60 }
 0x8a8   : > { %v1289_v12 = vpop.xlane.xlu0 %1288  ;;  %v1292_v13 = vpop.xlane.xlu1 %1291 }
 0x8a9   : > { %12665 = vrcp.f32 %v1289_v12 }
 0x8aa   : > { %12667 = vrcp.f32 %v1292_v13 }
 0x8ac   : > { %v1302_v50 = vpop.permute.xlu0 %1301  ;;  %v1304_v18 = vpop.permute.xlu1 %1303 }
 0x8ad   : > { %11518 = vmatprep.subr.bf16.mxu1 %v1302_v50  ;;  %v1313_v22 = vsel %vm795_vm5, %v1304_v18, 0 }
 0x8ae   : > { %11519 = vmatpush3.bf16.msra.mxu1 %v1302_v50 }
 0x8af   : > { %12440 = vmatprep.subr.msk.bf16.mxu1 %vm795_vm5, %v1304_v18  ;;  %v12664_v19 = vpop.eup %12663 }
 0x8b0   : > { %v1461_v24 = vpop.permute.xlu1 %1460  ;;  %v1296_v32 = vmul.f32 %v12664_v19, %v12658_v2  ;;  %v1457_v38 = vpop.permute.xlu0 %1456 }
 0x8b1   : > { %v1471_v39 = vsel %vm684_vm2, %v1461_v24, 0 }
 0x8b2   : > { %11521 = vmatpush3.bf16.msra.mxu1 %v1313_v22 }
 0x8b3   : > { %v12666_v29 = vpop.eup %12665  ;;  %12441 = vmatprep.subr.msk.bf16.mxu1 %vm684_vm2, %v1461_v24 }
 0x8b4   : > { %v12668_v58 = vpop.eup %12667  ;;  %v1297_v49 = vmul.f32 %v12666_v29, %v12660_v6  ;;  %v1463_v40 = vpop.permute.xlu1 %1462 }
 0x8b5   : > { %v1298_v34 = vmul.f32 %v12668_v58, %v12662_v7  ;;  %v1474_v41 = vsel %vm684_vm2, %v1463_v40, 0 }
 0x8b6   : > { %v1299_v36 = vpack.c.bf16 %v1297_v49, %v1296_v32 }
 0x8b7   : > { %v1300_v37 = vpack.c.bf16 %v1298_v34, %v1298_v34 }
 0x8b8   : > { %11522 = vmatprep.mubr.msk.bf16.mxu1 %vm748_vm4, %v1299_v36  ;;  %v1459_v57 = vpop.permute.xlu1 %1458 }
 0x8b9   : > { %11523 = vmatmul.mubr.msk.bf16.vlgmr.msra.gmra.mrb[24].mxu1 %vm748_vm4, %v1300_v37  ;;  %v649_v37 = vadd.f32 %v13531_v35, %v13570_v44 }
 0x8ba   : > { %11541 = vmatprep.mubr.msk.bf16.mxu1 %vm684_vm2, %v1457_v38 }
 0x8bb   : > { %11538 = vmatpush3.bf16.xpose.msra.mxu1 %v1471_v39  ;;  %v13756_v38 = vpack.c.bf16 %v649_v37, %v649_v37 }
 0x8bc   : > { %12442 = vmatprep.subr.msk.bf16.mxu1 %vm684_vm2, %v1463_v40 }
 0x8c3   : > { %11540 = vmatpush3.bf16.xpose.msra.mxu1 %v1474_v41 }
 0x8c4   : > { %11553 = vmatprep.subr.mxu1 %v13220_v27 }
 0x8ca   : > { %11542 = vmatmul.mubr.msk.bf16.vlgmr.msra.gmra.mrb[28].mxu1 %vm684_vm2, %v1459_v57 }
 0x8cb   : > { %11555 = vmatprep.mubr.msk.f32.mxu1 %vm13221_vm6, %v13220_v27 }
 0x98c   : > { %v11524_v53 = vpop.f32.mrb[24].mxu1 }
 0x98d   : > { %v1349_v52 = vpop.f32.mrb[25].mxu1 }
 0x98e   : > { %v11525_v55 = vpop.f32.mrb[26].mxu1  ;;  %11529 = vmatmul.mubr.msk.f32.vlgmr.msra.gmra.mrb[30].mxu0 %vm684_vm2, %v1349_v52 }
 0x98f   : > { %v1352_v59 = vpop.f32.mrb[27].mxu1  ;;  %11531 = vmatprep.mubr.msk.f32.mxu0 %vm13221_vm6, %v13220_v27 }
 0x992   : > { %11532 = vmatmul.mubr.msk.f32.gmra.mrb[36].mxu0 %vm684_vm2, %v1352_v59 }
 0x993   : > { %11534 = vmatprep.mubr.msk.f32.mxu0 %vm13221_vm6, %v13220_v27 }
 0x996   : > { %11535 = vmatmul.mubr.msk.f32.gmra.mrb[38].mxu0 %vm684_vm2, %v11524_v53 }
 0x99d   : > { %v11543_v62 = vpop.f32.mrb[28].mxu1 }
 0x99e   : > { %v1510_v63 = vpop.f32.mrb[29].mxu1  ;;  %v1526_v23 = vsel %vm332_vm3, %v11543_v62, -1e+30 }
 0x99f   : > { %v1524_v0 = vsel %vm332_vm3, %v1510_v63, -1e+30  ;;  %v11544_v1 = vpop.f32.mrb[30].mxu1  ;;  %v1533_v8 = vsel %vm748_vm4, %v1526_v23, -inf }
 0x9a0   : > { %v1513_v42 = vpop.f32.mrb[31].mxu1  ;;  %v1527_v2 = vsel %vm748_vm4, %v1524_v0, -inf }
 0x9a1   : > { %v1525_v6 = vsel %vm332_vm3, %v1513_v42, -1e+30  ;;  %1528 = vmax.xlane.f32.xlu0 %v1527_v2 }
 0x9a2   : > { %v1530_v7 = vsel %vm748_vm4, %v1525_v6, -inf }
 0x9a3   : > { %1531 = vmax.xlane.f32.xlu1 %v1530_v7 }
 0x9a5   : > { %1534 = vmax.xlane.f32.xlu0 %v1533_v8 }
 0xa2e   : > { %v1529_v9 = vpop.xlane.xlu0 %1528 }
 0xa2f   : > { %v1536_v60 = vsub.f32 %v1524_v0, %v1529_v9 }
 0xa30   : > { %v1532_v12 = vpop.xlane.xlu1 %1531 }
 0xa31   : > { %v1539_v13 = vmul.f32 1.442695, %v1536_v60  ;;  %v1537_v50 = vsub.f32 %v1525_v6, %v1532_v12 }
 0xa32   : > { %v1535_v18 = vpop.xlane.xlu0 %1534 }
 0xa33   : > { %12669 = vpow2.f32 %v1539_v13  ;;  %v1541_v19 = vmul.f32 1.442695, %v1537_v50  ;;  %v1538_v22 = vsub.f32 %v1526_v23, %v1535_v18 }
 0xa35   : > { %12671 = vpow2.f32 %v1541_v19  ;;  %v1543_v24 = vmul.f32 1.442695, %v1538_v22 }
 0xa37   : > { %12673 = vpow2.f32 %v1543_v24  ;;  %v13802_v24 = vld [vmem:[%s16283_s2 + $0x30] sm:$0xff] }
 0xa38   : > { %11554 = vmatpush3.msra.mxu1 %v13802_v24 }
 0xa3d   : > { %v12670_v29 = vpop.eup %12669 }
 0xa3e   : > { %v1545_v58 = vsel %vm748_vm4, %v12670_v29, 0.0 }
 0xa3f   : > { %v12672_v32 = vpop.eup %12671  ;;  %1546 = vadd.xlane.f32.xlu0 %v1545_v58 }
 0xa40   : > { %v1548_v36 = vsel %vm748_vm4, %v12672_v32, 0.0 }
 0xa41   : > { %v12674_v49 = vpop.eup %12673 }
 0xa42   : > { %v1551_v34 = vsel %vm748_vm4, %v12674_v49, 0.0 }
 0xa43   : > { %1552 = vadd.xlane.f32.xlu1 %v1551_v34  ;;  %1549 = vadd.xlane.f32.xlu0 %v1548_v36 }
 0xa54   : > { %1564 = vrot.lane.b32.xlu1 %v13534_v15, %s16285_s4 }
 0xa58   : > { %1721 = vrot.lane.b32.xlu1 %v13572_v46, %s13213_s6 }
 0xa59   : > { %1562 = vrot.lane.b32.xlu0 %v13540_v20, %s16285_s4 }
 0xa5c   : > { %1723 = vrot.lane.b32.xlu1 %v13756_v38, %s13213_s6 }
 0xa5d   : > { %1889 = vrot.lane.b32.xlu0 %v13572_v46, %s13214_s7 }
 0xa60   : > { %1891 = vrot.lane.b32.xlu1 %v13756_v38, %s13214_s7 }
 0xa61   : > { %v1439_v15 = vpop.f32.mrb[30].mxu0  ;;  %1885 = vrot.lane.b32.xlu0 %v13572_v46, %s13215_s8 }
 0xa62   : > { %v13767_v35 = vadd.f32 %v1439_v15, %v13680_v14  ;;  %v11530_v44 = vpop.f32.mrb[31].mxu0 }
 0xa64   : > { %1887 = vrot.lane.b32.xlu1 %v13756_v38, %s13215_s8 }
 0xa65   : > { %v1444_v20 = vpop.f32.mrb[36].mxu0 }
 0xa66   : > { %v13772_v39 = vadd.f32 %v1444_v20, %v13682_v26  ;;  %v11533_v40 = vpop.f32.mrb[37].mxu0 }
 0xa69   : > { %v1449_v41 = vpop.f32.mrb[38].mxu0 }
 0xa6a   : > { %v13775_v57 = vadd.f32 %v1449_v41, %v13684_v31  ;;  %v11536_v53 = vpop.f32.mrb[39].mxu0 }
 0xacc   : > { %v1547_v52 = vpop.xlane.xlu0 %1546 }
 0xacd   : > { %12675 = vrcp.f32 %v1547_v52 }
 0xad0   : > { %v1550_v55 = vpop.xlane.xlu0 %1549  ;;  %v1553_v59 = vpop.xlane.xlu1 %1552 }
 0xad1   : > { %12677 = vrcp.f32 %v1550_v55 }
 0xad2   : > { %12679 = vrcp.f32 %v1553_v59 }
 0xad4   : > { %v1563_v14 = vpop.permute.xlu0 %1562  ;;  %v1565_v62 = vpop.permute.xlu1 %1564 }
 0xad5   : > { %11545 = vmatprep.subr.bf16.mxu0 %v1563_v14  ;;  %v1574_v63 = vsel %vm795_vm5, %v1565_v62, 0 }
 0xad6   : > { %11546 = vmatpush3.bf16.msra.mxu0 %v1563_v14 }
 0xad7   : > { %12443 = vmatprep.subr.msk.bf16.mxu0 %vm795_vm5, %v1565_v62  ;;  %v12676_v26 = vpop.eup %12675 }
 0xad8   : > { %v1722_v0 = vpop.permute.xlu1 %1721  ;;  %v1557_v42 = vmul.f32 %v12676_v26, %v12670_v29  ;;  %v1890_v12 = vpop.permute.xlu0 %1889 }
 0xad9   : > { %v1732_v8 = vsel %vm684_vm2, %v1722_v0, 0  ;;  %v1900_v50 = vsel %vm684_vm2, %v1890_v12, 0 }
 0xada   : > { %11548 = vmatpush3.bf16.msra.mxu0 %v1574_v63 }
 0xadb   : > { %v12678_v31 = vpop.eup %12677  ;;  %12444 = vmatprep.subr.msk.bf16.mxu0 %vm684_vm2, %v1722_v0 }
 0xadc   : > { %v12680_v1 = vpop.eup %12679  ;;  %v1558_v2 = vmul.f32 %v12678_v31, %v12672_v32  ;;  %v1724_v9 = vpop.permute.xlu1 %1723 }
 0xadd   : > { %v1559_v23 = vmul.f32 %v12680_v1, %v12674_v49  ;;  %v1735_v60 = vsel %vm684_vm2, %v1724_v9, 0  ;;  %v1886_v13 = vpop.permute.xlu0 %1885 }
 0xade   : > { %v1560_v6 = vpack.c.bf16 %v1558_v2, %v1557_v42 }
 0xadf   : > { %v1561_v7 = vpack.c.bf16 %v1559_v23, %v1559_v23 }
 0xae0   : > { %11549 = vmatprep.mubr.msk.bf16.mxu0 %vm748_vm4, %v1560_v6  ;;  %v1892_v18 = vpop.permute.xlu1 %1891 }
 0xae1   : > { %11550 = vmatmul.mubr.msk.bf16.vlgmr.msra.gmra.mrb[40].mxu0 %vm748_vm4, %v1561_v7  ;;  %v1903_v19 = vsel %vm684_vm2, %v1892_v18, 0 }
 0xae2   : > { %11568 = vmatprep.mubr.msk.bf16.mxu0 %vm684_vm2, %v13572_v46 }
 0xae3   : > { %11565 = vmatpush3.bf16.xpose.msra.mxu0 %v1732_v8 }
 0xae4   : > { %12445 = vmatprep.subr.msk.bf16.mxu0 %vm684_vm2, %v1724_v9  ;;  %v1888_v22 = vpop.permute.xlu1 %1887 }
 0xaeb   : > { %11567 = vmatpush3.bf16.xpose.msra.mxu0 %v1735_v60 }
 0xaec   : > { %12447 = vmatprep.subr.msk.bf16.mxu0 %vm684_vm2, %v1890_v12 }
 0xaf2   : > { %11569 = vmatmul.mubr.msk.bf16.vlgmr.msra.gmra.mrb[44].mxu0 %vm684_vm2, %v13756_v38 }
 0xaf3   : > { %11581 = vmatpush3.bf16.xpose.msra.mxu0 %v1900_v50  ;;  %11584 = vmatprep.mubr.msk.bf16.mxu0 %vm684_vm2, %v1886_v13 }
 0xaf4   : > { %12448 = vmatprep.subr.msk.bf16.mxu0 %vm684_vm2, %v1892_v18 }
 0xafb   : > { %11583 = vmatpush3.bf16.xpose.msra.mxu0 %v1903_v19 }
 0xafc   : > { %11607 = vmatprep.subr.mxu0 %v13220_v27 }
 0xb02   : > { %11585 = vmatmul.mubr.msk.bf16.vlgmr.msra.gmra.mrb[48].mxu0 %vm684_vm2, %v1888_v22 }
 0xb03   : > { %11608 = vmatpush3.msra.mxu0 %v13651_v51  ;;  %11609 = vmatprep.mubr.msk.f32.mxu0 %vm13221_vm6, %v13220_v27 }
 0xbb4   : > { %v11551_v29 = vpop.f32.mrb[40].mxu0 }
 0xbb5   : > { %v1610_v58 = vpop.f32.mrb[41].mxu0 }
 0xbb6   : > { %v11552_v32 = vpop.f32.mrb[42].mxu0  ;;  %11556 = vmatmul.mubr.msk.f32.vlgmr.msra.gmra.mrb[22].mxu1 %vm684_vm2, %v1610_v58 }
 0xbb7   : > { %v1613_v49 = vpop.f32.mrb[43].mxu0  ;;  %11558 = vmatprep.mubr.msk.f32.mxu1 %vm13221_vm6, %v13220_v27 }
 0xbba   : > { %11559 = vmatmul.mubr.msk.f32.gmra.mrb[32].mxu1 %vm684_vm2, %v1613_v49 }
 0xbbb   : > { %11561 = vmatprep.mubr.msk.f32.mxu1 %vm13221_vm6, %v13220_v27 }
 0xbbe   : > { %11562 = vmatmul.mubr.msk.f32.gmra.mrb[34].mxu1 %vm684_vm2, %v11551_v29 }
 0xbc5   : > { %v11570_v51 = vpop.f32.mrb[44].mxu0 }
 0xbc6   : > { %v1771_v34 = vpop.f32.mrb[45].mxu0  ;;  %v1787_v20 = vsel %vm332_vm3, %v11570_v51, -1e+30 }
 0xbc7   : > { %v1785_v36 = vsel %vm332_vm3, %v1771_v34, -1e+30  ;;  %v11571_v37 = vpop.f32.mrb[46].mxu0  ;;  %v1794_v53 = vsel %vm748_vm4, %v1787_v20, -inf }
 0xbc8   : > { %v1774_v15 = vpop.f32.mrb[47].mxu0  ;;  %v1788_v44 = vsel %vm748_vm4, %v1785_v36, -inf }
 0xbc9   : > { %v1786_v40 = vsel %vm332_vm3, %v1774_v15, -1e+30  ;;  %1789 = vmax.xlane.f32.xlu0 %v1788_v44 }
 0xbca   : > { %v1791_v41 = vsel %vm748_vm4, %v1786_v40, -inf }
 0xbcb   : > { %1792 = vmax.xlane.f32.xlu1 %v1791_v41 }
 0xbcd   : > { %1795 = vmax.xlane.f32.xlu0 %v1794_v53 }
 0xbd5   : > { %v11586_v52 = vpop.f32.mrb[48].mxu0 }
 0xbd6   : > { %v1955_v55 = vsel %vm332_vm3, %v11586_v52, -1e+30  ;;  %v1939_v59 = vpop.f32.mrb[49].mxu0 }
 0xbd7   : > { %v1953_v14 = vsel %vm332_vm3, %v1939_v59, -1e+30  ;;  %v11587_v62 = vpop.f32.mrb[50].mxu0  ;;  %v1962_v26 = vsel %vm748_vm4, %v1955_v55, -inf }
 0xbd8   : > { %1963 = vmax.xlane.f32.xlu1 %v1962_v26  ;;  %v1942_v63 = vpop.f32.mrb[51].mxu0  ;;  %v1956_v0 = vsel %vm748_vm4, %v1953_v14, -inf }
 0xbd9   : > { %v1954_v31 = vsel %vm332_vm3, %v1942_v63, -1e+30  ;;  %1957 = vmax.xlane.f32.xlu0 %v1956_v0 }
 0xbda   : > { %v1959_v1 = vsel %vm748_vm4, %v1954_v31, -inf }
 0xbdd   : > { %1960 = vmax.xlane.f32.xlu0 %v1959_v1 }
 0xc56   : > { %v1790_v42 = vpop.xlane.xlu0 %1789 }
 0xc57   : > { %v1797_v23 = vsub.f32 %v1785_v36, %v1790_v42 }
 0xc58   : > { %v1793_v2 = vpop.xlane.xlu1 %1792 }
 0xc59   : > { %v1798_v6 = vsub.f32 %v1786_v40, %v1793_v2  ;;  %v1800_v60 = vmul.f32 1.442695, %v1797_v23 }
 0xc5a   : > { %v1796_v7 = vpop.xlane.xlu0 %1795 }
 0xc5b   : > { %v1802_v8 = vmul.f32 1.442695, %v1798_v6  ;;  %v1799_v9 = vsub.f32 %v1787_v20, %v1796_v7 }
 0xc5d   : > { %12681 = vpow2.f32 %v1802_v8  ;;  %v1804_v12 = vmul.f32 1.442695, %v1799_v9 }
 0xc5f   : > { %12683 = vpow2.f32 %v1804_v12 }
 0xc60   : > { %12685 = vpow2.f32 %v1800_v60 }
 0xc65   : > { %v1964_v13 = vpop.xlane.xlu1 %1963 }
 0xc66   : > { %v1967_v50 = vsub.f32 %v1955_v55, %v1964_v13  ;;  %v1958_v18 = vpop.xlane.xlu0 %1957 }
 0xc67   : > { %v12682_v19 = vpop.eup %12681  ;;  %v1965_v22 = vsub.f32 %v1953_v14, %v1958_v18 }
 0xc68   : > { %v1972_v29 = vmul.f32 1.442695, %v1967_v50  ;;  %v1809_v58 = vsel %vm748_vm4, %v12682_v19, 0.0 }
 0xc69   : > { %v13831_v32 = vpop.eup %12683  ;;  %v1968_v49 = vmul.f32 1.442695, %v1965_v22  ;;  %1810 = vadd.xlane.f32.xlu1 %v1809_v58 }
 0xc6a   : > { %12687 = vpow2.f32 %v1972_v29  ;;  %v1961_v51 = vpop.xlane.xlu0 %1960  ;;  %v1812_v34 = vsel %vm748_vm4, %v13831_v32, 0.0  ;;  %v12686_v36 = vpop.eup %12685 }
 0xc6b   : > { %v1966_v37 = vsub.f32 %v1954_v31, %v1961_v51  ;;  %1813 = vadd.xlane.f32.xlu0 %v1812_v34  ;;  %12689 = vpow2.f32 %v1968_v49  ;;  %v1806_v44 = vsel %vm748_vm4, %v12686_v36, 0.0 }
 0xc6d   : > { %v1970_v15 = vmul.f32 1.442695, %v1966_v37 }
 0xc6f   : > { %12691 = vpow2.f32 %v1970_v15  ;;  %1807 = vadd.xlane.f32.xlu0 %v1806_v44 }
 0xc74   : > { %v13836_v20 = vpop.eup %12687 }
 0xc75   : > { %v1980_v40 = vsel %vm748_vm4, %v13836_v20, 0.0  ;;  %v12690_v41 = vpop.eup %12689 }
 0xc76   : > { %1981 = vadd.xlane.f32.xlu1 %v1980_v40  ;;  %v1974_v52 = vsel %vm748_vm4, %v12690_v41, 0.0 }
 0xc79   : > { %v12692_v53 = vpop.eup %12691 }
 0xc7a   : > { %1975 = vadd.xlane.f32.xlu1 %v1974_v52  ;;  %v1977_v55 = vsel %vm748_vm4, %v12692_v53, 0.0 }
 0xc7b   : > { %1978 = vadd.xlane.f32.xlu0 %v1977_v55 }
 0xc89   : > { %v1700_v59 = vpop.f32.mrb[22].mxu1 }
 0xc8a   : > { %v13843_v14 = vadd.f32 %v1700_v59, %v13767_v35  ;;  %v11557_v62 = vpop.f32.mrb[23].mxu1 }
 0xc8b   : > { %1825 = vrot.lane.b32.xlu1 %v13756_v38, %s13216_s9 }
 0xc8d   : > { %v1705_v26 = vpop.f32.mrb[32].mxu1 }
 0xc8e   : > { %v13848_v63 = vadd.f32 %v1705_v26, %v13772_v39  ;;  %v11560_v0 = vpop.f32.mrb[33].mxu1 }
 0xc8f   : > { %1991 = vrot.lane.b32.xlu1 %v13572_v46, %s13217_s10 }
 0xc91   : > { %v1710_v31 = vpop.f32.mrb[34].mxu1  ;;  %1823 = vrot.lane.b32.xlu0 %v13572_v46, %s13216_s9 }
 0xc92   : > { %v13855_v1 = vadd.f32 %v1710_v31, %v13775_v57  ;;  %v11563_v35 = vpop.f32.mrb[35].mxu1 }
 0xc93   : > { %1993 = vrot.lane.b32.xlu1 %v13756_v38, %s13217_s10 }
 0xc95   : > { %2235 = vrot.lane.b32.xlu0 %v13572_v46, %s13218_s11 }
 0xc97   : > { %2237 = vrot.lane.b32.xlu1 %v13756_v38, %s13218_s11 }
 0xc99   : > { %2231 = vrot.lane.b32.xlu0 %v13572_v46, %s13219_s17 }
 0xc9b   : > { %2233 = vrot.lane.b32.xlu1 %v13756_v38, %s13219_s17 }
 0xcf6   : > { %v1811_v39 = vpop.xlane.xlu1 %1810 }
 0xcf7   : > { %12693 = vrcp.f32 %v1811_v39 }
 0xcf8   : > { %v1814_v42 = vpop.xlane.xlu0 %1813 }
 0xcfc   : > { %v1808_v57 = vpop.xlane.xlu0 %1807 }
 0xcfd   : > { %12695 = vrcp.f32 %v1808_v57 }
 0xcfe   : > { %12697 = vrcp.f32 %v1814_v42 }
 0xd01   : > { %v12694_v23 = vpop.eup %12693 }
 0xd02   : > { %v1819_v60 = vmul.f32 %v12694_v23, %v12682_v19 }
 0xd03   : > { %v1982_v2 = vpop.xlane.xlu1 %1981 }
 0xd07   : > { %v12696_v6 = vpop.eup %12695  ;;  %v1976_v7 = vpop.xlane.xlu1 %1975 }
 0xd08   : > { %12699 = vrcp.f32 %v1976_v7  ;;  %v1979_v8 = vpop.xlane.xlu0 %1978  ;;  %v1818_v9 = vmul.f32 %v12696_v6, %v12686_v36  ;;  %v12698_v50 = vpop.eup %12697 }
 0xd09   : > { %12701 = vrcp.f32 %v1979_v8  ;;  %v1820_v22 = vmul.f32 %v12698_v50, %v13831_v32 }
 0xd0a   : > { %12703 = vrcp.f32 %v1982_v2  ;;  %v1821_v12 = vpack.c.bf16 %v1819_v60, %v1818_v9 }
 0xd0b   : > { %v1826_v13 = vpop.permute.xlu1 %1825  ;;  %v1822_v51 = vpack.c.bf16 %v1820_v22, %v1820_v22 }
 0xd0c   : > { %v1824_v18 = vpop.permute.xlu0 %1823  ;;  %11576 = vmatprep.mubr.msk.bf16.mxu1 %vm748_vm4, %v1821_v12  ;;  %v1835_v58 = vsel %vm795_vm5, %v1826_v13, 0 }
 0xd0d   : > { %11572 = vmatprep.subr.bf16.mxu1 %v1824_v18 }
 0xd0e   : > { %11573 = vmatpush3.bf16.msra.mxu1 %v1824_v18 }
 0xd0f   : > { %12446 = vmatprep.subr.msk.bf16.mxu1 %vm795_vm5, %v1826_v13  ;;  %v1992_v29 = vpop.permute.xlu1 %1991 }
 0xd12   : > { %v12700_v49 = vpop.eup %12699  ;;  %11575 = vmatpush3.bf16.msra.mxu1 %v1835_v58 }
 0xd13   : > { %v12702_v19 = vpop.eup %12701  ;;  %11588 = vmatprep.subr.bf16.mxu1 %v1992_v29  ;;  %v1986_v34 = vmul.f32 %v12700_v49, %v12690_v41  ;;  %v1994_v15 = vpop.permute.xlu1 %1993 }
 0xd14   : > { %v12704_v36 = vpop.eup %12703  ;;  %v1987_v37 = vmul.f32 %v12702_v19, %v12692_v53  ;;  %v2003_v40 = vsel %vm795_vm5, %v1994_v15, 0  ;;  %v2236_v41 = vpop.permute.xlu0 %2235 }
 0xd15   : > { %11577 = vmatmul.mubr.msk.bf16.vlgmr.msra.gmra.mrb[36].mxu1 %vm748_vm4, %v1822_v51  ;;  %v1988_v32 = vmul.f32 %v12704_v36, %v13836_v20  ;;  %v2246_v0 = vsel %vm684_vm2, %v2236_v41, 0 }
 0xd16   : > { %11589 = vmatpush3.bf16.msra.mxu1 %v1992_v29  ;;  %v1989_v44 = vpack.c.bf16 %v1987_v37, %v1986_v34 }
 0xd17   : > { %12449 = vmatprep.subr.msk.bf16.mxu1 %vm795_vm5, %v1994_v15  ;;  %v1990_v52 = vpack.c.bf16 %v1988_v32, %v1988_v32  ;;  %v2238_v31 = vpop.permute.xlu1 %2237 }
 0xd18   : > { %11592 = vmatprep.mubr.msk.bf16.mxu1 %vm748_vm4, %v1989_v44  ;;  %v2232_v39 = vpop.permute.xlu0 %2231  ;;  %v2249_v42 = vsel %vm684_vm2, %v2238_v31, 0 }
 0xd1a   : > { %11591 = vmatpush3.bf16.msra.mxu1 %v2003_v40 }
 0xd1b   : > { %11596 = vmatprep.subr.mxu1 %v13220_v27  ;;  %v2234_v57 = vpop.permute.xlu1 %2233 }
 0xd1d   : > { %11593 = vmatmul.mubr.msk.bf16.vlgmr.msra.gmra.mrb[40].mxu1 %vm748_vm4, %v1990_v52 }
 0xd1e   : > { %11597 = vmatpush3.msra.mxu1 %v13643_v3  ;;  %11598 = vmatprep.mubr.msk.f32.mxu1 %vm13221_vm6, %v13220_v27 }
 0xd1f   : > { %12450 = vmatprep.subr.msk.bf16.mxu1 %vm684_vm2, %v2236_v41 }
 0xde8   : > { %v11578_v53 = vpop.f32.mrb[36].mxu1 }
 0xde9   : > { %v1871_v20 = vpop.f32.mrb[37].mxu1 }
 0xdea   : > { %v11579_v55 = vpop.f32.mrb[38].mxu1  ;;  %11610 = vmatmul.mubr.msk.f32.vlgmr.msra.gmra.mrb[52].mxu0 %vm684_vm2, %v1871_v20 }
 0xdeb   : > { %v1874_v59 = vpop.f32.mrb[39].mxu1  ;;  %11612 = vmatprep.mubr.msk.f32.mxu0 %vm13221_vm6, %v13220_v27 }
 0xdee   : > { %11613 = vmatmul.mubr.msk.f32.gmra.mrb[54].mxu0 %vm684_vm2, %v1874_v59 }
 0xdef   : > { %11615 = vmatprep.mubr.msk.f32.mxu0 %vm13221_vm6, %v13220_v27 }
 0xdf0   : > { %v11594_v3 = vpop.f32.mrb[40].mxu1 }
 0xdf1   : > { %v2039_v62 = vpop.f32.mrb[41].mxu1 }
 0xdf2   : > { %v11595_v26 = vpop.f32.mrb[42].mxu1  ;;  %11599 = vmatmul.mubr.msk.f32.vlgmr.msra.gmra.mrb[44].mxu1 %vm684_vm2, %v2039_v62  ;;  %11616 = vmatmul.mubr.msk.f32.gmra.mrb[56].mxu0 %vm684_vm2, %v11578_v53 }
 0xdf3   : > { %11619 = vmatpush3.bf16.xpose.msra.mxu1 %v2246_v0  ;;  %v2042_v35 = vpop.f32.mrb[43].mxu1  ;;  %11601 = vmatprep.mubr.msk.f32.mxu1 %vm13221_vm6, %v13220_v27 }
 0xdf4   : > { %12451 = vmatprep.subr.msk.bf16.mxu1 %vm684_vm2, %v2238_v31 }
 0xdf6   : > { %11602 = vmatmul.mubr.msk.f32.gmra.mrb[46].mxu1 %vm684_vm2, %v2042_v35 }
 0xdf7   : > { %11604 = vmatprep.mubr.msk.f32.mxu1 %vm13221_vm6, %v13220_v27 }
 0xdfa   : > { %11605 = vmatmul.mubr.msk.f32.gmra.mrb[48].mxu1 %vm684_vm2, %v11594_v3 }
 0xdfb   : > { %11621 = vmatpush3.bf16.xpose.msra.mxu1 %v2249_v42  ;;  %11622 = vmatprep.mubr.msk.bf16.mxu1 %vm684_vm2, %v2232_v39 }
 0xdfc   : > { %11634 = vmatprep.subr.mxu1 %v13220_v27 }
 0xe02   : > { %11623 = vmatmul.mubr.msk.bf16.vlgmr.msra.gmra.mrb[52].mxu1 %vm684_vm2, %v2234_v57 }
 0xe03   : > { %11635 = vmatpush3.msra.mxu1 %v13726_v43  ;;  %11636 = vmatprep.mubr.msk.f32.mxu1 %vm13221_vm6, %v13220_v27 }
 0xebd   : > { %v2217_v2 = vpop.f32.mrb[52].mxu0 }
 0xebe   : > { %v11611_v23 = vpop.f32.mrb[53].mxu0 }
 0xec1   : > { %v2222_v6 = vpop.f32.mrb[54].mxu0 }
 0xec2   : > { %v11614_v7 = vpop.f32.mrb[55].mxu0 }
 0xec5   : > { %v2128_v8 = vpop.f32.mrb[44].mxu1  ;;  %v2227_v9 = vpop.f32.mrb[56].mxu0 }
 0xec6   : > { %v13905_v60 = vadd.f32 %v2217_v2, %v2128_v8  ;;  %v11600_v12 = vpop.f32.mrb[45].mxu1  ;;  %v11617_v13 = vpop.f32.mrb[57].mxu0 }
 0xec9   : > { %v2133_v50 = vpop.f32.mrb[46].mxu1 }
 0xeca   : > { %v13907_v18 = vadd.f32 %v2222_v6, %v2133_v50  ;;  %v11603_v22 = vpop.f32.mrb[47].mxu1 }
 0xecd   : > { %v2138_v29 = vpop.f32.mrb[48].mxu1 }
 0xece   : > { %v13909_v58 = vadd.f32 %v2227_v9, %v2138_v29  ;;  %v11606_v43 = vpop.f32.mrb[49].mxu1 }
 0xed5   : > { %v11624_v49 = vpop.f32.mrb[52].mxu1 }
 0xed6   : > { %v2285_v19 = vpop.f32.mrb[53].mxu1  ;;  %v2301_v15 = vsel %vm332_vm3, %v11624_v49, -1e+30 }
 0xed7   : > { %v2299_v51 = vsel %vm332_vm3, %v2285_v19, -1e+30  ;;  %v11625_v34 = vpop.f32.mrb[54].mxu1  ;;  %v2308_v40 = vsel %vm748_vm4, %v2301_v15, -inf }
 0xed8   : > { %v2288_v36 = vpop.f32.mrb[55].mxu1  ;;  %v2302_v37 = vsel %vm748_vm4, %v2299_v51, -inf }
 0xed9   : > { %v2300_v44 = vsel %vm332_vm3, %v2288_v36, -1e+30  ;;  %2303 = vmax.xlane.f32.xlu0 %v2302_v37 }
 0xeda   : > { %v2305_v32 = vsel %vm748_vm4, %v2300_v44, -inf }
 0xedb   : > { %2306 = vmax.xlane.f32.xlu1 %v2305_v32 }
 0xedd   : > { %2309 = vmax.xlane.f32.xlu0 %v2308_v40 }
 0xf66   : > { %v2304_v52 = vpop.xlane.xlu0 %2303 }
 0xf67   : > { %v2311_v41 = vsub.f32 %v2299_v51, %v2304_v52 }
 0xf68   : > { %v2307_v53 = vpop.xlane.xlu1 %2306 }
 0xf69   : > { %v2314_v20 = vmul.f32 1.442695, %v2311_v41  ;;  %v2312_v55 = vsub.f32 %v2300_v44, %v2307_v53 }
 0xf6a   : > { %v2310_v59 = vpop.xlane.xlu0 %2309 }
 0xf6b   : > { %12705 = vpow2.f32 %v2314_v20  ;;  %v2316_v3 = vmul.f32 1.442695, %v2312_v55  ;;  %v2313_v62 = vsub.f32 %v2301_v15, %v2310_v59 }
 0xf6d   : > { %12707 = vpow2.f32 %v2316_v3  ;;  %v2318_v26 = vmul.f32 1.442695, %v2313_v62 }
 0xf6f   : > { %12709 = vpow2.f32 %v2318_v26 }
 0xf75   : > { %v12706_v0 = vpop.eup %12705 }
 0xf76   : > { %v2320_v31 = vsel %vm748_vm4, %v12706_v0, 0.0 }
 0xf77   : > { %v12708_v35 = vpop.eup %12707  ;;  %2321 = vadd.xlane.f32.xlu0 %v2320_v31 }
 0xf78   : > { %v2323_v57 = vsel %vm748_vm4, %v12708_v35, 0.0 }
 0xf79   : > { %v12710_v39 = vpop.eup %12709 }
 0xf7a   : > { %v2326_v42 = vsel %vm748_vm4, %v12710_v39, 0.0 }
 0xf7b   : > { %2327 = vadd.xlane.f32.xlu1 %v2326_v42  ;;  %2324 = vadd.xlane.f32.xlu0 %v2323_v57 }
 0xf8c   : > { %2339 = vrot.lane.b32.xlu1 %v13756_v38, %s13222_s26 }
 0xf90   : > { %2495 = vrot.lane.b32.xlu1 %v13572_v46, %s13223_s27 }
 0xf91   : > { %2337 = vrot.lane.b32.xlu0 %v13572_v46, %s13222_s26 }
 0xf94   : > { %2497 = vrot.lane.b32.xlu1 %v13756_v38, %s13223_s27 }
 0xf95   : > { %2491 = vrot.lane.b32.xlu0 %v13572_v46, %s13224_s28 }
 0xf98   : > { %2493 = vrot.lane.b32.xlu1 %v13756_v38, %s13224_s28 }
0x1004   : > { %v2322_v2 = vpop.xlane.xlu0 %2321 }
0x1005   : > { %12711 = vrcp.f32 %v2322_v2 }
0x1008   : > { %v2325_v23 = vpop.xlane.xlu0 %2324  ;;  %v2328_v6 = vpop.xlane.xlu1 %2327 }
0x1009   : > { %12713 = vrcp.f32 %v2325_v23 }
0x100a   : > { %12715 = vrcp.f32 %v2328_v6 }
0x100c   : > { %v2338_v7 = vpop.permute.xlu0 %2337  ;;  %v2340_v8 = vpop.permute.xlu1 %2339 }
0x100d   : > { %11626 = vmatprep.subr.bf16.mxu0 %v2338_v7  ;;  %v2349_v12 = vsel %vm795_vm5, %v2340_v8, 0 }
0x100e   : > { %11627 = vmatpush3.bf16.msra.mxu0 %v2338_v7 }
0x100f   : > { %12452 = vmatprep.subr.msk.bf16.mxu0 %vm795_vm5, %v2340_v8  ;;  %v12712_v9 = vpop.eup %12711 }
0x1010   : > { %v2496_v13 = vpop.permute.xlu1 %2495  ;;  %v2332_v29 = vmul.f32 %v12712_v9, %v12706_v0  ;;  %v2492_v34 = vpop.permute.xlu0 %2491 }
0x1011   : > { %v2506_v36 = vsel %vm684_vm2, %v2496_v13, 0 }
0x1012   : > { %11629 = vmatpush3.bf16.msra.mxu0 %v2349_v12 }
0x1013   : > { %v12714_v50 = vpop.eup %12713  ;;  %12453 = vmatprep.subr.msk.bf16.mxu0 %vm684_vm2, %v2496_v13 }
0x1014   : > { %v12716_v22 = vpop.eup %12715  ;;  %v2333_v43 = vmul.f32 %v12714_v50, %v12708_v35  ;;  %v2498_v37 = vpop.permute.xlu1 %2497 }
0x1015   : > { %v2334_v49 = vmul.f32 %v12716_v22, %v12710_v39  ;;  %v2509_v15 = vsel %vm684_vm2, %v2498_v37, 0 }
0x1016   : > { %v2335_v19 = vpack.c.bf16 %v2333_v43, %v2332_v29  ;;  %v13973_v43 = vld [vmem:[%s16283_s2 + $0x5] ss:$0 sm:$0xff] }
0x1017   : > { %v2336_v51 = vpack.c.bf16 %v2334_v49, %v2334_v49  ;;  %v662_v49 = vadd.f32 %v13973_v43, %v13576_v48 }
0x1018   : > { %11630 = vmatprep.mubr.msk.bf16.mxu0 %vm748_vm4, %v2335_v19  ;;  %v2494_v44 = vpop.permute.xlu1 %2493 }
0x1019   : > { %11631 = vmatmul.mubr.msk.bf16.vlgmr.msra.gmra.mrb[60].mxu0 %vm748_vm4, %v2336_v51  ;;  %v13981_v19 = vpack.c.bf16 %v662_v49, %v662_v49 }
0x101a   : > { %11649 = vmatprep.mubr.msk.bf16.mxu0 %vm684_vm2, %v2492_v34 }
0x101b   : > { %11646 = vmatpush3.bf16.xpose.msra.mxu0 %v2506_v36 }
0x101c   : > { %12454 = vmatprep.subr.msk.bf16.mxu0 %vm684_vm2, %v2498_v37 }
0x1023   : > { %11648 = vmatpush3.bf16.xpose.msra.mxu0 %v2509_v15 }
0x1024   : > { %11661 = vmatprep.subr.mxu0 %v13220_v27 }
0x102a   : > { %11650 = vmatmul.mubr.msk.bf16.vlgmr.msra.gmra.mrb[64].mxu0 %vm684_vm2, %v2494_v44 }
0x102b   : > { %11662 = vmatpush3.msra.mxu0 %v13802_v24  ;;  %11663 = vmatprep.mubr.msk.f32.mxu0 %vm13221_vm6, %v13220_v27 }
0x10ec   : > { %v11632_v32 = vpop.f32.mrb[60].mxu0 }
0x10ed   : > { %v2385_v40 = vpop.f32.mrb[61].mxu0 }
0x10ee   : > { %v11633_v52 = vpop.f32.mrb[62].mxu0  ;;  %11637 = vmatmul.mubr.msk.f32.vlgmr.msra.gmra.mrb[50].mxu1 %vm684_vm2, %v2385_v40 }
0x10ef   : > { %v2388_v41 = vpop.f32.mrb[63].mxu0  ;;  %11639 = vmatprep.mubr.msk.f32.mxu1 %vm13221_vm6, %v13220_v27 }
0x10f2   : > { %11640 = vmatmul.mubr.msk.f32.gmra.mrb[56].mxu1 %vm684_vm2, %v2388_v41 }
0x10f3   : > { %11642 = vmatprep.mubr.msk.f32.mxu1 %vm13221_vm6, %v13220_v27 }
0x10f6   : > { %11643 = vmatmul.mubr.msk.f32.gmra.mrb[58].mxu1 %vm684_vm2, %v11632_v32 }
0x10fd   : > { %v11651_v24 = vpop.f32.mrb[64].mxu0 }
0x10fe   : > { %v2545_v53 = vpop.f32.mrb[65].mxu0  ;;  %v2561_v62 = vsel %vm332_vm3, %v11651_v24, -1e+30 }
0x10ff   : > { %v2559_v20 = vsel %vm332_vm3, %v2545_v53, -1e+30  ;;  %v11652_v55 = vpop.f32.mrb[66].mxu0  ;;  %v2568_v31 = vsel %vm748_vm4, %v2561_v62, -inf }
0x1100   : > { %v2562_v59 = vsel %vm748_vm4, %v2559_v20, -inf  ;;  %v2548_v3 = vpop.f32.mrb[67].mxu0 }
0x1101   : > { %v2560_v26 = vsel %vm332_vm3, %v2548_v3, -1e+30  ;;  %2563 = vmax.xlane.f32.xlu0 %v2562_v59 }
0x1102   : > { %v2565_v0 = vsel %vm748_vm4, %v2560_v26, -inf }
0x1103   : > { %2566 = vmax.xlane.f32.xlu1 %v2565_v0 }
0x1105   : > { %2569 = vmax.xlane.f32.xlu0 %v2568_v31 }
0x118e   : > { %v2564_v35 = vpop.xlane.xlu0 %2563 }
0x118f   : > { %v2571_v39 = vsub.f32 %v2559_v20, %v2564_v35 }
0x1190   : > { %v2567_v42 = vpop.xlane.xlu1 %2566 }
0x1191   : > { %v2574_v57 = vmul.f32 1.442695, %v2571_v39  ;;  %v2572_v2 = vsub.f32 %v2560_v26, %v2567_v42 }
0x1192   : > { %v2570_v23 = vpop.xlane.xlu0 %2569 }
0x1193   : > { %12717 = vpow2.f32 %v2574_v57  ;;  %v2576_v6 = vmul.f32 1.442695, %v2572_v2  ;;  %v2573_v7 = vsub.f32 %v2561_v62, %v2570_v23 }
0x1195   : > { %12719 = vpow2.f32 %v2576_v6  ;;  %v2578_v8 = vmul.f32 1.442695, %v2573_v7  ;;  %v14024_v7 = vld [vmem:[%s16283_s2 + $0x18] sm:$0xff] }
0x1197   : > { %12721 = vpow2.f32 %v2578_v8 }
0x119d   : > { %v12718_v9 = vpop.eup %12717 }
0x119e   : > { %v2580_v12 = vsel %vm748_vm4, %v12718_v9, 0.0 }
0x119f   : > { %v12720_v13 = vpop.eup %12719  ;;  %2581 = vadd.xlane.f32.xlu0 %v2580_v12 }
0x11a0   : > { %v2583_v29 = vsel %vm748_vm4, %v12720_v13, 0.0 }
0x11a1   : > { %v12722_v50 = vpop.eup %12721 }
0x11a2   : > { %v2586_v22 = vsel %vm748_vm4, %v12722_v50, 0.0 }
0x11a3   : > { %2587 = vadd.xlane.f32.xlu1 %v2586_v22  ;;  %2584 = vadd.xlane.f32.xlu0 %v2583_v29 }
0x11b4   : > { %2599 = vrot.lane.b32.xlu1 %v13756_v38, %s16285_s4 }
0x11b8   : > { %2755 = vrot.lane.b32.xlu1 %v13574_v47, %s13213_s6 }
0x11b9   : > { %2597 = vrot.lane.b32.xlu0 %v13572_v46, %s16285_s4 }
0x11bc   : > { %2757 = vrot.lane.b32.xlu1 %v13981_v19, %s13213_s6 }
0x11bd   : > { %2923 = vrot.lane.b32.xlu0 %v13574_v47, %s13214_s7 }
0x11c0   : > { %2925 = vrot.lane.b32.xlu1 %v13981_v19, %s13214_s7 }
0x11c1   : > { %v2474_v38 = vpop.f32.mrb[50].mxu1  ;;  %2919 = vrot.lane.b32.xlu0 %v13574_v47, %s13215_s8 }
0x11c2   : > { %v13992_v48 = vadd.f32 %v2474_v38, %v13905_v60  ;;  %v11638_v51 = vpop.f32.mrb[51].mxu1 }
0x11c4   : > { %2921 = vrot.lane.b32.xlu1 %v13981_v19, %s13215_s8 }
0x11c5   : > { %v2479_v46 = vpop.f32.mrb[56].mxu1 }
0x11c6   : > { %v13997_v34 = vadd.f32 %v2479_v46, %v13907_v18  ;;  %v11641_v36 = vpop.f32.mrb[57].mxu1 }
0x11c9   : > { %v2484_v37 = vpop.f32.mrb[58].mxu1 }
0x11ca   : > { %v14000_v15 = vadd.f32 %v2484_v37, %v13909_v58  ;;  %v11644_v44 = vpop.f32.mrb[59].mxu1 }
0x122c   : > { %v2582_v32 = vpop.xlane.xlu0 %2581 }
0x122d   : > { %12723 = vrcp.f32 %v2582_v32 }
0x1230   : > { %v2585_v40 = vpop.xlane.xlu0 %2584  ;;  %v2588_v52 = vpop.xlane.xlu1 %2587 }
0x1231   : > { %12725 = vrcp.f32 %v2585_v40 }
0x1232   : > { %12727 = vrcp.f32 %v2588_v52 }
0x1234   : > { %v2598_v60 = vpop.permute.xlu0 %2597  ;;  %v2600_v41 = vpop.permute.xlu1 %2599 }
0x1235   : > { %11653 = vmatprep.subr.bf16.mxu1 %v2598_v60  ;;  %v2609_v24 = vsel %vm795_vm5, %v2600_v41, 0 }
0x1236   : > { %11654 = vmatpush3.bf16.msra.mxu1 %v2598_v60 }
0x1237   : > { %12455 = vmatprep.subr.msk.bf16.mxu1 %vm795_vm5, %v2600_v41  ;;  %v12724_v18 = vpop.eup %12723 }
0x1238   : > { %v2756_v53 = vpop.permute.xlu1 %2755  ;;  %v2592_v55 = vmul.f32 %v12724_v18, %v12718_v9  ;;  %v2924_v39 = vpop.permute.xlu0 %2923 }
0x1239   : > { %v2766_v0 = vsel %vm684_vm2, %v2756_v53, 0  ;;  %v2934_v57 = vsel %vm684_vm2, %v2924_v39, 0 }
0x123a   : > { %11656 = vmatpush3.bf16.msra.mxu1 %v2609_v24 }
0x123b   : > { %v12726_v58 = vpop.eup %12725  ;;  %12456 = vmatprep.subr.msk.bf16.mxu1 %vm684_vm2, %v2756_v53 }
0x123c   : > { %v12728_v20 = vpop.eup %12727  ;;  %v2593_v59 = vmul.f32 %v12726_v58, %v12720_v13  ;;  %v2758_v31 = vpop.permute.xlu1 %2757 }
0x123d   : > { %v2594_v3 = vmul.f32 %v12728_v20, %v12722_v50  ;;  %v2769_v35 = vsel %vm684_vm2, %v2758_v31, 0  ;;  %v2920_v42 = vpop.permute.xlu0 %2919 }
0x123e   : > { %v2595_v62 = vpack.c.bf16 %v2593_v59, %v2592_v55 }
0x123f   : > { %v2596_v26 = vpack.c.bf16 %v2594_v3, %v2594_v3 }
0x1240   : > { %11657 = vmatprep.mubr.msk.bf16.mxu1 %vm748_vm4, %v2595_v62  ;;  %v2926_v2 = vpop.permute.xlu1 %2925 }
0x1241   : > { %11658 = vmatmul.mubr.msk.bf16.vlgmr.msra.gmra.mrb[60].mxu1 %vm748_vm4, %v2596_v26  ;;  %v2937_v23 = vsel %vm684_vm2, %v2926_v2, 0 }
0x1242   : > { %11676 = vmatprep.mubr.msk.bf16.mxu1 %vm684_vm2, %v13574_v47 }
0x1243   : > { %11673 = vmatpush3.bf16.xpose.msra.mxu1 %v2766_v0 }
0x1244   : > { %12457 = vmatprep.subr.msk.bf16.mxu1 %vm684_vm2, %v2758_v31  ;;  %v2922_v6 = vpop.permute.xlu1 %2921 }
0x124b   : > { %11675 = vmatpush3.bf16.xpose.msra.mxu1 %v2769_v35 }
0x124c   : > { %12459 = vmatprep.subr.msk.bf16.mxu1 %vm684_vm2, %v2924_v39 }
0x1252   : > { %11677 = vmatmul.mubr.msk.bf16.vlgmr.msra.gmra.mrb[64].mxu1 %vm684_vm2, %v13981_v19 }
0x1253   : > { %11689 = vmatpush3.bf16.xpose.msra.mxu1 %v2934_v57  ;;  %11692 = vmatprep.mubr.msk.bf16.mxu1 %vm684_vm2, %v2920_v42 }
0x1254   : > { %12460 = vmatprep.subr.msk.bf16.mxu1 %vm684_vm2, %v2926_v2 }
0x125b   : > { %11691 = vmatpush3.bf16.xpose.msra.mxu1 %v2937_v23 }
0x125c   : > { %11715 = vmatprep.subr.mxu1 %v13220_v27 }
0x1262   : > { %11693 = vmatmul.mubr.msk.bf16.vlgmr.msra.gmra.mrb[68].mxu1 %vm684_vm2, %v2922_v6 }
0x1263   : > { %11716 = vmatpush3.msra.mxu1 %v14024_v7  ;;  %11717 = vmatprep.mubr.msk.f32.mxu1 %vm13221_vm6, %v13220_v27 }
0x1314   : > { %v11659_v8 = vpop.f32.mrb[60].mxu1 }
0x1315   : > { %v2645_v9 = vpop.f32.mrb[61].mxu1 }
0x1316   : > { %v11660_v12 = vpop.f32.mrb[62].mxu1  ;;  %11664 = vmatmul.mubr.msk.f32.vlgmr.msra.gmra.mrb[58].mxu0 %vm684_vm2, %v2645_v9 }
0x1317   : > { %v2648_v13 = vpop.f32.mrb[63].mxu1  ;;  %11666 = vmatprep.mubr.msk.f32.mxu0 %vm13221_vm6, %v13220_v27 }
0x131a   : > { %11667 = vmatmul.mubr.msk.f32.gmra.mrb[68].mxu0 %vm684_vm2, %v2648_v13 }
0x131b   : > { %11669 = vmatprep.mubr.msk.f32.mxu0 %vm13221_vm6, %v13220_v27 }
0x131e   : > { %11670 = vmatmul.mubr.msk.f32.gmra.mrb[70].mxu0 %vm684_vm2, %v11659_v8 }
0x1325   : > { %v11678_v50 = vpop.f32.mrb[64].mxu1 }
0x1326   : > { %v2805_v22 = vpop.f32.mrb[65].mxu1  ;;  %v2821_v46 = vsel %vm332_vm3, %v11678_v50, -1e+30 }
0x1327   : > { %v2819_v29 = vsel %vm332_vm3, %v2805_v22, -1e+30  ;;  %v11679_v49 = vpop.f32.mrb[66].mxu1  ;;  %v2828_v44 = vsel %vm748_vm4, %v2821_v46, -inf }
0x1328   : > { %v2822_v38 = vsel %vm748_vm4, %v2819_v29, -inf  ;;  %v2808_v51 = vpop.f32.mrb[67].mxu1 }
0x1329   : > { %v2820_v36 = vsel %vm332_vm3, %v2808_v51, -1e+30  ;;  %2823 = vmax.xlane.f32.xlu0 %v2822_v38 }
0x132a   : > { %v2825_v37 = vsel %vm748_vm4, %v2820_v36, -inf }
0x132b   : > { %2826 = vmax.xlane.f32.xlu1 %v2825_v37 }
0x132d   : > { %2829 = vmax.xlane.f32.xlu0 %v2828_v44 }
0x1335   : > { %v11694_v32 = vpop.f32.mrb[68].mxu1 }
0x1336   : > { %v2989_v40 = vsel %vm332_vm3, %v11694_v32, -1e+30  ;;  %v2973_v52 = vpop.f32.mrb[69].mxu1 }
0x1337   : > { %v2996_v60 = vsel %vm748_vm4, %v2989_v40, -inf  ;;  %v2987_v41 = vsel %vm332_vm3, %v2973_v52, -1e+30  ;;  %v11695_v18 = vpop.f32.mrb[70].mxu1 }
0x1338   : > { %v2990_v24 = vsel %vm748_vm4, %v2987_v41, -inf  ;;  %2997 = vmax.xlane.f32.xlu1 %v2996_v60  ;;  %v2976_v53 = vpop.f32.mrb[71].mxu1 }
0x1339   : > { %v2988_v58 = vsel %vm332_vm3, %v2976_v53, -1e+30  ;;  %2991 = vmax.xlane.f32.xlu0 %v2990_v24 }
0x133a   : > { %v2993_v20 = vsel %vm748_vm4, %v2988_v58, -inf }
0x133d   : > { %2994 = vmax.xlane.f32.xlu0 %v2993_v20 }
0x13b6   : > { %v2824_v55 = vpop.xlane.xlu0 %2823 }
0x13b7   : > { %v2831_v3 = vsub.f32 %v2819_v29, %v2824_v55 }
0x13b8   : > { %v2827_v59 = vpop.xlane.xlu1 %2826 }
0x13b9   : > { %v2832_v62 = vsub.f32 %v2820_v36, %v2827_v59  ;;  %v2834_v35 = vmul.f32 1.442695, %v2831_v3 }
0x13ba   : > { %v2830_v26 = vpop.xlane.xlu0 %2829 }
0x13bb   : > { %v2836_v0 = vmul.f32 1.442695, %v2832_v62  ;;  %v2833_v31 = vsub.f32 %v2821_v46, %v2830_v26 }
0x13bd   : > { %12729 = vpow2.f32 %v2836_v0  ;;  %v2838_v39 = vmul.f32 1.442695, %v2833_v31 }
0x13bf   : > { %12731 = vpow2.f32 %v2838_v39 }
0x13c0   : > { %12733 = vpow2.f32 %v2834_v35 }
0x13c5   : > { %v2998_v42 = vpop.xlane.xlu1 %2997 }
0x13c6   : > { %v3001_v57 = vsub.f32 %v2989_v40, %v2998_v42  ;;  %v2992_v2 = vpop.xlane.xlu0 %2991 }
0x13c7   : > { %v12730_v23 = vpop.eup %12729  ;;  %v2999_v6 = vsub.f32 %v2987_v41, %v2992_v2 }
0x13c8   : > { %v3006_v8 = vmul.f32 1.442695, %v3001_v57  ;;  %v2843_v9 = vsel %vm748_vm4, %v12730_v23, 0.0 }
0x13c9   : > { %v14055_v12 = vpop.eup %12731  ;;  %v3002_v13 = vmul.f32 1.442695, %v2999_v6  ;;  %2844 = vadd.xlane.f32.xlu1 %v2843_v9 }
0x13ca   : > { %12735 = vpow2.f32 %v3006_v8  ;;  %v2995_v50 = vpop.xlane.xlu0 %2994  ;;  %v2846_v22 = vsel %vm748_vm4, %v14055_v12, 0.0  ;;  %v12734_v29 = vpop.eup %12733 }
0x13cb   : > { %v3000_v49 = vsub.f32 %v2988_v58, %v2995_v50  ;;  %2847 = vadd.xlane.f32.xlu0 %v2846_v22  ;;  %12737 = vpow2.f32 %v3002_v13  ;;  %v2840_v51 = vsel %vm748_vm4, %v12734_v29, 0.0 }
0x13cd   : > { %v3004_v38 = vmul.f32 1.442695, %v3000_v49 }
0x13cf   : > { %12739 = vpow2.f32 %v3004_v38  ;;  %2841 = vadd.xlane.f32.xlu0 %v2840_v51 }
0x13d4   : > { %v14060_v46 = vpop.eup %12735 }
0x13d5   : > { %v3014_v36 = vsel %vm748_vm4, %v14060_v46, 0.0  ;;  %v12738_v37 = vpop.eup %12737 }
0x13d6   : > { %3015 = vadd.xlane.f32.xlu1 %v3014_v36  ;;  %v3008_v32 = vsel %vm748_vm4, %v12738_v37, 0.0 }
0x13d9   : > { %v12740_v44 = vpop.eup %12739 }
0x13da   : > { %3009 = vadd.xlane.f32.xlu1 %v3008_v32  ;;  %v3011_v40 = vsel %vm748_vm4, %v12740_v44, 0.0 }
0x13db   : > { %3012 = vadd.xlane.f32.xlu0 %v3011_v40 }
0x13e9   : > { %v2734_v52 = vpop.f32.mrb[58].mxu0 }
0x13ea   : > { %v14067_v60 = vadd.f32 %v2734_v52, %v13992_v48  ;;  %v11665_v41 = vpop.f32.mrb[59].mxu0 }
0x13eb   : > { %2859 = vrot.lane.b32.xlu1 %v13981_v19, %s13216_s9 }
0x13ed   : > { %v2739_v18 = vpop.f32.mrb[68].mxu0 }
0x13ee   : > { %v14072_v24 = vadd.f32 %v2739_v18, %v13997_v34  ;;  %v11668_v53 = vpop.f32.mrb[69].mxu0 }
0x13ef   : > { %3025 = vrot.lane.b32.xlu1 %v13574_v47, %s13217_s10 }
0x13f1   : > { %v2744_v58 = vpop.f32.mrb[70].mxu0  ;;  %2857 = vrot.lane.b32.xlu0 %v13574_v47, %s13216_s9 }
0x13f2   : > { %v14079_v20 = vadd.f32 %v2744_v58, %v14000_v15  ;;  %v11671_v48 = vpop.f32.mrb[71].mxu0 }
0x13f3   : > { %3027 = vrot.lane.b32.xlu1 %v13981_v19, %s13217_s10 }
0x13f5   : > { %3269 = vrot.lane.b32.xlu0 %v13574_v47, %s13218_s11 }
0x13f7   : > { %3271 = vrot.lane.b32.xlu1 %v13981_v19, %s13218_s11 }
0x13f9   : > { %3265 = vrot.lane.b32.xlu0 %v13574_v47, %s13219_s17 }
0x13fb   : > { %3267 = vrot.lane.b32.xlu1 %v13981_v19, %s13219_s17 }
0x1456   : > { %v2845_v34 = vpop.xlane.xlu1 %2844 }
0x1457   : > { %12741 = vrcp.f32 %v2845_v34 }
0x1458   : > { %v2848_v55 = vpop.xlane.xlu0 %2847 }
0x145c   : > { %v2842_v15 = vpop.xlane.xlu0 %2841 }
0x145d   : > { %12743 = vrcp.f32 %v2842_v15 }
0x145e   : > { %12745 = vrcp.f32 %v2848_v55 }
0x1461   : > { %v12742_v3 = vpop.eup %12741 }
0x1462   : > { %v2853_v35 = vmul.f32 %v12742_v3, %v12730_v23 }
0x1463   : > { %v3016_v59 = vpop.xlane.xlu1 %3015 }
0x1467   : > { %v12744_v62 = vpop.eup %12743  ;;  %v3010_v26 = vpop.xlane.xlu1 %3009 }
0x1468   : > { %12747 = vrcp.f32 %v3010_v26  ;;  %v3013_v0 = vpop.xlane.xlu0 %3012  ;;  %v2852_v31 = vmul.f32 %v12744_v62, %v12734_v29  ;;  %v12746_v57 = vpop.eup %12745  ;;  %v14134_v62 = vld [vmem:[%s16283_s2 + $0x28] sm:$0xff] }
0x1469   : > { %12749 = vrcp.f32 %v3013_v0  ;;  %v2854_v6 = vmul.f32 %v12746_v57, %v14055_v12 }
0x146a   : > { %12751 = vrcp.f32 %v3016_v59  ;;  %v2855_v39 = vpack.c.bf16 %v2853_v35, %v2852_v31 }
0x146b   : > { %v2860_v42 = vpop.permute.xlu1 %2859  ;;  %v2856_v50 = vpack.c.bf16 %v2854_v6, %v2854_v6 }
0x146c   : > { %v2858_v2 = vpop.permute.xlu0 %2857  ;;  %11684 = vmatprep.mubr.msk.bf16.mxu0 %vm748_vm4, %v2855_v39  ;;  %v2869_v9 = vsel %vm795_vm5, %v2860_v42, 0 }
0x146d   : > { %11680 = vmatprep.subr.bf16.mxu0 %v2858_v2 }
0x146e   : > { %11681 = vmatpush3.bf16.msra.mxu0 %v2858_v2 }
0x146f   : > { %12458 = vmatprep.subr.msk.bf16.mxu0 %vm795_vm5, %v2860_v42  ;;  %v3026_v8 = vpop.permute.xlu1 %3025 }
0x1472   : > { %v12748_v13 = vpop.eup %12747  ;;  %11683 = vmatpush3.bf16.msra.mxu0 %v2869_v9 }
0x1473   : > { %v12750_v23 = vpop.eup %12749  ;;  %11696 = vmatprep.subr.bf16.mxu0 %v3026_v8  ;;  %v3020_v22 = vmul.f32 %v12748_v13, %v12738_v37  ;;  %v3028_v38 = vpop.permute.xlu1 %3027 }
0x1474   : > { %v12752_v29 = vpop.eup %12751  ;;  %v3021_v49 = vmul.f32 %v12750_v23, %v12740_v44  ;;  %v3037_v36 = vsel %vm795_vm5, %v3028_v38, 0  ;;  %v3270_v37 = vpop.permute.xlu0 %3269  ;;  %v14105_v44 = vld [vmem:[%s16283_s2 + $0x20] sm:$0xff] }
0x1475   : > { %11685 = vmatmul.mubr.msk.bf16.vlgmr.msra.gmra.mrb[72].mxu0 %vm748_vm4, %v2856_v50  ;;  %v3022_v12 = vmul.f32 %v12752_v29, %v14060_v46  ;;  %v3280_v48 = vsel %vm684_vm2, %v3270_v37, 0 }
0x1476   : > { %11697 = vmatpush3.bf16.msra.mxu0 %v3026_v8  ;;  %v3023_v51 = vpack.c.bf16 %v3021_v49, %v3020_v22 }
0x1477   : > { %12461 = vmatprep.subr.msk.bf16.mxu0 %vm795_vm5, %v3028_v38  ;;  %v3024_v32 = vpack.c.bf16 %v3022_v12, %v3022_v12  ;;  %v3272_v34 = vpop.permute.xlu1 %3271 }
0x1478   : > { %11700 = vmatprep.mubr.msk.bf16.mxu0 %vm748_vm4, %v3023_v51  ;;  %v3266_v15 = vpop.permute.xlu0 %3265  ;;  %v3283_v59 = vsel %vm684_vm2, %v3272_v34, 0 }
0x147a   : > { %11699 = vmatpush3.bf16.msra.mxu0 %v3037_v36 }
0x147b   : > { %11704 = vmatprep.subr.mxu0 %v13220_v27  ;;  %v3268_v3 = vpop.permute.xlu1 %3267 }
0x147d   : > { %11701 = vmatmul.mubr.msk.bf16.vlgmr.msra.gmra.mrb[76].mxu0 %vm748_vm4, %v3024_v32 }
0x147e   : > { %11705 = vmatpush3.msra.mxu0 %v14105_v44  ;;  %11706 = vmatprep.mubr.msk.f32.mxu0 %vm13221_vm6, %v13220_v27 }
0x147f   : > { %12462 = vmatprep.subr.msk.bf16.mxu0 %vm684_vm2, %v3270_v37 }
0x1548   : > { %v11686_v46 = vpop.f32.mrb[72].mxu0 }
0x1549   : > { %v2905_v40 = vpop.f32.mrb[73].mxu0 }
0x154a   : > { %v11687_v52 = vpop.f32.mrb[74].mxu0  ;;  %11718 = vmatmul.mubr.msk.f32.vlgmr.msra.gmra.mrb[72].mxu1 %vm684_vm2, %v2905_v40 }
0x154b   : > { %v2908_v41 = vpop.f32.mrb[75].mxu0  ;;  %11720 = vmatprep.mubr.msk.f32.mxu1 %vm13221_vm6, %v13220_v27 }
0x154e   : > { %11721 = vmatmul.mubr.msk.f32.gmra.mrb[74].mxu1 %vm684_vm2, %v2908_v41 }
0x154f   : > { %11723 = vmatprep.mubr.msk.f32.mxu1 %vm13221_vm6, %v13220_v27 }
0x1550   : > { %v11702_v18 = vpop.f32.mrb[76].mxu0 }
0x1551   : > { %v3073_v53 = vpop.f32.mrb[77].mxu0 }
0x1552   : > { %v11703_v58 = vpop.f32.mrb[78].mxu0  ;;  %11707 = vmatmul.mubr.msk.f32.vlgmr.msra.gmra.mrb[80].mxu0 %vm684_vm2, %v3073_v53  ;;  %11724 = vmatmul.mubr.msk.f32.gmra.mrb[76].mxu1 %vm684_vm2, %v11686_v46 }
0x1553   : > { %11727 = vmatpush3.bf16.xpose.msra.mxu0 %v3280_v48  ;;  %v3076_v55 = vpop.f32.mrb[79].mxu0  ;;  %11709 = vmatprep.mubr.msk.f32.mxu0 %vm13221_vm6, %v13220_v27 }
0x1554   : > { %12463 = vmatprep.subr.msk.bf16.mxu0 %vm684_vm2, %v3272_v34 }
0x1556   : > { %11710 = vmatmul.mubr.msk.f32.gmra.mrb[82].mxu0 %vm684_vm2, %v3076_v55 }
0x1557   : > { %11712 = vmatprep.mubr.msk.f32.mxu0 %vm13221_vm6, %v13220_v27 }
0x155a   : > { %11713 = vmatmul.mubr.msk.f32.gmra.mrb[84].mxu0 %vm684_vm2, %v11702_v18 }
0x155b   : > { %11729 = vmatpush3.bf16.xpose.msra.mxu0 %v3283_v59  ;;  %11730 = vmatprep.mubr.msk.bf16.mxu0 %vm684_vm2, %v3266_v15 }
0x155c   : > { %11742 = vmatprep.subr.mxu0 %v13220_v27 }
0x1562   : > { %11731 = vmatmul.mubr.msk.bf16.vlgmr.msra.gmra.mrb[88].mxu0 %vm684_vm2, %v3268_v3 }
0x1563   : > { %11743 = vmatpush3.msra.mxu0 %v14134_v62  ;;  %11744 = vmatprep.mubr.msk.f32.mxu0 %vm13221_vm6, %v13220_v27 }
0x161d   : > { %v3251_v26 = vpop.f32.mrb[72].mxu1 }
0x161e   : > { %v11719_v0 = vpop.f32.mrb[73].mxu1 }
0x1621   : > { %v3256_v31 = vpop.f32.mrb[74].mxu1 }
0x1622   : > { %v11722_v35 = vpop.f32.mrb[75].mxu1 }
0x1625   : > { %v3162_v39 = vpop.f32.mrb[80].mxu0  ;;  %v3261_v42 = vpop.f32.mrb[76].mxu1 }
0x1626   : > { %v14139_v57 = vadd.f32 %v3251_v26, %v3162_v39  ;;  %v11708_v2 = vpop.f32.mrb[81].mxu0  ;;  %v11725_v6 = vpop.f32.mrb[77].mxu1 }
0x1629   : > { %v3167_v8 = vpop.f32.mrb[82].mxu0 }
0x162a   : > { %v14141_v9 = vadd.f32 %v3256_v31, %v3167_v8  ;;  %v11711_v13 = vpop.f32.mrb[83].mxu0 }
0x162d   : > { %v3172_v23 = vpop.f32.mrb[84].mxu0 }
0x162e   : > { %v14143_v50 = vadd.f32 %v3261_v42, %v3172_v23  ;;  %v11714_v22 = vpop.f32.mrb[85].mxu0 }
0x1635   : > { %v11732_v29 = vpop.f32.mrb[88].mxu0 }
0x1636   : > { %v3319_v49 = vpop.f32.mrb[89].mxu0  ;;  %v3335_v32 = vsel %vm332_vm3, %v11732_v29, -1e+30 }
0x1637   : > { %v3333_v38 = vsel %vm332_vm3, %v3319_v49, -1e+30  ;;  %v11733_v51 = vpop.f32.mrb[90].mxu0  ;;  %v3342_v40 = vsel %vm748_vm4, %v3335_v32, -inf }
0x1638   : > { %v3336_v12 = vsel %vm748_vm4, %v3333_v38, -inf  ;;  %v3322_v36 = vpop.f32.mrb[91].mxu0 }
0x1639   : > { %v3334_v37 = vsel %vm332_vm3, %v3322_v36, -1e+30  ;;  %3337 = vmax.xlane.f32.xlu0 %v3336_v12 }
0x163a   : > { %v3339_v46 = vsel %vm748_vm4, %v3334_v37, -inf }
0x163b   : > { %3340 = vmax.xlane.f32.xlu1 %v3339_v46 }
0x163d   : > { %3343 = vmax.xlane.f32.xlu0 %v3342_v40 }
0x16c6   : > { %v3338_v52 = vpop.xlane.xlu0 %3337 }
0x16c7   : > { %v3345_v41 = vsub.f32 %v3333_v38, %v3338_v52 }
0x16c8   : > { %v3341_v18 = vpop.xlane.xlu1 %3340 }
0x16c9   : > { %v3348_v53 = vmul.f32 1.442695, %v3345_v41  ;;  %v3346_v58 = vsub.f32 %v3334_v37, %v3341_v18  ;;  %v14183_v18 = vld [vmem:[%s16283_s2 + $0x30] sm:$0xff] }
0x16ca   : > { %v3344_v48 = vpop.xlane.xlu0 %3343 }
0x16cb   : > { %12753 = vpow2.f32 %v3348_v53  ;;  %v3350_v34 = vmul.f32 1.442695, %v3346_v58  ;;  %v3347_v55 = vsub.f32 %v3335_v32, %v3344_v48 }
0x16cd   : > { %12755 = vpow2.f32 %v3350_v34  ;;  %v3352_v15 = vmul.f32 1.442695, %v3347_v55 }
0x16cf   : > { %12757 = vpow2.f32 %v3352_v15 }
0x16d5   : > { %v12754_v59 = vpop.eup %12753 }
0x16d6   : > { %v3354_v3 = vsel %vm748_vm4, %v12754_v59, 0.0 }
0x16d7   : > { %v12756_v26 = vpop.eup %12755  ;;  %3355 = vadd.xlane.f32.xlu0 %v3354_v3 }
0x16d8   : > { %v3357_v35 = vsel %vm748_vm4, %v12756_v26, 0.0 }
0x16d9   : > { %v12758_v0 = vpop.eup %12757 }
0x16da   : > { %v3360_v31 = vsel %vm748_vm4, %v12758_v0, 0.0 }
0x16db   : > { %3361 = vadd.xlane.f32.xlu1 %v3360_v31  ;;  %3358 = vadd.xlane.f32.xlu0 %v3357_v35 }
0x16ec   : > { %3373 = vrot.lane.b32.xlu1 %v13981_v19, %s13222_s26 }
0x16f0   : > { %3529 = vrot.lane.b32.xlu1 %v13574_v47, %s13223_s27 }
0x16f1   : > { %3371 = vrot.lane.b32.xlu0 %v13574_v47, %s13222_s26 }
0x16f4   : > { %3531 = vrot.lane.b32.xlu1 %v13981_v19, %s13223_s27 }
0x16f5   : > { %3525 = vrot.lane.b32.xlu0 %v13574_v47, %s13224_s28 }
0x16f8   : > { %3527 = vrot.lane.b32.xlu1 %v13981_v19, %s13224_s28 }
0x1764   : > { %v3356_v39 = vpop.xlane.xlu0 %3355 }
0x1765   : > { %12759 = vrcp.f32 %v3356_v39 }
0x1768   : > { %v3359_v42 = vpop.xlane.xlu0 %3358  ;;  %v3362_v2 = vpop.xlane.xlu1 %3361 }
0x1769   : > { %12761 = vrcp.f32 %v3359_v42 }
0x176a   : > { %12763 = vrcp.f32 %v3362_v2 }
0x176c   : > { %v3372_v6 = vpop.permute.xlu0 %3371  ;;  %v3374_v8 = vpop.permute.xlu1 %3373 }
0x176d   : > { %11734 = vmatprep.subr.bf16.mxu1 %v3372_v6  ;;  %v3383_v23 = vsel %vm795_vm5, %v3374_v8, 0 }
0x176e   : > { %11735 = vmatpush3.bf16.msra.mxu1 %v3372_v6 }
0x176f   : > { %12464 = vmatprep.subr.msk.bf16.mxu1 %vm795_vm5, %v3374_v8  ;;  %v12760_v13 = vpop.eup %12759 }
0x1770   : > { %v3530_v22 = vpop.permute.xlu1 %3529  ;;  %v3366_v38 = vmul.f32 %v12760_v13, %v12754_v59  ;;  %v3526_v37 = vpop.permute.xlu0 %3525 }
0x1771   : > { %v3540_v46 = vsel %vm684_vm2, %v3530_v22, 0 }
0x1772   : > { %11737 = vmatpush3.bf16.msra.mxu1 %v3383_v23 }
0x1773   : > { %v12762_v29 = vpop.eup %12761  ;;  %12465 = vmatprep.subr.msk.bf16.mxu1 %vm684_vm2, %v3530_v22 }
0x1774   : > { %v12764_v49 = vpop.eup %12763  ;;  %v3367_v51 = vmul.f32 %v12762_v29, %v12756_v26  ;;  %v3532_v40 = vpop.permute.xlu1 %3531 }
0x1775   : > { %v3368_v12 = vmul.f32 %v12764_v49, %v12758_v0  ;;  %v3543_v52 = vsel %vm684_vm2, %v3532_v40, 0 }
0x1776   : > { %v3369_v36 = vpack.c.bf16 %v3367_v51, %v3366_v38 }
0x1777   : > { %v3370_v32 = vpack.c.bf16 %v3368_v12, %v3368_v12 }
0x1778   : > { %11738 = vmatprep.mubr.msk.bf16.mxu1 %vm748_vm4, %v3369_v36  ;;  %v3528_v41 = vpop.permute.xlu1 %3527 }
0x1779   : > { %11739 = vmatmul.mubr.msk.bf16.vlgmr.msra.gmra.mrb[80].mxu1 %vm748_vm4, %v3370_v32 }
0x177a   : > { %11757 = vmatprep.mubr.msk.bf16.mxu1 %vm684_vm2, %v3526_v37 }
0x177b   : > { %11754 = vmatpush3.bf16.xpose.msra.mxu1 %v3540_v46 }
0x177c   : > { %12466 = vmatprep.subr.msk.bf16.mxu1 %vm684_vm2, %v3532_v40  ;;  %v673_v40 = vadd.f32 %v13973_v43, %v13578_v45 }
0x1783   : > { %11756 = vmatpush3.bf16.xpose.msra.mxu1 %v3543_v52  ;;  %v14215_v52 = vpack.c.bf16 %v673_v40, %v673_v40 }
0x1784   : > { %11769 = vmatprep.subr.mxu1 %v13220_v27 }
0x178a   : > { %11758 = vmatmul.mubr.msk.bf16.vlgmr.msra.gmra.mrb[84].mxu1 %vm684_vm2, %v3528_v41 }
0x178b   : > { %11770 = vmatpush3.msra.mxu1 %v14183_v18  ;;  %11771 = vmatprep.mubr.msk.f32.mxu1 %vm13221_vm6, %v13220_v27 }
0x184c   : > { %v11740_v53 = vpop.f32.mrb[80].mxu1 }
0x184d   : > { %v3419_v58 = vpop.f32.mrb[81].mxu1 }
0x184e   : > { %v11741_v48 = vpop.f32.mrb[82].mxu1  ;;  %11745 = vmatmul.mubr.msk.f32.vlgmr.msra.gmra.mrb[86].mxu0 %vm684_vm2, %v3419_v58 }
0x184f   : > { %v3422_v34 = vpop.f32.mrb[83].mxu1  ;;  %11747 = vmatprep.mubr.msk.f32.mxu0 %vm13221_vm6, %v13220_v27 }
0x1852   : > { %11748 = vmatmul.mubr.msk.f32.gmra.mrb[92].mxu0 %vm684_vm2, %v3422_v34 }
0x1853   : > { %11750 = vmatprep.mubr.msk.f32.mxu0 %vm13221_vm6, %v13220_v27 }
0x1856   : > { %11751 = vmatmul.mubr.msk.f32.gmra.mrb[94].mxu0 %vm684_vm2, %v11740_v53 }
0x185d   : > { %v11759_v55 = vpop.f32.mrb[84].mxu1 }
0x185e   : > { %v3579_v15 = vpop.f32.mrb[85].mxu1  ;;  %v3595_v31 = vsel %vm332_vm3, %v11759_v55, -1e+30 }
0x185f   : > { %v3593_v59 = vsel %vm332_vm3, %v3579_v15, -1e+30  ;;  %v11760_v3 = vpop.f32.mrb[86].mxu1  ;;  %v3602_v42 = vsel %vm748_vm4, %v3595_v31, -inf }
0x1860   : > { %v3596_v26 = vsel %vm748_vm4, %v3593_v59, -inf  ;;  %v3582_v0 = vpop.f32.mrb[87].mxu1 }
0x1861   : > { %v3594_v35 = vsel %vm332_vm3, %v3582_v0, -1e+30  ;;  %3597 = vmax.xlane.f32.xlu0 %v3596_v26 }
0x1862   : > { %v3599_v39 = vsel %vm748_vm4, %v3594_v35, -inf }
0x1863   : > { %3600 = vmax.xlane.f32.xlu1 %v3599_v39 }
0x1865   : > { %3603 = vmax.xlane.f32.xlu0 %v3602_v42 }
0x18ee   : > { %v3598_v2 = vpop.xlane.xlu0 %3597 }
0x18ef   : > { %v3605_v6 = vsub.f32 %v3593_v59, %v3598_v2 }
0x18f0   : > { %v3601_v8 = vpop.xlane.xlu1 %3600 }
0x18f1   : > { %v3608_v13 = vmul.f32 1.442695, %v3605_v6  ;;  %v3606_v23 = vsub.f32 %v3594_v35, %v3601_v8 }
0x18f2   : > { %v3604_v22 = vpop.xlane.xlu0 %3603 }
0x18f3   : > { %12765 = vpow2.f32 %v3608_v13  ;;  %v3610_v29 = vmul.f32 1.442695, %v3606_v23  ;;  %v3607_v49 = vsub.f32 %v3595_v31, %v3604_v22 }
0x18f5   : > { %12767 = vpow2.f32 %v3610_v29  ;;  %v3612_v38 = vmul.f32 1.442695, %v3607_v49 }
0x18f7   : > { %12769 = vpow2.f32 %v3612_v38 }
0x18fd   : > { %v12766_v51 = vpop.eup %12765 }
0x18fe   : > { %v3614_v12 = vsel %vm748_vm4, %v12766_v51, 0.0 }
0x18ff   : > { %v12768_v36 = vpop.eup %12767  ;;  %3615 = vadd.xlane.f32.xlu0 %v3614_v12 }
0x1900   : > { %v3617_v46 = vsel %vm748_vm4, %v12768_v36, 0.0 }
0x1901   : > { %v12770_v32 = vpop.eup %12769 }
0x1902   : > { %v3620_v37 = vsel %vm748_vm4, %v12770_v32, 0.0 }
0x1903   : > { %3621 = vadd.xlane.f32.xlu1 %v3620_v37  ;;  %3618 = vadd.xlane.f32.xlu0 %v3617_v46 }
0x1914   : > { %3633 = vrot.lane.b32.xlu1 %v13981_v19, %s16285_s4 }
0x1918   : > { %3789 = vrot.lane.b32.xlu1 %v13582_v54, %s13213_s6 }
0x1919   : > { %3631 = vrot.lane.b32.xlu0 %v13574_v47, %s16285_s4 }
0x191c   : > { %3791 = vrot.lane.b32.xlu1 %v14215_v52, %s13213_s6 }
0x191d   : > { %3957 = vrot.lane.b32.xlu0 %v13582_v54, %s13214_s7 }
0x1920   : > { %3959 = vrot.lane.b32.xlu1 %v14215_v52, %s13214_s7 }
0x1921   : > { %v3508_v19 = vpop.f32.mrb[86].mxu0  ;;  %3953 = vrot.lane.b32.xlu0 %v13582_v54, %s13215_s8 }
0x1922   : > { %v14226_v45 = vadd.f32 %v3508_v19, %v14139_v57  ;;  %v11746_v43 = vpop.f32.mrb[87].mxu0 }
0x1924   : > { %3955 = vrot.lane.b32.xlu1 %v14215_v52, %s13215_s8 }
0x1925   : > { %v3513_v47 = vpop.f32.mrb[92].mxu0 }
0x1926   : > { %v14231_v41 = vadd.f32 %v3513_v47, %v14141_v9  ;;  %v11749_v53 = vpop.f32.mrb[93].mxu0 }
0x1929   : > { %v3518_v58 = vpop.f32.mrb[94].mxu0 }
0x192a   : > { %v14234_v48 = vadd.f32 %v3518_v58, %v14143_v50  ;;  %v11752_v34 = vpop.f32.mrb[95].mxu0 }
0x198c   : > { %v3616_v55 = vpop.xlane.xlu0 %3615 }
0x198d   : > { %12771 = vrcp.f32 %v3616_v55 }
0x1990   : > { %v3619_v15 = vpop.xlane.xlu0 %3618  ;;  %v3622_v59 = vpop.xlane.xlu1 %3621 }
0x1991   : > { %12773 = vrcp.f32 %v3619_v15 }
0x1992   : > { %12775 = vrcp.f32 %v3622_v59 }
0x1994   : > { %v3632_v57 = vpop.permute.xlu0 %3631  ;;  %v3634_v3 = vpop.permute.xlu1 %3633 }
0x1995   : > { %11761 = vmatprep.subr.bf16.mxu0 %v3632_v57  ;;  %v3643_v26 = vsel %vm795_vm5, %v3634_v3, 0 }
0x1996   : > { %11762 = vmatpush3.bf16.msra.mxu0 %v3632_v57 }
0x1997   : > { %12467 = vmatprep.subr.msk.bf16.mxu0 %vm795_vm5, %v3634_v3  ;;  %v12772_v9 = vpop.eup %12771 }
0x1998   : > { %v3790_v0 = vpop.permute.xlu1 %3789  ;;  %v3626_v35 = vmul.f32 %v12772_v9, %v12766_v51  ;;  %v3958_v22 = vpop.permute.xlu0 %3957 }
0x1999   : > { %v3800_v8 = vsel %vm684_vm2, %v3790_v0, 0  ;;  %v3968_v49 = vsel %vm684_vm2, %v3958_v22, 0 }
0x199a   : > { %11764 = vmatpush3.bf16.msra.mxu0 %v3643_v26 }
0x199b   : > { %v12774_v50 = vpop.eup %12773  ;;  %12468 = vmatprep.subr.msk.bf16.mxu0 %vm684_vm2, %v3790_v0 }
0x199c   : > { %v12776_v31 = vpop.eup %12775  ;;  %v3627_v39 = vmul.f32 %v12774_v50, %v12768_v36  ;;  %v3792_v13 = vpop.permute.xlu1 %3791 }
0x199d   : > { %v3628_v42 = vmul.f32 %v12776_v31, %v12770_v32  ;;  %v3803_v23 = vsel %vm684_vm2, %v3792_v13, 0  ;;  %v3954_v29 = vpop.permute.xlu0 %3953 }
0x199e   : > { %v3629_v2 = vpack.c.bf16 %v3627_v39, %v3626_v35 }
0x199f   : > { %v3630_v6 = vpack.c.bf16 %v3628_v42, %v3628_v42 }
0x19a0   : > { %11765 = vmatprep.mubr.msk.bf16.mxu0 %vm748_vm4, %v3629_v2  ;;  %v3960_v38 = vpop.permute.xlu1 %3959 }
0x19a1   : > { %11766 = vmatmul.mubr.msk.bf16.vlgmr.msra.gmra.mrb[96].mxu0 %vm748_vm4, %v3630_v6  ;;  %v3971_v51 = vsel %vm684_vm2, %v3960_v38, 0 }
0x19a2   : > { %11784 = vmatprep.mubr.msk.bf16.mxu0 %vm684_vm2, %v13582_v54 }
0x19a3   : > { %11781 = vmatpush3.bf16.xpose.msra.mxu0 %v3800_v8 }
0x19a4   : > { %12469 = vmatprep.subr.msk.bf16.mxu0 %vm684_vm2, %v3792_v13  ;;  %v3956_v12 = vpop.permute.xlu1 %3955 }
0x19ab   : > { %11783 = vmatpush3.bf16.xpose.msra.mxu0 %v3803_v23 }
0x19ac   : > { %12471 = vmatprep.subr.msk.bf16.mxu0 %vm684_vm2, %v3958_v22 }
0x19b2   : > { %11785 = vmatmul.mubr.msk.bf16.vlgmr.msra.gmra.mrb[100].mxu0 %vm684_vm2, %v14215_v52 }
0x19b3   : > { %11797 = vmatpush3.bf16.xpose.msra.mxu0 %v3968_v49  ;;  %11800 = vmatprep.mubr.msk.bf16.mxu0 %vm684_vm2, %v3954_v29 }
0x19b4   : > { %12472 = vmatprep.subr.msk.bf16.mxu0 %vm684_vm2, %v3960_v38 }
0x19bb   : > { %11799 = vmatpush3.bf16.xpose.msra.mxu0 %v3971_v51 }
0x19bc   : > { %11823 = vmatprep.subr.mxu0 %v13220_v27 }
0x19c2   : > { %11801 = vmatmul.mubr.msk.bf16.vlgmr.msra.gmra.mrb[104].mxu0 %vm684_vm2, %v3956_v12 }
0x19c3   : > { %11824 = vmatpush3.msra.mxu0 %v14024_v7  ;;  %11825 = vmatprep.mubr.msk.f32.mxu0 %vm13221_vm6, %v13220_v27 }
0x1a74   : > { %v11767_v36 = vpop.f32.mrb[96].mxu0 }
0x1a75   : > { %v3679_v32 = vpop.f32.mrb[97].mxu0 }
0x1a76   : > { %v11768_v37 = vpop.f32.mrb[98].mxu0  ;;  %11772 = vmatmul.mubr.msk.f32.vlgmr.msra.gmra.mrb[78].mxu1 %vm684_vm2, %v3679_v32 }
0x1a77   : > { %v3682_v46 = vpop.f32.mrb[99].mxu0  ;;  %11774 = vmatprep.mubr.msk.f32.mxu1 %vm13221_vm6, %v13220_v27 }
0x1a7a   : > { %11775 = vmatmul.mubr.msk.f32.gmra.mrb[88].mxu1 %vm684_vm2, %v3682_v46 }
0x1a7b   : > { %11777 = vmatprep.mubr.msk.f32.mxu1 %vm13221_vm6, %v13220_v27 }
0x1a7e   : > { %11778 = vmatmul.mubr.msk.f32.gmra.mrb[90].mxu1 %vm684_vm2, %v11767_v36 }
0x1a85   : > { %v11786_v7 = vpop.f32.mrb[100].mxu0 }
0x1a86   : > { %v3839_v40 = vpop.f32.mrb[101].mxu0  ;;  %v3855_v58 = vsel %vm332_vm3, %v11786_v7, -1e+30 }
0x1a87   : > { %v3853_v19 = vsel %vm332_vm3, %v3839_v40, -1e+30  ;;  %v11787_v43 = vpop.f32.mrb[102].mxu0  ;;  %v3862_v15 = vsel %vm748_vm4, %v3855_v58, -inf }
0x1a88   : > { %v3856_v47 = vsel %vm748_vm4, %v3853_v19, -inf  ;;  %v3842_v53 = vpop.f32.mrb[103].mxu0 }
0x1a89   : > { %v3854_v34 = vsel %vm332_vm3, %v3842_v53, -1e+30  ;;  %3857 = vmax.xlane.f32.xlu0 %v3856_v47 }
0x1a8a   : > { %v3859_v55 = vsel %vm748_vm4, %v3854_v34, -inf }
0x1a8b   : > { %3860 = vmax.xlane.f32.xlu1 %v3859_v55 }
0x1a8d   : > { %3863 = vmax.xlane.f32.xlu0 %v3862_v15 }
0x1a95   : > { %v11802_v59 = vpop.f32.mrb[104].mxu0 }
0x1a96   : > { %v4023_v57 = vsel %vm332_vm3, %v11802_v59, -1e+30  ;;  %v4007_v3 = vpop.f32.mrb[105].mxu0 }
0x1a97   : > { %v4030_v9 = vsel %vm748_vm4, %v4023_v57, -inf  ;;  %v4021_v26 = vsel %vm332_vm3, %v4007_v3, -1e+30  ;;  %v11803_v0 = vpop.f32.mrb[106].mxu0 }
0x1a98   : > { %v4024_v50 = vsel %vm748_vm4, %v4021_v26, -inf  ;;  %4031 = vmax.xlane.f32.xlu1 %v4030_v9  ;;  %v4010_v31 = vpop.f32.mrb[107].mxu0 }
0x1a99   : > { %v4022_v35 = vsel %vm332_vm3, %v4010_v31, -1e+30  ;;  %4025 = vmax.xlane.f32.xlu0 %v4024_v50 }
0x1a9a   : > { %v4027_v39 = vsel %vm748_vm4, %v4022_v35, -inf }
0x1a9d   : > { %4028 = vmax.xlane.f32.xlu0 %v4027_v39 }
0x1b16   : > { %v3858_v42 = vpop.xlane.xlu0 %3857 }
0x1b17   : > { %v3865_v6 = vsub.f32 %v3853_v19, %v3858_v42 }
0x1b18   : > { %v3861_v2 = vpop.xlane.xlu1 %3860 }
0x1b19   : > { %v3866_v8 = vsub.f32 %v3854_v34, %v3861_v2  ;;  %v3868_v29 = vmul.f32 1.442695, %v3865_v6 }
0x1b1a   : > { %v3864_v13 = vpop.xlane.xlu0 %3863 }
0x1b1b   : > { %v3870_v23 = vmul.f32 1.442695, %v3866_v8  ;;  %v3867_v22 = vsub.f32 %v3855_v58, %v3864_v13 }
0x1b1d   : > { %12777 = vpow2.f32 %v3870_v23  ;;  %v3872_v49 = vmul.f32 1.442695, %v3867_v22 }
0x1b1f   : > { %12779 = vpow2.f32 %v3872_v49 }
0x1b20   : > { %12781 = vpow2.f32 %v3868_v29 }
0x1b25   : > { %v4032_v38 = vpop.xlane.xlu1 %4031 }
0x1b26   : > { %v4035_v51 = vsub.f32 %v4023_v57, %v4032_v38  ;;  %v4026_v12 = vpop.xlane.xlu0 %4025 }
0x1b27   : > { %v12778_v36 = vpop.eup %12777  ;;  %v4033_v32 = vsub.f32 %v4021_v26, %v4026_v12 }
0x1b28   : > { %v4040_v37 = vmul.f32 1.442695, %v4035_v51  ;;  %v3877_v46 = vsel %vm748_vm4, %v12778_v36, 0.0 }
0x1b29   : > { %v14284_v7 = vpop.eup %12779  ;;  %v4036_v40 = vmul.f32 1.442695, %v4033_v32  ;;  %3878 = vadd.xlane.f32.xlu1 %v3877_v46 }
0x1b2a   : > { %12783 = vpow2.f32 %v4040_v37  ;;  %v4029_v19 = vpop.xlane.xlu0 %4028  ;;  %v3880_v43 = vsel %vm748_vm4, %v14284_v7, 0.0  ;;  %v12782_v47 = vpop.eup %12781 }
0x1b2b   : > { %v4034_v53 = vsub.f32 %v4022_v35, %v4029_v19  ;;  %3881 = vadd.xlane.f32.xlu0 %v3880_v43  ;;  %12785 = vpow2.f32 %v4036_v40  ;;  %v3874_v34 = vsel %vm748_vm4, %v12782_v47, 0.0 }
0x1b2d   : > { %v4038_v58 = vmul.f32 1.442695, %v4034_v53 }
0x1b2f   : > { %12787 = vpow2.f32 %v4038_v58  ;;  %3875 = vadd.xlane.f32.xlu0 %v3874_v34 }
0x1b34   : > { %v14289_v55 = vpop.eup %12783 }
0x1b35   : > { %v4048_v15 = vsel %vm748_vm4, %v14289_v55, 0.0  ;;  %v12786_v59 = vpop.eup %12785 }
0x1b36   : > { %4049 = vadd.xlane.f32.xlu1 %v4048_v15  ;;  %v4042_v3 = vsel %vm748_vm4, %v12786_v59, 0.0 }
0x1b39   : > { %v12788_v57 = vpop.eup %12787 }
0x1b3a   : > { %4043 = vadd.xlane.f32.xlu1 %v4042_v3  ;;  %v4045_v9 = vsel %vm748_vm4, %v12788_v57, 0.0 }
0x1b3b   : > { %4046 = vadd.xlane.f32.xlu0 %v4045_v9 }
0x1b49   : > { %v3768_v26 = vpop.f32.mrb[78].mxu1 }
0x1b4a   : > { %v14296_v0 = vadd.f32 %v3768_v26, %v14226_v45  ;;  %v11773_v50 = vpop.f32.mrb[79].mxu1 }
0x1b4b   : > { %3893 = vrot.lane.b32.xlu1 %v14215_v52, %s13216_s9 }
0x1b4d   : > { %v3773_v31 = vpop.f32.mrb[88].mxu1 }
0x1b4e   : > { %v14301_v35 = vadd.f32 %v3773_v31, %v14231_v41  ;;  %v11776_v39 = vpop.f32.mrb[89].mxu1 }
0x1b4f   : > { %4059 = vrot.lane.b32.xlu1 %v13582_v54, %s13217_s10 }
0x1b51   : > { %v3778_v42 = vpop.f32.mrb[90].mxu1  ;;  %3891 = vrot.lane.b32.xlu0 %v13582_v54, %s13216_s9 }
0x1b52   : > { %v14308_v2 = vadd.f32 %v3778_v42, %v14234_v48  ;;  %v11779_v45 = vpop.f32.mrb[91].mxu1 }
0x1b53   : > { %4061 = vrot.lane.b32.xlu1 %v14215_v52, %s13217_s10 }
0x1b55   : > { %4303 = vrot.lane.b32.xlu0 %v13582_v54, %s13218_s11 }
0x1b57   : > { %4305 = vrot.lane.b32.xlu1 %v14215_v52, %s13218_s11 }
0x1b59   : > { %4299 = vrot.lane.b32.xlu0 %v13582_v54, %s13219_s17 }
0x1b5b   : > { %4301 = vrot.lane.b32.xlu1 %v14215_v52, %s13219_s17 }
0x1bb6   : > { %v3879_v41 = vpop.xlane.xlu1 %3878 }
0x1bb7   : > { %12789 = vrcp.f32 %v3879_v41 }
0x1bb8   : > { %v3882_v6 = vpop.xlane.xlu0 %3881 }
0x1bbc   : > { %v3876_v48 = vpop.xlane.xlu0 %3875 }
0x1bbd   : > { %12791 = vrcp.f32 %v3876_v48 }
0x1bbe   : > { %12793 = vrcp.f32 %v3882_v6 }
0x1bc1   : > { %v12790_v13 = vpop.eup %12789 }
0x1bc2   : > { %v3887_v38 = vmul.f32 %v12790_v13, %v12778_v36 }
0x1bc3   : > { %v4050_v8 = vpop.xlane.xlu1 %4049 }
0x1bc7   : > { %v12792_v23 = vpop.eup %12791  ;;  %v4044_v22 = vpop.xlane.xlu1 %4043 }
0x1bc8   : > { %12795 = vrcp.f32 %v4044_v22  ;;  %v4047_v29 = vpop.xlane.xlu0 %4046  ;;  %v3886_v49 = vmul.f32 %v12792_v23, %v12782_v47  ;;  %v12794_v32 = vpop.eup %12793 }
0x1bc9   : > { %12797 = vrcp.f32 %v4047_v29  ;;  %v3888_v46 = vmul.f32 %v12794_v32, %v14284_v7 }
0x1bca   : > { %12799 = vrcp.f32 %v4050_v8  ;;  %v3889_v51 = vpack.c.bf16 %v3887_v38, %v3886_v49 }
0x1bcb   : > { %v3894_v12 = vpop.permute.xlu1 %3893  ;;  %v3890_v47 = vpack.c.bf16 %v3888_v46, %v3888_v46 }
0x1bcc   : > { %v3892_v37 = vpop.permute.xlu0 %3891  ;;  %11792 = vmatprep.mubr.msk.bf16.mxu1 %vm748_vm4, %v3889_v51  ;;  %v3903_v19 = vsel %vm795_vm5, %v3894_v12, 0 }
0x1bcd   : > { %11788 = vmatprep.subr.bf16.mxu1 %v3892_v37 }
0x1bce   : > { %11789 = vmatpush3.bf16.msra.mxu1 %v3892_v37 }
0x1bcf   : > { %12470 = vmatprep.subr.msk.bf16.mxu1 %vm795_vm5, %v3894_v12  ;;  %v4060_v40 = vpop.permute.xlu1 %4059 }
0x1bd2   : > { %v12796_v43 = vpop.eup %12795  ;;  %11791 = vmatpush3.bf16.msra.mxu1 %v3903_v19 }
0x1bd3   : > { %v12798_v36 = vpop.eup %12797  ;;  %11804 = vmatprep.subr.bf16.mxu1 %v4060_v40  ;;  %v4054_v53 = vmul.f32 %v12796_v43, %v12786_v59  ;;  %v4062_v15 = vpop.permute.xlu1 %4061 }
0x1bd4   : > { %v12800_v58 = vpop.eup %12799  ;;  %v4055_v34 = vmul.f32 %v12798_v36, %v12788_v57  ;;  %v4071_v9 = vsel %vm795_vm5, %v4062_v15, 0  ;;  %v4304_v59 = vpop.permute.xlu0 %4303 }
0x1bd5   : > { %11793 = vmatmul.mubr.msk.bf16.vlgmr.msra.gmra.mrb[92].mxu1 %vm748_vm4, %v3890_v47  ;;  %v4056_v7 = vmul.f32 %v12800_v58, %v14289_v55  ;;  %v4314_v45 = vsel %vm684_vm2, %v4304_v59, 0 }
0x1bd6   : > { %11805 = vmatpush3.bf16.msra.mxu1 %v4060_v40  ;;  %v4057_v3 = vpack.c.bf16 %v4055_v34, %v4054_v53 }
0x1bd7   : > { %12473 = vmatprep.subr.msk.bf16.mxu1 %vm795_vm5, %v4062_v15  ;;  %v4058_v26 = vpack.c.bf16 %v4056_v7, %v4056_v7  ;;  %v4306_v41 = vpop.permute.xlu1 %4305 }
0x1bd8   : > { %11808 = vmatprep.mubr.msk.bf16.mxu1 %vm748_vm4, %v4057_v3  ;;  %v4300_v48 = vpop.permute.xlu0 %4299  ;;  %v4317_v8 = vsel %vm684_vm2, %v4306_v41, 0 }
0x1bda   : > { %11807 = vmatpush3.bf16.msra.mxu1 %v4071_v9 }
0x1bdb   : > { %11812 = vmatprep.subr.mxu1 %v13220_v27  ;;  %v4302_v13 = vpop.permute.xlu1 %4301 }
0x1bdd   : > { %11809 = vmatmul.mubr.msk.bf16.vlgmr.msra.gmra.mrb[96].mxu1 %vm748_vm4, %v4058_v26 }
0x1bde   : > { %11813 = vmatpush3.msra.mxu1 %v14105_v44  ;;  %11814 = vmatprep.mubr.msk.f32.mxu1 %vm13221_vm6, %v13220_v27 }
0x1bdf   : > { %12474 = vmatprep.subr.msk.bf16.mxu1 %vm684_vm2, %v4304_v59 }
0x1ca8   : > { %v11794_v57 = vpop.f32.mrb[92].mxu1 }
0x1ca9   : > { %v3939_v55 = vpop.f32.mrb[93].mxu1 }
0x1caa   : > { %v11795_v50 = vpop.f32.mrb[94].mxu1  ;;  %11826 = vmatmul.mubr.msk.f32.vlgmr.msra.gmra.mrb[108].mxu0 %vm684_vm2, %v3939_v55 }
0x1cab   : > { %v3942_v31 = vpop.f32.mrb[95].mxu1  ;;  %11828 = vmatprep.mubr.msk.f32.mxu0 %vm13221_vm6, %v13220_v27 }
0x1cae   : > { %11829 = vmatmul.mubr.msk.f32.gmra.mrb[110].mxu0 %vm684_vm2, %v3942_v31 }
0x1caf   : > { %11831 = vmatprep.mubr.msk.f32.mxu0 %vm13221_vm6, %v13220_v27 }
0x1cb0   : > { %v11810_v44 = vpop.f32.mrb[96].mxu1 }
0x1cb1   : > { %v4107_v39 = vpop.f32.mrb[97].mxu1 }
0x1cb2   : > { %v11811_v42 = vpop.f32.mrb[98].mxu1  ;;  %11815 = vmatmul.mubr.msk.f32.vlgmr.msra.gmra.mrb[100].mxu1 %vm684_vm2, %v4107_v39  ;;  %11832 = vmatmul.mubr.msk.f32.gmra.mrb[112].mxu0 %vm684_vm2, %v11794_v57 }
0x1cb3   : > { %11835 = vmatpush3.bf16.xpose.msra.mxu1 %v4314_v45  ;;  %v4110_v6 = vpop.f32.mrb[99].mxu1  ;;  %11817 = vmatprep.mubr.msk.f32.mxu1 %vm13221_vm6, %v13220_v27 }
0x1cb4   : > { %12475 = vmatprep.subr.msk.bf16.mxu1 %vm684_vm2, %v4306_v41 }
0x1cb6   : > { %11818 = vmatmul.mubr.msk.f32.gmra.mrb[102].mxu1 %vm684_vm2, %v4110_v6 }
0x1cb7   : > { %11820 = vmatprep.mubr.msk.f32.mxu1 %vm13221_vm6, %v13220_v27 }
0x1cba   : > { %11821 = vmatmul.mubr.msk.f32.gmra.mrb[104].mxu1 %vm684_vm2, %v11810_v44 }
0x1cbb   : > { %11837 = vmatpush3.bf16.xpose.msra.mxu1 %v4317_v8  ;;  %11838 = vmatprep.mubr.msk.bf16.mxu1 %vm684_vm2, %v4300_v48 }
0x1cbc   : > { %11850 = vmatprep.subr.mxu1 %v13220_v27 }
0x1cc2   : > { %11839 = vmatmul.mubr.msk.bf16.vlgmr.msra.gmra.mrb[108].mxu1 %vm684_vm2, %v4302_v13 }
0x1cc3   : > { %11851 = vmatpush3.msra.mxu1 %v14134_v62  ;;  %11852 = vmatprep.mubr.msk.f32.mxu1 %vm13221_vm6, %v13220_v27 }
0x1d7d   : > { %v4285_v23 = vpop.f32.mrb[108].mxu0 }
0x1d7e   : > { %v11827_v22 = vpop.f32.mrb[109].mxu0 }
0x1d81   : > { %v4290_v29 = vpop.f32.mrb[110].mxu0 }
0x1d82   : > { %v11830_v49 = vpop.f32.mrb[111].mxu0 }
0x1d85   : > { %v4196_v38 = vpop.f32.mrb[100].mxu1  ;;  %v4295_v51 = vpop.f32.mrb[112].mxu0 }
0x1d86   : > { %v14358_v12 = vadd.f32 %v4285_v23, %v4196_v38  ;;  %v11816_v32 = vpop.f32.mrb[101].mxu1  ;;  %v11833_v37 = vpop.f32.mrb[113].mxu0 }
0x1d89   : > { %v4201_v46 = vpop.f32.mrb[102].mxu1 }
0x1d8a   : > { %v14360_v40 = vadd.f32 %v4290_v29, %v4201_v46  ;;  %v11819_v19 = vpop.f32.mrb[103].mxu1 }
0x1d8d   : > { %v4206_v43 = vpop.f32.mrb[104].mxu1 }
0x1d8e   : > { %v14362_v36 = vadd.f32 %v4295_v51, %v4206_v43  ;;  %v11822_v62 = vpop.f32.mrb[105].mxu1 }
0x1d95   : > { %v11840_v47 = vpop.f32.mrb[108].mxu1 }
0x1d96   : > { %v4353_v53 = vpop.f32.mrb[109].mxu1  ;;  %v4369_v7 = vsel %vm332_vm3, %v11840_v47, -1e+30 }
0x1d97   : > { %v4367_v58 = vsel %vm332_vm3, %v4353_v53, -1e+30  ;;  %v11841_v34 = vpop.f32.mrb[110].mxu1  ;;  %v4376_v59 = vsel %vm748_vm4, %v4369_v7, -inf }
0x1d98   : > { %v4370_v15 = vsel %vm748_vm4, %v4367_v58, -inf  ;;  %v4356_v3 = vpop.f32.mrb[111].mxu1 }
0x1d99   : > { %v4368_v9 = vsel %vm332_vm3, %v4356_v3, -1e+30  ;;  %4371 = vmax.xlane.f32.xlu0 %v4370_v15 }
0x1d9a   : > { %v4373_v26 = vsel %vm748_vm4, %v4368_v9, -inf }
0x1d9b   : > { %4374 = vmax.xlane.f32.xlu1 %v4373_v26 }
0x1d9d   : > { %4377 = vmax.xlane.f32.xlu0 %v4376_v59 }
0x1e26   : > { %v4372_v57 = vpop.xlane.xlu0 %4371 }
0x1e27   : > { %v4379_v55 = vsub.f32 %v4367_v58, %v4372_v57 }
0x1e28   : > { %v4375_v50 = vpop.xlane.xlu1 %4374 }
0x1e29   : > { %v4382_v31 = vmul.f32 1.442695, %v4379_v55  ;;  %v4380_v44 = vsub.f32 %v4368_v9, %v4375_v50 }
0x1e2a   : > { %v4378_v39 = vpop.xlane.xlu0 %4377 }
0x1e2b   : > { %12801 = vpow2.f32 %v4382_v31  ;;  %v4384_v42 = vmul.f32 1.442695, %v4380_v44  ;;  %v4381_v45 = vsub.f32 %v4369_v7, %v4378_v39 }
0x1e2d   : > { %12803 = vpow2.f32 %v4384_v42  ;;  %v4386_v41 = vmul.f32 1.442695, %v4381_v45 }
0x1e2f   : > { %12805 = vpow2.f32 %v4386_v41 }
0x1e35   : > { %v12802_v6 = vpop.eup %12801 }
0x1e36   : > { %v4388_v48 = vsel %vm748_vm4, %v12802_v6, 0.0 }
0x1e37   : > { %v12804_v8 = vpop.eup %12803  ;;  %4389 = vadd.xlane.f32.xlu0 %v4388_v48 }
0x1e38   : > { %v4391_v22 = vsel %vm748_vm4, %v12804_v8, 0.0 }
0x1e39   : > { %v12806_v13 = vpop.eup %12805 }
0x1e3a   : > { %v4394_v23 = vsel %vm748_vm4, %v12806_v13, 0.0 }
0x1e3b   : > { %4395 = vadd.xlane.f32.xlu1 %v4394_v23  ;;  %4392 = vadd.xlane.f32.xlu0 %v4391_v22 }
0x1e4c   : > { %4407 = vrot.lane.b32.xlu1 %v14215_v52, %s13222_s26 }
0x1e50   : > { %4563 = vrot.lane.b32.xlu1 %v13582_v54, %s13223_s27 }
0x1e51   : > { %4405 = vrot.lane.b32.xlu0 %v13582_v54, %s13222_s26 }
0x1e54   : > { %4565 = vrot.lane.b32.xlu1 %v14215_v52, %s13223_s27 }
0x1e55   : > { %4559 = vrot.lane.b32.xlu0 %v13582_v54, %s13224_s28 }
0x1e58   : > { %4561 = vrot.lane.b32.xlu1 %v14215_v52, %s13224_s28 }
0x1ec4   : > { %v4390_v29 = vpop.xlane.xlu0 %4389 }
0x1ec5   : > { %12807 = vrcp.f32 %v4390_v29 }
0x1ec8   : > { %v4393_v49 = vpop.xlane.xlu0 %4392  ;;  %v4396_v38 = vpop.xlane.xlu1 %4395 }
0x1ec9   : > { %12809 = vrcp.f32 %v4393_v49 }
0x1eca   : > { %12811 = vrcp.f32 %v4396_v38 }
0x1ecc   : > { %v4406_v51 = vpop.permute.xlu0 %4405  ;;  %v4408_v32 = vpop.permute.xlu1 %4407 }
0x1ecd   : > { %11842 = vmatprep.subr.bf16.mxu0 %v4406_v51  ;;  %v4417_v46 = vsel %vm795_vm5, %v4408_v32, 0 }
0x1ece   : > { %11843 = vmatpush3.bf16.msra.mxu0 %v4406_v51 }
0x1ecf   : > { %12476 = vmatprep.subr.msk.bf16.mxu0 %vm795_vm5, %v4408_v32  ;;  %v12808_v37 = vpop.eup %12807 }
0x1ed0   : > { %v4564_v19 = vpop.permute.xlu1 %4563  ;;  %v4400_v47 = vmul.f32 %v12808_v37, %v12802_v6  ;;  %v4560_v3 = vpop.permute.xlu0 %4559 }
0x1ed1   : > { %v4574_v7 = vsel %vm684_vm2, %v4564_v19, 0 }
0x1ed2   : > { %11845 = vmatpush3.bf16.msra.mxu0 %v4417_v46 }
0x1ed3   : > { %v12810_v43 = vpop.eup %12809  ;;  %12477 = vmatprep.subr.msk.bf16.mxu0 %vm684_vm2, %v4564_v19 }
0x1ed4   : > { %v12812_v62 = vpop.eup %12811  ;;  %v4401_v53 = vmul.f32 %v12810_v43, %v12804_v8  ;;  %v4566_v9 = vpop.permute.xlu1 %4565 }
0x1ed5   : > { %v4402_v58 = vmul.f32 %v12812_v62, %v12806_v13  ;;  %v4577_v26 = vsel %vm684_vm2, %v4566_v9, 0 }
0x1ed6   : > { %v4403_v34 = vpack.c.bf16 %v4401_v53, %v4400_v47 }
0x1ed7   : > { %v4404_v15 = vpack.c.bf16 %v4402_v58, %v4402_v58 }
0x1ed8   : > { %11846 = vmatprep.mubr.msk.bf16.mxu0 %vm748_vm4, %v4403_v34  ;;  %v4562_v59 = vpop.permute.xlu1 %4561 }
0x1ed9   : > { %11847 = vmatmul.mubr.msk.bf16.vlgmr.msra.gmra.mrb[116].mxu0 %vm748_vm4, %v4404_v15 }
0x1eda   : > { %11865 = vmatprep.mubr.msk.bf16.mxu0 %vm684_vm2, %v4560_v3 }
0x1edb   : > { %11862 = vmatpush3.bf16.xpose.msra.mxu0 %v4574_v7 }
0x1edc   : > { %12478 = vmatprep.subr.msk.bf16.mxu0 %vm684_vm2, %v4566_v9 }
0x1ee3   : > { %11864 = vmatpush3.bf16.xpose.msra.mxu0 %v4577_v26 }
0x1ee4   : > { %11877 = vmatprep.subr.mxu0 %v13220_v27 }
0x1eea   : > { %11866 = vmatmul.mubr.msk.bf16.vlgmr.msra.gmra.mrb[120].mxu0 %vm684_vm2, %v4562_v59 }
0x1eeb   : > { %11878 = vmatpush3.msra.mxu0 %v14183_v18  ;;  %11879 = vmatprep.mubr.msk.f32.mxu0 %vm13221_vm6, %v13220_v27 }
0x1fac   : > { %v11848_v57 = vpop.f32.mrb[116].mxu0 }
0x1fad   : > { %v4453_v55 = vpop.f32.mrb[117].mxu0 }
0x1fae   : > { %v11849_v50 = vpop.f32.mrb[118].mxu0  ;;  %11853 = vmatmul.mubr.msk.f32.vlgmr.msra.gmra.mrb[106].mxu1 %vm684_vm2, %v4453_v55 }
0x1faf   : > { %v4456_v31 = vpop.f32.mrb[119].mxu0  ;;  %11855 = vmatprep.mubr.msk.f32.mxu1 %vm13221_vm6, %v13220_v27 }
0x1fb2   : > { %11856 = vmatmul.mubr.msk.f32.gmra.mrb[112].mxu1 %vm684_vm2, %v4456_v31 }
0x1fb3   : > { %11858 = vmatprep.mubr.msk.f32.mxu1 %vm13221_vm6, %v13220_v27 }
0x1fb6   : > { %11859 = vmatmul.mubr.msk.f32.gmra.mrb[114].mxu1 %vm684_vm2, %v11848_v57 }
0x1fbd   : > { %v11867_v18 = vpop.f32.mrb[120].mxu0 }
0x1fbe   : > { %v4613_v44 = vpop.f32.mrb[121].mxu0  ;;  %v4629_v6 = vsel %vm332_vm3, %v11867_v18, -1e+30 }
0x1fbf   : > { %v4627_v39 = vsel %vm332_vm3, %v4613_v44, -1e+30  ;;  %v11868_v42 = vpop.f32.mrb[122].mxu0  ;;  %v4636_v13 = vsel %vm748_vm4, %v4629_v6, -inf }
0x1fc0   : > { %v4630_v45 = vsel %vm748_vm4, %v4627_v39, -inf  ;;  %v4616_v41 = vpop.f32.mrb[123].mxu0 }
0x1fc1   : > { %v4628_v48 = vsel %vm332_vm3, %v4616_v41, -1e+30  ;;  %4631 = vmax.xlane.f32.xlu0 %v4630_v45 }
0x1fc2   : > { %v4633_v8 = vsel %vm748_vm4, %v4628_v48, -inf }
0x1fc3   : > { %4634 = vmax.xlane.f32.xlu1 %v4633_v8 }
0x1fc5   : > { %4637 = vmax.xlane.f32.xlu0 %v4636_v13 }
0x204e   : > { %v4632_v23 = vpop.xlane.xlu0 %4631 }
0x204f   : > { %v4639_v22 = vsub.f32 %v4627_v39, %v4632_v23 }
0x2050   : > { %v4635_v29 = vpop.xlane.xlu1 %4634 }
0x2051   : > { %v4642_v49 = vmul.f32 1.442695, %v4639_v22  ;;  %v4640_v38 = vsub.f32 %v4628_v48, %v4635_v29 }
0x2052   : > { %v4638_v51 = vpop.xlane.xlu0 %4637 }
0x2053   : > { %12813 = vpow2.f32 %v4642_v49  ;;  %v4644_v32 = vmul.f32 1.442695, %v4640_v38  ;;  %v4641_v37 = vsub.f32 %v4629_v6, %v4638_v51 }
0x2055   : > { %12815 = vpow2.f32 %v4644_v32  ;;  %v4646_v46 = vmul.f32 1.442695, %v4641_v37 }
0x2057   : > { %12817 = vpow2.f32 %v4646_v46 }
0x205d   : > { %v12814_v19 = vpop.eup %12813 }
0x205e   : > { %v4648_v43 = vsel %vm748_vm4, %v12814_v19, 0.0 }
0x205f   : > { %v12816_v62 = vpop.eup %12815  ;;  %4649 = vadd.xlane.f32.xlu0 %v4648_v43 }
0x2060   : > { %v4651_v58 = vsel %vm748_vm4, %v12816_v62, 0.0 }
0x2061   : > { %v12818_v47 = vpop.eup %12817 }
0x2062   : > { %v4654_v53 = vsel %vm748_vm4, %v12818_v47, 0.0 }
0x2063   : > { %4655 = vadd.xlane.f32.xlu1 %v4654_v53  ;;  %4652 = vadd.xlane.f32.xlu0 %v4651_v58  ;;  %v4823_v58 = vadd.f32 %v14072_v24, %v13362_v61  ;;  %v4825_v24 = vadd.f32 %v14296_v0, %v13376_v4  ;;  %v4827_v4 = vadd.f32 %v14308_v2, %v13391_v11  ;;  %v12585_v11 = vld [vmem:[%s16282_s1 + $0x38] sm:$0xff]   ;;  %v12586_v2 = vld [vmem:[%s16282_s1 + $0x40] sm:$0xff]  }
0x2074   : > { %4667 = vrot.lane.b32.xlu1 %v14215_v52, %s16285_s4  ;;  %v4819_v52 = vadd.f32 %v13843_v14, %v13328_v28  ;;  %v4822_v28 = vadd.f32 %v14067_v60, %v13330_v30 }
0x2079   : > { %4665 = vrot.lane.b32.xlu0 %v13582_v54, %s16285_s4  ;;  %v4820_v54 = vadd.f32 %v13848_v63, %v13334_v33  ;;  %s13153_s4 = sshll.u32 %s13226_s30, 4  ;;  %s13154_s4 = int_to_ptr.vmem [resolvable:$false] %s13153_s4 }
0x207a   : > { %s13155_s5 = scalar_lea.vmem %s13154_s4, 128 }
0x2081   : > { %v4542_v34 = vpop.f32.mrb[106].mxu1 }
0x2082   : > { %v14426_v15 = vadd.f32 %v4542_v34, %v14358_v12  ;;  %v11854_v3 = vpop.f32.mrb[107].mxu1  ;;  %v14441_v12 = vld [vmem:[%s16283_s2 + $0x6] ss:$0 sm:$0xff]  ;;  %v4824_v34 = vadd.f32 %v14079_v20, %v13378_v5  ;;  %v4826_v20 = vadd.f32 %v14301_v35, %v13389_v10 }
0x2083   : > { %v14447_v50 = vadd.f32 %v14441_v12, %v4820_v54  ;;  %v14457_v33 = vadd.f32 %v14441_v12, %v4822_v28  ;;  %v14494_v61 = vadd.f32 %v14441_v12, %v4823_v58  ;;  %v14518_v0 = vadd.f32 %v14441_v12, %v4827_v4  ;;  %v12590_v4 = vld [vmem:[%s16282_s1 + $0x60] sm:$0xff]  }
0x2084   : > { %v14497_v5 = vadd.f32 %v14441_v12, %v4824_v34 }
0x2085   : > { %v4547_v7 = vpop.f32.mrb[112].mxu1  ;;  %v4850_v31 = vsel %vm365_vm1, %v14447_v50, 0.0  ;;  %v4859_v28 = vsel %vm365_vm1, %v14494_v61, 0.0 }
0x2086   : > { %v14429_v9 = vadd.f32 %v4547_v7, %v14360_v40  ;;  %v11857_v26 = vpop.f32.mrb[113].mxu1  ;;  %v14444_v40 = vadd.f32 %v14441_v12, %v4819_v52  ;;  %v4862_v10 = vsel %vm365_vm1, %v14497_v5, 0.0 }
0x2088   : > { %v4847_v63 = vsel %vm365_vm1, %v14444_v40, 0.0 }
0x2089   : > { %v4552_v59 = vpop.f32.mrb[114].mxu1 }
0x208a   : > { %v14432_v57 = vadd.f32 %v4552_v59, %v14362_v36  ;;  %v11860_v55 = vpop.f32.mrb[115].mxu1  ;;  %v4821_v36 = vadd.f32 %v13855_v1, %v13323_v25  ;;  %v4856_v25 = vsel %vm365_vm1, %v14457_v33, 0.0 }
0x208c   : > { %v14454_v14 = vadd.f32 %v14441_v12, %v4821_v36 }
0x208e   : > { %v4853_v30 = vsel %vm365_vm1, %v14454_v14, 0.0 }
0x2098   : > { %4848 = vadd.xlane.f32.xlu1 %v4847_v63  ;;  %4851 = vadd.xlane.f32.xlu0 %v4850_v31  ;;  %v14508_v63 = vadd.f32 %v14441_v12, %v4825_v24  ;;  %v14511_v31 = vadd.f32 %v14441_v12, %v4826_v20 }
0x209a   : > { %v4865_v35 = vsel %vm365_vm1, %v14508_v63, 0.0 }
0x209c   : > { %4857 = vadd.xlane.f32.xlu1 %v4856_v25  ;;  %4854 = vadd.xlane.f32.xlu0 %v4853_v30  ;;  %v4868_v25 = vsel %vm365_vm1, %v14511_v31, 0.0  ;;  %v4871_v30 = vsel %vm365_vm1, %v14518_v0, 0.0 }
0x20ec   : > { %v4650_v1 = vpop.xlane.xlu0 %4649 }
0x20ed   : > { %12819 = vrcp.f32 %v4650_v1 }
0x20f0   : > { %v4653_v60 = vpop.xlane.xlu0 %4652  ;;  %v4656_v18 = vpop.xlane.xlu1 %4655 }
0x20f1   : > { %12821 = vrcp.f32 %v4653_v60 }
0x20f2   : > { %12823 = vrcp.f32 %v4656_v18 }
0x20f4   : > { %v4666_v44 = vpop.permute.xlu0 %4665  ;;  %v4668_v39 = vpop.permute.xlu1 %4667 }
0x20f5   : > { %11869 = vmatprep.subr.bf16.mxu1 %v4666_v44  ;;  %v4677_v45 = vsel %vm795_vm5, %v4668_v39, 0 }
0x20f6   : > { %11870 = vmatpush3.bf16.msra.mxu1 %v4666_v44 }
0x20f7   : > { %12479 = vmatprep.subr.msk.bf16.mxu1 %vm795_vm5, %v4668_v39  ;;  %v12820_v42 = vpop.eup %12819 }
0x20f8   : > { %v4660_v48 = vmul.f32 %v12820_v42, %v12814_v19 }
0x20fa   : > { %11872 = vmatpush3.bf16.msra.mxu1 %v4677_v45 }
0x20fb   : > { %v12822_v41 = vpop.eup %12821  ;;  %11888 = vmatprep.subr.bf16.mxu1 %v12585_v11 }
0x20fc   : > { %v12824_v6 = vpop.eup %12823  ;;  %v4661_v8 = vmul.f32 %v12822_v41, %v12816_v62 }
0x20fd   : > { %v4662_v13 = vmul.f32 %v12824_v6, %v12818_v47 }
0x20fe   : > { %v4663_v23 = vpack.c.bf16 %v4661_v8, %v4660_v48 }
0x20ff   : > { %v4664_v22 = vpack.c.bf16 %v4662_v13, %v4662_v13 }
0x2100   : > { %11873 = vmatprep.mubr.msk.bf16.mxu1 %vm748_vm4, %v4663_v23 }
0x2101   : > { %11874 = vmatmul.mubr.msk.bf16.vlgmr.msra.gmra.mrb[116].mxu1 %vm748_vm4, %v4664_v22  ;;  %v14535_v22 = vld [vmem:[%s16283_s2 + $0x7] ss:$0 sm:$0xff] }
0x2102   : > { %11889 = vmatpush3.bf16.msra.mxu1 %v12585_v11 }
0x2103   : > { %11890 = vmatprep.subr.bf16.mxu1 %v12586_v2 }
0x2106   : > { %11891 = vmatpush3.bf16.msra.mxu1 %v12586_v2 }
0x2125   : > { %v4852_v29 = vpop.xlane.xlu0 %4851  ;;  %v4849_v49 = vpop.xlane.xlu1 %4848 }
0x2126   : > { %v4884_v38 = vmul.f32 0.03125, %v4852_v29  ;;  %v4883_v51 = vmul.f32 0.03125, %v4849_v49 }
0x2128   : > { %v14472_v32 = vsub.f32 %v14447_v50, %v4884_v38  ;;  %v14475_v37 = vsub.f32 %v14444_v40, %v4883_v51  ;;  %v14541_v38 = vld [vmem:[%s16283_s2 + $0x8] ss:$0 sm:$0xff] }
0x2129   : > { %v4855_v46 = vpop.xlane.xlu0 %4854  ;;  %v4858_v19 = vpop.xlane.xlu1 %4857 }
0x212a   : > { %v4885_v43 = vmul.f32 0.03125, %v4855_v46  ;;  %v4886_v62 = vmul.f32 0.03125, %v4858_v19  ;;  %v4908_v47 = vmul.f32 %v14472_v32, %v14472_v32  ;;  %v4907_v53 = vmul.f32 %v14475_v37, %v14475_v37 }
0x212c   : > { %v4897_v3 = vsub.f32 %v14454_v14, %v4885_v43  ;;  %v14487_v7 = vsub.f32 %v14457_v33, %v4886_v62  ;;  %v4922_v26 = vsel %vm365_vm1, %v4908_v47, 0.0  ;;  %v4919_v59 = vsel %vm365_vm1, %v4907_v53, 0.0 }
0x212d   : > { %4923 = vadd.xlane.f32.xlu1 %v4922_v26  ;;  %4920 = vadd.xlane.f32.xlu0 %v4919_v59 }
0x212e   : > { %v4909_v55 = vmul.f32 %v4897_v3, %v4897_v3  ;;  %v4910_v52 = vmul.f32 %v14487_v7, %v14487_v7 }
0x2130   : > { %v4925_v54 = vsel %vm365_vm1, %v4909_v55, 0.0  ;;  %v4928_v36 = vsel %vm365_vm1, %v4910_v52, 0.0 }
0x2131   : > { %4926 = vadd.xlane.f32.xlu0 %v4925_v54  ;;  %4929 = vadd.xlane.f32.xlu1 %v4928_v36  ;;  %v12587_v54 = vld [vmem:[%s16282_s1 + $0x48] sm:$0xff]   ;;  %v12588_v36 = vld [vmem:[%s16282_s1 + $0x50] sm:$0xff]  }
0x2132   : > { %11904 = vmatprep.subr.bf16.mxu0 %v12587_v54 }
0x2135   : > { %4860 = vadd.xlane.f32.xlu0 %v4859_v28  ;;  %4863 = vadd.xlane.f32.xlu1 %v4862_v10  ;;  %v12589_v28 = vld [vmem:[%s16282_s1 + $0x58] sm:$0xff]   ;;  %v12591_v10 = vld [vmem:[%s16282_s1 + $0x68] sm:$0xff]  }
0x2139   : > { %4866 = vadd.xlane.f32.xlu0 %v4865_v35  ;;  %4869 = vadd.xlane.f32.xlu1 %v4868_v25  ;;  %v12592_v35 = vld [vmem:[%s16282_s1 + $0x70] sm:$0xff]   ;;  %v12593_v25 = vld [vmem:[%s16282_s1 + $0x78] sm:$0xff]  }
0x213d   : > { %4872 = vadd.xlane.f32.xlu0 %v4871_v30  ;;  %v12594_v30 = vld [vmem:[%s16282_s1 + $0x80] sm:$0xff]  }
0x21ba   : > { %v4921_v1 = vpop.xlane.xlu0 %4920  ;;  %v4924_v60 = vpop.xlane.xlu1 %4923 }
0x21bb   : > { %v4955_v18 = vmul.f32 0.03125, %v4921_v1  ;;  %v4956_v44 = vmul.f32 0.03125, %v4924_v60  ;;  %v14589_v1 = vld [vmem:[%s16283_s2 + $0x9] ss:$0 sm:$0xff] }
0x21bd   : > { %v4967_v39 = vadd.f32 1e-06, %v4955_v18  ;;  %v4968_v42 = vadd.f32 1e-06, %v4956_v44 }
0x21be   : > { %v4927_v45 = vpop.xlane.xlu0 %4926  ;;  %v4930_v41 = vpop.xlane.xlu1 %4929 }
0x21bf   : > { %12825 = vrsqrt.f32 %v4967_v39  ;;  %v4957_v6 = vmul.f32 0.03125, %v4927_v45  ;;  %v4958_v48 = vmul.f32 0.03125, %v4930_v41 }
0x21c0   : > { %12827 = vrsqrt.f32 %v4968_v42 }
0x21c1   : > { %v4969_v8 = vadd.f32 1e-06, %v4957_v6  ;;  %v4970_v13 = vadd.f32 1e-06, %v4958_v48 }
0x21c2   : > { %v4861_v11 = vpop.xlane.xlu0 %4860  ;;  %v4864_v2 = vpop.xlane.xlu1 %4863 }
0x21c3   : > { %12829 = vrsqrt.f32 %v4969_v8  ;;  %v4887_v60 = vmul.f32 0.03125, %v4861_v11  ;;  %v4888_v41 = vmul.f32 0.03125, %v4864_v2 }
0x21c4   : > { %12831 = vrsqrt.f32 %v4970_v13 }
0x21c6   : > { %v4867_v18 = vpop.xlane.xlu0 %4866 }
0x21c9   : > { %v12826_v23 = vpop.eup %12825 }
0x21ca   : > { %v12828_v29 = vpop.eup %12827  ;;  %v4991_v49 = vmul.f32 %v12826_v23, %v14475_v37 }
0x21cb   : > { %v4992_v51 = vmul.f32 %v12828_v29, %v14472_v32  ;;  %v14600_v29 = vsub.f32 %v14494_v61, %v4887_v60 }
0x21cc   : > { %v5007_v46 = vmul.f32 %v14535_v22, %v4991_v49 }
0x21cd   : > { %v12830_v19 = vpop.eup %12829  ;;  %v5008_v43 = vmul.f32 %v14535_v22, %v4992_v51 }
0x21ce   : > { %v12832_v62 = vpop.eup %12831  ;;  %v4993_v47 = vmul.f32 %v12830_v19, %v4897_v3  ;;  %v5023_v53 = vadd.f32 %v14541_v38, %v5007_v46  ;;  %v4870_v19 = vpop.xlane.xlu1 %4869 }
0x21cf   : > { %v4994_v58 = vmul.f32 %v12832_v62, %v14487_v7  ;;  %v5024_v37 = vadd.f32 %v14541_v38, %v5008_v43 }
0x21d0   : > { %v5009_v34 = vmul.f32 %v14535_v22, %v4993_v47 }
0x21d1   : > { %v5010_v26 = vmul.f32 %v14535_v22, %v4994_v58  ;;  %v5035_v59 = vpack.c.bf16 %v5024_v37, %v5023_v53  ;;  %v14617_v58 = vsub.f32 %v14497_v5, %v4888_v41  ;;  %v4889_v37 = vmul.f32 0.03125, %v4867_v18 }
0x21d2   : > { %v5025_v32 = vadd.f32 %v14541_v38, %v5009_v34 }
0x21d3   : > { %11892 = vmatprep.mubr.msk.bf16.mxu1 %vm365_vm1, %v5035_v59  ;;  %v5026_v55 = vadd.f32 %v14541_v38, %v5010_v26  ;;  %v4873_v59 = vpop.xlane.xlu0 %4872 }
0x21d4   : > { %v11875_v52 = vpop.f32.mrb[116].mxu1 }
0x21d5   : > { %v4713_v24 = vpop.f32.mrb[117].mxu1  ;;  %v5036_v3 = vpack.c.bf16 %v5026_v55, %v5025_v32 }
0x21d6   : > { %v11876_v20 = vpop.f32.mrb[118].mxu1  ;;  %11880 = vmatmul.mubr.msk.f32.vlgmr.msra.gmra.mrb[114].mxu0 %vm684_vm2, %v4713_v24  ;;  %v4890_v24 = vmul.f32 0.03125, %v4870_v19 }
0x21d7   : > { %11893 = vmatmul.mubr.msk.bf16.vlgmr.msra.gmra.mrb[120].mxu1 %vm365_vm1, %v5036_v3  ;;  %v4716_v7 = vpop.f32.mrb[119].mxu1  ;;  %11882 = vmatprep.mubr.msk.f32.mxu0 %vm13221_vm6, %v13220_v27 }
0x21d8   : > { %11905 = vmatpush3.bf16.msra.mxu0 %v12587_v54  ;;  %v4911_v54 = vmul.f32 %v14600_v29, %v14600_v29 }
0x21d9   : > { %11906 = vmatprep.subr.bf16.mxu0 %v12588_v36 }
0x21da   : > { %11883 = vmatmul.mubr.msk.f32.gmra.mrb[124].mxu0 %vm684_vm2, %v4716_v7 }
0x21db   : > { %11885 = vmatprep.mubr.msk.f32.mxu0 %vm13221_vm6, %v13220_v27 }
0x21dc   : > { %11907 = vmatpush3.bf16.msra.mxu0 %v12588_v36 }
0x21dd   : > { %11908 = vmatprep.subr.bf16.mxu0 %v12589_v28 }
0x21de   : > { %11886 = vmatmul.mubr.msk.f32.gmra.mrb[126].mxu0 %vm684_vm2, %v11875_v52 }
0x21e0   : > { %11909 = vmatpush3.bf16.msra.mxu0 %v12589_v28 }
0x21e1   : > { %11910 = vmatprep.subr.bf16.mxu0 %v12590_v4 }
0x21e4   : > { %11911 = vmatpush3.bf16.msra.mxu0 %v12590_v4 }
0x21e5   : > { %11912 = vmatprep.subr.bf16.mxu0 %v12591_v10 }
0x21e8   : > { %11913 = vmatpush3.bf16.msra.mxu0 %v12591_v10 }
0x21e9   : > { %11914 = vmatprep.subr.bf16.mxu0 %v12592_v35 }
0x21ec   : > { %11915 = vmatpush3.bf16.msra.mxu0 %v12592_v35  ;;  %v14637_v35 = vsub.f32 %v14508_v63, %v4889_v37 }
0x21ed   : > { %11916 = vmatprep.subr.bf16.mxu0 %v12593_v25 }
0x21f0   : > { %11917 = vmatpush3.bf16.msra.mxu0 %v12593_v25  ;;  %v4891_v25 = vmul.f32 0.03125, %v4873_v59 }
0x21f1   : > { %11918 = vmatprep.subr.bf16.mxu0 %v12594_v30 }
0x21f4   : > { %11919 = vmatpush3.bf16.msra.mxu0 %v12594_v30 }
0x22a9   : > { %v4802_v44 = vpop.f32.mrb[114].mxu0 }
0x22aa   : > { %v4816_v39 = vadd.f32 %v4802_v44, %v14426_v15  ;;  %v11894_v42 = vpop.f32.mrb[120].mxu1  ;;  %v11881_v45 = vpop.f32.mrb[115].mxu0 }
0x22ab   : > { %v14593_v6 = vadd.f32 %v11894_v42, %v14589_v1  ;;  %v5109_v48 = vpop.f32.mrb[121].mxu1  ;;  %v14648_v45 = vsub.f32 %v14511_v31, %v4890_v24 }
0x22ac   : > { %v4828_v8 = vadd.f32 %v4816_v39, %v13405_v17  ;;  %v14597_v13 = vadd.f32 %v14589_v1, %v5109_v48  ;;  %v11895_v23 = vpop.f32.mrb[122].mxu1 }
0x22ad   : > { %v5158_v49 = vmul.f32 %v14593_v6, %v14593_v6  ;;  %v14605_v15 = vadd.f32 %v11895_v23, %v14589_v1  ;;  %v5112_v51 = vpop.f32.mrb[123].mxu1  ;;  %v4807_v46 = vpop.f32.mrb[124].mxu0  ;;  %v4931_v23 = vsel %vm365_vm1, %v4911_v54, 0.0 }
0x22ae   : > { %v14608_v43 = vadd.f32 %v14441_v12, %v4828_v8  ;;  %v5156_v17 = vmul.f32 %v14597_v13, %v14597_v13  ;;  %v14613_v62 = vadd.f32 %v14589_v1, %v5112_v51  ;;  %v4817_v47 = vadd.f32 %v4807_v46, %v14429_v9  ;;  %v11884_v53 = vpop.f32.mrb[125].mxu0 }
0x22af   : > { %v5170_v34 = vmul.f32 %v5158_v49, %v14593_v6  ;;  %v5159_v26 = vmul.f32 %v14605_v15, %v14605_v15  ;;  %v4913_v49 = vmul.f32 %v14637_v35, %v14637_v35  ;;  %v14658_v51 = vsub.f32 %v14518_v0, %v4891_v25 }
0x22b0   : > { %v5168_v32 = vmul.f32 %v5156_v17, %v14597_v13  ;;  %v5157_v55 = vmul.f32 %v14613_v62, %v14613_v62  ;;  %v4829_v52 = vadd.f32 %v4817_v47, %v13403_v16  ;;  %v4874_v9 = vsel %vm365_vm1, %v14608_v43, 0.0 }
0x22b1   : > { %v5182_v3 = vmul.f32 0.044715, %v5170_v34  ;;  %v5171_v20 = vmul.f32 %v5159_v26, %v14605_v15  ;;  %v4812_v7 = vpop.f32.mrb[126].mxu0  ;;  %4875 = vadd.xlane.f32.xlu1 %v4874_v9  ;;  %v4915_v47 = vmul.f32 %v14658_v51, %v14658_v51  ;;  %v4914_v53 = vmul.f32 %v14648_v45, %v14648_v45 }
0x22b2   : > { %v5180_v36 = vmul.f32 0.044715, %v5168_v32  ;;  %v5169_v28 = vmul.f32 %v5157_v55, %v14613_v62  ;;  %v14633_v4 = vadd.f32 %v14441_v12, %v4829_v52  ;;  %v4818_v16 = vadd.f32 %v4812_v7, %v14432_v57  ;;  %v11887_v10 = vpop.f32.mrb[127].mxu0 }
0x22b3   : > { %v5194_v30 = vadd.f32 %v5182_v3, %v14593_v6  ;;  %v5183_v11 = vmul.f32 0.044715, %v5171_v20  ;;  %v4912_v57 = vmul.f32 %v14617_v58, %v14617_v58  ;;  %v4943_v37 = vsel %vm365_vm1, %v4915_v47, 0.0 }
0x22b4   : > { %v5192_v2 = vadd.f32 %v5180_v36, %v14597_v13  ;;  %v5181_v60 = vmul.f32 0.044715, %v5169_v28  ;;  %v4830_v18 = vadd.f32 %v4818_v16, %v13414_v21  ;;  %v4877_v44 = vsel %vm365_vm1, %v14633_v4, 0.0 }
0x22b5   : > { %v5206_v39 = vmul.f32 0.7978846, %v5194_v30  ;;  %v5195_v42 = vadd.f32 %v5183_v11, %v14605_v15  ;;  %4878 = vadd.xlane.f32.xlu0 %v4877_v44  ;;  %v4934_v17 = vsel %vm365_vm1, %v4912_v57, 0.0  ;;  %v4940_v34 = vsel %vm365_vm1, %v4914_v53, 0.0 }
0x22b6   : > { %v5204_v41 = vmul.f32 0.7978846, %v5192_v2  ;;  %v5193_v48 = vadd.f32 %v5181_v60, %v14613_v62  ;;  %v14652_v8 = vadd.f32 %v14441_v12, %v4830_v18  ;;  %v4937_v12 = vsel %vm365_vm1, %v4913_v49, 0.0 }
0x22b7   : > { %12833 = vtanh.f32 %v5206_v39  ;;  %v5207_v21 = vmul.f32 0.7978846, %v5195_v42 }
0x22b8   : > { %12835 = vtanh.f32 %v5204_v41  ;;  %v5205_v46 = vmul.f32 0.7978846, %v5193_v48  ;;  %v4880_v19 = vsel %vm365_vm1, %v14652_v8, 0.0 }
0x22b9   : > { %12837 = vtanh.f32 %v5207_v21  ;;  %4932 = vadd.xlane.f32.xlu0 %v4931_v23  ;;  %4881 = vadd.xlane.f32.xlu1 %v4880_v19 }
0x22ba   : > { %12839 = vtanh.f32 %v5205_v46 }
0x22bd   : > { %4938 = vadd.xlane.f32.xlu0 %v4937_v12  ;;  %4935 = vadd.xlane.f32.xlu1 %v4934_v17 }
0x22c1   : > { %v12834_v26 = vpop.eup %12833  ;;  %4944 = vadd.xlane.f32.xlu0 %v4943_v37  ;;  %4941 = vadd.xlane.f32.xlu1 %v4940_v34 }
0x22c2   : > { %v12836_v59 = vpop.eup %12835  ;;  %v5230_v32 = vadd.f32 1.0, %v12834_v26 }
0x22c3   : > { %v12838_v55 = vpop.eup %12837  ;;  %v5228_v52 = vadd.f32 1.0, %v12836_v59 }
0x22c4   : > { %v12840_v9 = vpop.eup %12839  ;;  %v5242_v24 = vmul.f32 0.5, %v5230_v32  ;;  %v5231_v3 = vadd.f32 1.0, %v12838_v55 }
0x22c5   : > { %v5229_v20 = vadd.f32 1.0, %v12840_v9  ;;  %v5240_v7 = vmul.f32 0.5, %v5228_v52 }
0x22c6   : > { %v5243_v54 = vmul.f32 0.5, %v5231_v3  ;;  %v5254_v28 = vmul.f32 %v5242_v24, %v14593_v6 }
0x22c7   : > { %v5241_v36 = vmul.f32 0.5, %v5229_v20  ;;  %v5252_v10 = vmul.f32 %v5240_v7, %v14597_v13 }
0x22c8   : > { %v5255_v16 = vmul.f32 %v5243_v54, %v14605_v15 }
0x22c9   : > { %v5253_v25 = vmul.f32 %v5241_v36, %v14613_v62 }
0x22ca   : > { %v5265_v30 = vpack.c.bf16 %v5255_v16, %v5254_v28 }
0x22cb   : > { %v5264_v11 = vpack.c.bf16 %v5253_v25, %v5252_v10 }
0x22cd   : > { %11920 = vmatprep.mubr.bf16.mxu0 %v5264_v11 }
0x22ce   : > { %11921 = vmatmul.mubr.bf16.vlgmr.msra.gmra.mrb[128].mxu0 %v5265_v30 }
0x233e   : > { %v4876_v2 = vpop.xlane.xlu1 %4875 }
0x233f   : > { %v4892_v60 = vmul.f32 0.03125, %v4876_v2  ;;  %v14709_v2 = vld [vmem:[%s16283_s2 + $0xa] ss:$0 sm:$0xff] }
0x2341   : > { %v14675_v18 = vsub.f32 %v14608_v43, %v4892_v60 }
0x2342   : > { %v4879_v44 = vpop.xlane.xlu0 %4878 }
0x2343   : > { %v4893_v39 = vmul.f32 0.03125, %v4879_v44  ;;  %v4916_v6 = vmul.f32 %v14675_v18, %v14675_v18 }
0x2345   : > { %v14680_v15 = vsub.f32 %v14633_v4, %v4893_v39  ;;  %v4946_v13 = vsel %vm365_vm1, %v4916_v6, 0.0 }
0x2346   : > { %v4933_v62 = vpop.xlane.xlu0 %4932  ;;  %4947 = vadd.xlane.f32.xlu1 %v4946_v13  ;;  %v4882_v42 = vpop.xlane.xlu1 %4881 }
0x2347   : > { %v4959_v57 = vmul.f32 0.03125, %v4933_v62  ;;  %v4894_v41 = vmul.f32 0.03125, %v4882_v42  ;;  %v4917_v48 = vmul.f32 %v14680_v15, %v14680_v15 }
0x2349   : > { %v4971_v21 = vadd.f32 1e-06, %v4959_v57  ;;  %v14686_v23 = vsub.f32 %v14652_v8, %v4894_v41  ;;  %v4949_v49 = vsel %vm365_vm1, %v4917_v48, 0.0 }
0x234a   : > { %4950 = vadd.xlane.f32.xlu0 %v4949_v49  ;;  %v4939_v46 = vpop.xlane.xlu0 %4938  ;;  %v4936_v19 = vpop.xlane.xlu1 %4935 }
0x234b   : > { %12841 = vrsqrt.f32 %v4971_v21  ;;  %v4961_v12 = vmul.f32 0.03125, %v4939_v46  ;;  %v4960_v17 = vmul.f32 0.03125, %v4936_v19  ;;  %v4918_v47 = vmul.f32 %v14686_v23, %v14686_v23 }
0x234d   : > { %v4973_v53 = vadd.f32 1e-06, %v4961_v12  ;;  %v4972_v37 = vadd.f32 1e-06, %v4960_v17  ;;  %v4952_v34 = vsel %vm365_vm1, %v4918_v47, 0.0 }
0x234e   : > { %4953 = vadd.xlane.f32.xlu1 %v4952_v34  ;;  %v4942_v26 = vpop.xlane.xlu1 %4941 }
0x234f   : > { %12843 = vrsqrt.f32 %v4973_v53  ;;  %v4962_v59 = vmul.f32 0.03125, %v4942_v26 }
0x2350   : > { %12845 = vrsqrt.f32 %v4972_v37 }
0x2351   : > { %v4974_v32 = vadd.f32 1e-06, %v4962_v59 }
0x2353   : > { %12847 = vrsqrt.f32 %v4974_v32 }
0x2355   : > { %v12842_v55 = vpop.eup %12841 }
0x2356   : > { %v4995_v52 = vmul.f32 %v12842_v55, %v14600_v29 }
0x2358   : > { %v5011_v20 = vmul.f32 %v14535_v22, %v4995_v52 }
0x2359   : > { %v12844_v9 = vpop.eup %12843 }
0x235a   : > { %v12846_v24 = vpop.eup %12845  ;;  %v4997_v7 = vmul.f32 %v12844_v9, %v14637_v35  ;;  %v5027_v28 = vadd.f32 %v14541_v38, %v5011_v20 }
0x235b   : > { %v4996_v3 = vmul.f32 %v12846_v24, %v14617_v58 }
0x235c   : > { %v5013_v25 = vmul.f32 %v14535_v22, %v4997_v7 }
0x235d   : > { %v5012_v54 = vmul.f32 %v14535_v22, %v4996_v3  ;;  %v12848_v36 = vpop.eup %12847 }
0x235e   : > { %v4998_v10 = vmul.f32 %v12848_v36, %v14648_v45  ;;  %v5029_v58 = vadd.f32 %v14541_v38, %v5013_v25 }
0x235f   : > { %v5028_v16 = vadd.f32 %v14541_v38, %v5012_v54 }
0x2360   : > { %v5014_v30 = vmul.f32 %v14535_v22, %v4998_v10 }
0x2361   : > { %v5037_v29 = vpack.c.bf16 %v5028_v16, %v5027_v28 }
0x2362   : > { %v5030_v35 = vadd.f32 %v14541_v38, %v5014_v30 }
0x2363   : > { %11896 = vmatprep.mubr.msk.bf16.mxu1 %vm365_vm1, %v5037_v29 }
0x2364   : > { %v5038_v11 = vpack.c.bf16 %v5030_v35, %v5029_v58 }
0x2366   : > { %11897 = vmatmul.mubr.msk.bf16.gmra.mrb[124].mxu1 %vm365_vm1, %v5038_v11 }
0x23a1   : > { %v11922_v45 = vpop.f32.mrb[128].mxu0 }
0x23a2   : > { %v5356_v60 = vpop.f32.mrb[129].mxu0  ;;  %v5365_v44 = vadd.f32 %v11922_v45, %v14709_v2 }
0x23a3   : > { %v5357_v39 = vadd.f32 %v14709_v2, %v5356_v60  ;;  %v11923_v6 = vpop.f32.mrb[130].mxu0 }
0x23a4   : > { %v5359_v13 = vpop.f32.mrb[131].mxu0  ;;  %v5368_v42 = vadd.f32 %v11923_v6, %v14709_v2  ;;  %v14719_v41 = vadd.f32 %v5365_v44, %v14454_v14 }
0x23a5   : > { %v14714_v62 = vadd.f32 %v5357_v39, %v14444_v40  ;;  %v5360_v57 = vadd.f32 %v14709_v2, %v5359_v13 }
0x23a6   : > { %v14727_v49 = vadd.f32 %v5368_v42, %v14457_v33  ;;  %v5453_v46 = vsel %vm365_vm1, %v14719_v41, 0.0 }
0x23a7   : > { %v14722_v48 = vadd.f32 %v5360_v57, %v14447_v50  ;;  %v5447_v21 = vsel %vm365_vm1, %v14714_v62, 0.0  ;;  %v4945_v50 = vpop.xlane.xlu0 %4944 }
0x23a8   : > { %5448 = vadd.xlane.f32.xlu0 %v5447_v21  ;;  %v5456_v14 = vsel %vm365_vm1, %v14727_v49, 0.0  ;;  %v4963_v19 = vmul.f32 0.03125, %v4945_v50 }
0x23a9   : > { %v5450_v40 = vsel %vm365_vm1, %v14722_v48, 0.0 }
0x23aa   : > { %5451 = vadd.xlane.f32.xlu1 %v5450_v40  ;;  %v4975_v12 = vadd.f32 1e-06, %v4963_v19 }
0x23ac   : > { %5454 = vadd.xlane.f32.xlu0 %v5453_v46  ;;  %12849 = vrsqrt.f32 %v4975_v12 }
0x23ae   : > { %5457 = vadd.xlane.f32.xlu1 %v5456_v14 }
0x23b6   : > { %v12850_v59 = vpop.eup %12849 }
0x23b7   : > { %v4999_v52 = vmul.f32 %v12850_v59, %v14658_v51 }
0x23b9   : > { %v5015_v3 = vmul.f32 %v14535_v22, %v4999_v52 }
0x23bb   : > { %v5031_v54 = vadd.f32 %v14541_v38, %v5015_v3 }
0x23d3   : > { %v4948_v17 = vpop.xlane.xlu1 %4947 }
0x23d4   : > { %v4964_v47 = vmul.f32 0.03125, %v4948_v17 }
0x23d6   : > { %v4976_v33 = vadd.f32 1e-06, %v4964_v47 }
0x23d7   : > { %v4951_v53 = vpop.xlane.xlu0 %4950 }
0x23d8   : > { %12851 = vrsqrt.f32 %v4976_v33  ;;  %v4965_v37 = vmul.f32 0.03125, %v4951_v53 }
0x23da   : > { %v4977_v34 = vadd.f32 1e-06, %v4965_v37 }
0x23db   : > { %v4954_v26 = vpop.xlane.xlu1 %4953 }
0x23dc   : > { %12853 = vrsqrt.f32 %v4977_v34  ;;  %v4966_v32 = vmul.f32 0.03125, %v4954_v26 }
0x23de   : > { %v4978_v55 = vadd.f32 1e-06, %v4966_v32 }
0x23e0   : > { %12855 = vrsqrt.f32 %v4978_v55 }
0x23e2   : > { %v12852_v9 = vpop.eup %12851 }
0x23e3   : > { %v5000_v24 = vmul.f32 %v12852_v9, %v14675_v18 }
0x23e5   : > { %v5016_v20 = vmul.f32 %v14535_v22, %v5000_v24 }
0x23e6   : > { %v12854_v7 = vpop.eup %12853 }
0x23e7   : > { %v5032_v36 = vadd.f32 %v14541_v38, %v5016_v20  ;;  %v5001_v28 = vmul.f32 %v12854_v7, %v14680_v15 }
0x23e9   : > { %v5039_v16 = vpack.c.bf16 %v5032_v36, %v5031_v54  ;;  %v5017_v25 = vmul.f32 %v14535_v22, %v5001_v28 }
0x23ea   : > { %v12856_v10 = vpop.eup %12855 }
0x23eb   : > { %11900 = vmatprep.mubr.msk.bf16.mxu1 %vm365_vm1, %v5039_v16  ;;  %v5002_v51 = vmul.f32 %v12856_v10, %v14686_v23  ;;  %v5033_v29 = vadd.f32 %v14541_v38, %v5017_v25 }
0x23ed   : > { %v5018_v18 = vmul.f32 %v14535_v22, %v5002_v51 }
0x23ef   : > { %v5034_v30 = vadd.f32 %v14541_v38, %v5018_v18 }
0x23f1   : > { %v5040_v58 = vpack.c.bf16 %v5034_v30, %v5033_v29 }
0x23f3   : > { %11901 = vmatmul.mubr.msk.bf16.gmra.mrb[128].mxu1 %vm365_vm1, %v5040_v58 }
0x2435   : > { %v5449_v35 = vpop.xlane.xlu0 %5448 }
0x2436   : > { %v5483_v11 = vmul.f32 0.03125, %v5449_v35 }
0x2437   : > { %v5452_v15 = vpop.xlane.xlu1 %5451 }
0x2438   : > { %v14750_v45 = vsub.f32 %v14714_v62, %v5483_v11  ;;  %v5484_v60 = vmul.f32 0.03125, %v5452_v15 }
0x2439   : > { %v5455_v44 = vpop.xlane.xlu0 %5454  ;;  %v11898_v22 = vpop.f32.mrb[124].mxu1 }
0x243a   : > { %v14753_v23 = vsub.f32 %v14722_v48, %v5484_v60  ;;  %v5485_v39 = vmul.f32 0.03125, %v5455_v44  ;;  %v5507_v6 = vmul.f32 %v14750_v45, %v14750_v45  ;;  %v5134_v38 = vadd.f32 %v11898_v22, %v14589_v1  ;;  %v5125_v13 = vpop.f32.mrb[125].mxu1 }
0x243b   : > { %v5458_v42 = vpop.xlane.xlu1 %5457  ;;  %v5126_v21 = vadd.f32 %v14589_v1, %v5125_v13  ;;  %v11899_v46 = vpop.f32.mrb[126].mxu1 }
0x243c   : > { %v14759_v57 = vsub.f32 %v14719_v41, %v5485_v39  ;;  %v5486_v40 = vmul.f32 0.03125, %v5458_v42  ;;  %v5519_v14 = vsel %vm365_vm1, %v5507_v6, 0.0  ;;  %v5162_v50 = vmul.f32 %v5134_v38, %v5134_v38  ;;  %v5128_v12 = vpop.f32.mrb[127].mxu1 }
0x243d   : > { %v5137_v19 = vadd.f32 %v11899_v46, %v14589_v1  ;;  %5520 = vadd.xlane.f32.xlu0 %v5519_v14  ;;  %v5508_v17 = vmul.f32 %v14753_v23, %v14753_v23  ;;  %v5160_v47 = vmul.f32 %v5126_v21, %v5126_v21  ;;  %v5129_v53 = vadd.f32 %v14589_v1, %v5128_v12 }
0x243e   : > { %v14767_v33 = vsub.f32 %v14727_v49, %v5486_v40  ;;  %v5509_v37 = vmul.f32 %v14759_v57, %v14759_v57  ;;  %v5174_v34 = vmul.f32 %v5162_v50, %v5134_v38 }
0x243f   : > { %v5163_v26 = vmul.f32 %v5137_v19, %v5137_v19  ;;  %v5522_v59 = vsel %vm365_vm1, %v5508_v17, 0.0  ;;  %v5172_v32 = vmul.f32 %v5160_v47, %v5126_v21  ;;  %v5161_v55 = vmul.f32 %v5129_v53, %v5129_v53 }
0x2440   : > { %5523 = vadd.xlane.f32.xlu1 %v5522_v59  ;;  %v5525_v52 = vsel %vm365_vm1, %v5509_v37, 0.0  ;;  %v5510_v9 = vmul.f32 %v14767_v33, %v14767_v33  ;;  %v5186_v24 = vmul.f32 0.044715, %v5174_v34  ;;  %v12595_v34 = vld [vmem:[%s16282_s1 + $0x88] sm:$0xff]  }
0x2441   : > { %v5175_v3 = vmul.f32 %v5163_v26, %v5137_v19  ;;  %5526 = vadd.xlane.f32.xlu0 %v5525_v52  ;;  %v5184_v20 = vmul.f32 0.044715, %v5172_v32  ;;  %v5173_v7 = vmul.f32 %v5161_v55, %v5129_v53  ;;  %11932 = vmatprep.subr.bf16.mxu1 %v12595_v34  ;;  %v12596_v26 = vld [vmem:[%s16282_s1 + $0x90] sm:$0xff]  }
0x2442   : > { %v5528_v54 = vsel %vm365_vm1, %v5510_v9, 0.0  ;;  %v5198_v36 = vadd.f32 %v5186_v24, %v5134_v38  ;;  %11933 = vmatpush3.bf16.msra.mxu1 %v12595_v34 }
0x2443   : > { %v5187_v28 = vmul.f32 0.044715, %v5175_v3  ;;  %v5196_v16 = vadd.f32 %v5184_v20, %v5126_v21  ;;  %v5185_v10 = vmul.f32 0.044715, %v5173_v7  ;;  %11934 = vmatprep.subr.bf16.mxu1 %v12596_v26 }
0x2444   : > { %5529 = vadd.xlane.f32.xlu1 %v5528_v54  ;;  %v5210_v51 = vmul.f32 0.7978846, %v5198_v36 }
0x2445   : > { %v5199_v25 = vadd.f32 %v5187_v28, %v5137_v19  ;;  %v5208_v18 = vmul.f32 0.7978846, %v5196_v16  ;;  %v5197_v29 = vadd.f32 %v5185_v10, %v5129_v53 }
0x2446   : > { %12857 = vtanh.f32 %v5210_v51  ;;  %11935 = vmatpush3.bf16.msra.mxu1 %v12596_v26 }
0x2447   : > { %v5211_v30 = vmul.f32 0.7978846, %v5199_v25  ;;  %12859 = vtanh.f32 %v5208_v18  ;;  %v5209_v58 = vmul.f32 0.7978846, %v5197_v29 }
0x2449   : > { %12861 = vtanh.f32 %v5211_v30 }
0x244a   : > { %12863 = vtanh.f32 %v5209_v58 }
0x2450   : > { %v12858_v35 = vpop.eup %12857 }
0x2451   : > { %v12860_v11 = vpop.eup %12859  ;;  %v5234_v15 = vadd.f32 1.0, %v12858_v35 }
0x2452   : > { %v5232_v44 = vadd.f32 1.0, %v12860_v11 }
0x2453   : > { %v12862_v60 = vpop.eup %12861  ;;  %v5246_v6 = vmul.f32 0.5, %v5234_v15 }
0x2454   : > { %v12864_v39 = vpop.eup %12863  ;;  %v5235_v22 = vadd.f32 1.0, %v12862_v60  ;;  %v5244_v42 = vmul.f32 0.5, %v5232_v44 }
0x2455   : > { %v5233_v13 = vadd.f32 1.0, %v12864_v39  ;;  %v5258_v14 = vmul.f32 %v5246_v6, %v5134_v38 }
0x2456   : > { %v5247_v40 = vmul.f32 0.5, %v5235_v22  ;;  %v5256_v12 = vmul.f32 %v5244_v42, %v5126_v21 }
0x2457   : > { %v5245_v46 = vmul.f32 0.5, %v5233_v13 }
0x2458   : > { %v5259_v50 = vmul.f32 %v5247_v40, %v5137_v19 }
0x2459   : > { %v5257_v17 = vmul.f32 %v5245_v46, %v5129_v53 }
0x245a   : > { %v5267_v47 = vpack.c.bf16 %v5259_v50, %v5258_v14 }
0x245b   : > { %v5266_v37 = vpack.c.bf16 %v5257_v17, %v5256_v12 }
0x245d   : > { %11924 = vmatprep.mubr.bf16.mxu0 %v5266_v37 }
0x245e   : > { %11925 = vmatmul.mubr.bf16.gmra.mrb[132].mxu0 %v5267_v47  ;;  %v14814_v47 = vld [vmem:[%s16283_s2 + $0xb] ss:$0 sm:$0xff] }
0x24c6   : > { %v11902_v38 = vpop.f32.mrb[128].mxu1 }
0x24c7   : > { %v14784_v21 = vadd.f32 %v11902_v38, %v14589_v1  ;;  %v5141_v19 = vpop.f32.mrb[129].mxu1 }
0x24c8   : > { %v14787_v53 = vadd.f32 %v14589_v1, %v5141_v19  ;;  %v11903_v59 = vpop.f32.mrb[130].mxu1 }
0x24c9   : > { %v5166_v32 = vmul.f32 %v14784_v21, %v14784_v21  ;;  %v14792_v55 = vadd.f32 %v11903_v59, %v14589_v1  ;;  %v5144_v52 = vpop.f32.mrb[131].mxu1 }
0x24ca   : > { %v5164_v9 = vmul.f32 %v14787_v53, %v14787_v53  ;;  %v5521_v24 = vpop.xlane.xlu0 %5520  ;;  %v14797_v3 = vadd.f32 %v14589_v1, %v5144_v52 }
0x24cb   : > { %v5178_v20 = vmul.f32 %v5166_v32, %v14784_v21  ;;  %v5167_v7 = vmul.f32 %v14792_v55, %v14792_v55  ;;  %v5555_v54 = vmul.f32 0.03125, %v5521_v24  ;;  %v14822_v32 = vld [vmem:[%s16283_s2 + $0xc] ss:$0 sm:$0xff] }
0x24cc   : > { %v5176_v36 = vmul.f32 %v5164_v9, %v14787_v53  ;;  %v5165_v28 = vmul.f32 %v14797_v3, %v14797_v3 }
0x24cd   : > { %v5190_v16 = vmul.f32 0.044715, %v5178_v20  ;;  %v5179_v10 = vmul.f32 %v5167_v7, %v14792_v55  ;;  %v5567_v51 = vadd.f32 1e-06, %v5555_v54  ;;  %v5524_v25 = vpop.xlane.xlu1 %5523 }
0x24ce   : > { %v5188_v18 = vmul.f32 0.044715, %v5176_v36  ;;  %v5177_v1 = vmul.f32 %v5165_v28, %v14797_v3  ;;  %v5556_v29 = vmul.f32 0.03125, %v5524_v25  ;;  %v5527_v30 = vpop.xlane.xlu0 %5526 }
0x24cf   : > { %v5202_v58 = vadd.f32 %v5190_v16, %v14784_v21  ;;  %v5191_v35 = vmul.f32 0.044715, %v5179_v10  ;;  %12865 = vrsqrt.f32 %v5567_v51  ;;  %v5557_v11 = vmul.f32 0.03125, %v5527_v30 }
0x24d0   : > { %v5200_v15 = vadd.f32 %v5188_v18, %v14787_v53  ;;  %v5189_v60 = vmul.f32 0.044715, %v5177_v1  ;;  %v5568_v44 = vadd.f32 1e-06, %v5556_v29 }
0x24d1   : > { %v5214_v39 = vmul.f32 0.7978846, %v5202_v58  ;;  %v5203_v22 = vadd.f32 %v5191_v35, %v14792_v55  ;;  %v5530_v6 = vpop.xlane.xlu1 %5529  ;;  %v5569_v14 = vadd.f32 1e-06, %v5557_v11 }
0x24d2   : > { %v5212_v13 = vmul.f32 0.7978846, %v5200_v15  ;;  %v5201_v42 = vadd.f32 %v5189_v60, %v14797_v3  ;;  %12867 = vrsqrt.f32 %v5568_v44  ;;  %v5558_v40 = vmul.f32 0.03125, %v5530_v6 }
0x24d3   : > { %12869 = vtanh.f32 %v5214_v39  ;;  %v5215_v46 = vmul.f32 0.7978846, %v5203_v22 }
0x24d4   : > { %12871 = vtanh.f32 %v5212_v13  ;;  %v5213_v50 = vmul.f32 0.7978846, %v5201_v42  ;;  %v5570_v12 = vadd.f32 1e-06, %v5558_v40 }
0x24d5   : > { %12873 = vtanh.f32 %v5215_v46 }
0x24d6   : > { %12875 = vtanh.f32 %v5213_v50 }
0x24d7   : > { %12877 = vrsqrt.f32 %v5569_v14 }
0x24d8   : > { %12879 = vrsqrt.f32 %v5570_v12 }
0x24d9   : > { %v12866_v17 = vpop.eup %12865 }
0x24da   : > { %v5591_v37 = vmul.f32 %v12866_v17, %v14750_v45 }
0x24dc   : > { %v12868_v34 = vpop.eup %12867  ;;  %v5607_v19 = vmul.f32 %v14814_v47, %v5591_v37 }
0x24dd   : > { %v12870_v26 = vpop.eup %12869  ;;  %v5592_v38 = vmul.f32 %v12868_v34, %v14753_v23 }
0x24de   : > { %v12872_v59 = vpop.eup %12871  ;;  %v5238_v52 = vadd.f32 1.0, %v12870_v26  ;;  %v5623_v28 = vadd.f32 %v14822_v32, %v5607_v19 }
0x24df   : > { %v12874_v9 = vpop.eup %12873  ;;  %v5608_v24 = vmul.f32 %v14814_v47, %v5592_v38  ;;  %v5236_v20 = vadd.f32 1.0, %v12872_v59 }
0x24e0   : > { %v12876_v7 = vpop.eup %12875  ;;  %v5239_v54 = vadd.f32 1.0, %v12874_v9  ;;  %v5250_v45 = vmul.f32 0.5, %v5238_v52 }
0x24e1   : > { %v12878_v36 = vpop.eup %12877  ;;  %v5624_v23 = vadd.f32 %v14822_v32, %v5608_v24  ;;  %v5237_v16 = vadd.f32 1.0, %v12876_v7  ;;  %v5248_v10 = vmul.f32 0.5, %v5236_v20 }
0x24e2   : > { %v12880_v51 = vpop.eup %12879  ;;  %v5593_v25 = vmul.f32 %v12878_v36, %v14759_v57  ;;  %v5251_v18 = vmul.f32 0.5, %v5239_v54  ;;  %v5262_v35 = vmul.f32 %v5250_v45, %v14784_v21 }
0x24e3   : > { %v5594_v1 = vmul.f32 %v12880_v51, %v14767_v33  ;;  %v5635_v29 = vpack.c.bf16 %v5624_v23, %v5623_v28  ;;  %v5249_v30 = vmul.f32 0.5, %v5237_v16  ;;  %v5260_v60 = vmul.f32 %v5248_v10, %v14787_v53 }
0x24e4   : > { %v5609_v58 = vmul.f32 %v14814_v47, %v5593_v25  ;;  %v5263_v11 = vmul.f32 %v5251_v18, %v14792_v55 }
0x24e5   : > { %v5610_v15 = vmul.f32 %v14814_v47, %v5594_v1  ;;  %11936 = vmatprep.mubr.msk.bf16.mxu1 %vm365_vm1, %v5635_v29  ;;  %v5261_v44 = vmul.f32 %v5249_v30, %v14797_v3 }
0x24e6   : > { %v5269_v57 = vpack.c.bf16 %v5263_v11, %v5262_v35  ;;  %v5625_v39 = vadd.f32 %v14822_v32, %v5609_v58 }
0x24e7   : > { %v5626_v33 = vadd.f32 %v14822_v32, %v5610_v15  ;;  %v5268_v22 = vpack.c.bf16 %v5261_v44, %v5260_v60 }
0x24e9   : > { %v5636_v6 = vpack.c.bf16 %v5626_v33, %v5625_v39  ;;  %11928 = vmatprep.mubr.bf16.mxu0 %v5268_v22 }
0x24ea   : > { %11929 = vmatmul.mubr.bf16.gmra.mrb[136].mxu0 %v5269_v57 }
0x24eb   : > { %11937 = vmatmul.mubr.msk.bf16.vlgmr.msra.gmra.mrb[132].mxu1 %vm365_vm1, %v5636_v6 }
0x2531   : > { %v11926_v21 = vpop.f32.mrb[132].mxu0 }
0x2532   : > { %v5372_v55 = vpop.f32.mrb[133].mxu0  ;;  %v5381_v13 = vadd.f32 %v11926_v21, %v14709_v2 }
0x2533   : > { %v5373_v42 = vadd.f32 %v14709_v2, %v5372_v55  ;;  %v11927_v53 = vpop.f32.mrb[134].mxu0 }
0x2534   : > { %v5375_v40 = vpop.f32.mrb[135].mxu0  ;;  %v5384_v46 = vadd.f32 %v11927_v53, %v14709_v2  ;;  %v14847_v50 = vadd.f32 %v5381_v13, %v14508_v63 }
0x2535   : > { %v14842_v3 = vadd.f32 %v5373_v42, %v14494_v61  ;;  %v5376_v14 = vadd.f32 %v14709_v2, %v5375_v40 }
0x2536   : > { %v14855_v37 = vadd.f32 %v5384_v46, %v14511_v31  ;;  %v5465_v34 = vsel %vm365_vm1, %v14847_v50, 0.0  ;;  %v14868_v31 = vld [vmem:[%s16283_s2 + $0xd] ss:$0 sm:$0xff] }
0x2537   : > { %v14850_v12 = vadd.f32 %v5376_v14, %v14497_v5  ;;  %v5459_v17 = vsel %vm365_vm1, %v14842_v3, 0.0 }
0x2538   : > { %5460 = vadd.xlane.f32.xlu0 %v5459_v17  ;;  %v5468_v63 = vsel %vm365_vm1, %v14855_v37, 0.0 }
0x2539   : > { %v5462_v61 = vsel %vm365_vm1, %v14850_v12, 0.0 }
0x253a   : > { %5463 = vadd.xlane.f32.xlu1 %v5462_v61 }
0x253c   : > { %5466 = vadd.xlane.f32.xlu0 %v5465_v34 }
0x253e   : > { %5469 = vadd.xlane.f32.xlu1 %v5468_v63 }
0x25bd   : > { %v11930_v5 = vpop.f32.mrb[136].mxu0 }
0x25be   : > { %v14863_v26 = vpop.f32.mrb[132].mxu1  ;;  %v5388_v38 = vpop.f32.mrb[137].mxu0  ;;  %v5397_v59 = vadd.f32 %v11930_v5, %v14709_v2 }
0x25bf   : > { %v5709_v19 = vpop.f32.mrb[133].mxu1  ;;  %v5389_v52 = vadd.f32 %v14709_v2, %v5388_v38  ;;  %v11931_v9 = vpop.f32.mrb[138].mxu0 }
0x25c0   : > { %v14872_v24 = vpop.f32.mrb[134].mxu1  ;;  %v5391_v20 = vpop.f32.mrb[139].mxu0  ;;  %v5400_v45 = vadd.f32 %v11931_v9, %v14709_v2  ;;  %v5710_v28 = vadd.f32 %v14868_v31, %v5709_v19  ;;  %v14882_v16 = vadd.f32 %v5397_v59, %v14633_v4 }
0x25c1   : > { %v5712_v7 = vpop.f32.mrb[135].mxu1  ;;  %v14875_v54 = vadd.f32 %v5389_v52, %v14518_v0  ;;  %v5392_v36 = vadd.f32 %v14709_v2, %v5391_v20 }
0x25c2   : > { %v5713_v23 = vadd.f32 %v14868_v31, %v5712_v7  ;;  %v14892_v0 = vadd.f32 %v5400_v45, %v14652_v8 }
0x25c3   : > { %v14885_v10 = vadd.f32 %v5392_v36, %v14608_v43  ;;  %v5471_v51 = vsel %vm365_vm1, %v14875_v54, 0.0  ;;  %v5477_v43 = vsel %vm365_vm1, %v14882_v16, 0.0 }
0x25c4   : > { %v14889_v25 = vpack.c.bf16 %v5713_v23, %v5710_v28  ;;  %5472 = vadd.xlane.f32.xlu0 %v5471_v51  ;;  %v5480_v8 = vsel %vm365_vm1, %v14892_v0, 0.0 }
0x25c5   : > { %v5461_v2 = vpop.xlane.xlu0 %5460  ;;  %v5474_v18 = vsel %vm365_vm1, %v14885_v10, 0.0 }
0x25c6   : > { %v5487_v1 = vmul.f32 0.03125, %v5461_v2  ;;  %5475 = vadd.xlane.f32.xlu1 %v5474_v18 }
0x25c7   : > { %v5464_v4 = vpop.xlane.xlu1 %5463 }
0x25c8   : > { %v14899_v29 = vsub.f32 %v14842_v3, %v5487_v1  ;;  %v5488_v30 = vmul.f32 0.03125, %v5464_v4  ;;  %5478 = vadd.xlane.f32.xlu0 %v5477_v43 }
0x25c9   : > { %v5467_v58 = vpop.xlane.xlu0 %5466 }
0x25ca   : > { %v14904_v35 = vsub.f32 %v14850_v12, %v5488_v30  ;;  %v5489_v11 = vmul.f32 0.03125, %v5467_v58  ;;  %5481 = vadd.xlane.f32.xlu1 %v5480_v8  ;;  %v5511_v15 = vmul.f32 %v14899_v29, %v14899_v29 }
0x25cb   : > { %v5470_v60 = vpop.xlane.xlu1 %5469 }
0x25cc   : > { %v14909_v44 = vsub.f32 %v14847_v50, %v5489_v11  ;;  %v5490_v57 = vmul.f32 0.03125, %v5470_v60  ;;  %v5531_v39 = vsel %vm365_vm1, %v5511_v15, 0.0  ;;  %v5512_v33 = vmul.f32 %v14904_v35, %v14904_v35 }
0x25cd   : > { %5532 = vadd.xlane.f32.xlu0 %v5531_v39  ;;  %v5718_v39 = vadd.f32 %v14863_v26, %v14868_v31 }
0x25ce   : > { %v14915_v22 = vsub.f32 %v14855_v37, %v5490_v57  ;;  %v5534_v6 = vsel %vm365_vm1, %v5512_v33, 0.0  ;;  %v5513_v21 = vmul.f32 %v14909_v44, %v14909_v44 }
0x25cf   : > { %5535 = vadd.xlane.f32.xlu1 %v5534_v6 }
0x25d0   : > { %v5537_v55 = vsel %vm365_vm1, %v5513_v21, 0.0  ;;  %v5514_v13 = vmul.f32 %v14915_v22, %v14915_v22 }
0x25d1   : > { %5538 = vadd.xlane.f32.xlu0 %v5537_v55 }
0x25d2   : > { %v5540_v42 = vsel %vm365_vm1, %v5514_v13, 0.0 }
0x25d3   : > { %5541 = vadd.xlane.f32.xlu1 %v5540_v42  ;;  %v14953_v42 = vpack.c.bf16 %v5718_v39, %v5718_v39 }
0x2651   : > { %v5473_v53 = vpop.xlane.xlu0 %5472 }
0x2652   : > { %v5491_v46 = vmul.f32 0.03125, %v5473_v53 }
0x2653   : > { %v5476_v40 = vpop.xlane.xlu1 %5475 }
0x2654   : > { %v5492_v14 = vmul.f32 0.03125, %v5476_v40  ;;  %v14928_v5 = vsub.f32 %v14875_v54, %v5491_v46 }
0x2655   : > { %v5479_v17 = vpop.xlane.xlu0 %5478 }
0x2656   : > { %v14925_v61 = vsub.f32 %v14885_v10, %v5492_v14  ;;  %v5493_v34 = vmul.f32 0.03125, %v5479_v17  ;;  %v5515_v51 = vmul.f32 %v14928_v5, %v14928_v5 }
0x2657   : > { %v5482_v63 = vpop.xlane.xlu1 %5481 }
0x2658   : > { %v14931_v38 = vsub.f32 %v14882_v16, %v5493_v34  ;;  %v5494_v19 = vmul.f32 0.03125, %v5482_v63  ;;  %v5516_v59 = vmul.f32 %v14925_v61, %v14925_v61  ;;  %v5543_v8 = vsel %vm365_vm1, %v5515_v51, 0.0 }
0x265a   : > { %v14936_v52 = vsub.f32 %v14892_v0, %v5494_v19  ;;  %v5533_v9 = vpop.xlane.xlu0 %5532  ;;  %v5546_v20 = vsel %vm365_vm1, %v5516_v59, 0.0  ;;  %v5517_v7 = vmul.f32 %v14931_v38, %v14931_v38 }
0x265b   : > { %v5559_v45 = vmul.f32 0.03125, %v5533_v9  ;;  %5547 = vadd.xlane.f32.xlu1 %v5546_v20 }
0x265c   : > { %v5536_v36 = vpop.xlane.xlu1 %5535  ;;  %v5549_v28 = vsel %vm365_vm1, %v5517_v7, 0.0  ;;  %v5518_v23 = vmul.f32 %v14936_v52, %v14936_v52 }
0x265d   : > { %v5571_v2 = vadd.f32 1e-06, %v5559_v45  ;;  %v5560_v18 = vmul.f32 0.03125, %v5536_v36  ;;  %5550 = vadd.xlane.f32.xlu0 %v5549_v28 }
0x265e   : > { %v5539_v1 = vpop.xlane.xlu0 %5538  ;;  %v5552_v4 = vsel %vm365_vm1, %v5518_v23, 0.0 }
0x265f   : > { %12881 = vrsqrt.f32 %v5571_v2  ;;  %v5572_v43 = vadd.f32 1e-06, %v5560_v18  ;;  %v5561_v30 = vmul.f32 0.03125, %v5539_v1  ;;  %5553 = vadd.xlane.f32.xlu1 %v5552_v4 }
0x2660   : > { %v5542_v58 = vpop.xlane.xlu1 %5541 }
0x2661   : > { %12883 = vrsqrt.f32 %v5572_v43  ;;  %v5573_v11 = vadd.f32 1e-06, %v5561_v30  ;;  %v5562_v15 = vmul.f32 0.03125, %v5542_v58  ;;  %5544 = vadd.xlane.f32.xlu0 %v5543_v8 }
0x2663   : > { %12885 = vrsqrt.f32 %v5573_v11  ;;  %v5574_v60 = vadd.f32 1e-06, %v5562_v15 }
0x2665   : > { %12887 = vrsqrt.f32 %v5574_v60 }
0x2669   : > { %v12882_v57 = vpop.eup %12881 }
0x266a   : > { %v5595_v33 = vmul.f32 %v12882_v57, %v14899_v29 }
0x266b   : > { %v12884_v6 = vpop.eup %12883 }
0x266c   : > { %v5596_v21 = vmul.f32 %v12884_v6, %v14904_v35  ;;  %v5611_v55 = vmul.f32 %v14814_v47, %v5595_v33 }
0x266d   : > { %v12886_v13 = vpop.eup %12885 }
0x266e   : > { %v5612_v53 = vmul.f32 %v14814_v47, %v5596_v21  ;;  %v5597_v40 = vmul.f32 %v12886_v13, %v14909_v44  ;;  %v5627_v26 = vadd.f32 %v14822_v32, %v5611_v55 }
0x266f   : > { %v12888_v46 = vpop.eup %12887 }
0x2670   : > { %5762 = vrot.lane.b32.xlu1 %v14953_v42, %s13213_s6  ;;  %v5628_v29 = vadd.f32 %v14822_v32, %v5612_v53  ;;  %v5598_v14 = vmul.f32 %v12888_v46, %v14915_v22  ;;  %v5613_v35 = vmul.f32 %v14814_v47, %v5597_v40 }
0x2672   : > { %v5637_v17 = vpack.c.bf16 %v5628_v29, %v5627_v26  ;;  %v5614_v34 = vmul.f32 %v14814_v47, %v5598_v14  ;;  %v5629_v44 = vadd.f32 %v14822_v32, %v5613_v35 }
0x2674   : > { %11940 = vmatprep.mubr.msk.bf16.mxu1 %vm365_vm1, %v5637_v17  ;;  %5929 = vrot.lane.b32.xlu1 %v14889_v25, %s13214_s7  ;;  %v5630_v63 = vadd.f32 %v14822_v32, %v5614_v34  ;;  %v5721_v34 = vadd.f32 %v14872_v24, %v14868_v31 }
0x2676   : > { %v5638_v19 = vpack.c.bf16 %v5630_v63, %v5629_v44 }
0x2677   : > { %5760 = vrot.lane.b32.xlu0 %v14889_v25, %s13213_s6 }
0x2678   : > { %11941 = vmatmul.mubr.msk.bf16.gmra.mrb[136].mxu1 %vm365_vm1, %v5638_v19  ;;  %5931 = vrot.lane.b32.xlu1 %v14953_v42, %s13214_s7 }
0x267b   : > { %5925 = vrot.lane.b32.xlu0 %v14889_v25, %s13215_s8 }
0x267c   : > { %5927 = vrot.lane.b32.xlu1 %v14953_v42, %s13215_s8 }
0x26e8   : > { %v5548_v22 = vpop.xlane.xlu1 %5547 }
0x26e9   : > { %v5564_v59 = vmul.f32 0.03125, %v5548_v22 }
0x26ea   : > { %v5551_v9 = vpop.xlane.xlu0 %5550 }
0x26eb   : > { %v5576_v20 = vadd.f32 1e-06, %v5564_v59  ;;  %v5565_v7 = vmul.f32 0.03125, %v5551_v9 }
0x26ec   : > { %v5554_v45 = vpop.xlane.xlu1 %5553 }
0x26ed   : > { %12889 = vrsqrt.f32 %v5576_v20  ;;  %v5577_v36 = vadd.f32 1e-06, %v5565_v7  ;;  %v5566_v28 = vmul.f32 0.03125, %v5554_v45 }
0x26ee   : > { %v5545_v23 = vpop.xlane.xlu0 %5544 }
0x26ef   : > { %12891 = vrsqrt.f32 %v5577_v36  ;;  %v5578_v51 = vadd.f32 1e-06, %v5566_v28  ;;  %v5563_v2 = vmul.f32 0.03125, %v5545_v23 }
0x26f0   : > { %v5763_v43 = vpop.permute.xlu1 %5762 }
0x26f1   : > { %12893 = vrsqrt.f32 %v5578_v51  ;;  %v5575_v18 = vadd.f32 1e-06, %v5563_v2  ;;  %v5774_v15 = vsel %vm684_vm2, %v5763_v43, 0 }
0x26f2   : > { %v5761_v1 = vpop.permute.xlu0 %5760 }
0x26f3   : > { %12895 = vrsqrt.f32 %v5575_v18  ;;  %12480 = vmatprep.subr.msk.bf16.mxu1 %vm684_vm2, %v5761_v1  ;;  %v5771_v4 = vsel %vm684_vm2, %v5761_v1, 0 }
0x26f4   : > { %11949 = vmatpush3.bf16.xpose.msra.mxu1 %v5771_v4  ;;  %v5930_v57 = vpop.permute.xlu1 %5929 }
0x26f5   : > { %12481 = vmatprep.subr.msk.bf16.mxu1 %vm684_vm2, %v5763_v43 }
0x26f7   : > { %v12890_v30 = vpop.eup %12889 }
0x26f8   : > { %v5600_v8 = vmul.f32 %v12890_v30, %v14925_v61  ;;  %v5932_v29 = vpop.permute.xlu1 %5931 }
0x26f9   : > { %v12892_v58 = vpop.eup %12891 }
0x26fa   : > { %v5601_v60 = vmul.f32 %v12892_v58, %v14931_v38  ;;  %v5616_v21 = vmul.f32 %v14814_v47, %v5600_v8 }
0x26fb   : > { %v12894_v11 = vpop.eup %12893 }
0x26fc   : > { %11951 = vmatpush3.bf16.xpose.msra.mxu1 %v5774_v15  ;;  %v5602_v39 = vmul.f32 %v12894_v11, %v14936_v52  ;;  %v5617_v61 = vmul.f32 %v14814_v47, %v5601_v60  ;;  %v5632_v40 = vadd.f32 %v14822_v32, %v5616_v21  ;;  %v5928_v14 = vpop.permute.xlu1 %5927 }
0x26fd   : > { %v12896_v33 = vpop.eup %12895  ;;  %12483 = vmatprep.subr.msk.bf16.mxu1 %vm684_vm2, %v5930_v57 }
0x26fe   : > { %v5599_v6 = vmul.f32 %v12896_v33, %v14928_v5  ;;  %v5618_v55 = vmul.f32 %v14814_v47, %v5602_v39  ;;  %v5633_v52 = vadd.f32 %v14822_v32, %v5617_v61  ;;  %v5926_v5 = vpop.permute.xlu0 %5925 }
0x2700   : > { %v5615_v13 = vmul.f32 %v14814_v47, %v5599_v6  ;;  %v5634_v53 = vadd.f32 %v14822_v32, %v5618_v55  ;;  %v5940_v47 = vsel %vm684_vm2, %v5930_v57, 0 }
0x2702   : > { %v5631_v38 = vadd.f32 %v14822_v32, %v5615_v13  ;;  %v5640_v26 = vpack.c.bf16 %v5634_v53, %v5633_v52  ;;  %v5943_v32 = vsel %vm684_vm2, %v5932_v29, 0 }
0x2704   : > { %v5639_v46 = vpack.c.bf16 %v5632_v40, %v5631_v38 }
0x2706   : > { %11944 = vmatprep.mubr.msk.bf16.mxu1 %vm365_vm1, %v5639_v46 }
0x2707   : > { %11945 = vmatmul.mubr.msk.bf16.gmra.mrb[140].mxu1 %vm365_vm1, %v5640_v26 }
0x2708   : > { %11952 = vmatprep.mubr.msk.bf16.mxu1 %vm684_vm2, %v14889_v25 }
0x270f   : > { %11953 = vmatmul.mubr.msk.bf16.vlgmr.msra.gmra.mrb[144].mxu1 %vm684_vm2, %v14953_v42 }
0x2710   : > { %11965 = vmatpush3.bf16.xpose.msra.mxu1 %v5940_v47  ;;  %11968 = vmatprep.mubr.msk.bf16.mxu1 %vm684_vm2, %v5926_v5 }
0x2711   : > { %12484 = vmatprep.subr.msk.bf16.mxu1 %vm684_vm2, %v5932_v29 }
0x2718   : > { %11967 = vmatpush3.bf16.xpose.msra.mxu1 %v5943_v32 }
0x2719   : > { %11991 = vmatprep.subr.mxu1 %v13220_v27 }
0x271f   : > { %11969 = vmatmul.mubr.msk.bf16.vlgmr.msra.gmra.mrb[148].mxu1 %vm684_vm2, %v5928_v14 }
0x2720   : > { %11993 = vmatprep.mubr.msk.f32.mxu1 %vm13221_vm6, %v13220_v27 }
0x274b   : > { %v11942_v35 = vpop.f32.mrb[136].mxu1 }
0x274c   : > { %v5725_v17 = vpop.f32.mrb[137].mxu1  ;;  %v5734_v19 = vadd.f32 %v11942_v35, %v14868_v31 }
0x274d   : > { %v5726_v44 = vadd.f32 %v14868_v31, %v5725_v17  ;;  %v11943_v63 = vpop.f32.mrb[138].mxu1 }
0x274e   : > { %v5737_v22 = vadd.f32 %v11943_v63, %v14868_v31  ;;  %v15014_v59 = vpop.f32.mrb[139].mxu1 }
0x274f   : > { %v15016_v9 = vpack.c.bf16 %v5726_v44, %v5721_v34 }
0x2750   : > { %v15018_v20 = vpack.c.bf16 %v5737_v22, %v5734_v19 }
0x27da   : > { %v11946_v7 = vpop.f32.mrb[140].mxu1 }
0x27db   : > { %v15020_v45 = vpop.f32.mrb[141].mxu1  ;;  %v5750_v24 = vadd.f32 %v11946_v7, %v14868_v31 }
0x27dc   : > { %v15022_v36 = vpop.f32.mrb[142].mxu1 }
0x27dd   : > { %v5744_v28 = vpop.f32.mrb[143].mxu1 }
0x27de   : > { %v5745_v23 = vadd.f32 %v14868_v31, %v5744_v28 }
0x27e0   : > { %v15026_v51 = vpack.c.bf16 %v5750_v24, %v5745_v23 }
0x27e2   : > { %v11954_v2 = vpop.f32.mrb[144].mxu1 }
0x27e3   : > { %v5810_v18 = vpop.f32.mrb[145].mxu1  ;;  %v5826_v58 = vsel %vm332_vm3, %v11954_v2, -1e+30 }
0x27e4   : > { %v5824_v1 = vsel %vm332_vm3, %v5810_v18, -1e+30  ;;  %v11955_v4 = vpop.f32.mrb[146].mxu1  ;;  %v5833_v15 = vsel %vm748_vm4, %v5826_v58, -inf }
0x27e5   : > { %v5827_v43 = vsel %vm748_vm4, %v5824_v1, -inf  ;;  %v5813_v30 = vpop.f32.mrb[147].mxu1 }
0x27e6   : > { %v5825_v8 = vsel %vm332_vm3, %v5813_v30, -1e+30  ;;  %5828 = vmax.xlane.f32.xlu0 %v5827_v43 }
0x27e7   : > { %v5830_v11 = vsel %vm748_vm4, %v5825_v8, -inf }
0x27e8   : > { %5831 = vmax.xlane.f32.xlu1 %v5830_v11 }
0x27ea   : > { %5834 = vmax.xlane.f32.xlu0 %v5833_v15 }
0x27f2   : > { %v11970_v60 = vpop.f32.mrb[148].mxu1 }
0x27f3   : > { %v5995_v57 = vsel %vm332_vm3, %v11970_v60, -1e+30  ;;  %v5979_v39 = vpop.f32.mrb[149].mxu1 }
0x27f4   : > { %v6002_v33 = vsel %vm748_vm4, %v5995_v57, -inf  ;;  %v5993_v6 = vsel %vm332_vm3, %v5979_v39, -1e+30  ;;  %v11971_v21 = vpop.f32.mrb[150].mxu1 }
0x27f5   : > { %v5996_v55 = vsel %vm748_vm4, %v5993_v6, -inf  ;;  %6003 = vmax.xlane.f32.xlu1 %v6002_v33  ;;  %v5982_v61 = vpop.f32.mrb[151].mxu1 }
0x27f6   : > { %v5994_v13 = vsel %vm332_vm3, %v5982_v61, -1e+30  ;;  %5997 = vmax.xlane.f32.xlu0 %v5996_v55 }
0x27f7   : > { %v5999_v53 = vsel %vm748_vm4, %v5994_v13, -inf }
0x27fa   : > { %6000 = vmax.xlane.f32.xlu0 %v5999_v53 }
0x2873   : > { %v5829_v38 = vpop.xlane.xlu0 %5828 }
0x2874   : > { %v5836_v52 = vsub.f32 %v5824_v1, %v5829_v38 }
0x2875   : > { %v5832_v40 = vpop.xlane.xlu1 %5831 }
0x2876   : > { %v5837_v46 = vsub.f32 %v5825_v8, %v5832_v40  ;;  %v5839_v29 = vmul.f32 1.442695, %v5836_v52 }
0x2877   : > { %v5835_v26 = vpop.xlane.xlu0 %5834 }
0x2878   : > { %v5841_v5 = vmul.f32 1.442695, %v5837_v46  ;;  %v5838_v47 = vsub.f32 %v5826_v58, %v5835_v26 }
0x287a   : > { %12897 = vpow2.f32 %v5841_v5  ;;  %v5843_v32 = vmul.f32 1.442695, %v5838_v47 }
0x287c   : > { %12899 = vpow2.f32 %v5843_v32 }
0x287d   : > { %12901 = vpow2.f32 %v5839_v29 }
0x2882   : > { %v6004_v14 = vpop.xlane.xlu1 %6003 }
0x2883   : > { %v6007_v35 = vsub.f32 %v5995_v57, %v6004_v14  ;;  %v5998_v17 = vpop.xlane.xlu0 %5997 }
0x2884   : > { %v12898_v34 = vpop.eup %12897  ;;  %v6005_v44 = vsub.f32 %v5993_v6, %v5998_v17 }
0x2885   : > { %v6012_v63 = vmul.f32 1.442695, %v6007_v35  ;;  %v5848_v19 = vsel %vm748_vm4, %v12898_v34, 0.0 }
0x2886   : > { %v12900_v22 = vpop.eup %12899  ;;  %v6008_v7 = vmul.f32 1.442695, %v6005_v44  ;;  %5849 = vadd.xlane.f32.xlu1 %v5848_v19 }
0x2887   : > { %12903 = vpow2.f32 %v6012_v63  ;;  %v6001_v28 = vpop.xlane.xlu0 %6000  ;;  %v5851_v24 = vsel %vm748_vm4, %v12900_v22, 0.0  ;;  %v12902_v23 = vpop.eup %12901 }
0x2888   : > { %v6006_v2 = vsub.f32 %v5994_v13, %v6001_v28  ;;  %5852 = vadd.xlane.f32.xlu0 %v5851_v24  ;;  %12905 = vpow2.f32 %v6008_v7  ;;  %v5845_v1 = vsel %vm748_vm4, %v12902_v23, 0.0  ;;  %v15087_v7 = vld [vmem:[%s16283_s2 + $0x40] sm:$0xff]  ;;  %v15097_v24 = vld [vmem:[%s16283_s2 + $0x38] sm:$0xff] }
0x2889   : > { %11992 = vmatpush3.msra.mxu1 %v15097_v24 }
0x288a   : > { %v6010_v18 = vmul.f32 1.442695, %v6006_v2 }
0x288c   : > { %12907 = vpow2.f32 %v6010_v18  ;;  %5846 = vadd.xlane.f32.xlu0 %v5845_v1 }
0x2891   : > { %v12904_v4 = vpop.eup %12903 }
0x2892   : > { %v6020_v43 = vsel %vm748_vm4, %v12904_v4, 0.0  ;;  %v12906_v30 = vpop.eup %12905 }
0x2893   : > { %6021 = vadd.xlane.f32.xlu1 %v6020_v43  ;;  %v6014_v8 = vsel %vm748_vm4, %v12906_v30, 0.0 }
0x2896   : > { %v12908_v58 = vpop.eup %12907 }
0x2897   : > { %6015 = vadd.xlane.f32.xlu1 %v6014_v8  ;;  %v6017_v11 = vsel %vm748_vm4, %v12908_v58, 0.0 }
0x2898   : > { %6018 = vadd.xlane.f32.xlu0 %v6017_v11 }
0x28a8   : > { %5864 = vrot.lane.b32.xlu1 %v14953_v42, %s13216_s9 }
0x28ac   : > { %6031 = vrot.lane.b32.xlu1 %v14889_v25, %s13217_s10 }
0x28ae   : > { %5862 = vrot.lane.b32.xlu0 %v14889_v25, %s13216_s9 }
0x28b0   : > { %6033 = vrot.lane.b32.xlu1 %v14953_v42, %s13217_s10 }
0x28b2   : > { %6276 = vrot.lane.b32.xlu0 %v14889_v25, %s13218_s11 }
0x28b4   : > { %6278 = vrot.lane.b32.xlu1 %v14953_v42, %s13218_s11 }
0x28b6   : > { %6272 = vrot.lane.b32.xlu0 %v14889_v25, %s13219_s17 }
0x28b8   : > { %6274 = vrot.lane.b32.xlu1 %v14953_v42, %s13219_s17 }
0x28ba   : > { %6537 = vrot.lane.b32.xlu0 %v14889_v25, %s13223_s27 }
0x28bc   : > { %6539 = vrot.lane.b32.xlu1 %v14953_v42, %s13223_s27 }
0x28be   : > { %6533 = vrot.lane.b32.xlu0 %v14889_v25, %s13224_s28 }
0x28c0   : > { %6535 = vrot.lane.b32.xlu1 %v14953_v42, %s13224_s28 }
0x2913   : > { %v5850_v15 = vpop.xlane.xlu1 %5849 }
0x2914   : > { %12909 = vrcp.f32 %v5850_v15 }
0x2915   : > { %v5853_v60 = vpop.xlane.xlu0 %5852 }
0x2919   : > { %v5847_v57 = vpop.xlane.xlu0 %5846 }
0x291a   : > { %12911 = vrcp.f32 %v5847_v57 }
0x291b   : > { %12913 = vrcp.f32 %v5853_v60 }
0x291e   : > { %v12910_v33 = vpop.eup %12909 }
0x291f   : > { %v5858_v13 = vmul.f32 %v12910_v33, %v12898_v34 }
0x2920   : > { %v6022_v39 = vpop.xlane.xlu1 %6021 }
0x2924   : > { %v12912_v6 = vpop.eup %12911  ;;  %v6016_v21 = vpop.xlane.xlu1 %6015 }
0x2925   : > { %12915 = vrcp.f32 %v6016_v21  ;;  %v6019_v55 = vpop.xlane.xlu0 %6018  ;;  %v5857_v61 = vmul.f32 %v12912_v6, %v12902_v23  ;;  %v12914_v40 = vpop.eup %12913 }
0x2926   : > { %12917 = vrcp.f32 %v6019_v55  ;;  %v5859_v46 = vmul.f32 %v12914_v40, %v12900_v22 }
0x2927   : > { %12919 = vrcp.f32 %v6022_v39  ;;  %v5860_v53 = vpack.c.bf16 %v5858_v13, %v5857_v61 }
0x2928   : > { %v5865_v38 = vpop.permute.xlu1 %5864  ;;  %v5861_v32 = vpack.c.bf16 %v5859_v46, %v5859_v46 }
0x2929   : > { %v5863_v52 = vpop.permute.xlu0 %5862  ;;  %11960 = vmatprep.mubr.msk.bf16.mxu0 %vm748_vm4, %v5860_v53  ;;  %v5874_v5 = vsel %vm795_vm5, %v5865_v38, 0 }
0x292a   : > { %11956 = vmatprep.subr.bf16.mxu0 %v5863_v52 }
0x292b   : > { %11957 = vmatpush3.bf16.msra.mxu0 %v5863_v52 }
0x292c   : > { %12482 = vmatprep.subr.msk.bf16.mxu0 %vm795_vm5, %v5865_v38  ;;  %v6032_v26 = vpop.permute.xlu1 %6031 }
0x292d   : > { %v6277_v28 = vpop.permute.xlu0 %6276 }
0x292f   : > { %v12916_v47 = vpop.eup %12915  ;;  %11959 = vmatpush3.bf16.msra.mxu0 %v5874_v5 }
0x2930   : > { %v12918_v29 = vpop.eup %12917  ;;  %11972 = vmatprep.subr.bf16.mxu0 %v6032_v26  ;;  %v6026_v14 = vmul.f32 %v12916_v47, %v12906_v30  ;;  %v6034_v34 = vpop.permute.xlu1 %6033 }
0x2931   : > { %v12920_v35 = vpop.eup %12919  ;;  %v6027_v17 = vmul.f32 %v12918_v29, %v12908_v58  ;;  %v6043_v19 = vsel %vm795_vm5, %v6034_v34, 0  ;;  %v6287_v58 = vsel %vm684_vm2, %v6277_v28, 0  ;;  %v6273_v15 = vpop.permute.xlu0 %6272 }
0x2932   : > { %11961 = vmatmul.mubr.msk.bf16.vlgmr.msra.gmra.mrb[140].mxu0 %vm748_vm4, %v5861_v32  ;;  %v6028_v63 = vmul.f32 %v12920_v35, %v12904_v4 }
0x2933   : > { %11973 = vmatpush3.bf16.msra.mxu0 %v6032_v26  ;;  %v6029_v44 = vpack.c.bf16 %v6027_v17, %v6026_v14 }
0x2934   : > { %12485 = vmatprep.subr.msk.bf16.mxu0 %vm795_vm5, %v6034_v34  ;;  %v6030_v22 = vpack.c.bf16 %v6028_v63, %v6028_v63  ;;  %v6279_v8 = vpop.permute.xlu1 %6278 }
0x2935   : > { %11976 = vmatprep.mubr.msk.bf16.mxu0 %vm748_vm4, %v6029_v44  ;;  %v6290_v60 = vsel %vm684_vm2, %v6279_v8, 0  ;;  %v6538_v57 = vpop.permute.xlu0 %6537 }
0x2936   : > { %v6548_v6 = vsel %vm684_vm2, %v6538_v57, 0 }
0x2937   : > { %11975 = vmatpush3.bf16.msra.mxu0 %v6043_v19 }
0x2938   : > { %11980 = vmatprep.subr.mxu0 %v13220_v27  ;;  %v6275_v39 = vpop.permute.xlu1 %6274 }
0x2939   : > { %v6534_v33 = vpop.permute.xlu0 %6533 }
0x293a   : > { %11977 = vmatmul.mubr.msk.bf16.vlgmr.msra.gmra.mrb[144].mxu0 %vm748_vm4, %v6030_v22 }
0x293b   : > { %11981 = vmatpush3.msra.mxu0 %v15087_v7  ;;  %11982 = vmatprep.mubr.msk.f32.mxu0 %vm13221_vm6, %v13220_v27 }
0x293c   : > { %12486 = vmatprep.subr.msk.bf16.mxu0 %vm684_vm2, %v6277_v28  ;;  %v6540_v21 = vpop.permute.xlu1 %6539 }
0x293d   : > { %v6551_v55 = vsel %vm684_vm2, %v6540_v21, 0 }
0x2940   : > { %v6536_v61 = vpop.permute.xlu1 %6535 }
0x2a05   : > { %v11962_v23 = vpop.f32.mrb[140].mxu0 }
0x2a06   : > { %v5910_v2 = vpop.f32.mrb[141].mxu0 }
0x2a07   : > { %v11963_v18 = vpop.f32.mrb[142].mxu0  ;;  %11994 = vmatmul.mubr.msk.f32.vlgmr.msra.gmra.mrb[152].mxu1 %vm684_vm2, %v5910_v2 }
0x2a08   : > { %v5913_v1 = vpop.f32.mrb[143].mxu0  ;;  %11996 = vmatprep.mubr.msk.f32.mxu1 %vm13221_vm6, %v13220_v27 }
0x2a0b   : > { %11997 = vmatmul.mubr.msk.f32.gmra.mrb[154].mxu1 %vm684_vm2, %v5913_v1 }
0x2a0c   : > { %11999 = vmatprep.mubr.msk.f32.mxu1 %vm13221_vm6, %v13220_v27 }
0x2a0d   : > { %v11978_v4 = vpop.f32.mrb[144].mxu0 }
0x2a0e   : > { %v6079_v43 = vpop.f32.mrb[145].mxu0 }
0x2a0f   : > { %v11979_v30 = vpop.f32.mrb[146].mxu0  ;;  %11983 = vmatmul.mubr.msk.f32.vlgmr.msra.gmra.mrb[148].mxu0 %vm684_vm2, %v6079_v43  ;;  %12000 = vmatmul.mubr.msk.f32.gmra.mrb[156].mxu1 %vm684_vm2, %v11962_v23 }
0x2a10   : > { %12003 = vmatpush3.bf16.xpose.msra.mxu0 %v6287_v58  ;;  %v6082_v11 = vpop.f32.mrb[147].mxu0  ;;  %11985 = vmatprep.mubr.msk.f32.mxu0 %vm13221_vm6, %v13220_v27 }
0x2a11   : > { %12487 = vmatprep.subr.msk.bf16.mxu0 %vm684_vm2, %v6279_v8 }
0x2a13   : > { %11986 = vmatmul.mubr.msk.f32.gmra.mrb[150].mxu0 %vm684_vm2, %v6082_v11 }
0x2a14   : > { %11988 = vmatprep.mubr.msk.f32.mxu0 %vm13221_vm6, %v13220_v27 }
0x2a17   : > { %11989 = vmatmul.mubr.msk.f32.gmra.mrb[152].mxu0 %vm684_vm2, %v11978_v4 }
0x2a18   : > { %12005 = vmatpush3.bf16.xpose.msra.mxu0 %v6290_v60  ;;  %12006 = vmatprep.mubr.msk.bf16.mxu0 %vm684_vm2, %v6273_v15 }
0x2a19   : > { %12489 = vmatprep.subr.msk.bf16.mxu0 %vm684_vm2, %v6538_v57 }
0x2a1f   : > { %12007 = vmatmul.mubr.msk.bf16.vlgmr.msra.gmra.mrb[156].mxu0 %vm684_vm2, %v6275_v39 }
0x2a20   : > { %12030 = vmatpush3.bf16.xpose.msra.mxu0 %v6548_v6  ;;  %12033 = vmatprep.mubr.msk.bf16.mxu0 %vm684_vm2, %v6534_v33 }
0x2a21   : > { %12490 = vmatprep.subr.msk.bf16.mxu0 %vm684_vm2, %v6540_v21 }
0x2a28   : > { %12032 = vmatpush3.bf16.xpose.msra.mxu0 %v6551_v55 }
0x2a29   : > { %12045 = vmatprep.subr.mxu0 %v13220_v27 }
0x2a2f   : > { %12034 = vmatmul.mubr.msk.bf16.vlgmr.msra.gmra.mrb[160].mxu0 %vm684_vm2, %v6536_v61 }
0x2a30   : > { %12047 = vmatprep.mubr.msk.f32.mxu0 %vm13221_vm6, %v13220_v27 }
0x2ada   : > { %v6258_v13 = vpop.f32.mrb[152].mxu1 }
0x2adb   : > { %v11995_v53 = vpop.f32.mrb[153].mxu1 }
0x2ade   : > { %v6263_v38 = vpop.f32.mrb[154].mxu1 }
0x2adf   : > { %v11998_v40 = vpop.f32.mrb[155].mxu1 }
0x2ae2   : > { %v6169_v52 = vpop.f32.mrb[148].mxu0  ;;  %v6268_v46 = vpop.f32.mrb[156].mxu1 }
0x2ae3   : > { %v15128_v26 = vadd.f32 %v6258_v13, %v6169_v52  ;;  %v11984_v5 = vpop.f32.mrb[149].mxu0  ;;  %v12001_v47 = vpop.f32.mrb[157].mxu1 }
0x2ae6   : > { %v6174_v29 = vpop.f32.mrb[150].mxu0 }
0x2ae7   : > { %v15130_v32 = vadd.f32 %v6263_v38, %v6174_v29  ;;  %v11987_v14 = vpop.f32.mrb[151].mxu0 }
0x2aea   : > { %v6179_v35 = vpop.f32.mrb[152].mxu0 }
0x2aeb   : > { %v15132_v17 = vadd.f32 %v6268_v46, %v6179_v35  ;;  %v11990_v34 = vpop.f32.mrb[153].mxu0 }
0x2af2   : > { %v12008_v44 = vpop.f32.mrb[156].mxu0 }
0x2af3   : > { %v6326_v63 = vpop.f32.mrb[157].mxu0  ;;  %v6342_v2 = vsel %vm332_vm3, %v12008_v44, -1e+30 }
0x2af4   : > { %v6340_v19 = vsel %vm332_vm3, %v6326_v63, -1e+30  ;;  %v12009_v22 = vpop.f32.mrb[158].mxu0  ;;  %v6349_v4 = vsel %vm748_vm4, %v6342_v2, -inf }
0x2af5   : > { %v6343_v28 = vsel %vm748_vm4, %v6340_v19, -inf  ;;  %v6329_v23 = vpop.f32.mrb[159].mxu0 }
0x2af6   : > { %v6341_v18 = vsel %vm332_vm3, %v6329_v23, -1e+30  ;;  %6344 = vmax.xlane.f32.xlu0 %v6343_v28 }
0x2af7   : > { %v6346_v1 = vsel %vm748_vm4, %v6341_v18, -inf }
0x2af8   : > { %6347 = vmax.xlane.f32.xlu1 %v6346_v1 }
0x2afa   : > { %6350 = vmax.xlane.f32.xlu0 %v6349_v4 }
0x2b02   : > { %v12035_v43 = vpop.f32.mrb[160].mxu0 }
0x2b03   : > { %v6587_v30 = vpop.f32.mrb[161].mxu0  ;;  %v6603_v14 = vsel %vm332_vm3, %v12035_v43, -1e+30 }
0x2b04   : > { %v12036_v58 = vpop.f32.mrb[162].mxu0  ;;  %v6601_v46 = vsel %vm332_vm3, %v6587_v30, -1e+30  ;;  %v6610_v35 = vsel %vm748_vm4, %v6603_v14, -inf }
0x2b05   : > { %v6590_v8 = vpop.f32.mrb[163].mxu0  ;;  %v6604_v47 = vsel %vm748_vm4, %v6601_v46, -inf }
0x2b06   : > { %v6602_v5 = vsel %vm332_vm3, %v6590_v8, -1e+30 }
0x2b07   : > { %v6607_v29 = vsel %vm748_vm4, %v6602_v5, -inf }
0x2b83   : > { %v6345_v11 = vpop.xlane.xlu0 %6344 }
0x2b84   : > { %v6352_v15 = vsub.f32 %v6340_v19, %v6345_v11 }
0x2b85   : > { %v6348_v60 = vpop.xlane.xlu1 %6347 }
0x2b86   : > { %v6355_v57 = vmul.f32 1.442695, %v6352_v15  ;;  %v6353_v39 = vsub.f32 %v6341_v18, %v6348_v60 }
0x2b87   : > { %v6351_v33 = vpop.xlane.xlu0 %6350 }
0x2b88   : > { %12921 = vpow2.f32 %v6355_v57  ;;  %v6357_v6 = vmul.f32 1.442695, %v6353_v39  ;;  %v6354_v21 = vsub.f32 %v6342_v2, %v6351_v33 }
0x2b8a   : > { %12923 = vpow2.f32 %v6357_v6  ;;  %v6359_v55 = vmul.f32 1.442695, %v6354_v21 }
0x2b8c   : > { %12925 = vpow2.f32 %v6359_v55 }
0x2b92   : > { %v12922_v61 = vpop.eup %12921 }
0x2b93   : > { %v6361_v13 = vsel %vm748_vm4, %v12922_v61, 0.0 }
0x2b94   : > { %v12924_v53 = vpop.eup %12923  ;;  %6362 = vadd.xlane.f32.xlu0 %v6361_v13 }
0x2b95   : > { %v6364_v52 = vsel %vm748_vm4, %v12924_v53, 0.0 }
0x2b96   : > { %v12926_v38 = vpop.eup %12925 }
0x2b97   : > { %v6367_v40 = vsel %vm748_vm4, %v12926_v38, 0.0 }
0x2b98   : > { %6368 = vadd.xlane.f32.xlu1 %v6367_v40  ;;  %6365 = vadd.xlane.f32.xlu0 %v6364_v52  ;;  %v15172_v52 = vld [vmem:[%s16283_s2 + $0x48] sm:$0xff] }
0x2ba9   : > { %6380 = vrot.lane.b32.xlu1 %v14953_v42, %s13222_s26 }
0x2bae   : > { %6378 = vrot.lane.b32.xlu0 %v14889_v25, %s13222_s26 }
0x2bcd   : > { %6605 = vmax.xlane.f32.xlu1 %v6604_v47  ;;  %6608 = vmax.xlane.f32.xlu0 %v6607_v29 }
0x2bd1   : > { %6611 = vmax.xlane.f32.xlu0 %v6610_v35 }
0x2c21   : > { %v6363_v34 = vpop.xlane.xlu0 %6362 }
0x2c22   : > { %12927 = vrcp.f32 %v6363_v34 }
0x2c25   : > { %v6366_v44 = vpop.xlane.xlu0 %6365  ;;  %v6369_v63 = vpop.xlane.xlu1 %6368 }
0x2c26   : > { %12929 = vrcp.f32 %v6366_v44 }
0x2c27   : > { %12931 = vrcp.f32 %v6369_v63 }
0x2c29   : > { %v6379_v19 = vpop.permute.xlu0 %6378  ;;  %v6381_v22 = vpop.permute.xlu1 %6380 }
0x2c2a   : > { %12010 = vmatprep.subr.bf16.mxu1 %v6379_v19  ;;  %v6390_v23 = vsel %vm795_vm5, %v6381_v22, 0 }
0x2c2b   : > { %12011 = vmatpush3.bf16.msra.mxu1 %v6379_v19 }
0x2c2c   : > { %12488 = vmatprep.subr.msk.bf16.mxu1 %vm795_vm5, %v6381_v22  ;;  %v12928_v28 = vpop.eup %12927 }
0x2c2d   : > { %v6373_v1 = vmul.f32 %v12928_v28, %v12922_v61 }
0x2c2f   : > { %12013 = vmatpush3.bf16.msra.mxu1 %v6390_v23 }
0x2c30   : > { %v12930_v2 = vpop.eup %12929  ;;  %12018 = vmatprep.subr.mxu1 %v13220_v27 }
0x2c31   : > { %v12932_v18 = vpop.eup %12931  ;;  %v6374_v4 = vmul.f32 %v12930_v2, %v12924_v53 }
0x2c32   : > { %v6375_v43 = vmul.f32 %v12932_v18, %v12926_v38 }
0x2c33   : > { %v6376_v30 = vpack.c.bf16 %v6374_v4, %v6373_v1 }
0x2c34   : > { %v6377_v58 = vpack.c.bf16 %v6375_v43, %v6375_v43 }
0x2c35   : > { %12014 = vmatprep.mubr.msk.bf16.mxu1 %vm748_vm4, %v6376_v30 }
0x2c36   : > { %12015 = vmatmul.mubr.msk.bf16.vlgmr.msra.gmra.mrb[160].mxu1 %vm748_vm4, %v6377_v58 }
0x2c37   : > { %12020 = vmatprep.mubr.msk.f32.mxu1 %vm13221_vm6, %v13220_v27  ;;  %12019 = vmatpush3.msra.mxu1 %v15172_v52 }
0x2c5a   : > { %v6609_v8 = vpop.xlane.xlu0 %6608  ;;  %v6606_v11 = vpop.xlane.xlu1 %6605 }
0x2c5b   : > { %v6614_v15 = vsub.f32 %v6602_v5, %v6609_v8  ;;  %v6613_v57 = vsub.f32 %v6601_v46, %v6606_v11  ;;  %v5729_v46 = vadd.f32 %v14868_v31, %v15014_v59 }
0x2c5d   : > { %v6618_v60 = vmul.f32 1.442695, %v6614_v15  ;;  %v6616_v6 = vmul.f32 1.442695, %v6613_v57  ;;  %v15187_v5 = vpack.c.bf16 %v5729_v46, %v5729_v46 }
0x2c5e   : > { %v6612_v39 = vpop.xlane.xlu0 %6611 }
0x2c5f   : > { %12933 = vpow2.f32 %v6618_v60  ;;  %v6615_v33 = vsub.f32 %v6603_v14, %v6612_v39 }
0x2c61   : > { %v6620_v21 = vmul.f32 1.442695, %v6615_v33  ;;  %v15227_v33 = vld [vmem:[%s16283_s2 + $0x50] sm:$0xff] }
0x2c62   : > { %12046 = vmatpush3.msra.mxu0 %v15227_v33 }
0x2c63   : > { %12935 = vpow2.f32 %v6620_v21 }
0x2c64   : > { %12937 = vpow2.f32 %v6616_v6 }
0x2c69   : > { %v12934_v55 = vpop.eup %12933 }
0x2c6a   : > { %v6625_v61 = vsel %vm748_vm4, %v12934_v55, 0.0 }
0x2c6b   : > { %6626 = vadd.xlane.f32.xlu0 %v6625_v61 }
0x2c6d   : > { %v12936_v13 = vpop.eup %12935 }
0x2c6e   : > { %v6628_v53 = vsel %vm748_vm4, %v12936_v13, 0.0  ;;  %v12938_v38 = vpop.eup %12937 }
0x2c6f   : > { %6629 = vadd.xlane.f32.xlu1 %v6628_v53  ;;  %v6622_v40 = vsel %vm748_vm4, %v12938_v38, 0.0 }
0x2c73   : > { %6623 = vadd.xlane.f32.xlu1 %v6622_v40 }
0x2c81   : > { %6639 = vrot.lane.b32.xlu0 %v14889_v25, %s16289_s29 }
0x2c84   : > { %6641 = vrot.lane.b32.xlu1 %v14953_v42, %s16289_s29 }
0x2c85   : > { %6966 = vrot.lane.b32.xlu0 %v15016_v9, %s13214_s7 }
0x2c88   : > { %6798 = vrot.lane.b32.xlu1 %v15016_v9, %s13213_s6 }
0x2c89   : > { %6962 = vrot.lane.b32.xlu0 %v15016_v9, %s13215_s8 }
0x2c8c   : > { %6800 = vrot.lane.b32.xlu1 %v15187_v5, %s13213_s6 }
0x2c90   : > { %6968 = vrot.lane.b32.xlu1 %v15187_v5, %s13214_s7 }
0x2c94   : > { %6964 = vrot.lane.b32.xlu1 %v15187_v5, %s13215_s8 }
0x2cf8   : > { %v6627_v25 = vpop.xlane.xlu0 %6626 }
0x2cfc   : > { %v6640_v42 = vpop.permute.xlu0 %6639  ;;  %v6630_v31 = vpop.xlane.xlu1 %6629 }
0x2cfd   : > { %12037 = vmatprep.subr.bf16.mxu1 %v6640_v42 }
0x2d00   : > { %v6624_v59 = vpop.xlane.xlu1 %6623  ;;  %v6967_v8 = vpop.permute.xlu0 %6966 }
0x2d01   : > { %12939 = vrcp.f32 %v6624_v59  ;;  %v6977_v15 = vsel %vm684_vm2, %v6967_v8, 0 }
0x2d02   : > { %12941 = vrcp.f32 %v6627_v25 }
0x2d03   : > { %12943 = vrcp.f32 %v6630_v31 }
0x2d04   : > { %v6642_v29 = vpop.permute.xlu1 %6641  ;;  %v6963_v11 = vpop.permute.xlu0 %6962 }
0x2d05   : > { %v6651_v28 = vsel %vm795_vm5, %v6642_v29, 0 }
0x2d08   : > { %v6799_v23 = vpop.permute.xlu1 %6798 }
0x2d09   : > { %v12016_v47 = vpop.f32.mrb[160].mxu1  ;;  %v6809_v43 = vsel %vm684_vm2, %v6799_v23, 0 }
0x2d0a   : > { %v6426_v14 = vpop.f32.mrb[161].mxu1 }
0x2d0b   : > { %v12940_v35 = vpop.eup %12939  ;;  %v12017_v34 = vpop.f32.mrb[162].mxu1  ;;  %12021 = vmatmul.mubr.msk.f32.vlgmr.msra.gmra.mrb[158].mxu1 %vm684_vm2, %v6426_v14 }
0x2d0c   : > { %12038 = vmatpush3.bf16.msra.mxu1 %v6640_v42  ;;  %v6429_v44 = vpop.f32.mrb[163].mxu1  ;;  %12023 = vmatprep.mubr.msk.f32.mxu1 %vm13221_vm6, %v13220_v27  ;;  %v12942_v63 = vpop.eup %12941  ;;  %v6634_v22 = vmul.f32 %v12940_v35, %v12938_v38 }
0x2d0d   : > { %12491 = vmatprep.subr.msk.bf16.mxu1 %vm795_vm5, %v6642_v29  ;;  %v12944_v19 = vpop.eup %12943  ;;  %v6635_v2 = vmul.f32 %v12942_v63, %v12934_v55  ;;  %v6801_v30 = vpop.permute.xlu1 %6800 }
0x2d0e   : > { %v6636_v18 = vmul.f32 %v12944_v19, %v12936_v13  ;;  %v6812_v58 = vsel %vm684_vm2, %v6801_v30, 0 }
0x2d0f   : > { %12024 = vmatmul.mubr.msk.f32.gmra.mrb[164].mxu1 %vm684_vm2, %v6429_v44  ;;  %v6637_v1 = vpack.c.bf16 %v6635_v2, %v6634_v22 }
0x2d10   : > { %12040 = vmatpush3.bf16.msra.mxu1 %v6651_v28  ;;  %12026 = vmatprep.mubr.msk.f32.mxu1 %vm13221_vm6, %v13220_v27  ;;  %v6638_v4 = vpack.c.bf16 %v6636_v18, %v6636_v18 }
0x2d11   : > { %12492 = vmatprep.subr.msk.bf16.mxu1 %vm684_vm2, %v6799_v23  ;;  %v6969_v60 = vpop.permute.xlu1 %6968 }
0x2d12   : > { %v6980_v57 = vsel %vm684_vm2, %v6969_v60, 0 }
0x2d13   : > { %12027 = vmatmul.mubr.msk.f32.gmra.mrb[166].mxu1 %vm684_vm2, %v12016_v47 }
0x2d14   : > { %12041 = vmatprep.mubr.msk.bf16.mxu1 %vm748_vm4, %v6637_v1 }
0x2d15   : > { %v6965_v39 = vpop.permute.xlu1 %6964 }
0x2d17   : > { %12042 = vmatmul.mubr.msk.bf16.vlgmr.msra.gmra.mrb[168].mxu1 %vm748_vm4, %v6638_v4 }
0x2d18   : > { %12060 = vmatprep.mubr.msk.bf16.mxu1 %vm684_vm2, %v15016_v9 }
0x2d19   : > { %12057 = vmatpush3.bf16.xpose.msra.mxu1 %v6809_v43 }
0x2d1a   : > { %12493 = vmatprep.subr.msk.bf16.mxu1 %vm684_vm2, %v6801_v30 }
0x2d21   : > { %12059 = vmatpush3.bf16.xpose.msra.mxu1 %v6812_v58 }
0x2d22   : > { %12495 = vmatprep.subr.msk.bf16.mxu1 %vm684_vm2, %v6967_v8 }
0x2d28   : > { %12061 = vmatmul.mubr.msk.bf16.vlgmr.msra.gmra.mrb[172].mxu1 %vm684_vm2, %v15187_v5 }
0x2d29   : > { %12073 = vmatpush3.bf16.xpose.msra.mxu1 %v6977_v15  ;;  %12076 = vmatprep.mubr.msk.bf16.mxu1 %vm684_vm2, %v6963_v11 }
0x2d2a   : > { %12496 = vmatprep.subr.msk.bf16.mxu1 %vm684_vm2, %v6969_v60 }
0x2d31   : > { %12075 = vmatpush3.bf16.xpose.msra.mxu1 %v6980_v57 }
0x2d32   : > { %12099 = vmatprep.subr.mxu1 %v13220_v27 }
0x2d38   : > { %12077 = vmatmul.mubr.msk.bf16.vlgmr.msra.gmra.mrb[176].mxu1 %vm684_vm2, %v6965_v39 }
0x2d39   : > { %12100 = vmatpush3.msra.mxu1 %v15097_v24  ;;  %12101 = vmatprep.mubr.msk.f32.mxu1 %vm13221_vm6, %v13220_v27 }
0x2dde   : > { %v6516_v6 = vpop.f32.mrb[158].mxu1 }
0x2ddf   : > { %v15231_v21 = vadd.f32 %v6516_v6, %v15128_v26  ;;  %v12022_v55 = vpop.f32.mrb[159].mxu1 }
0x2de2   : > { %v6521_v61 = vpop.f32.mrb[164].mxu1 }
0x2de3   : > { %v15234_v13 = vadd.f32 %v6521_v61, %v15130_v32  ;;  %v12025_v24 = vpop.f32.mrb[165].mxu1 }
0x2de6   : > { %v6526_v53 = vpop.f32.mrb[166].mxu1 }
0x2de7   : > { %v15237_v38 = vadd.f32 %v6526_v53, %v15132_v17  ;;  %v12028_v40 = vpop.f32.mrb[167].mxu1 }
0x2dea   : > { %v12043_v46 = vpop.f32.mrb[168].mxu1 }
0x2deb   : > { %v6687_v25 = vpop.f32.mrb[169].mxu1 }
0x2dec   : > { %v12044_v42 = vpop.f32.mrb[170].mxu1  ;;  %12048 = vmatmul.mubr.msk.f32.vlgmr.msra.gmra.mrb[154].mxu0 %vm684_vm2, %v6687_v25 }
0x2ded   : > { %v6690_v31 = vpop.f32.mrb[171].mxu1  ;;  %12050 = vmatprep.mubr.msk.f32.mxu0 %vm13221_vm6, %v13220_v27 }
0x2df0   : > { %12051 = vmatmul.mubr.msk.f32.gmra.mrb[164].mxu0 %vm684_vm2, %v6690_v31 }
0x2df1   : > { %12053 = vmatprep.mubr.msk.f32.mxu0 %vm13221_vm6, %v13220_v27 }
0x2df4   : > { %12054 = vmatmul.mubr.msk.f32.gmra.mrb[166].mxu0 %vm684_vm2, %v12043_v46 }
0x2dfb   : > { %v12062_v26 = vpop.f32.mrb[172].mxu1 }
0x2dfc   : > { %v6848_v32 = vpop.f32.mrb[173].mxu1  ;;  %v6864_v14 = vsel %vm332_vm3, %v12062_v26, -1e+30 }
0x2dfd   : > { %v6862_v17 = vsel %vm332_vm3, %v6848_v32, -1e+30  ;;  %v12063_v59 = vpop.f32.mrb[174].mxu1  ;;  %v6871_v44 = vsel %vm748_vm4, %v6864_v14, -inf }
0x2dfe   : > { %v6865_v47 = vsel %vm748_vm4, %v6862_v17, -inf  ;;  %v6851_v29 = vpop.f32.mrb[175].mxu1 }
0x2dff   : > { %v6863_v35 = vsel %vm332_vm3, %v6851_v29, -1e+30  ;;  %6866 = vmax.xlane.f32.xlu0 %v6865_v47 }
0x2e00   : > { %v6868_v34 = vsel %vm748_vm4, %v6863_v35, -inf }
0x2e01   : > { %6869 = vmax.xlane.f32.xlu1 %v6868_v34 }
0x2e03   : > { %6872 = vmax.xlane.f32.xlu0 %v6871_v44 }
0x2e0b   : > { %v12078_v63 = vpop.f32.mrb[176].mxu1 }
0x2e0c   : > { %v7032_v19 = vsel %vm332_vm3, %v12078_v63, -1e+30  ;;  %v7016_v22 = vpop.f32.mrb[177].mxu1 }
0x2e0d   : > { %v7039_v28 = vsel %vm748_vm4, %v7032_v19, -inf  ;;  %v7030_v23 = vsel %vm332_vm3, %v7016_v22, -1e+30  ;;  %v12079_v2 = vpop.f32.mrb[178].mxu1 }
0x2e0e   : > { %v7033_v18 = vsel %vm748_vm4, %v7030_v23, -inf  ;;  %7040 = vmax.xlane.f32.xlu1 %v7039_v28  ;;  %v7019_v1 = vpop.f32.mrb[179].mxu1 }
0x2e0f   : > { %v7031_v4 = vsel %vm332_vm3, %v7019_v1, -1e+30  ;;  %7034 = vmax.xlane.f32.xlu0 %v7033_v18 }
0x2e10   : > { %v7036_v43 = vsel %vm748_vm4, %v7031_v4, -inf }
0x2e13   : > { %7037 = vmax.xlane.f32.xlu0 %v7036_v43 }
0x2e8c   : > { %v6867_v30 = vpop.xlane.xlu0 %6866 }
0x2e8d   : > { %v6874_v8 = vsub.f32 %v6862_v17, %v6867_v30 }
0x2e8e   : > { %v6870_v58 = vpop.xlane.xlu1 %6869 }
0x2e8f   : > { %v6875_v11 = vsub.f32 %v6863_v35, %v6870_v58  ;;  %v6877_v39 = vmul.f32 1.442695, %v6874_v8 }
0x2e90   : > { %v6873_v15 = vpop.xlane.xlu0 %6872 }
0x2e91   : > { %v6879_v60 = vmul.f32 1.442695, %v6875_v11  ;;  %v6876_v57 = vsub.f32 %v6864_v14, %v6873_v15 }
0x2e93   : > { %12945 = vpow2.f32 %v6879_v60  ;;  %v6881_v6 = vmul.f32 1.442695, %v6876_v57 }
0x2e95   : > { %12947 = vpow2.f32 %v6881_v6 }
0x2e96   : > { %12949 = vpow2.f32 %v6877_v39 }
0x2e9b   : > { %v7041_v55 = vpop.xlane.xlu1 %7040 }
0x2e9c   : > { %v7044_v61 = vsub.f32 %v7032_v19, %v7041_v55  ;;  %v7035_v24 = vpop.xlane.xlu0 %7034 }
0x2e9d   : > { %v12946_v53 = vpop.eup %12945  ;;  %v7042_v40 = vsub.f32 %v7030_v23, %v7035_v24 }
0x2e9e   : > { %v7049_v46 = vmul.f32 1.442695, %v7044_v61  ;;  %v6886_v25 = vsel %vm748_vm4, %v12946_v53, 0.0 }
0x2e9f   : > { %v15265_v42 = vpop.eup %12947  ;;  %v7045_v31 = vmul.f32 1.442695, %v7042_v40  ;;  %6887 = vadd.xlane.f32.xlu1 %v6886_v25 }
0x2ea0   : > { %12951 = vpow2.f32 %v7049_v46  ;;  %v7038_v26 = vpop.xlane.xlu0 %7037  ;;  %v6889_v32 = vsel %vm748_vm4, %v15265_v42, 0.0  ;;  %v12950_v17 = vpop.eup %12949 }
0x2ea1   : > { %v7043_v59 = vsub.f32 %v7031_v4, %v7038_v26  ;;  %6890 = vadd.xlane.f32.xlu0 %v6889_v32  ;;  %12953 = vpow2.f32 %v7045_v31  ;;  %v6883_v29 = vsel %vm748_vm4, %v12950_v17, 0.0 }
0x2ea3   : > { %v7047_v47 = vmul.f32 1.442695, %v7043_v59 }
0x2ea5   : > { %12955 = vpow2.f32 %v7047_v47  ;;  %6884 = vadd.xlane.f32.xlu0 %v6883_v29 }
0x2eaa   : > { %v15270_v14 = vpop.eup %12951 }
0x2eab   : > { %v7057_v35 = vsel %vm748_vm4, %v15270_v14, 0.0  ;;  %v12954_v34 = vpop.eup %12953 }
0x2eac   : > { %7058 = vadd.xlane.f32.xlu1 %v7057_v35  ;;  %v7051_v63 = vsel %vm748_vm4, %v12954_v34, 0.0 }
0x2eaf   : > { %v12956_v44 = vpop.eup %12955 }
0x2eb0   : > { %7052 = vadd.xlane.f32.xlu1 %v7051_v63  ;;  %v7054_v19 = vsel %vm748_vm4, %v12956_v44, 0.0 }
0x2eb1   : > { %7055 = vadd.xlane.f32.xlu0 %v7054_v19 }
0x2ebf   : > { %v6777_v22 = vpop.f32.mrb[154].mxu0 }
0x2ec0   : > { %v15277_v28 = vadd.f32 %v6777_v22, %v15231_v21  ;;  %v12049_v23 = vpop.f32.mrb[155].mxu0 }
0x2ec1   : > { %6902 = vrot.lane.b32.xlu1 %v15187_v5, %s13216_s9 }
0x2ec3   : > { %v6782_v2 = vpop.f32.mrb[164].mxu0 }
0x2ec4   : > { %v15282_v18 = vadd.f32 %v6782_v2, %v15234_v13  ;;  %v12052_v1 = vpop.f32.mrb[165].mxu0 }
0x2ec5   : > { %7068 = vrot.lane.b32.xlu1 %v15016_v9, %s13217_s10 }
0x2ec7   : > { %6900 = vrot.lane.b32.xlu0 %v15016_v9, %s13216_s9  ;;  %v6787_v4 = vpop.f32.mrb[166].mxu0 }
0x2ec8   : > { %v15289_v43 = vadd.f32 %v6787_v4, %v15237_v38  ;;  %v12055_v21 = vpop.f32.mrb[167].mxu0 }
0x2ec9   : > { %7070 = vrot.lane.b32.xlu1 %v15187_v5, %s13217_s10 }
0x2ecb   : > { %7312 = vrot.lane.b32.xlu0 %v15016_v9, %s13218_s11 }
0x2ecd   : > { %7314 = vrot.lane.b32.xlu1 %v15187_v5, %s13218_s11 }
0x2ecf   : > { %7308 = vrot.lane.b32.xlu0 %v15016_v9, %s13219_s17 }
0x2ed1   : > { %7310 = vrot.lane.b32.xlu1 %v15187_v5, %s13219_s17 }
0x2f2c   : > { %v6888_v13 = vpop.xlane.xlu1 %6887 }
0x2f2d   : > { %12957 = vrcp.f32 %v6888_v13 }
0x2f2e   : > { %v6891_v30 = vpop.xlane.xlu0 %6890 }
0x2f32   : > { %v6885_v38 = vpop.xlane.xlu0 %6884 }
0x2f33   : > { %12959 = vrcp.f32 %v6885_v38 }
0x2f34   : > { %12961 = vrcp.f32 %v6891_v30 }
0x2f37   : > { %v12958_v8 = vpop.eup %12957 }
0x2f38   : > { %v6896_v39 = vmul.f32 %v12958_v8, %v12946_v53 }
0x2f39   : > { %v7059_v58 = vpop.xlane.xlu1 %7058 }
0x2f3d   : > { %v12960_v11 = vpop.eup %12959  ;;  %v7053_v15 = vpop.xlane.xlu1 %7052 }
0x2f3e   : > { %12963 = vrcp.f32 %v7053_v15  ;;  %v7056_v60 = vpop.xlane.xlu0 %7055  ;;  %v6895_v57 = vmul.f32 %v12960_v11, %v12950_v17  ;;  %v12962_v61 = vpop.eup %12961 }
0x2f3f   : > { %12965 = vrcp.f32 %v7056_v60  ;;  %v6897_v40 = vmul.f32 %v12962_v61, %v15265_v42 }
0x2f40   : > { %12967 = vrcp.f32 %v7059_v58  ;;  %v6898_v6 = vpack.c.bf16 %v6896_v39, %v6895_v57 }
0x2f41   : > { %v6903_v55 = vpop.permute.xlu1 %6902  ;;  %v6899_v26 = vpack.c.bf16 %v6897_v40, %v6897_v40 }
0x2f42   : > { %v6901_v24 = vpop.permute.xlu0 %6900  ;;  %12068 = vmatprep.mubr.msk.bf16.mxu0 %vm748_vm4, %v6898_v6  ;;  %v6912_v25 = vsel %vm795_vm5, %v6903_v55, 0 }
0x2f43   : > { %12064 = vmatprep.subr.bf16.mxu0 %v6901_v24 }
0x2f44   : > { %12065 = vmatpush3.bf16.msra.mxu0 %v6901_v24 }
0x2f45   : > { %12494 = vmatprep.subr.msk.bf16.mxu0 %vm795_vm5, %v6903_v55  ;;  %v7069_v46 = vpop.permute.xlu1 %7068 }
0x2f48   : > { %v12964_v31 = vpop.eup %12963  ;;  %12067 = vmatpush3.bf16.msra.mxu0 %v6912_v25 }
0x2f49   : > { %v12966_v53 = vpop.eup %12965  ;;  %12080 = vmatprep.subr.bf16.mxu0 %v7069_v46  ;;  %v7063_v32 = vmul.f32 %v12964_v31, %v12954_v34  ;;  %v7071_v47 = vpop.permute.xlu1 %7070 }
0x2f4a   : > { %v12968_v17 = vpop.eup %12967  ;;  %v7064_v59 = vmul.f32 %v12966_v53, %v12956_v44  ;;  %v7080_v35 = vsel %vm795_vm5, %v7071_v47, 0  ;;  %v7313_v34 = vpop.permute.xlu0 %7312 }
0x2f4b   : > { %12069 = vmatmul.mubr.msk.bf16.vlgmr.msra.gmra.mrb[168].mxu0 %vm748_vm4, %v6899_v26  ;;  %v7065_v42 = vmul.f32 %v12968_v17, %v15270_v14  ;;  %v7323_v1 = vsel %vm684_vm2, %v7313_v34, 0 }
0x2f4c   : > { %12081 = vmatpush3.bf16.msra.mxu0 %v7069_v46  ;;  %v7066_v29 = vpack.c.bf16 %v7064_v59, %v7063_v32 }
0x2f4d   : > { %12497 = vmatprep.subr.msk.bf16.mxu0 %vm795_vm5, %v7071_v47  ;;  %v7067_v63 = vpack.c.bf16 %v7065_v42, %v7065_v42  ;;  %v7315_v4 = vpop.permute.xlu1 %7314 }
0x2f4e   : > { %12084 = vmatprep.mubr.msk.bf16.mxu0 %vm748_vm4, %v7066_v29  ;;  %v7309_v13 = vpop.permute.xlu0 %7308  ;;  %v7326_v30 = vsel %vm684_vm2, %v7315_v4, 0 }
0x2f50   : > { %12083 = vmatpush3.bf16.msra.mxu0 %v7080_v35 }
0x2f51   : > { %12088 = vmatprep.subr.mxu0 %v13220_v27  ;;  %v7311_v38 = vpop.permute.xlu1 %7310 }
0x2f53   : > { %12085 = vmatmul.mubr.msk.bf16.vlgmr.msra.gmra.mrb[172].mxu0 %vm748_vm4, %v7067_v63 }
0x2f54   : > { %12089 = vmatpush3.msra.mxu0 %v15087_v7  ;;  %12090 = vmatprep.mubr.msk.f32.mxu0 %vm13221_vm6, %v13220_v27 }
0x2f55   : > { %12498 = vmatprep.subr.msk.bf16.mxu0 %vm684_vm2, %v7313_v34 }
0x301e   : > { %v12070_v44 = vpop.f32.mrb[168].mxu0 }
0x301f   : > { %v6948_v14 = vpop.f32.mrb[169].mxu0 }
0x3020   : > { %v12071_v19 = vpop.f32.mrb[170].mxu0  ;;  %12102 = vmatmul.mubr.msk.f32.vlgmr.msra.gmra.mrb[180].mxu1 %vm684_vm2, %v6948_v14 }
0x3021   : > { %v6951_v22 = vpop.f32.mrb[171].mxu0  ;;  %12104 = vmatprep.mubr.msk.f32.mxu1 %vm13221_vm6, %v13220_v27 }
0x3024   : > { %12105 = vmatmul.mubr.msk.f32.gmra.mrb[182].mxu1 %vm684_vm2, %v6951_v22 }
0x3025   : > { %12107 = vmatprep.mubr.msk.f32.mxu1 %vm13221_vm6, %v13220_v27 }
0x3026   : > { %v12086_v7 = vpop.f32.mrb[172].mxu0 }
0x3027   : > { %v7116_v23 = vpop.f32.mrb[173].mxu0 }
0x3028   : > { %v12087_v2 = vpop.f32.mrb[174].mxu0  ;;  %12091 = vmatmul.mubr.msk.f32.vlgmr.msra.gmra.mrb[176].mxu0 %vm684_vm2, %v7116_v23  ;;  %12108 = vmatmul.mubr.msk.f32.gmra.mrb[184].mxu1 %vm684_vm2, %v12070_v44 }
0x3029   : > { %12111 = vmatpush3.bf16.xpose.msra.mxu0 %v7323_v1  ;;  %v7119_v21 = vpop.f32.mrb[175].mxu0  ;;  %12093 = vmatprep.mubr.msk.f32.mxu0 %vm13221_vm6, %v13220_v27 }
0x302a   : > { %12499 = vmatprep.subr.msk.bf16.mxu0 %vm684_vm2, %v7315_v4 }
0x302c   : > { %12094 = vmatmul.mubr.msk.f32.gmra.mrb[178].mxu0 %vm684_vm2, %v7119_v21 }
0x302d   : > { %12096 = vmatprep.mubr.msk.f32.mxu0 %vm13221_vm6, %v13220_v27 }
0x3030   : > { %12097 = vmatmul.mubr.msk.f32.gmra.mrb[180].mxu0 %vm684_vm2, %v12086_v7 }
0x3031   : > { %12113 = vmatpush3.bf16.xpose.msra.mxu0 %v7326_v30  ;;  %12114 = vmatprep.mubr.msk.bf16.mxu0 %vm684_vm2, %v7309_v13 }
0x3032   : > { %12126 = vmatprep.subr.mxu0 %v13220_v27 }
0x3038   : > { %12115 = vmatmul.mubr.msk.bf16.vlgmr.msra.gmra.mrb[184].mxu0 %vm684_vm2, %v7311_v38 }
0x3039   : > { %12127 = vmatpush3.msra.mxu0 %v15172_v52  ;;  %12128 = vmatprep.mubr.msk.f32.mxu0 %vm13221_vm6, %v13220_v27 }
0x30f3   : > { %v7294_v58 = vpop.f32.mrb[180].mxu1 }
0x30f4   : > { %v12103_v8 = vpop.f32.mrb[181].mxu1 }
0x30f7   : > { %v7299_v11 = vpop.f32.mrb[182].mxu1 }
0x30f8   : > { %v12106_v15 = vpop.f32.mrb[183].mxu1 }
0x30fb   : > { %v7205_v60 = vpop.f32.mrb[176].mxu0  ;;  %v7304_v57 = vpop.f32.mrb[184].mxu1 }
0x30fc   : > { %v15339_v39 = vadd.f32 %v7294_v58, %v7205_v60  ;;  %v12092_v6 = vpop.f32.mrb[177].mxu0  ;;  %v12109_v55 = vpop.f32.mrb[185].mxu1 }
0x30ff   : > { %v7210_v61 = vpop.f32.mrb[178].mxu0 }
0x3100   : > { %v15341_v24 = vadd.f32 %v7299_v11, %v7210_v61  ;;  %v12095_v40 = vpop.f32.mrb[179].mxu0 }
0x3103   : > { %v7215_v46 = vpop.f32.mrb[180].mxu0 }
0x3104   : > { %v15343_v25 = vadd.f32 %v7304_v57, %v7215_v46  ;;  %v12098_v52 = vpop.f32.mrb[181].mxu0 }
0x310b   : > { %v12116_v31 = vpop.f32.mrb[184].mxu0 }
0x310c   : > { %v7362_v53 = vpop.f32.mrb[185].mxu0  ;;  %v7378_v47 = vsel %vm332_vm3, %v12116_v31, -1e+30 }
0x310d   : > { %v7376_v26 = vsel %vm332_vm3, %v7362_v53, -1e+30  ;;  %v12117_v32 = vpop.f32.mrb[186].mxu0  ;;  %v7385_v35 = vsel %vm748_vm4, %v7378_v47, -inf }
0x310e   : > { %v7379_v17 = vsel %vm748_vm4, %v7376_v26, -inf  ;;  %v7365_v59 = vpop.f32.mrb[187].mxu0 }
0x310f   : > { %v7377_v29 = vsel %vm332_vm3, %v7365_v59, -1e+30  ;;  %7380 = vmax.xlane.f32.xlu0 %v7379_v17 }
0x3110   : > { %v7382_v42 = vsel %vm748_vm4, %v7377_v29, -inf }
0x3111   : > { %7383 = vmax.xlane.f32.xlu1 %v7382_v42 }
0x3113   : > { %7386 = vmax.xlane.f32.xlu0 %v7385_v35 }
0x319c   : > { %v7381_v63 = vpop.xlane.xlu0 %7380 }
0x319d   : > { %v7388_v34 = vsub.f32 %v7376_v26, %v7381_v63 }
0x319e   : > { %v7384_v44 = vpop.xlane.xlu1 %7383 }
0x319f   : > { %v7391_v14 = vmul.f32 1.442695, %v7388_v34  ;;  %v7389_v19 = vsub.f32 %v7377_v29, %v7384_v44 }
0x31a0   : > { %v7387_v22 = vpop.xlane.xlu0 %7386 }
0x31a1   : > { %12969 = vpow2.f32 %v7391_v14  ;;  %v7393_v7 = vmul.f32 1.442695, %v7389_v19  ;;  %v7390_v23 = vsub.f32 %v7378_v47, %v7387_v22 }
0x31a3   : > { %12971 = vpow2.f32 %v7393_v7  ;;  %v7395_v2 = vmul.f32 1.442695, %v7390_v23 }
0x31a5   : > { %12973 = vpow2.f32 %v7395_v2 }
0x31ab   : > { %v12970_v1 = vpop.eup %12969 }
0x31ac   : > { %v7397_v4 = vsel %vm748_vm4, %v12970_v1, 0.0 }
0x31ad   : > { %v12972_v21 = vpop.eup %12971  ;;  %7398 = vadd.xlane.f32.xlu0 %v7397_v4 }
0x31ae   : > { %v7400_v38 = vsel %vm748_vm4, %v12972_v21, 0.0 }
0x31af   : > { %v12974_v13 = vpop.eup %12973 }
0x31b0   : > { %v7403_v30 = vsel %vm748_vm4, %v12974_v13, 0.0 }
0x31b1   : > { %7404 = vadd.xlane.f32.xlu1 %v7403_v30  ;;  %7401 = vadd.xlane.f32.xlu0 %v7400_v38 }
0x31c2   : > { %7416 = vrot.lane.b32.xlu1 %v15187_v5, %s13222_s26 }
0x31c6   : > { %7572 = vrot.lane.b32.xlu1 %v15016_v9, %s13223_s27 }
0x31c7   : > { %7414 = vrot.lane.b32.xlu0 %v15016_v9, %s13222_s26 }
0x31ca   : > { %7574 = vrot.lane.b32.xlu1 %v15187_v5, %s13223_s27 }
0x31cb   : > { %7568 = vrot.lane.b32.xlu0 %v15016_v9, %s13224_s28 }
0x31ce   : > { %7570 = vrot.lane.b32.xlu1 %v15187_v5, %s13224_s28 }
0x323a   : > { %v7399_v58 = vpop.xlane.xlu0 %7398 }
0x323b   : > { %12975 = vrcp.f32 %v7399_v58 }
0x323e   : > { %v7402_v8 = vpop.xlane.xlu0 %7401  ;;  %v7405_v11 = vpop.xlane.xlu1 %7404 }
0x323f   : > { %12977 = vrcp.f32 %v7402_v8 }
0x3240   : > { %12979 = vrcp.f32 %v7405_v11 }
0x3242   : > { %v7415_v15 = vpop.permute.xlu0 %7414  ;;  %v7417_v60 = vpop.permute.xlu1 %7416 }
0x3243   : > { %12118 = vmatprep.subr.bf16.mxu1 %v7415_v15  ;;  %v7426_v6 = vsel %vm795_vm5, %v7417_v60, 0 }
0x3244   : > { %12119 = vmatpush3.bf16.msra.mxu1 %v7415_v15 }
0x3245   : > { %12500 = vmatprep.subr.msk.bf16.mxu1 %vm795_vm5, %v7417_v60  ;;  %v12976_v57 = vpop.eup %12975 }
0x3246   : > { %v7573_v55 = vpop.permute.xlu1 %7572  ;;  %v7409_v46 = vmul.f32 %v12976_v57, %v12970_v1  ;;  %v7569_v32 = vpop.permute.xlu0 %7568 }
0x3247   : > { %v7583_v17 = vsel %vm684_vm2, %v7573_v55, 0 }
0x3248   : > { %12121 = vmatpush3.bf16.msra.mxu1 %v7426_v6 }
0x3249   : > { %v12978_v61 = vpop.eup %12977  ;;  %12501 = vmatprep.subr.msk.bf16.mxu1 %vm684_vm2, %v7573_v55 }
0x324a   : > { %v12980_v40 = vpop.eup %12979  ;;  %v7410_v52 = vmul.f32 %v12978_v61, %v12972_v21  ;;  %v7575_v59 = vpop.permute.xlu1 %7574 }
0x324b   : > { %v7411_v31 = vmul.f32 %v12980_v40, %v12974_v13  ;;  %v7586_v47 = vsel %vm684_vm2, %v7575_v59, 0 }
0x324c   : > { %v7412_v53 = vpack.c.bf16 %v7410_v52, %v7409_v46  ;;  %v15407_v52 = vld [vmem:[%s16283_s2 + $0xd] ss:$0 sm:$0xff] }
0x324d   : > { %v7413_v26 = vpack.c.bf16 %v7411_v31, %v7411_v31  ;;  %v5742_v31 = vadd.f32 %v15407_v52, %v15020_v45 }
0x324e   : > { %12122 = vmatprep.mubr.msk.bf16.mxu1 %vm748_vm4, %v7412_v53  ;;  %v7571_v29 = vpop.permute.xlu1 %7570 }
0x324f   : > { %12123 = vmatmul.mubr.msk.bf16.vlgmr.msra.gmra.mrb[188].mxu1 %vm748_vm4, %v7413_v26  ;;  %v15415_v53 = vpack.c.bf16 %v5742_v31, %v5742_v31 }
0x3250   : > { %12141 = vmatprep.mubr.msk.bf16.mxu1 %vm684_vm2, %v7569_v32 }
0x3251   : > { %12138 = vmatpush3.bf16.xpose.msra.mxu1 %v7583_v17 }
0x3252   : > { %12502 = vmatprep.subr.msk.bf16.mxu1 %vm684_vm2, %v7575_v59 }
0x3259   : > { %12140 = vmatpush3.bf16.xpose.msra.mxu1 %v7586_v47 }
0x325a   : > { %12153 = vmatprep.subr.mxu1 %v13220_v27 }
0x3260   : > { %12142 = vmatmul.mubr.msk.bf16.vlgmr.msra.gmra.mrb[192].mxu1 %vm684_vm2, %v7571_v29 }
0x3261   : > { %12154 = vmatpush3.msra.mxu1 %v15227_v33  ;;  %12155 = vmatprep.mubr.msk.f32.mxu1 %vm13221_vm6, %v13220_v27 }
0x3322   : > { %v12124_v42 = vpop.f32.mrb[188].mxu1 }
0x3323   : > { %v7462_v35 = vpop.f32.mrb[189].mxu1 }
0x3324   : > { %v12125_v63 = vpop.f32.mrb[190].mxu1  ;;  %12129 = vmatmul.mubr.msk.f32.vlgmr.msra.gmra.mrb[182].mxu0 %vm684_vm2, %v7462_v35 }
0x3325   : > { %v7465_v34 = vpop.f32.mrb[191].mxu1  ;;  %12131 = vmatprep.mubr.msk.f32.mxu0 %vm13221_vm6, %v13220_v27 }
0x3328   : > { %12132 = vmatmul.mubr.msk.f32.gmra.mrb[188].mxu0 %vm684_vm2, %v7465_v34 }
0x3329   : > { %12134 = vmatprep.mubr.msk.f32.mxu0 %vm13221_vm6, %v13220_v27 }
0x332c   : > { %12135 = vmatmul.mubr.msk.f32.gmra.mrb[190].mxu0 %vm684_vm2, %v12124_v42 }
0x3333   : > { %v12143_v33 = vpop.f32.mrb[192].mxu1 }
0x3334   : > { %v7622_v44 = vpop.f32.mrb[193].mxu1  ;;  %v7638_v23 = vsel %vm332_vm3, %v12143_v33, -1e+30 }
0x3335   : > { %v7636_v14 = vsel %vm332_vm3, %v7622_v44, -1e+30  ;;  %v12144_v19 = vpop.f32.mrb[194].mxu1  ;;  %v7645_v4 = vsel %vm748_vm4, %v7638_v23, -inf }
0x3336   : > { %v7639_v22 = vsel %vm748_vm4, %v7636_v14, -inf  ;;  %v7625_v7 = vpop.f32.mrb[195].mxu1 }
0x3337   : > { %v7637_v2 = vsel %vm332_vm3, %v7625_v7, -1e+30  ;;  %7640 = vmax.xlane.f32.xlu0 %v7639_v22 }
0x3338   : > { %v7642_v1 = vsel %vm748_vm4, %v7637_v2, -inf }
0x3339   : > { %7643 = vmax.xlane.f32.xlu1 %v7642_v1 }
0x333b   : > { %7646 = vmax.xlane.f32.xlu0 %v7645_v4 }
0x33c4   : > { %v7641_v21 = vpop.xlane.xlu0 %7640 }
0x33c5   : > { %v7648_v13 = vsub.f32 %v7636_v14, %v7641_v21 }
0x33c6   : > { %v7644_v30 = vpop.xlane.xlu1 %7643 }
0x33c7   : > { %v7651_v38 = vmul.f32 1.442695, %v7648_v13  ;;  %v7649_v58 = vsub.f32 %v7637_v2, %v7644_v30 }
0x33c8   : > { %v7647_v8 = vpop.xlane.xlu0 %7646 }
0x33c9   : > { %12981 = vpow2.f32 %v7651_v38  ;;  %v7653_v11 = vmul.f32 1.442695, %v7649_v58  ;;  %v7650_v15 = vsub.f32 %v7638_v23, %v7647_v8 }
0x33cb   : > { %12983 = vpow2.f32 %v7653_v11  ;;  %v7655_v60 = vmul.f32 1.442695, %v7650_v15  ;;  %v15458_v15 = vld [vmem:[%s16283_s2 + $0x38] sm:$0xff] }
0x33cd   : > { %12985 = vpow2.f32 %v7655_v60 }
0x33d3   : > { %v12982_v57 = vpop.eup %12981 }
0x33d4   : > { %v7657_v6 = vsel %vm748_vm4, %v12982_v57, 0.0 }
0x33d5   : > { %v12984_v55 = vpop.eup %12983  ;;  %7658 = vadd.xlane.f32.xlu0 %v7657_v6 }
0x33d6   : > { %v7660_v46 = vsel %vm748_vm4, %v12984_v55, 0.0 }
0x33d7   : > { %v12986_v61 = vpop.eup %12985 }
0x33d8   : > { %v7663_v40 = vsel %vm748_vm4, %v12986_v61, 0.0 }
0x33d9   : > { %7664 = vadd.xlane.f32.xlu1 %v7663_v40  ;;  %7661 = vadd.xlane.f32.xlu0 %v7660_v46 }
0x33ea   : > { %7676 = vrot.lane.b32.xlu1 %v15187_v5, %s16289_s29 }
0x33ee   : > { %7832 = vrot.lane.b32.xlu1 %v15018_v20, %s13213_s6 }
0x33ef   : > { %7674 = vrot.lane.b32.xlu0 %v15016_v9, %s16289_s29 }
0x33f2   : > { %7834 = vrot.lane.b32.xlu1 %v15415_v53, %s13213_s6 }
0x33f3   : > { %8000 = vrot.lane.b32.xlu0 %v15018_v20, %s13214_s7 }
0x33f6   : > { %8002 = vrot.lane.b32.xlu1 %v15415_v53, %s13214_s7 }
0x33f7   : > { %v7551_v5 = vpop.f32.mrb[182].mxu0  ;;  %7996 = vrot.lane.b32.xlu0 %v15018_v20, %s13215_s8 }
0x33f8   : > { %v15426_v45 = vadd.f32 %v7551_v5, %v15339_v39  ;;  %v12130_v26 = vpop.f32.mrb[183].mxu0 }
0x33fa   : > { %7998 = vrot.lane.b32.xlu1 %v15415_v53, %s13215_s8 }
0x33fb   : > { %v7556_v9 = vpop.f32.mrb[188].mxu0 }
0x33fc   : > { %v15431_v32 = vadd.f32 %v7556_v9, %v15341_v24  ;;  %v12133_v17 = vpop.f32.mrb[189].mxu0 }
0x33ff   : > { %v7561_v59 = vpop.f32.mrb[190].mxu0 }
0x3400   : > { %v15434_v47 = vadd.f32 %v7561_v59, %v15343_v25  ;;  %v12136_v29 = vpop.f32.mrb[191].mxu0 }
0x3462   : > { %v7659_v42 = vpop.xlane.xlu0 %7658 }
0x3463   : > { %12987 = vrcp.f32 %v7659_v42 }
0x3466   : > { %v7662_v35 = vpop.xlane.xlu0 %7661  ;;  %v7665_v63 = vpop.xlane.xlu1 %7664 }
0x3467   : > { %12989 = vrcp.f32 %v7662_v35 }
0x3468   : > { %12991 = vrcp.f32 %v7665_v63 }
0x346a   : > { %v7675_v39 = vpop.permute.xlu0 %7674  ;;  %v7677_v34 = vpop.permute.xlu1 %7676 }
0x346b   : > { %12145 = vmatprep.subr.bf16.mxu0 %v7675_v39  ;;  %v7686_v33 = vsel %vm795_vm5, %v7677_v34, 0 }
0x346c   : > { %12146 = vmatpush3.bf16.msra.mxu0 %v7675_v39 }
0x346d   : > { %12503 = vmatprep.subr.msk.bf16.mxu0 %vm795_vm5, %v7677_v34  ;;  %v12988_v24 = vpop.eup %12987 }
0x346e   : > { %v7833_v44 = vpop.permute.xlu1 %7832  ;;  %v7669_v19 = vmul.f32 %v12988_v24, %v12982_v57  ;;  %v8001_v13 = vpop.permute.xlu0 %8000 }
0x346f   : > { %v7843_v1 = vsel %vm684_vm2, %v7833_v44, 0  ;;  %v8011_v38 = vsel %vm684_vm2, %v8001_v13, 0 }
0x3470   : > { %12148 = vmatpush3.bf16.msra.mxu0 %v7686_v33 }
0x3471   : > { %v12990_v25 = vpop.eup %12989  ;;  %12504 = vmatprep.subr.msk.bf16.mxu0 %vm684_vm2, %v7833_v44 }
0x3472   : > { %v12992_v14 = vpop.eup %12991  ;;  %v7670_v22 = vmul.f32 %v12990_v25, %v12984_v55  ;;  %v7835_v4 = vpop.permute.xlu1 %7834 }
0x3473   : > { %v7671_v7 = vmul.f32 %v12992_v14, %v12986_v61  ;;  %v7846_v21 = vsel %vm684_vm2, %v7835_v4, 0  ;;  %v7997_v30 = vpop.permute.xlu0 %7996 }
0x3474   : > { %v7672_v23 = vpack.c.bf16 %v7670_v22, %v7669_v19 }
0x3475   : > { %v7673_v2 = vpack.c.bf16 %v7671_v7, %v7671_v7 }
0x3476   : > { %12149 = vmatprep.mubr.msk.bf16.mxu0 %vm748_vm4, %v7672_v23  ;;  %v8003_v58 = vpop.permute.xlu1 %8002 }
0x3477   : > { %12150 = vmatmul.mubr.msk.bf16.vlgmr.msra.gmra.mrb[192].mxu0 %vm748_vm4, %v7673_v2  ;;  %v8014_v8 = vsel %vm684_vm2, %v8003_v58, 0 }
0x3478   : > { %12168 = vmatprep.mubr.msk.bf16.mxu0 %vm684_vm2, %v15018_v20 }
0x3479   : > { %12165 = vmatpush3.bf16.xpose.msra.mxu0 %v7843_v1 }
0x347a   : > { %12505 = vmatprep.subr.msk.bf16.mxu0 %vm684_vm2, %v7835_v4  ;;  %v7999_v11 = vpop.permute.xlu1 %7998 }
0x3481   : > { %12167 = vmatpush3.bf16.xpose.msra.mxu0 %v7846_v21 }
0x3482   : > { %12507 = vmatprep.subr.msk.bf16.mxu0 %vm684_vm2, %v8001_v13 }
0x3488   : > { %12169 = vmatmul.mubr.msk.bf16.vlgmr.msra.gmra.mrb[196].mxu0 %vm684_vm2, %v15415_v53 }
0x3489   : > { %12181 = vmatpush3.bf16.xpose.msra.mxu0 %v8011_v38  ;;  %12184 = vmatprep.mubr.msk.bf16.mxu0 %vm684_vm2, %v7997_v30 }
0x348a   : > { %12508 = vmatprep.subr.msk.bf16.mxu0 %vm684_vm2, %v8003_v58 }
0x3491   : > { %12183 = vmatpush3.bf16.xpose.msra.mxu0 %v8014_v8 }
0x3492   : > { %12207 = vmatprep.subr.mxu0 %v13220_v27 }
0x3498   : > { %12185 = vmatmul.mubr.msk.bf16.vlgmr.msra.gmra.mrb[200].mxu0 %vm684_vm2, %v7999_v11 }
0x3499   : > { %12208 = vmatpush3.msra.mxu0 %v15458_v15  ;;  %12209 = vmatprep.mubr.msk.f32.mxu0 %vm13221_vm6, %v13220_v27 }
0x354a   : > { %v12151_v60 = vpop.f32.mrb[192].mxu0 }
0x354b   : > { %v7722_v57 = vpop.f32.mrb[193].mxu0 }
0x354c   : > { %v12152_v6 = vpop.f32.mrb[194].mxu0  ;;  %12156 = vmatmul.mubr.msk.f32.vlgmr.msra.gmra.mrb[186].mxu1 %vm684_vm2, %v7722_v57 }
0x354d   : > { %v7725_v55 = vpop.f32.mrb[195].mxu0  ;;  %12158 = vmatprep.mubr.msk.f32.mxu1 %vm13221_vm6, %v13220_v27 }
0x3550   : > { %12159 = vmatmul.mubr.msk.f32.gmra.mrb[196].mxu1 %vm684_vm2, %v7725_v55 }
0x3551   : > { %12161 = vmatprep.mubr.msk.f32.mxu1 %vm13221_vm6, %v13220_v27 }
0x3554   : > { %12162 = vmatmul.mubr.msk.f32.gmra.mrb[198].mxu1 %vm684_vm2, %v12151_v60 }
0x355b   : > { %v12170_v61 = vpop.f32.mrb[196].mxu0 }
0x355c   : > { %v7882_v40 = vpop.f32.mrb[197].mxu0  ;;  %v7898_v9 = vsel %vm332_vm3, %v12170_v61, -1e+30 }
0x355d   : > { %v7896_v46 = vsel %vm332_vm3, %v7882_v40, -1e+30  ;;  %v12171_v31 = vpop.f32.mrb[198].mxu0  ;;  %v7905_v29 = vsel %vm748_vm4, %v7898_v9, -inf }
0x355e   : > { %v7899_v5 = vsel %vm748_vm4, %v7896_v46, -inf  ;;  %v7885_v26 = vpop.f32.mrb[199].mxu0 }
0x355f   : > { %v7897_v17 = vsel %vm332_vm3, %v7885_v26, -1e+30  ;;  %7900 = vmax.xlane.f32.xlu0 %v7899_v5 }
0x3560   : > { %v7902_v59 = vsel %vm748_vm4, %v7897_v17, -inf }
0x3561   : > { %7903 = vmax.xlane.f32.xlu1 %v7902_v59 }
0x3563   : > { %7906 = vmax.xlane.f32.xlu0 %v7905_v29 }
0x356b   : > { %v12186_v42 = vpop.f32.mrb[200].mxu0 }
0x356c   : > { %v8066_v35 = vsel %vm332_vm3, %v12186_v42, -1e+30  ;;  %v8050_v63 = vpop.f32.mrb[201].mxu0 }
0x356d   : > { %v8073_v39 = vsel %vm748_vm4, %v8066_v35, -inf  ;;  %v8064_v34 = vsel %vm332_vm3, %v8050_v63, -1e+30  ;;  %v12187_v24 = vpop.f32.mrb[202].mxu0 }
0x356e   : > { %v8067_v33 = vsel %vm748_vm4, %v8064_v34, -inf  ;;  %8074 = vmax.xlane.f32.xlu1 %v8073_v39  ;;  %v8053_v44 = vpop.f32.mrb[203].mxu0 }
0x356f   : > { %v8065_v25 = vsel %vm332_vm3, %v8053_v44, -1e+30  ;;  %8068 = vmax.xlane.f32.xlu0 %v8067_v33 }
0x3570   : > { %v8070_v14 = vsel %vm748_vm4, %v8065_v25, -inf }
0x3573   : > { %8071 = vmax.xlane.f32.xlu0 %v8070_v14 }
0x35ec   : > { %v7901_v19 = vpop.xlane.xlu0 %7900 }
0x35ed   : > { %v7908_v7 = vsub.f32 %v7896_v46, %v7901_v19 }
0x35ee   : > { %v7904_v22 = vpop.xlane.xlu1 %7903 }
0x35ef   : > { %v7909_v23 = vsub.f32 %v7897_v17, %v7904_v22  ;;  %v7911_v21 = vmul.f32 1.442695, %v7908_v7 }
0x35f0   : > { %v7907_v2 = vpop.xlane.xlu0 %7906 }
0x35f1   : > { %v7913_v1 = vmul.f32 1.442695, %v7909_v23  ;;  %v7910_v4 = vsub.f32 %v7898_v9, %v7907_v2 }
0x35f3   : > { %12993 = vpow2.f32 %v7913_v1  ;;  %v7915_v13 = vmul.f32 1.442695, %v7910_v4 }
0x35f5   : > { %12995 = vpow2.f32 %v7915_v13 }
0x35f6   : > { %12997 = vpow2.f32 %v7911_v21 }
0x35fb   : > { %v8075_v30 = vpop.xlane.xlu1 %8074 }
0x35fc   : > { %v8078_v38 = vsub.f32 %v8066_v35, %v8075_v30  ;;  %v8069_v58 = vpop.xlane.xlu0 %8068 }
0x35fd   : > { %v12994_v8 = vpop.eup %12993  ;;  %v8076_v11 = vsub.f32 %v8064_v34, %v8069_v58 }
0x35fe   : > { %v8083_v60 = vmul.f32 1.442695, %v8078_v38  ;;  %v7920_v57 = vsel %vm748_vm4, %v12994_v8, 0.0 }
0x35ff   : > { %v15489_v6 = vpop.eup %12995  ;;  %v8079_v55 = vmul.f32 1.442695, %v8076_v11  ;;  %7921 = vadd.xlane.f32.xlu1 %v7920_v57 }
0x3600   : > { %12999 = vpow2.f32 %v8083_v60  ;;  %v8072_v61 = vpop.xlane.xlu0 %8071  ;;  %v7923_v40 = vsel %vm748_vm4, %v15489_v6, 0.0  ;;  %v12998_v46 = vpop.eup %12997 }
0x3601   : > { %v8077_v31 = vsub.f32 %v8065_v25, %v8072_v61  ;;  %7924 = vadd.xlane.f32.xlu0 %v7923_v40  ;;  %13001 = vpow2.f32 %v8079_v55  ;;  %v7917_v26 = vsel %vm748_vm4, %v12998_v46, 0.0 }
0x3603   : > { %v8081_v5 = vmul.f32 1.442695, %v8077_v31 }
0x3605   : > { %13003 = vpow2.f32 %v8081_v5  ;;  %7918 = vadd.xlane.f32.xlu0 %v7917_v26 }
0x360a   : > { %v15494_v9 = vpop.eup %12999 }
0x360b   : > { %v8091_v17 = vsel %vm748_vm4, %v15494_v9, 0.0  ;;  %v13002_v59 = vpop.eup %13001 }
0x360c   : > { %8092 = vadd.xlane.f32.xlu1 %v8091_v17  ;;  %v8085_v42 = vsel %vm748_vm4, %v13002_v59, 0.0 }
0x360f   : > { %v13004_v29 = vpop.eup %13003 }
0x3610   : > { %8086 = vadd.xlane.f32.xlu1 %v8085_v42  ;;  %v8088_v35 = vsel %vm748_vm4, %v13004_v29, 0.0 }
0x3611   : > { %8089 = vadd.xlane.f32.xlu0 %v8088_v35 }
0x361f   : > { %v7811_v63 = vpop.f32.mrb[186].mxu1 }
0x3620   : > { %v15501_v39 = vadd.f32 %v7811_v63, %v15426_v45  ;;  %v12157_v34 = vpop.f32.mrb[187].mxu1 }
0x3621   : > { %7936 = vrot.lane.b32.xlu1 %v15415_v53, %s13216_s9 }
0x3623   : > { %v7816_v24 = vpop.f32.mrb[196].mxu1 }
0x3624   : > { %v15506_v33 = vadd.f32 %v7816_v24, %v15431_v32  ;;  %v12160_v44 = vpop.f32.mrb[197].mxu1 }
0x3625   : > { %8102 = vrot.lane.b32.xlu1 %v15018_v20, %s13217_s10 }
0x3627   : > { %v7821_v25 = vpop.f32.mrb[198].mxu1  ;;  %7934 = vrot.lane.b32.xlu0 %v15018_v20, %s13216_s9 }
0x3628   : > { %v15513_v14 = vadd.f32 %v7821_v25, %v15434_v47  ;;  %v12163_v45 = vpop.f32.mrb[199].mxu1 }
0x3629   : > { %8104 = vrot.lane.b32.xlu1 %v15415_v53, %s13217_s10 }
0x362b   : > { %8346 = vrot.lane.b32.xlu0 %v15018_v20, %s13218_s11 }
0x362d   : > { %8348 = vrot.lane.b32.xlu1 %v15415_v53, %s13218_s11 }
0x362f   : > { %8342 = vrot.lane.b32.xlu0 %v15018_v20, %s13219_s17 }
0x3631   : > { %8344 = vrot.lane.b32.xlu1 %v15415_v53, %s13219_s17 }
0x368c   : > { %v7922_v32 = vpop.xlane.xlu1 %7921 }
0x368d   : > { %13005 = vrcp.f32 %v7922_v32 }
0x368e   : > { %v7925_v19 = vpop.xlane.xlu0 %7924 }
0x3692   : > { %v7919_v47 = vpop.xlane.xlu0 %7918 }
0x3693   : > { %13007 = vrcp.f32 %v7919_v47 }
0x3694   : > { %13009 = vrcp.f32 %v7925_v19 }
0x3697   : > { %v13006_v7 = vpop.eup %13005 }
0x3698   : > { %v7930_v21 = vmul.f32 %v13006_v7, %v12994_v8 }
0x3699   : > { %v8093_v22 = vpop.xlane.xlu1 %8092 }
0x369d   : > { %v13008_v23 = vpop.eup %13007  ;;  %v8087_v2 = vpop.xlane.xlu1 %8086 }
0x369e   : > { %13011 = vrcp.f32 %v8087_v2  ;;  %v8090_v1 = vpop.xlane.xlu0 %8089  ;;  %v7929_v4 = vmul.f32 %v13008_v23, %v12998_v46  ;;  %v13010_v38 = vpop.eup %13009  ;;  %v15568_v23 = vld [vmem:[%s16283_s2 + $0x48] sm:$0xff] }
0x369f   : > { %13013 = vrcp.f32 %v8090_v1  ;;  %v7931_v11 = vmul.f32 %v13010_v38, %v15489_v6 }
0x36a0   : > { %13015 = vrcp.f32 %v8093_v22  ;;  %v7932_v13 = vpack.c.bf16 %v7930_v21, %v7929_v4 }
0x36a1   : > { %v7937_v30 = vpop.permute.xlu1 %7936  ;;  %v7933_v61 = vpack.c.bf16 %v7931_v11, %v7931_v11 }
0x36a2   : > { %v7935_v58 = vpop.permute.xlu0 %7934  ;;  %12176 = vmatprep.mubr.msk.bf16.mxu1 %vm748_vm4, %v7932_v13  ;;  %v7946_v57 = vsel %vm795_vm5, %v7937_v30, 0 }
0x36a3   : > { %12172 = vmatprep.subr.bf16.mxu1 %v7935_v58 }
0x36a4   : > { %12173 = vmatpush3.bf16.msra.mxu1 %v7935_v58 }
0x36a5   : > { %12506 = vmatprep.subr.msk.bf16.mxu1 %vm795_vm5, %v7937_v30  ;;  %v8103_v60 = vpop.permute.xlu1 %8102 }
0x36a8   : > { %v13012_v55 = vpop.eup %13011  ;;  %12175 = vmatpush3.bf16.msra.mxu1 %v7946_v57 }
0x36a9   : > { %v13014_v8 = vpop.eup %13013  ;;  %12188 = vmatprep.subr.bf16.mxu1 %v8103_v60  ;;  %v8097_v40 = vmul.f32 %v13012_v55, %v13002_v59  ;;  %v8105_v5 = vpop.permute.xlu1 %8104 }
0x36aa   : > { %v13016_v46 = vpop.eup %13015  ;;  %v8098_v31 = vmul.f32 %v13014_v8, %v13004_v29  ;;  %v8114_v17 = vsel %vm795_vm5, %v8105_v5, 0  ;;  %v8347_v59 = vpop.permute.xlu0 %8346  ;;  %v15539_v29 = vld [vmem:[%s16283_s2 + $0x40] sm:$0xff] }
0x36ab   : > { %12177 = vmatmul.mubr.msk.bf16.vlgmr.msra.gmra.mrb[200].mxu1 %vm748_vm4, %v7933_v61  ;;  %v8099_v6 = vmul.f32 %v13016_v46, %v15494_v9  ;;  %v8357_v25 = vsel %vm684_vm2, %v8347_v59, 0 }
0x36ac   : > { %12189 = vmatpush3.bf16.msra.mxu1 %v8103_v60  ;;  %v8100_v26 = vpack.c.bf16 %v8098_v31, %v8097_v40 }
0x36ad   : > { %12509 = vmatprep.subr.msk.bf16.mxu1 %vm795_vm5, %v8105_v5  ;;  %v8101_v42 = vpack.c.bf16 %v8099_v6, %v8099_v6  ;;  %v8349_v32 = vpop.permute.xlu1 %8348 }
0x36ae   : > { %12192 = vmatprep.mubr.msk.bf16.mxu1 %vm748_vm4, %v8100_v26  ;;  %v8343_v47 = vpop.permute.xlu0 %8342  ;;  %v8360_v22 = vsel %vm684_vm2, %v8349_v32, 0 }
0x36b0   : > { %12191 = vmatpush3.bf16.msra.mxu1 %v8114_v17 }
0x36b1   : > { %12196 = vmatprep.subr.mxu1 %v13220_v27  ;;  %v8345_v7 = vpop.permute.xlu1 %8344 }
0x36b3   : > { %12193 = vmatmul.mubr.msk.bf16.vlgmr.msra.gmra.mrb[204].mxu1 %vm748_vm4, %v8101_v42 }
0x36b4   : > { %12197 = vmatpush3.msra.mxu1 %v15539_v29  ;;  %12198 = vmatprep.mubr.msk.f32.mxu1 %vm13221_vm6, %v13220_v27 }
0x36b5   : > { %12510 = vmatprep.subr.msk.bf16.mxu1 %vm684_vm2, %v8347_v59 }
0x377e   : > { %v12178_v9 = vpop.f32.mrb[200].mxu1 }
0x377f   : > { %v7982_v35 = vpop.f32.mrb[201].mxu1 }
0x3780   : > { %v12179_v63 = vpop.f32.mrb[202].mxu1  ;;  %12210 = vmatmul.mubr.msk.f32.vlgmr.msra.gmra.mrb[204].mxu0 %vm684_vm2, %v7982_v35 }
0x3781   : > { %v7985_v34 = vpop.f32.mrb[203].mxu1  ;;  %12212 = vmatprep.mubr.msk.f32.mxu0 %vm13221_vm6, %v13220_v27 }
0x3784   : > { %12213 = vmatmul.mubr.msk.f32.gmra.mrb[206].mxu0 %vm684_vm2, %v7985_v34 }
0x3785   : > { %12215 = vmatprep.mubr.msk.f32.mxu0 %vm13221_vm6, %v13220_v27 }
0x3786   : > { %v12194_v24 = vpop.f32.mrb[204].mxu1 }
0x3787   : > { %v8150_v44 = vpop.f32.mrb[205].mxu1 }
0x3788   : > { %v12195_v45 = vpop.f32.mrb[206].mxu1  ;;  %12199 = vmatmul.mubr.msk.f32.vlgmr.msra.gmra.mrb[208].mxu1 %vm684_vm2, %v8150_v44  ;;  %12216 = vmatmul.mubr.msk.f32.gmra.mrb[208].mxu0 %vm684_vm2, %v12178_v9 }
0x3789   : > { %12219 = vmatpush3.bf16.xpose.msra.mxu1 %v8357_v25  ;;  %v8153_v19 = vpop.f32.mrb[207].mxu1  ;;  %12201 = vmatprep.mubr.msk.f32.mxu1 %vm13221_vm6, %v13220_v27 }
0x378a   : > { %12511 = vmatprep.subr.msk.bf16.mxu1 %vm684_vm2, %v8349_v32 }
0x378c   : > { %12202 = vmatmul.mubr.msk.f32.gmra.mrb[210].mxu1 %vm684_vm2, %v8153_v19 }
0x378d   : > { %12204 = vmatprep.mubr.msk.f32.mxu1 %vm13221_vm6, %v13220_v27 }
0x3790   : > { %12205 = vmatmul.mubr.msk.f32.gmra.mrb[212].mxu1 %vm684_vm2, %v12194_v24 }
0x3791   : > { %12221 = vmatpush3.bf16.xpose.msra.mxu1 %v8360_v22  ;;  %12222 = vmatprep.mubr.msk.bf16.mxu1 %vm684_vm2, %v8343_v47 }
0x3792   : > { %12234 = vmatprep.subr.mxu1 %v13220_v27 }
0x3798   : > { %12223 = vmatmul.mubr.msk.bf16.vlgmr.msra.gmra.mrb[216].mxu1 %vm684_vm2, %v8345_v7 }
0x3799   : > { %12235 = vmatpush3.msra.mxu1 %v15568_v23  ;;  %12236 = vmatprep.mubr.msk.f32.mxu1 %vm13221_vm6, %v13220_v27 }
0x3853   : > { %v8328_v2 = vpop.f32.mrb[204].mxu0 }
0x3854   : > { %v12211_v1 = vpop.f32.mrb[205].mxu0 }
0x3857   : > { %v8333_v4 = vpop.f32.mrb[206].mxu0 }
0x3858   : > { %v12214_v21 = vpop.f32.mrb[207].mxu0 }
0x385b   : > { %v8239_v13 = vpop.f32.mrb[208].mxu1  ;;  %v8338_v30 = vpop.f32.mrb[208].mxu0 }
0x385c   : > { %v15573_v38 = vadd.f32 %v8328_v2, %v8239_v13  ;;  %v12200_v58 = vpop.f32.mrb[209].mxu1  ;;  %v12217_v11 = vpop.f32.mrb[209].mxu0 }
0x385f   : > { %v8244_v60 = vpop.f32.mrb[210].mxu1 }
0x3860   : > { %v15575_v57 = vadd.f32 %v8333_v4, %v8244_v60  ;;  %v12203_v55 = vpop.f32.mrb[211].mxu1 }
0x3863   : > { %v8249_v8 = vpop.f32.mrb[212].mxu1 }
0x3864   : > { %v15577_v61 = vadd.f32 %v8338_v30, %v8249_v8  ;;  %v12206_v40 = vpop.f32.mrb[213].mxu1 }
0x386b   : > { %v12224_v46 = vpop.f32.mrb[216].mxu1 }
0x386c   : > { %v8396_v31 = vpop.f32.mrb[217].mxu1  ;;  %v8412_v42 = vsel %vm332_vm3, %v12224_v46, -1e+30 }
0x386d   : > { %v8410_v5 = vsel %vm332_vm3, %v8396_v31, -1e+30  ;;  %v12225_v26 = vpop.f32.mrb[218].mxu1  ;;  %v8419_v35 = vsel %vm748_vm4, %v8412_v42, -inf }
0x386e   : > { %v8413_v6 = vsel %vm748_vm4, %v8410_v5, -inf  ;;  %v8399_v17 = vpop.f32.mrb[219].mxu1 }
0x386f   : > { %v8411_v59 = vsel %vm332_vm3, %v8399_v17, -1e+30  ;;  %8414 = vmax.xlane.f32.xlu0 %v8413_v6 }
0x3870   : > { %v8416_v9 = vsel %vm748_vm4, %v8411_v59, -inf }
0x3871   : > { %8417 = vmax.xlane.f32.xlu1 %v8416_v9 }
0x3873   : > { %8420 = vmax.xlane.f32.xlu0 %v8419_v35 }
0x38fc   : > { %v8415_v63 = vpop.xlane.xlu0 %8414 }
0x38fd   : > { %v8422_v34 = vsub.f32 %v8410_v5, %v8415_v63 }
0x38fe   : > { %v8418_v24 = vpop.xlane.xlu1 %8417 }
0x38ff   : > { %v8425_v44 = vmul.f32 1.442695, %v8422_v34  ;;  %v8423_v25 = vsub.f32 %v8411_v59, %v8418_v24  ;;  %v15617_v24 = vld [vmem:[%s16283_s2 + $0x50] sm:$0xff] }
0x3900   : > { %v8421_v45 = vpop.xlane.xlu0 %8420 }
0x3901   : > { %13017 = vpow2.f32 %v8425_v44  ;;  %v8427_v32 = vmul.f32 1.442695, %v8423_v25  ;;  %v8424_v19 = vsub.f32 %v8412_v42, %v8421_v45 }
0x3903   : > { %13019 = vpow2.f32 %v8427_v32  ;;  %v8429_v47 = vmul.f32 1.442695, %v8424_v19 }
0x3905   : > { %13021 = vpow2.f32 %v8429_v47 }
0x390b   : > { %v13018_v22 = vpop.eup %13017 }
0x390c   : > { %v8431_v7 = vsel %vm748_vm4, %v13018_v22, 0.0 }
0x390d   : > { %v13020_v2 = vpop.eup %13019  ;;  %8432 = vadd.xlane.f32.xlu0 %v8431_v7 }
0x390e   : > { %v8434_v21 = vsel %vm748_vm4, %v13020_v2, 0.0 }
0x390f   : > { %v13022_v1 = vpop.eup %13021 }
0x3910   : > { %v8437_v4 = vsel %vm748_vm4, %v13022_v1, 0.0 }
0x3911   : > { %8438 = vadd.xlane.f32.xlu1 %v8437_v4  ;;  %8435 = vadd.xlane.f32.xlu0 %v8434_v21 }
0x3922   : > { %8450 = vrot.lane.b32.xlu1 %v15415_v53, %s13222_s26 }
0x3926   : > { %8606 = vrot.lane.b32.xlu1 %v15018_v20, %s13223_s27 }
0x3927   : > { %8448 = vrot.lane.b32.xlu0 %v15018_v20, %s13222_s26 }
0x392a   : > { %8608 = vrot.lane.b32.xlu1 %v15415_v53, %s13223_s27 }
0x392b   : > { %8602 = vrot.lane.b32.xlu0 %v15018_v20, %s13224_s28 }
0x392e   : > { %8604 = vrot.lane.b32.xlu1 %v15415_v53, %s13224_s28 }
0x399a   : > { %v8433_v13 = vpop.xlane.xlu0 %8432 }
0x399b   : > { %13023 = vrcp.f32 %v8433_v13 }
0x399e   : > { %v8436_v30 = vpop.xlane.xlu0 %8435  ;;  %v8439_v58 = vpop.xlane.xlu1 %8438 }
0x399f   : > { %13025 = vrcp.f32 %v8436_v30 }
0x39a0   : > { %13027 = vrcp.f32 %v8439_v58 }
0x39a2   : > { %v8449_v11 = vpop.permute.xlu0 %8448  ;;  %v8451_v60 = vpop.permute.xlu1 %8450 }
0x39a3   : > { %12226 = vmatprep.subr.bf16.mxu0 %v8449_v11  ;;  %v8460_v8 = vsel %vm795_vm5, %v8451_v60, 0 }
0x39a4   : > { %12227 = vmatpush3.bf16.msra.mxu0 %v8449_v11 }
0x39a5   : > { %12512 = vmatprep.subr.msk.bf16.mxu0 %vm795_vm5, %v8451_v60  ;;  %v13024_v55 = vpop.eup %13023 }
0x39a6   : > { %v8607_v40 = vpop.permute.xlu1 %8606  ;;  %v8443_v5 = vmul.f32 %v13024_v55, %v13018_v22  ;;  %v8603_v59 = vpop.permute.xlu0 %8602 }
0x39a7   : > { %v8617_v9 = vsel %vm684_vm2, %v8607_v40, 0 }
0x39a8   : > { %12229 = vmatpush3.bf16.msra.mxu0 %v8460_v8 }
0x39a9   : > { %v13026_v46 = vpop.eup %13025  ;;  %12513 = vmatprep.subr.msk.bf16.mxu0 %vm684_vm2, %v8607_v40 }
0x39aa   : > { %v13028_v31 = vpop.eup %13027  ;;  %v8444_v26 = vmul.f32 %v13026_v46, %v13020_v2  ;;  %v8609_v35 = vpop.permute.xlu1 %8608 }
0x39ab   : > { %v8445_v6 = vmul.f32 %v13028_v31, %v13022_v1  ;;  %v8620_v63 = vsel %vm684_vm2, %v8609_v35, 0 }
0x39ac   : > { %v8446_v17 = vpack.c.bf16 %v8444_v26, %v8443_v5 }
0x39ad   : > { %v8447_v42 = vpack.c.bf16 %v8445_v6, %v8445_v6 }
0x39ae   : > { %12230 = vmatprep.mubr.msk.bf16.mxu0 %vm748_vm4, %v8446_v17  ;;  %v8605_v34 = vpop.permute.xlu1 %8604 }
0x39af   : > { %12231 = vmatmul.mubr.msk.bf16.vlgmr.msra.gmra.mrb[212].mxu0 %vm748_vm4, %v8447_v42 }
0x39b0   : > { %12249 = vmatprep.mubr.msk.bf16.mxu0 %vm684_vm2, %v8603_v59 }
0x39b1   : > { %12246 = vmatpush3.bf16.xpose.msra.mxu0 %v8617_v9 }
0x39b2   : > { %12514 = vmatprep.subr.msk.bf16.mxu0 %vm684_vm2, %v8609_v35  ;;  %v5753_v35 = vadd.f32 %v15407_v52, %v15022_v36 }
0x39b9   : > { %12248 = vmatpush3.bf16.xpose.msra.mxu0 %v8620_v63  ;;  %v15649_v63 = vpack.c.bf16 %v5753_v35, %v5753_v35 }
0x39ba   : > { %12261 = vmatprep.subr.mxu0 %v13220_v27 }
0x39c0   : > { %12250 = vmatmul.mubr.msk.bf16.vlgmr.msra.gmra.mrb[216].mxu0 %vm684_vm2, %v8605_v34 }
0x39c1   : > { %12262 = vmatpush3.msra.mxu0 %v15617_v24  ;;  %12263 = vmatprep.mubr.msk.f32.mxu0 %vm13221_vm6, %v13220_v27 }
0x3a82   : > { %v12232_v44 = vpop.f32.mrb[212].mxu0 }
0x3a83   : > { %v8496_v25 = vpop.f32.mrb[213].mxu0 }
0x3a84   : > { %v12233_v45 = vpop.f32.mrb[214].mxu0  ;;  %12237 = vmatmul.mubr.msk.f32.vlgmr.msra.gmra.mrb[214].mxu1 %vm684_vm2, %v8496_v25 }
0x3a85   : > { %v8499_v32 = vpop.f32.mrb[215].mxu0  ;;  %12239 = vmatprep.mubr.msk.f32.mxu1 %vm13221_vm6, %v13220_v27 }
0x3a88   : > { %12240 = vmatmul.mubr.msk.f32.gmra.mrb[220].mxu1 %vm684_vm2, %v8499_v32 }
0x3a89   : > { %12242 = vmatprep.mubr.msk.f32.mxu1 %vm13221_vm6, %v13220_v27 }
0x3a8c   : > { %12243 = vmatmul.mubr.msk.f32.gmra.mrb[222].mxu1 %vm684_vm2, %v12232_v44 }
0x3a93   : > { %v12251_v19 = vpop.f32.mrb[216].mxu0 }
0x3a94   : > { %v8656_v47 = vpop.f32.mrb[217].mxu0  ;;  %v8672_v4 = vsel %vm332_vm3, %v12251_v19, -1e+30 }
0x3a95   : > { %v8670_v22 = vsel %vm332_vm3, %v8656_v47, -1e+30  ;;  %v12252_v7 = vpop.f32.mrb[218].mxu0  ;;  %v8679_v30 = vsel %vm748_vm4, %v8672_v4, -inf }
0x3a96   : > { %v8673_v2 = vsel %vm748_vm4, %v8670_v22, -inf  ;;  %v8659_v1 = vpop.f32.mrb[219].mxu0 }
0x3a97   : > { %v8671_v21 = vsel %vm332_vm3, %v8659_v1, -1e+30  ;;  %8674 = vmax.xlane.f32.xlu0 %v8673_v2 }
0x3a98   : > { %v8676_v13 = vsel %vm748_vm4, %v8671_v21, -inf }
0x3a99   : > { %8677 = vmax.xlane.f32.xlu1 %v8676_v13 }
0x3a9b   : > { %8680 = vmax.xlane.f32.xlu0 %v8679_v30 }
0x3b24   : > { %v8675_v58 = vpop.xlane.xlu0 %8674 }
0x3b25   : > { %v8682_v11 = vsub.f32 %v8670_v22, %v8675_v58 }
0x3b26   : > { %v8678_v60 = vpop.xlane.xlu1 %8677 }
0x3b27   : > { %v8685_v55 = vmul.f32 1.442695, %v8682_v11  ;;  %v8683_v8 = vsub.f32 %v8671_v21, %v8678_v60 }
0x3b28   : > { %v8681_v40 = vpop.xlane.xlu0 %8680 }
0x3b29   : > { %13029 = vpow2.f32 %v8685_v55  ;;  %v8687_v46 = vmul.f32 1.442695, %v8683_v8  ;;  %v8684_v31 = vsub.f32 %v8672_v4, %v8681_v40 }
0x3b2b   : > { %13031 = vpow2.f32 %v8687_v46  ;;  %v8689_v5 = vmul.f32 1.442695, %v8684_v31 }
0x3b2d   : > { %13033 = vpow2.f32 %v8689_v5 }
0x3b33   : > { %v13030_v26 = vpop.eup %13029 }
0x3b34   : > { %v8691_v6 = vsel %vm748_vm4, %v13030_v26, 0.0 }
0x3b35   : > { %v13032_v17 = vpop.eup %13031  ;;  %8692 = vadd.xlane.f32.xlu0 %v8691_v6 }
0x3b36   : > { %v8694_v9 = vsel %vm748_vm4, %v13032_v17, 0.0 }
0x3b37   : > { %v13034_v42 = vpop.eup %13033 }
0x3b38   : > { %v8697_v59 = vsel %vm748_vm4, %v13034_v42, 0.0 }
0x3b39   : > { %8698 = vadd.xlane.f32.xlu1 %v8697_v59  ;;  %8695 = vadd.xlane.f32.xlu0 %v8694_v9 }
0x3b4a   : > { %8710 = vrot.lane.b32.xlu1 %v15415_v53, %s16289_s29 }
0x3b4e   : > { %8866 = vrot.lane.b32.xlu1 %v15026_v51, %s13213_s6 }
0x3b4f   : > { %8708 = vrot.lane.b32.xlu0 %v15018_v20, %s16289_s29 }
0x3b52   : > { %8868 = vrot.lane.b32.xlu1 %v15649_v63, %s13213_s6 }
0x3b53   : > { %9034 = vrot.lane.b32.xlu0 %v15026_v51, %s13214_s7 }
0x3b56   : > { %9036 = vrot.lane.b32.xlu1 %v15649_v63, %s13214_s7 }
0x3b57   : > { %v8585_v53 = vpop.f32.mrb[214].mxu1  ;;  %9030 = vrot.lane.b32.xlu0 %v15026_v51, %s13215_s8 }
0x3b58   : > { %v15660_v36 = vadd.f32 %v8585_v53, %v15573_v38  ;;  %v12238_v52 = vpop.f32.mrb[215].mxu1 }
0x3b5a   : > { %9032 = vrot.lane.b32.xlu1 %v15649_v63, %s13215_s8  ;;  %s162_s8 = sand.u32 1, %s13203_s13  }
0x3b5b   : > { %v8590_v20 = vpop.f32.mrb[220].mxu1 }
0x3b5c   : > { %v15665_v34 = vadd.f32 %v8590_v20, %v15575_v57  ;;  %v12241_v44 = vpop.f32.mrb[221].mxu1 }
0x3b5f   : > { %v8595_v25 = vpop.f32.mrb[222].mxu1 }
0x3b60   : > { %v15668_v45 = vadd.f32 %v8595_v25, %v15577_v61  ;;  %v12244_v32 = vpop.f32.mrb[223].mxu1 }
0x3bc2   : > { %v8693_v19 = vpop.xlane.xlu0 %8692 }
0x3bc3   : > { %13035 = vrcp.f32 %v8693_v19 }
0x3bc6   : > { %v8696_v47 = vpop.xlane.xlu0 %8695  ;;  %v8699_v22 = vpop.xlane.xlu1 %8698 }
0x3bc7   : > { %13037 = vrcp.f32 %v8696_v47 }
0x3bc8   : > { %13039 = vrcp.f32 %v8699_v22 }
0x3bca   : > { %v8709_v38 = vpop.permute.xlu0 %8708  ;;  %v8711_v7 = vpop.permute.xlu1 %8710 }
0x3bcb   : > { %12253 = vmatprep.subr.bf16.mxu1 %v8709_v38  ;;  %v8720_v2 = vsel %vm795_vm5, %v8711_v7, 0 }
0x3bcc   : > { %12254 = vmatpush3.bf16.msra.mxu1 %v8709_v38 }
0x3bcd   : > { %12515 = vmatprep.subr.msk.bf16.mxu1 %vm795_vm5, %v8711_v7  ;;  %v13036_v57 = vpop.eup %13035 }
0x3bce   : > { %v8867_v1 = vpop.permute.xlu1 %8866  ;;  %v8703_v21 = vmul.f32 %v13036_v57, %v13030_v26  ;;  %v9035_v40 = vpop.permute.xlu0 %9034 }
0x3bcf   : > { %v8877_v60 = vsel %vm684_vm2, %v8867_v1, 0  ;;  %v9045_v46 = vsel %vm684_vm2, %v9035_v40, 0 }
0x3bd0   : > { %12256 = vmatpush3.bf16.msra.mxu1 %v8720_v2 }
0x3bd1   : > { %v13038_v61 = vpop.eup %13037  ;;  %12516 = vmatprep.subr.msk.bf16.mxu1 %vm684_vm2, %v8867_v1 }
0x3bd2   : > { %v13040_v4 = vpop.eup %13039  ;;  %v8704_v13 = vmul.f32 %v13038_v61, %v13032_v17  ;;  %v8869_v55 = vpop.permute.xlu1 %8868 }
0x3bd3   : > { %v8705_v30 = vmul.f32 %v13040_v4, %v13034_v42  ;;  %v8880_v8 = vsel %vm684_vm2, %v8869_v55, 0  ;;  %v9031_v31 = vpop.permute.xlu0 %9030 }
0x3bd4   : > { %v8706_v58 = vpack.c.bf16 %v8704_v13, %v8703_v21 }
0x3bd5   : > { %v8707_v11 = vpack.c.bf16 %v8705_v30, %v8705_v30 }
0x3bd6   : > { %12257 = vmatprep.mubr.msk.bf16.mxu1 %vm748_vm4, %v8706_v58  ;;  %v9037_v5 = vpop.permute.xlu1 %9036 }
0x3bd7   : > { %12258 = vmatmul.mubr.msk.bf16.vlgmr.msra.gmra.mrb[224].mxu1 %vm748_vm4, %v8707_v11  ;;  %v9048_v26 = vsel %vm684_vm2, %v9037_v5, 0 }
0x3bd8   : > { %12276 = vmatprep.mubr.msk.bf16.mxu1 %vm684_vm2, %v15026_v51 }
0x3bd9   : > { %12273 = vmatpush3.bf16.xpose.msra.mxu1 %v8877_v60 }
0x3bda   : > { %12517 = vmatprep.subr.msk.bf16.mxu1 %vm684_vm2, %v8869_v55  ;;  %v9033_v6 = vpop.permute.xlu1 %9032 }
0x3be1   : > { %12275 = vmatpush3.bf16.xpose.msra.mxu1 %v8880_v8 }
0x3be2   : > { %12519 = vmatprep.subr.msk.bf16.mxu1 %vm684_vm2, %v9035_v40 }
0x3be8   : > { %12277 = vmatmul.mubr.msk.bf16.vlgmr.msra.gmra.mrb[228].mxu1 %vm684_vm2, %v15649_v63 }
0x3be9   : > { %12289 = vmatpush3.bf16.xpose.msra.mxu1 %v9045_v46  ;;  %12292 = vmatprep.mubr.msk.bf16.mxu1 %vm684_vm2, %v9031_v31 }
0x3bea   : > { %12520 = vmatprep.subr.msk.bf16.mxu1 %vm684_vm2, %v9037_v5 }
0x3bf1   : > { %12291 = vmatpush3.bf16.xpose.msra.mxu1 %v9048_v26 }
0x3bf2   : > { %12315 = vmatprep.subr.mxu1 %v13220_v27 }
0x3bf8   : > { %12293 = vmatmul.mubr.msk.bf16.vlgmr.msra.gmra.mrb[232].mxu1 %vm684_vm2, %v9033_v6 }
0x3bf9   : > { %12316 = vmatpush3.msra.mxu1 %v15458_v15  ;;  %12317 = vmatprep.mubr.msk.f32.mxu1 %vm13221_vm6, %v13220_v27 }
0x3caa   : > { %v12259_v17 = vpop.f32.mrb[224].mxu1 }
0x3cab   : > { %v8756_v42 = vpop.f32.mrb[225].mxu1 }
0x3cac   : > { %v12260_v59 = vpop.f32.mrb[226].mxu1  ;;  %12264 = vmatmul.mubr.msk.f32.vlgmr.msra.gmra.mrb[210].mxu0 %vm684_vm2, %v8756_v42 }
0x3cad   : > { %v8759_v9 = vpop.f32.mrb[227].mxu1  ;;  %12266 = vmatprep.mubr.msk.f32.mxu0 %vm13221_vm6, %v13220_v27 }
0x3cb0   : > { %12267 = vmatmul.mubr.msk.f32.gmra.mrb[220].mxu0 %vm684_vm2, %v8759_v9 }
0x3cb1   : > { %12269 = vmatprep.mubr.msk.f32.mxu0 %vm13221_vm6, %v13220_v27 }
0x3cb4   : > { %12270 = vmatmul.mubr.msk.f32.gmra.mrb[222].mxu0 %vm684_vm2, %v12259_v17 }
0x3cbb   : > { %v12278_v15 = vpop.f32.mrb[228].mxu1 }
0x3cbc   : > { %v8916_v35 = vpop.f32.mrb[229].mxu1  ;;  %v8932_v25 = vsel %vm332_vm3, %v12278_v15, -1e+30 }
0x3cbd   : > { %v8930_v53 = vsel %vm332_vm3, %v8916_v35, -1e+30  ;;  %v12279_v52 = vpop.f32.mrb[230].mxu1  ;;  %v8939_v47 = vsel %vm748_vm4, %v8932_v25, -inf }
0x3cbe   : > { %v8933_v20 = vsel %vm748_vm4, %v8930_v53, -inf  ;;  %v8919_v44 = vpop.f32.mrb[231].mxu1 }
0x3cbf   : > { %v8931_v32 = vsel %vm332_vm3, %v8919_v44, -1e+30  ;;  %8934 = vmax.xlane.f32.xlu0 %v8933_v20 }
0x3cc0   : > { %v8936_v19 = vsel %vm748_vm4, %v8931_v32, -inf }
0x3cc1   : > { %8937 = vmax.xlane.f32.xlu1 %v8936_v19 }
0x3cc3   : > { %8940 = vmax.xlane.f32.xlu0 %v8939_v47 }
0x3ccb   : > { %v12294_v22 = vpop.f32.mrb[232].mxu1 }
0x3ccc   : > { %v9100_v38 = vsel %vm332_vm3, %v12294_v22, -1e+30  ;;  %v9084_v7 = vpop.f32.mrb[233].mxu1 }
0x3ccd   : > { %v9107_v57 = vsel %vm748_vm4, %v9100_v38, -inf  ;;  %v9098_v2 = vsel %vm332_vm3, %v9084_v7, -1e+30  ;;  %v12295_v1 = vpop.f32.mrb[234].mxu1 }
0x3cce   : > { %v9101_v61 = vsel %vm748_vm4, %v9098_v2, -inf  ;;  %9108 = vmax.xlane.f32.xlu1 %v9107_v57  ;;  %v9087_v4 = vpop.f32.mrb[235].mxu1 }
0x3ccf   : > { %v9099_v21 = vsel %vm332_vm3, %v9087_v4, -1e+30  ;;  %9102 = vmax.xlane.f32.xlu0 %v9101_v61 }
0x3cd0   : > { %v9104_v13 = vsel %vm748_vm4, %v9099_v21, -inf }
0x3cd3   : > { %9105 = vmax.xlane.f32.xlu0 %v9104_v13 }
0x3d4c   : > { %v8935_v30 = vpop.xlane.xlu0 %8934 }
0x3d4d   : > { %v8942_v11 = vsub.f32 %v8930_v53, %v8935_v30 }
0x3d4e   : > { %v8938_v58 = vpop.xlane.xlu1 %8937 }
0x3d4f   : > { %v8943_v60 = vsub.f32 %v8931_v32, %v8938_v58  ;;  %v8945_v46 = vmul.f32 1.442695, %v8942_v11 }
0x3d50   : > { %v8941_v55 = vpop.xlane.xlu0 %8940 }
0x3d51   : > { %v8947_v8 = vmul.f32 1.442695, %v8943_v60  ;;  %v8944_v40 = vsub.f32 %v8932_v25, %v8941_v55 }
0x3d53   : > { %13041 = vpow2.f32 %v8947_v8  ;;  %v8949_v31 = vmul.f32 1.442695, %v8944_v40 }
0x3d55   : > { %13043 = vpow2.f32 %v8949_v31 }
0x3d56   : > { %13045 = vpow2.f32 %v8945_v46 }
0x3d5b   : > { %v9109_v5 = vpop.xlane.xlu1 %9108 }
0x3d5c   : > { %v9112_v26 = vsub.f32 %v9100_v38, %v9109_v5  ;;  %v9103_v6 = vpop.xlane.xlu0 %9102 }
0x3d5d   : > { %v13042_v17 = vpop.eup %13041  ;;  %v9110_v42 = vsub.f32 %v9098_v2, %v9103_v6 }
0x3d5e   : > { %v9117_v59 = vmul.f32 1.442695, %v9112_v26  ;;  %v8954_v9 = vsel %vm748_vm4, %v13042_v17, 0.0 }
0x3d5f   : > { %v15718_v15 = vpop.eup %13043  ;;  %v9113_v35 = vmul.f32 1.442695, %v9110_v42  ;;  %8955 = vadd.xlane.f32.xlu1 %v8954_v9 }
0x3d60   : > { %13047 = vpow2.f32 %v9117_v59  ;;  %v9106_v53 = vpop.xlane.xlu0 %9105  ;;  %v8957_v52 = vsel %vm748_vm4, %v15718_v15, 0.0  ;;  %v13046_v20 = vpop.eup %13045 }
0x3d61   : > { %v9111_v44 = vsub.f32 %v9099_v21, %v9106_v53  ;;  %8958 = vadd.xlane.f32.xlu0 %v8957_v52  ;;  %13049 = vpow2.f32 %v9113_v35  ;;  %v8951_v32 = vsel %vm748_vm4, %v13046_v20, 0.0 }
0x3d63   : > { %v9115_v25 = vmul.f32 1.442695, %v9111_v44 }
0x3d65   : > { %13051 = vpow2.f32 %v9115_v25  ;;  %8952 = vadd.xlane.f32.xlu0 %v8951_v32 }
0x3d6a   : > { %v15723_v19 = vpop.eup %13047 }
0x3d6b   : > { %v9125_v47 = vsel %vm748_vm4, %v15723_v19, 0.0  ;;  %v13050_v22 = vpop.eup %13049 }
0x3d6c   : > { %9126 = vadd.xlane.f32.xlu1 %v9125_v47  ;;  %v9119_v7 = vsel %vm748_vm4, %v13050_v22, 0.0 }
0x3d6f   : > { %v13052_v38 = vpop.eup %13051 }
0x3d70   : > { %9120 = vadd.xlane.f32.xlu1 %v9119_v7  ;;  %v9122_v57 = vsel %vm748_vm4, %v13052_v38, 0.0 }
0x3d71   : > { %9123 = vadd.xlane.f32.xlu0 %v9122_v57 }
0x3d7f   : > { %v8845_v2 = vpop.f32.mrb[210].mxu0 }
0x3d80   : > { %v15730_v1 = vadd.f32 %v8845_v2, %v15660_v36  ;;  %v12265_v61 = vpop.f32.mrb[211].mxu0 }
0x3d81   : > { %8970 = vrot.lane.b32.xlu1 %v15649_v63, %s13216_s9 }
0x3d83   : > { %v8850_v4 = vpop.f32.mrb[220].mxu0 }
0x3d84   : > { %v15735_v21 = vadd.f32 %v8850_v4, %v15665_v34  ;;  %v12268_v13 = vpop.f32.mrb[221].mxu0 }
0x3d85   : > { %9136 = vrot.lane.b32.xlu1 %v15026_v51, %s13217_s10 }
0x3d87   : > { %v8855_v30 = vpop.f32.mrb[222].mxu0  ;;  %8968 = vrot.lane.b32.xlu0 %v15026_v51, %s13216_s9  ;;  %s10657_s9 = sshll.u32 %s162_s8, 2 }
0x3d88   : > { %v15742_v58 = vadd.f32 %v8855_v30, %v15668_v45  ;;  %v12271_v36 = vpop.f32.mrb[223].mxu0 }
0x3d89   : > { %9138 = vrot.lane.b32.xlu1 %v15649_v63, %s13217_s10 }
0x3d8b   : > { %9380 = vrot.lane.b32.xlu0 %v15026_v51, %s13218_s11 }
0x3d8d   : > { %9382 = vrot.lane.b32.xlu1 %v15649_v63, %s13218_s11 }
0x3d8f   : > { %9376 = vrot.lane.b32.xlu0 %v15026_v51, %s13219_s17 }
0x3d91   : > { %9378 = vrot.lane.b32.xlu1 %v15649_v63, %s13219_s17  ;;  %s10963_s17 = sshll.u32 %s13268_s16, 6  ;;  %s10581_s16 = scalar_lea.sflag [#allocation3], %s162_s8 }
0x3d92   : > { %s16239_s24 = scalar_lea.hbm %s16284_s3, %s10963_s17 }
0x3dec   : > { %v8956_v34 = vpop.xlane.xlu1 %8955 }
0x3ded   : > { %13053 = vrcp.f32 %v8956_v34 }
0x3dee   : > { %v8959_v11 = vpop.xlane.xlu0 %8958 }
0x3df2   : > { %v8953_v45 = vpop.xlane.xlu0 %8952 }
0x3df3   : > { %13055 = vrcp.f32 %v8953_v45 }
0x3df4   : > { %13057 = vrcp.f32 %v8959_v11 }
0x3df7   : > { %v13054_v55 = vpop.eup %13053 }
0x3df8   : > { %v8964_v5 = vmul.f32 %v13054_v55, %v13042_v17 }
0x3df9   : > { %v9127_v60 = vpop.xlane.xlu1 %9126 }
0x3dfd   : > { %v13056_v8 = vpop.eup %13055  ;;  %v9121_v40 = vpop.xlane.xlu1 %9120 }
0x3dfe   : > { %13059 = vrcp.f32 %v9121_v40  ;;  %v9124_v46 = vpop.xlane.xlu0 %9123  ;;  %v8963_v31 = vmul.f32 %v13056_v8, %v13046_v20  ;;  %v13058_v42 = vpop.eup %13057 }
0x3dff   : > { %13061 = vrcp.f32 %v9124_v46  ;;  %v8965_v9 = vmul.f32 %v13058_v42, %v15718_v15 }
0x3e00   : > { %13063 = vrcp.f32 %v9127_v60  ;;  %v8966_v26 = vpack.c.bf16 %v8964_v5, %v8963_v31 }
0x3e01   : > { %v8971_v6 = vpop.permute.xlu1 %8970  ;;  %v8967_v20 = vpack.c.bf16 %v8965_v9, %v8965_v9 }
0x3e02   : > { %v8969_v59 = vpop.permute.xlu0 %8968  ;;  %12284 = vmatprep.mubr.msk.bf16.mxu0 %vm748_vm4, %v8966_v26  ;;  %v8980_v53 = vsel %vm795_vm5, %v8971_v6, 0 }
0x3e03   : > { %12280 = vmatprep.subr.bf16.mxu0 %v8969_v59 }
0x3e04   : > { %12281 = vmatpush3.bf16.msra.mxu0 %v8969_v59 }
0x3e05   : > { %12518 = vmatprep.subr.msk.bf16.mxu0 %vm795_vm5, %v8971_v6  ;;  %v9137_v35 = vpop.permute.xlu1 %9136 }
0x3e08   : > { %v13060_v52 = vpop.eup %13059  ;;  %12283 = vmatpush3.bf16.msra.mxu0 %v8980_v53 }
0x3e09   : > { %v13062_v17 = vpop.eup %13061  ;;  %12296 = vmatprep.subr.bf16.mxu0 %v9137_v35  ;;  %v9131_v44 = vmul.f32 %v13060_v52, %v13050_v22  ;;  %v9139_v47 = vpop.permute.xlu1 %9138 }
0x3e0a   : > { %v13064_v25 = vpop.eup %13063  ;;  %v9132_v32 = vmul.f32 %v13062_v17, %v13052_v38  ;;  %v9148_v57 = vsel %vm795_vm5, %v9139_v47, 0  ;;  %v9381_v22 = vpop.permute.xlu0 %9380 }
0x3e0b   : > { %12285 = vmatmul.mubr.msk.bf16.vlgmr.msra.gmra.mrb[224].mxu0 %vm748_vm4, %v8967_v20  ;;  %v9133_v15 = vmul.f32 %v13064_v25, %v15723_v19  ;;  %v9391_v30 = vsel %vm684_vm2, %v9381_v22, 0 }
0x3e0c   : > { %12297 = vmatpush3.bf16.msra.mxu0 %v9137_v35  ;;  %v9134_v7 = vpack.c.bf16 %v9132_v32, %v9131_v44 }
0x3e0d   : > { %12521 = vmatprep.subr.msk.bf16.mxu0 %vm795_vm5, %v9139_v47  ;;  %v9135_v2 = vpack.c.bf16 %v9133_v15, %v9133_v15  ;;  %v9383_v34 = vpop.permute.xlu1 %9382 }
0x3e0e   : > { %12300 = vmatprep.mubr.msk.bf16.mxu0 %vm748_vm4, %v9134_v7  ;;  %v9377_v45 = vpop.permute.xlu0 %9376  ;;  %v9394_v60 = vsel %vm684_vm2, %v9383_v34, 0 }
0x3e10   : > { %12299 = vmatpush3.bf16.msra.mxu0 %v9148_v57 }
0x3e11   : > { %12304 = vmatprep.subr.mxu0 %v13220_v27  ;;  %v9379_v55 = vpop.permute.xlu1 %9378 }
0x3e13   : > { %12301 = vmatmul.mubr.msk.bf16.vlgmr.msra.gmra.mrb[228].mxu0 %vm748_vm4, %v9135_v2 }
0x3e14   : > { %12305 = vmatpush3.msra.mxu0 %v15539_v29  ;;  %12306 = vmatprep.mubr.msk.f32.mxu0 %vm13221_vm6, %v13220_v27 }
0x3e15   : > { %12522 = vmatprep.subr.msk.bf16.mxu0 %vm684_vm2, %v9381_v22 }
0x3ede   : > { %v12286_v19 = vpop.f32.mrb[224].mxu0 }
0x3edf   : > { %v9016_v38 = vpop.f32.mrb[225].mxu0 }
0x3ee0   : > { %v12287_v61 = vpop.f32.mrb[226].mxu0  ;;  %12318 = vmatmul.mubr.msk.f32.vlgmr.msra.gmra.mrb[236].mxu1 %vm684_vm2, %v9016_v38 }
0x3ee1   : > { %v9019_v4 = vpop.f32.mrb[227].mxu0  ;;  %12320 = vmatprep.mubr.msk.f32.mxu1 %vm13221_vm6, %v13220_v27 }
0x3ee4   : > { %12321 = vmatmul.mubr.msk.f32.gmra.mrb[238].mxu1 %vm684_vm2, %v9019_v4 }
0x3ee5   : > { %12323 = vmatprep.mubr.msk.f32.mxu1 %vm13221_vm6, %v13220_v27 }
0x3ee6   : > { %v12302_v29 = vpop.f32.mrb[228].mxu0 }
0x3ee7   : > { %v9184_v13 = vpop.f32.mrb[229].mxu0 }
0x3ee8   : > { %v12303_v36 = vpop.f32.mrb[230].mxu0  ;;  %12307 = vmatmul.mubr.msk.f32.vlgmr.msra.gmra.mrb[232].mxu0 %vm684_vm2, %v9184_v13  ;;  %12324 = vmatmul.mubr.msk.f32.gmra.mrb[240].mxu1 %vm684_vm2, %v12286_v19 }
0x3ee9   : > { %12327 = vmatpush3.bf16.xpose.msra.mxu0 %v9391_v30  ;;  %v9187_v11 = vpop.f32.mrb[231].mxu0  ;;  %12309 = vmatprep.mubr.msk.f32.mxu0 %vm13221_vm6, %v13220_v27 }
0x3eea   : > { %12523 = vmatprep.subr.msk.bf16.mxu0 %vm684_vm2, %v9383_v34 }
0x3eec   : > { %12310 = vmatmul.mubr.msk.f32.gmra.mrb[234].mxu0 %vm684_vm2, %v9187_v11 }
0x3eed   : > { %12312 = vmatprep.mubr.msk.f32.mxu0 %vm13221_vm6, %v13220_v27 }
0x3ef0   : > { %12313 = vmatmul.mubr.msk.f32.gmra.mrb[236].mxu0 %vm684_vm2, %v12302_v29 }
0x3ef1   : > { %12329 = vmatpush3.bf16.xpose.msra.mxu0 %v9394_v60  ;;  %12330 = vmatprep.mubr.msk.bf16.mxu0 %vm684_vm2, %v9377_v45 }
0x3ef2   : > { %12342 = vmatprep.subr.mxu0 %v13220_v27 }
0x3ef8   : > { %12331 = vmatmul.mubr.msk.bf16.vlgmr.msra.gmra.mrb[240].mxu0 %vm684_vm2, %v9379_v55 }
0x3ef9   : > { %12343 = vmatpush3.msra.mxu0 %v15568_v23  ;;  %12344 = vmatprep.mubr.msk.f32.mxu0 %vm13221_vm6, %v13220_v27 }
0x3fb3   : > { %v9362_v8 = vpop.f32.mrb[236].mxu1 }
0x3fb4   : > { %v12319_v40 = vpop.f32.mrb[237].mxu1 }
0x3fb7   : > { %v9367_v46 = vpop.f32.mrb[238].mxu1 }
0x3fb8   : > { %v12322_v31 = vpop.f32.mrb[239].mxu1 }
0x3fbb   : > { %v9273_v5 = vpop.f32.mrb[232].mxu0  ;;  %v9372_v26 = vpop.f32.mrb[240].mxu1 }
0x3fbc   : > { %v15792_v6 = vadd.f32 %v9362_v8, %v9273_v5  ;;  %v12308_v42 = vpop.f32.mrb[233].mxu0  ;;  %v12325_v59 = vpop.f32.mrb[241].mxu1 }
0x3fbf   : > { %v9278_v9 = vpop.f32.mrb[234].mxu0 }
0x3fc0   : > { %v15794_v35 = vadd.f32 %v9367_v46, %v9278_v9  ;;  %v12311_v53 = vpop.f32.mrb[235].mxu0 }
0x3fc3   : > { %v9283_v52 = vpop.f32.mrb[236].mxu0 }
0x3fc4   : > { %v15796_v17 = vadd.f32 %v9372_v26, %v9283_v52  ;;  %v12314_v23 = vpop.f32.mrb[237].mxu0 }
0x3fcb   : > { %v12332_v20 = vpop.f32.mrb[240].mxu0 }
0x3fcc   : > { %v9430_v44 = vpop.f32.mrb[241].mxu0  ;;  %v9446_v15 = vsel %vm332_vm3, %v12332_v20, -1e+30 }
0x3fcd   : > { %v9444_v25 = vsel %vm332_vm3, %v9430_v44, -1e+30  ;;  %v12333_v32 = vpop.f32.mrb[242].mxu0  ;;  %v9453_v22 = vsel %vm748_vm4, %v9446_v15, -inf }
0x3fce   : > { %v9447_v47 = vsel %vm748_vm4, %v9444_v25, -inf  ;;  %v9433_v7 = vpop.f32.mrb[243].mxu0 }
0x3fcf   : > { %v9445_v57 = vsel %vm332_vm3, %v9433_v7, -1e+30  ;;  %9448 = vmax.xlane.f32.xlu0 %v9447_v47 }
0x3fd0   : > { %v9450_v2 = vsel %vm748_vm4, %v9445_v57, -inf }
0x3fd1   : > { %9451 = vmax.xlane.f32.xlu1 %v9450_v2 }
0x3fd3   : > { %9454 = vmax.xlane.f32.xlu0 %v9453_v22 }
0x405c   : > { %v9449_v19 = vpop.xlane.xlu0 %9448 }
0x405d   : > { %v9456_v38 = vsub.f32 %v9444_v25, %v9449_v19 }
0x405e   : > { %v9452_v61 = vpop.xlane.xlu1 %9451 }
0x405f   : > { %v9459_v4 = vmul.f32 1.442695, %v9456_v38  ;;  %v9457_v29 = vsub.f32 %v9445_v57, %v9452_v61 }
0x4060   : > { %v9455_v13 = vpop.xlane.xlu0 %9454 }
0x4061   : > { %13065 = vpow2.f32 %v9459_v4  ;;  %v9461_v30 = vmul.f32 1.442695, %v9457_v29  ;;  %v9458_v36 = vsub.f32 %v9446_v15, %v9455_v13 }
0x4063   : > { %13067 = vpow2.f32 %v9461_v30  ;;  %v9463_v34 = vmul.f32 1.442695, %v9458_v36 }
0x4065   : > { %13069 = vpow2.f32 %v9463_v34 }
0x406b   : > { %v13066_v11 = vpop.eup %13065 }
0x406c   : > { %v9465_v45 = vsel %vm748_vm4, %v13066_v11, 0.0 }
0x406d   : > { %v13068_v60 = vpop.eup %13067  ;;  %9466 = vadd.xlane.f32.xlu0 %v9465_v45 }
0x406e   : > { %v9468_v40 = vsel %vm748_vm4, %v13068_v60, 0.0 }
0x406f   : > { %v13070_v55 = vpop.eup %13069 }
0x4070   : > { %v9471_v8 = vsel %vm748_vm4, %v13070_v55, 0.0 }
0x4071   : > { %9472 = vadd.xlane.f32.xlu1 %v9471_v8  ;;  %9469 = vadd.xlane.f32.xlu0 %v9468_v40 }
0x4082   : > { %9484 = vrot.lane.b32.xlu1 %v15649_v63, %s13222_s26 }
0x4086   : > { %9640 = vrot.lane.b32.xlu1 %v15026_v51, %s13223_s27 }
0x4087   : > { %9482 = vrot.lane.b32.xlu0 %v15026_v51, %s13222_s26  ;;  %s164_s26 = scalar_lea.vmem [#allocation2], %s10657_s9 }
0x408a   : > { %9642 = vrot.lane.b32.xlu1 %v15649_v63, %s13223_s27  ;;  %s10594_s27 = sshll.u32 %s164_s26, 4  ;;  %s16241_s27 = int_to_ptr.vmem [resolvable:$true] %s10594_s27 }
0x408b   : > { %9636 = vrot.lane.b32.xlu0 %v15026_v51, %s13224_s28  ;;  %s13149_s25 = scalar_lea.vmem %s16241_s27, 64  ;;  %p13156_p0 = scmp.lt.s32.totalorder %s16241_s27, %s13154_s4 }
0x408c   : > { %p13150_p11 = scmp.ne.s32.totalorder %s16241_s27, %s13149_s25  ;;  %p13157_p1 = scmp.lt.s32.totalorder %s13155_s5, %s13149_s25 }
0x408e   : > { %9638 = vrot.lane.b32.xlu1 %v15649_v63, %s13224_s28  ;;  %p13151_p12 = pnand %p13150_p11, %p13285_p5  ;;  %p13158_p2 = por %p13157_p1, %p13156_p0 }
0x4090   : > { %p13152_p13 = pneg %p13151_p12 }
0x4092   : > { %p13159_p3 = pnand %p13158_p2, %p13152_p13 }
0x40fa   : > { %v9467_v46 = vpop.xlane.xlu0 %9466 }
0x40fb   : > { %13071 = vrcp.f32 %v9467_v46 }
0x40fe   : > { %v9470_v31 = vpop.xlane.xlu0 %9469  ;;  %v9473_v5 = vpop.xlane.xlu1 %9472 }
0x40ff   : > { %13073 = vrcp.f32 %v9470_v31 }
0x4100   : > { %13075 = vrcp.f32 %v9473_v5 }
0x4102   : > { %v9483_v26 = vpop.permute.xlu0 %9482  ;;  %v9485_v42 = vpop.permute.xlu1 %9484 }
0x4103   : > { %12334 = vmatprep.subr.bf16.mxu1 %v9483_v26  ;;  %v9494_v9 = vsel %vm795_vm5, %v9485_v42, 0 }
0x4104   : > { %12335 = vmatpush3.bf16.msra.mxu1 %v9483_v26 }
0x4105   : > { %12524 = vmatprep.subr.msk.bf16.mxu1 %vm795_vm5, %v9485_v42  ;;  %v13072_v59 = vpop.eup %13071 }
0x4106   : > { %v9641_v53 = vpop.permute.xlu1 %9640  ;;  %v9477_v20 = vmul.f32 %v13072_v59, %v13066_v11  ;;  %v9637_v7 = vpop.permute.xlu0 %9636 }
0x4107   : > { %v9651_v15 = vsel %vm684_vm2, %v9641_v53, 0 }
0x4108   : > { %12337 = vmatpush3.bf16.msra.mxu1 %v9494_v9 }
0x4109   : > { %v13074_v52 = vpop.eup %13073  ;;  %12525 = vmatprep.subr.msk.bf16.mxu1 %vm684_vm2, %v9641_v53 }
0x410a   : > { %v13076_v23 = vpop.eup %13075  ;;  %v9478_v44 = vmul.f32 %v13074_v52, %v13068_v60  ;;  %v9643_v57 = vpop.permute.xlu1 %9642 }
0x410b   : > { %v9479_v25 = vmul.f32 %v13076_v23, %v13070_v55  ;;  %v9654_v2 = vsel %vm684_vm2, %v9643_v57, 0 }
0x410c   : > { %v9480_v32 = vpack.c.bf16 %v9478_v44, %v9477_v20 }
0x410d   : > { %v9481_v47 = vpack.c.bf16 %v9479_v25, %v9479_v25 }
0x410e   : > { %12338 = vmatprep.mubr.msk.bf16.mxu1 %vm748_vm4, %v9480_v32  ;;  %v9639_v22 = vpop.permute.xlu1 %9638 }
0x410f   : > { %12339 = vmatmul.mubr.msk.bf16.vlgmr.msra.gmra.mrb[244].mxu1 %vm748_vm4, %v9481_v47 }
0x4110   : > { %12357 = vmatprep.mubr.msk.bf16.mxu1 %vm684_vm2, %v9637_v7 }
0x4111   : > { %12354 = vmatpush3.bf16.xpose.msra.mxu1 %v9651_v15 }
0x4112   : > { %12526 = vmatprep.subr.msk.bf16.mxu1 %vm684_vm2, %v9643_v57 }
0x4119   : > { %12356 = vmatpush3.bf16.xpose.msra.mxu1 %v9654_v2 }
0x411a   : > { %12369 = vmatprep.subr.mxu1 %v13220_v27 }
0x4120   : > { %12358 = vmatmul.mubr.msk.bf16.vlgmr.msra.gmra.mrb[248].mxu1 %vm684_vm2, %v9639_v22 }
0x4121   : > { %12370 = vmatpush3.msra.mxu1 %v15617_v24  ;;  %12371 = vmatprep.mubr.msk.f32.mxu1 %vm13221_vm6, %v13220_v27 }
0x41e2   : > { %v12340_v19 = vpop.f32.mrb[244].mxu1 }
0x41e3   : > { %v9530_v38 = vpop.f32.mrb[245].mxu1 }
0x41e4   : > { %v12341_v61 = vpop.f32.mrb[246].mxu1  ;;  %12345 = vmatmul.mubr.msk.f32.vlgmr.msra.gmra.mrb[238].mxu0 %vm684_vm2, %v9530_v38  ;;  %v9899_v38 = vadd.f32 %v15501_v39, %v14727_v49 }
0x41e5   : > { %v9533_v4 = vpop.f32.mrb[247].mxu1  ;;  %12347 = vmatprep.mubr.msk.f32.mxu0 %vm13221_vm6, %v13220_v27 }
0x41e8   : > { %12348 = vmatmul.mubr.msk.f32.gmra.mrb[244].mxu0 %vm684_vm2, %v9533_v4 }
0x41e9   : > { %12350 = vmatprep.mubr.msk.f32.mxu0 %vm13221_vm6, %v13220_v27 }
0x41ec   : > { %12351 = vmatmul.mubr.msk.f32.gmra.mrb[246].mxu0 %vm684_vm2, %v12340_v19 }
0x41f3   : > { %v12359_v24 = vpop.f32.mrb[248].mxu1 }
0x41f4   : > { %v9690_v29 = vpop.f32.mrb[249].mxu1  ;;  %v9706_v11 = vsel %vm332_vm3, %v12359_v24, -1e+30  ;;  %v9904_v24 = vadd.f32 %v15742_v58, %v14875_v54 }
0x41f5   : > { %v9704_v13 = vsel %vm332_vm3, %v9690_v29, -1e+30  ;;  %v12360_v30 = vpop.f32.mrb[250].mxu1  ;;  %v9713_v55 = vsel %vm748_vm4, %v9706_v11, -inf }
0x41f6   : > { %v9707_v36 = vsel %vm748_vm4, %v9704_v13, -inf  ;;  %v9693_v34 = vpop.f32.mrb[251].mxu1 }
0x41f7   : > { %v9705_v45 = vsel %vm332_vm3, %v9693_v34, -1e+30  ;;  %9708 = vmax.xlane.f32.xlu0 %v9707_v36 }
0x41f8   : > { %v9710_v60 = vsel %vm748_vm4, %v9705_v45, -inf }
0x41f9   : > { %9711 = vmax.xlane.f32.xlu1 %v9710_v60 }
0x41fb   : > { %9714 = vmax.xlane.f32.xlu0 %v9713_v55 }
0x4284   : > { %v9709_v8 = vpop.xlane.xlu0 %9708 }
0x4285   : > { %v9716_v40 = vsub.f32 %v9704_v13, %v9709_v8 }
0x4286   : > { %v9712_v46 = vpop.xlane.xlu1 %9711 }
0x4287   : > { %v9719_v31 = vmul.f32 1.442695, %v9716_v40  ;;  %v9717_v5 = vsub.f32 %v9705_v45, %v9712_v46 }
0x4288   : > { %v9715_v26 = vpop.xlane.xlu0 %9714 }
0x4289   : > { %13077 = vpow2.f32 %v9719_v31  ;;  %v9721_v42 = vmul.f32 1.442695, %v9717_v5  ;;  %v9718_v59 = vsub.f32 %v9706_v11, %v9715_v26 }
0x428b   : > { %13079 = vpow2.f32 %v9721_v42  ;;  %v9723_v9 = vmul.f32 1.442695, %v9718_v59 }
0x428d   : > { %13081 = vpow2.f32 %v9723_v9 }
0x4293   : > { %v15852_v56 = vpop.eup %13077 }
0x4294   : > { %v9725_v53 = vsel %vm748_vm4, %v15852_v56, 0.0 }
0x4295   : > { %v15856_v52 = vpop.eup %13079  ;;  %9726 = vadd.xlane.f32.xlu0 %v9725_v53 }
0x4296   : > { %v9728_v44 = vsel %vm748_vm4, %v15856_v52, 0.0 }
0x4297   : > { %v15858_v23 = vpop.eup %13081 }
0x4298   : > { %v9731_v20 = vsel %vm748_vm4, %v15858_v23, 0.0 }
0x4299   : > { %9732 = vadd.xlane.f32.xlu1 %v9731_v20  ;;  %9729 = vadd.xlane.f32.xlu0 %v9728_v44 }
0x42aa   : > { %9744 = vrot.lane.b32.xlu1 %v15649_v63, %s16289_s29  ;;  %v9896_v63 = vadd.f32 %v15277_v28, %v14714_v62  ;;  %v9901_v28 = vadd.f32 %v15513_v14, %v14850_v12  ;;  %v9902_v12 = vadd.f32 %v15730_v1, %v14847_v50 }
0x42af   : > { %9742 = vrot.lane.b32.xlu0 %v15026_v51, %s16289_s29  ;;  %v9897_v51 = vadd.f32 %v15282_v18, %v14722_v48  ;;  %v9900_v48 = vadd.f32 %v15506_v33, %v14842_v3  ;;  %v9903_v33 = vadd.f32 %v15735_v21, %v14855_v37 }
0x42b7   : > { %v9619_v25 = vpop.f32.mrb[238].mxu0 }
0x42b8   : > { %v15869_v32 = vadd.f32 %v9619_v25, %v15792_v6  ;;  %v12346_v47 = vpop.f32.mrb[239].mxu0  ;;  %v15884_v6 = vld [vmem:[%s16283_s2 + $0xe] ss:$0 sm:$0xff] }
0x42b9   : > { %v15894_v61 = vadd.f32 %v15884_v6, %v9897_v51  ;;  %v15908_v18 = vadd.f32 %v15884_v6, %v9899_v38  ;;  %v15913_v39 = vadd.f32 %v15884_v6, %v9900_v48  ;;  %v15916_v3 = vadd.f32 %v15884_v6, %v9901_v28 }
0x42ba   : > { %v15931_v13 = vadd.f32 %v15884_v6, %v9903_v33  ;;  %v15934_v50 = vadd.f32 %v15884_v6, %v9902_v12  ;;  %v15937_v37 = vadd.f32 %v15884_v6, %v9904_v24 }
0x42bb   : > { %v9624_v7 = vpop.f32.mrb[244].mxu0  ;;  %v9927_v49 = vsel %vm365_vm1, %v15894_v61, 0.0  ;;  %v9933_v14 = vsel %vm365_vm1, %v15908_v18, 0.0  ;;  %v9936_v4 = vsel %vm365_vm1, %v15913_v39, 0.0  ;;  %v9939_v29 = vsel %vm365_vm1, %v15916_v3, 0.0 }
0x42bc   : > { %v15872_v15 = vadd.f32 %v9624_v7, %v15794_v35  ;;  %v12349_v57 = vpop.f32.mrb[245].mxu0  ;;  %v9898_v35 = vadd.f32 %v15289_v43, %v14719_v41  ;;  %v9945_v1 = vsel %vm365_vm1, %v15931_v13, 0.0  ;;  %v9942_v54 = vsel %vm365_vm1, %v15934_v50, 0.0 }
0x42bd   : > { %v9948_v21 = vsel %vm365_vm1, %v15937_v37, 0.0 }
0x42be   : > { %v15897_v62 = vadd.f32 %v15884_v6, %v9898_v35 }
0x42bf   : > { %v9629_v2 = vpop.f32.mrb[246].mxu0 }
0x42c0   : > { %v15875_v22 = vadd.f32 %v9629_v2, %v15796_v17  ;;  %v12352_v19 = vpop.f32.mrb[247].mxu0  ;;  %v15891_v17 = vadd.f32 %v15884_v6, %v9896_v63  ;;  %v9930_v43 = vsel %vm365_vm1, %v15897_v62, 0.0 }
0x42c2   : > { %v9924_v41 = vsel %vm365_vm1, %v15891_v17, 0.0 }
0x42ce   : > { %9925 = vadd.xlane.f32.xlu1 %v9924_v41  ;;  %9928 = vadd.xlane.f32.xlu0 %v9927_v49 }
0x42d2   : > { %9934 = vadd.xlane.f32.xlu1 %v9933_v14  ;;  %9931 = vadd.xlane.f32.xlu0 %v9930_v43 }
0x42d6   : > { %9940 = vadd.xlane.f32.xlu1 %v9939_v29  ;;  %9937 = vadd.xlane.f32.xlu0 %v9936_v4 }
0x42da   : > { %9946 = vadd.xlane.f32.xlu1 %v9945_v1  ;;  %9943 = vadd.xlane.f32.xlu0 %v9942_v54 }
0x42de   : > { %9949 = vadd.xlane.f32.xlu0 %v9948_v21 }
0x4322   : > { %v9727_v58 = vpop.xlane.xlu0 %9726 }
0x4323   : > { %13083 = vrcp.f32 %v9727_v58 }
0x4326   : > { %v9730_v30 = vpop.xlane.xlu0 %9729  ;;  %v9733_v36 = vpop.xlane.xlu1 %9732 }
0x4327   : > { %13085 = vrcp.f32 %v9730_v30 }
0x4328   : > { %13087 = vrcp.f32 %v9733_v36 }
0x432a   : > { %v9743_v34 = vpop.permute.xlu0 %9742  ;;  %v9745_v11 = vpop.permute.xlu1 %9744 }
0x432b   : > { %12361 = vmatprep.subr.bf16.mxu0 %v9743_v34  ;;  %v9754_v60 = vsel %vm795_vm5, %v9745_v11, 0 }
0x432c   : > { %12362 = vmatpush3.bf16.msra.mxu0 %v9743_v34 }
0x432d   : > { %12527 = vmatprep.subr.msk.bf16.mxu0 %vm795_vm5, %v9745_v11  ;;  %v13084_v45 = vpop.eup %13083 }
0x432e   : > { %v9737_v40 = vmul.f32 %v13084_v45, %v15852_v56 }
0x4330   : > { %12364 = vmatpush3.bf16.msra.mxu0 %v9754_v60 }
0x4331   : > { %v13086_v55 = vpop.eup %13085 }
0x4332   : > { %v13088_v8 = vpop.eup %13087  ;;  %v9738_v46 = vmul.f32 %v13086_v55, %v15856_v52 }
0x4333   : > { %v9739_v31 = vmul.f32 %v13088_v8, %v15858_v23 }
0x4334   : > { %v9740_v5 = vpack.c.bf16 %v9738_v46, %v9737_v40 }
0x4335   : > { %v9741_v26 = vpack.c.bf16 %v9739_v31, %v9739_v31 }
0x4336   : > { %12365 = vmatprep.mubr.msk.bf16.mxu0 %vm748_vm4, %v9740_v5 }
0x4337   : > { %12366 = vmatmul.mubr.msk.bf16.vlgmr.msra.gmra.mrb[248].mxu0 %vm748_vm4, %v9741_v26 }
0x435b   : > { %v9929_v56 = vpop.xlane.xlu0 %9928  ;;  %v9926_v52 = vpop.xlane.xlu1 %9925 }
0x435c   : > { %v9960_v47 = vmul.f32 0.03125, %v9926_v52  ;;  %v9961_v38 = vmul.f32 0.03125, %v9929_v56 }
0x435e   : > { %v15966_v28 = vsub.f32 %v15891_v17, %v9960_v47  ;;  %v15976_v12 = vsub.f32 %v15894_v61, %v9961_v38 }
0x435f   : > { %v9932_v23 = vpop.xlane.xlu0 %9931  ;;  %v9935_v7 = vpop.xlane.xlu1 %9934 }
0x4360   : > { %v9962_v48 = vmul.f32 0.03125, %v9932_v23  ;;  %v9963_v17 = vmul.f32 0.03125, %v9935_v7  ;;  %v9985_v21 = vmul.f32 %v15976_v12, %v15976_v12 }
0x4362   : > { %v15979_v33 = vsub.f32 %v15897_v62, %v9962_v48  ;;  %v15990_v61 = vsub.f32 %v15908_v18, %v9963_v17  ;;  %v9999_v45 = vsel %vm365_vm1, %v9985_v21, 0.0 }
0x4363   : > { %v9938_v2 = vpop.xlane.xlu0 %9937  ;;  %v9941_v14 = vpop.xlane.xlu1 %9940 }
0x4364   : > { %v9964_v4 = vmul.f32 0.03125, %v9938_v2  ;;  %v9965_v54 = vmul.f32 0.03125, %v9941_v14 }
0x4366   : > { %v15997_v58 = vsub.f32 %v15913_v39, %v9964_v4  ;;  %v16003_v18 = vsub.f32 %v15916_v3, %v9965_v54  ;;  %v9987_v39 = vmul.f32 %v15990_v61, %v15990_v61 }
0x4367   : > { %v9947_v34 = vpop.xlane.xlu1 %9946 }
0x4368   : > { %v9967_v8 = vmul.f32 0.03125, %v9947_v34  ;;  %v9988_v46 = vmul.f32 %v15997_v58, %v15997_v58  ;;  %v10005_v31 = vsel %vm365_vm1, %v9987_v39, 0.0  ;;  %v9989_v5 = vmul.f32 %v16003_v18, %v16003_v18 }
0x436a   : > { %v16018_v26 = vsub.f32 %v15931_v13, %v9967_v8 }
0x436c   : > { %v9991_v13 = vmul.f32 %v16018_v26, %v16018_v26 }
0x436e   : > { %v10017_v23 = vsel %vm365_vm1, %v9991_v13, 0.0 }
0x440a   : > { %v12367_v42 = vpop.f32.mrb[248].mxu0 }
0x440b   : > { %v9790_v59 = vpop.f32.mrb[249].mxu0 }
0x440c   : > { %v12368_v9 = vpop.f32.mrb[250].mxu0  ;;  %12372 = vmatmul.mubr.msk.f32.vlgmr.msra.gmra.mrb[242].mxu1 %vm684_vm2, %v9790_v59 }
0x440d   : > { %v9793_v53 = vpop.f32.mrb[251].mxu0  ;;  %12374 = vmatprep.mubr.msk.f32.mxu1 %vm13221_vm6, %v13220_v27 }
0x4410   : > { %12375 = vmatmul.mubr.msk.f32.gmra.mrb[252].mxu1 %vm684_vm2, %v9793_v53  ;;  %v10011_v53 = vsel %vm365_vm1, %v9989_v5, 0.0 }
0x4411   : > { %12377 = vmatprep.mubr.msk.f32.mxu1 %vm13221_vm6, %v13220_v27 }
0x4414   : > { %12378 = vmatmul.mubr.msk.f32.gmra.mrb[254].mxu1 %vm684_vm2, %v12367_v42 }
0x44df   : > { %v9879_v20 = vpop.f32.mrb[242].mxu1 }
0x44e0   : > { %v9893_v44 = vadd.f32 %v9879_v20, %v15869_v32  ;;  %v12373_v25 = vpop.f32.mrb[243].mxu1  ;;  %v12597_v20 = vld [vmem:[%s16282_s1 + $0x98] sm:$0xff]  }
0x44e1   : > { %12380 = vmatprep.subr.bf16.mxu0 %v12597_v20 }
0x44e2   : > { %v9905_v57 = vadd.f32 %v9893_v44, %v14885_v10  ;;  %12381 = vmatpush3.bf16.msra.mxu0 %v12597_v20  ;;  %v12598_v44 = vld [vmem:[%s16282_s1 + $0xa0] sm:$0xff]  }
0x44e3   : > { %v9884_v19 = vpop.f32.mrb[252].mxu1  ;;  %12382 = vmatprep.subr.bf16.mxu0 %v12598_v44 }
0x44e4   : > { %v9894_v63 = vadd.f32 %v9884_v19, %v15872_v15  ;;  %v12376_v51 = vpop.f32.mrb[253].mxu1  ;;  %v15963_v35 = vadd.f32 %v15884_v6, %v9905_v57 }
0x44e6   : > { %v9906_v32 = vadd.f32 %v9894_v63, %v14882_v16  ;;  %v9951_v41 = vsel %vm365_vm1, %v15963_v35, 0.0  ;;  %v9944_v16 = vpop.xlane.xlu0 %9943  ;;  %12383 = vmatpush3.bf16.msra.mxu0 %v12598_v44 }
0x44e7   : > { %9952 = vadd.xlane.f32.xlu1 %v9951_v41  ;;  %v9889_v10 = vpop.f32.mrb[254].mxu1  ;;  %v9966_v30 = vmul.f32 0.03125, %v9944_v16  ;;  %12424 = vmatprep.subr.bf16.mxu0 %v13220_v27 }
0x44e8   : > { %v9895_v49 = vadd.f32 %v9889_v10, %v15875_v22  ;;  %v12379_v43 = vpop.f32.mrb[255].mxu1  ;;  %v15973_v15 = vadd.f32 %v15884_v6, %v9906_v32  ;;  %v9984_v22 = vmul.f32 %v15966_v28, %v15966_v28 }
0x44e9   : > { %v16010_v55 = vsub.f32 %v15934_v50, %v9966_v30  ;;  %v10008_v50 = vsel %vm365_vm1, %v9988_v46, 0.0 }
0x44ea   : > { %v9907_v24 = vadd.f32 %v9895_v49, %v14892_v0  ;;  %v9954_v29 = vsel %vm365_vm1, %v15973_v15, 0.0  ;;  %v9986_v0 = vmul.f32 %v15979_v33, %v15979_v33  ;;  %v9950_v11 = vpop.xlane.xlu0 %9949 }
0x44eb   : > { %9955 = vadd.xlane.f32.xlu0 %v9954_v29  ;;  %v9968_v40 = vmul.f32 0.03125, %v9950_v11  ;;  %v9990_v59 = vmul.f32 %v16010_v55, %v16010_v55 }
0x44ec   : > { %v15987_v1 = vadd.f32 %v15884_v6, %v9907_v24  ;;  %v9996_v6 = vsel %vm365_vm1, %v9984_v22, 0.0  ;;  %v10002_v60 = vsel %vm365_vm1, %v9986_v0, 0.0 }
0x44ed   : > { %v16021_v42 = vsub.f32 %v15937_v37, %v9968_v40  ;;  %v10014_v9 = vsel %vm365_vm1, %v9990_v59, 0.0 }
0x44ee   : > { %v9957_v36 = vsel %vm365_vm1, %v15987_v1, 0.0 }
0x44ef   : > { %9958 = vadd.xlane.f32.xlu1 %v9957_v36  ;;  %9997 = vadd.xlane.f32.xlu0 %v9996_v6  ;;  %v9992_v56 = vmul.f32 %v16021_v42, %v16021_v42 }
0x44f1   : > { %v10020_v52 = vsel %vm365_vm1, %v9992_v56, 0.0 }
0x44f3   : > { %10000 = vadd.xlane.f32.xlu1 %v9999_v45  ;;  %10003 = vadd.xlane.f32.xlu0 %v10002_v60 }
0x44f7   : > { %10009 = vadd.xlane.f32.xlu0 %v10008_v50  ;;  %10006 = vadd.xlane.f32.xlu1 %v10005_v31  ;;  %v16063_v50 = vld [vmem:[%s16283_s2 + $0xf] ss:$0 sm:$0xff] }
0x44fb   : > { %10015 = vadd.xlane.f32.xlu0 %v10014_v9  ;;  %10012 = vadd.xlane.f32.xlu1 %v10011_v53 }
0x44ff   : > { %10021 = vadd.xlane.f32.xlu0 %v10020_v52  ;;  %10018 = vadd.xlane.f32.xlu1 %v10017_v23 }
0x4574   : > { %v9953_v25 = vpop.xlane.xlu1 %9952 }
0x4575   : > { %v9969_v47 = vmul.f32 0.03125, %v9953_v25 }
0x4577   : > { %v16042_v7 = vsub.f32 %v15963_v35, %v9969_v47 }
0x4578   : > { %v9956_v57 = vpop.xlane.xlu0 %9955 }
0x4579   : > { %v9970_v2 = vmul.f32 0.03125, %v9956_v57  ;;  %v9993_v19 = vmul.f32 %v16042_v7, %v16042_v7 }
0x457b   : > { %v16047_v63 = vsub.f32 %v15973_v15, %v9970_v2  ;;  %v10023_v51 = vsel %vm365_vm1, %v9993_v19, 0.0 }
0x457c   : > { %v9998_v38 = vpop.xlane.xlu0 %9997  ;;  %10024 = vadd.xlane.f32.xlu1 %v10023_v51  ;;  %v9959_v48 = vpop.xlane.xlu1 %9958 }
0x457d   : > { %v10032_v32 = vmul.f32 0.03125, %v9998_v38  ;;  %v9971_v41 = vmul.f32 0.03125, %v9959_v48  ;;  %v9994_v10 = vmul.f32 %v16047_v63, %v16047_v63 }
0x457f   : > { %v10044_v35 = vadd.f32 1e-06, %v10032_v32  ;;  %v16053_v49 = vsub.f32 %v15987_v1, %v9971_v41  ;;  %v10026_v43 = vsel %vm365_vm1, %v9994_v10, 0.0 }
0x4580   : > { %10027 = vadd.xlane.f32.xlu0 %v10026_v43  ;;  %v10004_v17 = vpop.xlane.xlu0 %10003  ;;  %v10001_v15 = vpop.xlane.xlu1 %10000 }
0x4581   : > { %13089 = vrsqrt.f32 %v10044_v35  ;;  %v10034_v14 = vmul.f32 0.03125, %v10004_v17  ;;  %v10033_v16 = vmul.f32 0.03125, %v10001_v15  ;;  %v9995_v4 = vmul.f32 %v16053_v49, %v16053_v49 }
0x4583   : > { %v10046_v24 = vadd.f32 1e-06, %v10034_v14  ;;  %v10045_v29 = vadd.f32 1e-06, %v10033_v16  ;;  %v10029_v22 = vsel %vm365_vm1, %v9995_v4, 0.0 }
0x4584   : > { %v10010_v54 = vpop.xlane.xlu0 %10009  ;;  %10030 = vadd.xlane.f32.xlu1 %v10029_v22  ;;  %v10007_v21 = vpop.xlane.xlu1 %10006  ;;  %v12600_v22 = vld [vmem:[%s16282_s1 + $0xb0] sm:$0xff]  }
0x4585   : > { %13091 = vrsqrt.f32 %v10046_v24  ;;  %v10036_v0 = vmul.f32 0.03125, %v10010_v54  ;;  %v10035_v30 = vmul.f32 0.03125, %v10007_v21  ;;  %v12601_v54 = vld [vmem:[%s16282_s1 + $0xb8] sm:$0xff]  }
0x4586   : > { %13093 = vrsqrt.f32 %v10045_v29 }
0x4587   : > { %v10048_v36 = vadd.f32 1e-06, %v10036_v0  ;;  %v10047_v6 = vadd.f32 1e-06, %v10035_v30  ;;  %v12602_v0 = vld [vmem:[%s16282_s1 + $0xc0] sm:$0xff]  }
0x4588   : > { %v10016_v34 = vpop.xlane.xlu0 %10015  ;;  %v10013_v11 = vpop.xlane.xlu1 %10012 }
0x4589   : > { %13095 = vrsqrt.f32 %v10048_v36  ;;  %v10038_v45 = vmul.f32 0.03125, %v10016_v34  ;;  %v10037_v60 = vmul.f32 0.03125, %v10013_v11  ;;  %v12603_v36 = vld [vmem:[%s16282_s1 + $0xc8] sm:$0xff]   ;;  %v12604_v34 = vld [vmem:[%s16282_s1 + $0xd0] sm:$0xff]  }
0x458a   : > { %13097 = vrsqrt.f32 %v10047_v6 }
0x458b   : > { %v13090_v39 = vpop.eup %13089  ;;  %v10050_v8 = vadd.f32 1e-06, %v10038_v45  ;;  %v10049_v40 = vadd.f32 1e-06, %v10037_v60  ;;  %v12605_v60 = vld [vmem:[%s16282_s1 + $0xd8] sm:$0xff]  }
0x458c   : > { %v10019_v46 = vpop.xlane.xlu1 %10018  ;;  %v10068_v31 = vmul.f32 %v13090_v39, %v15966_v28  ;;  %v16071_v28 = vld [vmem:[%s16283_s2 + $0x10] ss:$0 sm:$0xff]  ;;  %v10022_v21 = vpop.xlane.xlu0 %10021 }
0x458d   : > { %13099 = vrsqrt.f32 %v10050_v8  ;;  %v10039_v5 = vmul.f32 0.03125, %v10019_v46  ;;  %v10040_v30 = vmul.f32 0.03125, %v10022_v21  ;;  %v12606_v46 = vld [vmem:[%s16282_s1 + $0xe0] sm:$0xff]  }
0x458e   : > { %13101 = vrsqrt.f32 %v10049_v40  ;;  %v10084_v52 = vmul.f32 %v16063_v50, %v10068_v31 }
0x458f   : > { %v13092_v59 = vpop.eup %13091  ;;  %v10051_v9 = vadd.f32 1e-06, %v10039_v5  ;;  %v10052_v6 = vadd.f32 1e-06, %v10040_v30 }
0x4590   : > { %v13094_v53 = vpop.eup %13093  ;;  %v10070_v56 = vmul.f32 %v13092_v59, %v15979_v33 }
0x4591   : > { %v10069_v13 = vmul.f32 %v13094_v53, %v15976_v12  ;;  %13103 = vrsqrt.f32 %v10051_v9  ;;  %v10100_v12 = vadd.f32 %v16071_v28, %v10084_v52 }
0x4592   : > { %v10086_v25 = vmul.f32 %v16063_v50, %v10070_v56  ;;  %13105 = vrsqrt.f32 %v10052_v6 }
0x4593   : > { %v13096_v23 = vpop.eup %13095  ;;  %v10085_v20 = vmul.f32 %v16063_v50, %v10069_v13 }
0x4594   : > { %v13098_v44 = vpop.eup %13097  ;;  %v10072_v47 = vmul.f32 %v13096_v23, %v15997_v58  ;;  %v10102_v48 = vadd.f32 %v16071_v28, %v10086_v25 }
0x4595   : > { %v10071_v33 = vmul.f32 %v13098_v44, %v15990_v61  ;;  %v10101_v57 = vadd.f32 %v16071_v28, %v10085_v20 }
0x4596   : > { %v10088_v61 = vmul.f32 %v16063_v50, %v10072_v47 }
0x4597   : > { %v13100_v2 = vpop.eup %13099  ;;  %v10087_v19 = vmul.f32 %v16063_v50, %v10071_v33  ;;  %v10112_v51 = vpack.c.bf16 %v10101_v57, %v10100_v12 }
0x4598   : > { %v13102_v38 = vpop.eup %13101  ;;  %v10074_v32 = vmul.f32 %v13100_v2, %v16010_v55  ;;  %v10104_v55 = vadd.f32 %v16071_v28, %v10088_v61 }
0x4599   : > { %v10073_v41 = vmul.f32 %v13102_v38, %v16003_v18  ;;  %12384 = vmatprep.mubr.msk.bf16.mxu0 %vm365_vm1, %v10112_v51  ;;  %v10103_v58 = vadd.f32 %v16071_v28, %v10087_v19 }
0x459a   : > { %v10090_v17 = vmul.f32 %v16063_v50, %v10074_v32 }
0x459b   : > { %v10113_v10 = vpack.c.bf16 %v10103_v58, %v10102_v48  ;;  %v10089_v35 = vmul.f32 %v16063_v50, %v10073_v41  ;;  %v13104_v43 = vpop.eup %13103 }
0x459c   : > { %v10075_v15 = vmul.f32 %v13104_v43, %v16018_v26  ;;  %v10106_v4 = vadd.f32 %v16071_v28, %v10090_v17  ;;  %v12599_v26 = vld [vmem:[%s16282_s1 + $0xa8] sm:$0xff]   ;;  %v13106_v59 = vpop.eup %13105 }
0x459d   : > { %12385 = vmatmul.mubr.msk.bf16.vlgmr.msra.gmra.mrb[252].mxu0 %vm365_vm1, %v10113_v10  ;;  %v10105_v18 = vadd.f32 %v16071_v28, %v10089_v35  ;;  %12396 = vmatprep.subr.bf16.mxu1 %v12599_v26  ;;  %v10076_v56 = vmul.f32 %v13106_v59, %v16021_v42 }
0x459e   : > { %v10091_v14 = vmul.f32 %v16063_v50, %v10075_v15  ;;  %12397 = vmatpush3.bf16.msra.mxu1 %v12599_v26 }
0x459f   : > { %v10114_v16 = vpack.c.bf16 %v10105_v18, %v10104_v55  ;;  %12398 = vmatprep.subr.bf16.mxu1 %v12600_v22  ;;  %v10092_v23 = vmul.f32 %v16063_v50, %v10076_v56 }
0x45a0   : > { %v10107_v24 = vadd.f32 %v16071_v28, %v10091_v14 }
0x45a1   : > { %12388 = vmatprep.mubr.msk.bf16.mxu0 %vm365_vm1, %v10114_v16  ;;  %v10108_v47 = vadd.f32 %v16071_v28, %v10092_v23 }
0x45a2   : > { %v10115_v29 = vpack.c.bf16 %v10107_v24, %v10106_v4  ;;  %12399 = vmatpush3.bf16.msra.mxu1 %v12600_v22 }
0x45a3   : > { %12400 = vmatprep.subr.bf16.mxu1 %v12601_v54 }
0x45a5   : > { %12389 = vmatmul.mubr.msk.bf16.gmra.mrb[0].mxu0 %vm365_vm1, %v10115_v29 }
0x45a6   : > { %12401 = vmatpush3.bf16.msra.mxu1 %v12601_v54 }
0x45a7   : > { %12402 = vmatprep.subr.bf16.mxu1 %v12602_v0 }
0x45aa   : > { %12403 = vmatpush3.bf16.msra.mxu1 %v12602_v0 }
0x45ab   : > { %12404 = vmatprep.subr.bf16.mxu1 %v12603_v36 }
0x45ae   : > { %12405 = vmatpush3.bf16.msra.mxu1 %v12603_v36 }
0x45af   : > { %12406 = vmatprep.subr.bf16.mxu1 %v12604_v34 }
0x45b2   : > { %12407 = vmatpush3.bf16.msra.mxu1 %v12604_v34 }
0x45b3   : > { %12408 = vmatprep.subr.bf16.mxu1 %v12605_v60 }
0x45b6   : > { %12409 = vmatpush3.bf16.msra.mxu1 %v12605_v60 }
0x45b7   : > { %12410 = vmatprep.subr.bf16.mxu1 %v12606_v46 }
0x45ba   : > { %12411 = vmatpush3.bf16.msra.mxu1 %v12606_v46 }
0x4609   : > { %v10025_v11 = vpop.xlane.xlu1 %10024 }
0x460a   : > { %v10041_v45 = vmul.f32 0.03125, %v10025_v11 }
0x460c   : > { %v10053_v39 = vadd.f32 1e-06, %v10041_v45 }
0x460d   : > { %v10028_v8 = vpop.xlane.xlu0 %10027 }
0x460e   : > { %13107 = vrsqrt.f32 %v10053_v39  ;;  %v10042_v40 = vmul.f32 0.03125, %v10028_v8 }
0x4610   : > { %v10054_v31 = vadd.f32 1e-06, %v10042_v40 }
0x4611   : > { %v10031_v5 = vpop.xlane.xlu1 %10030 }
0x4612   : > { %13109 = vrsqrt.f32 %v10054_v31  ;;  %v10043_v9 = vmul.f32 0.03125, %v10031_v5 }
0x4614   : > { %v10055_v53 = vadd.f32 1e-06, %v10043_v9 }
0x4616   : > { %13111 = vrsqrt.f32 %v10055_v53 }
0x4618   : > { %v13108_v13 = vpop.eup %13107 }
0x4619   : > { %v10077_v52 = vmul.f32 %v13108_v13, %v16042_v7 }
0x461b   : > { %v10093_v20 = vmul.f32 %v16063_v50, %v10077_v52 }
0x461c   : > { %v13110_v44 = vpop.eup %13109 }
0x461d   : > { %v10078_v25 = vmul.f32 %v13110_v44, %v16047_v63  ;;  %v10109_v33 = vadd.f32 %v16071_v28, %v10093_v20  ;;  %v16140_v63 = vld [vmem:[%s16283_s2 + $0x11] ss:$0 sm:$0xff] }
0x461f   : > { %v10116_v12 = vpack.c.bf16 %v10109_v33, %v10108_v47  ;;  %v10094_v2 = vmul.f32 %v16063_v50, %v10078_v25 }
0x4620   : > { %v13112_v57 = vpop.eup %13111 }
0x4621   : > { %v10079_v42 = vmul.f32 %v13112_v57, %v16053_v49  ;;  %12392 = vmatprep.mubr.msk.bf16.mxu0 %vm365_vm1, %v10116_v12  ;;  %v10110_v19 = vadd.f32 %v16071_v28, %v10094_v2 }
0x4623   : > { %v10095_v7 = vmul.f32 %v16063_v50, %v10079_v42 }
0x4625   : > { %v10111_v51 = vadd.f32 %v16071_v28, %v10095_v7 }
0x4627   : > { %v10117_v38 = vpack.c.bf16 %v10111_v51, %v10110_v19 }
0x4629   : > { %12393 = vmatmul.mubr.msk.bf16.gmra.mrb[4].mxu0 %vm365_vm1, %v10117_v38 }
0x462a   : > { %12428 = vmatprep.mubr.msk.bf16.mxu0 %vm13221_vm6, %v13220_v27 }
0x4670   : > { %v12386_v49 = vpop.f32.mrb[252].mxu0 }
0x4671   : > { %v16143_v48 = vadd.f32 %v12386_v49, %v16140_v63  ;;  %v10186_v50 = vpop.f32.mrb[253].mxu0 }
0x4672   : > { %v16146_v32 = vadd.f32 %v16140_v63, %v10186_v50  ;;  %v12387_v28 = vpop.f32.mrb[254].mxu0 }
0x4673   : > { %v10235_v41 = vmul.f32 %v16143_v48, %v16143_v48  ;;  %v16151_v58 = vadd.f32 %v12387_v28, %v16140_v63  ;;  %v10189_v61 = vpop.f32.mrb[255].mxu0 }
0x4674   : > { %v10233_v10 = vmul.f32 %v16146_v32, %v16146_v32  ;;  %v16156_v35 = vadd.f32 %v16140_v63, %v10189_v61 }
0x4675   : > { %v10247_v43 = vmul.f32 %v10235_v41, %v16143_v48  ;;  %v10236_v17 = vmul.f32 %v16151_v58, %v16151_v58 }
0x4676   : > { %v10245_v15 = vmul.f32 %v10233_v10, %v16146_v32  ;;  %v10234_v55 = vmul.f32 %v16156_v35, %v16156_v35 }
0x4677   : > { %v10259_v18 = vmul.f32 0.044715, %v10247_v43  ;;  %v10248_v14 = vmul.f32 %v10236_v17, %v16151_v58 }
0x4678   : > { %v10257_v16 = vmul.f32 0.044715, %v10245_v15  ;;  %v10246_v4 = vmul.f32 %v10234_v55, %v16156_v35  ;;  %v12390_v24 = vpop.f32.mrb[0].mxu0 }
0x4679   : > { %v10271_v29 = vadd.f32 %v10259_v18, %v16143_v48  ;;  %v10260_v26 = vmul.f32 0.044715, %v10248_v14  ;;  %v16168_v22 = vadd.f32 %v12390_v24, %v16140_v63  ;;  %v10202_v54 = vpop.f32.mrb[1].mxu0 }
0x467a   : > { %v10269_v21 = vadd.f32 %v10257_v16, %v16146_v32  ;;  %v10258_v0 = vmul.f32 0.044715, %v10246_v4  ;;  %v16172_v30 = vadd.f32 %v16140_v63, %v10202_v54  ;;  %v12391_v36 = vpop.f32.mrb[2].mxu0 }
0x467b   : > { %v10283_v6 = vmul.f32 0.7978846, %v10271_v29  ;;  %v10272_v34 = vadd.f32 %v10260_v26, %v16151_v58  ;;  %v10239_v11 = vmul.f32 %v16168_v22, %v16168_v22  ;;  %v16178_v45 = vadd.f32 %v12391_v36, %v16140_v63  ;;  %v10205_v60 = vpop.f32.mrb[3].mxu0 }
0x467c   : > { %v10281_v39 = vmul.f32 0.7978846, %v10269_v21  ;;  %v10270_v8 = vadd.f32 %v10258_v0, %v16156_v35  ;;  %v10237_v40 = vmul.f32 %v16172_v30, %v16172_v30  ;;  %v16184_v46 = vadd.f32 %v16140_v63, %v10205_v60 }
0x467d   : > { %13113 = vtanh.f32 %v10283_v6  ;;  %v10284_v31 = vmul.f32 0.7978846, %v10272_v34  ;;  %v10251_v5 = vmul.f32 %v10239_v11, %v16168_v22  ;;  %v10240_v59 = vmul.f32 %v16178_v45, %v16178_v45 }
0x467e   : > { %13115 = vtanh.f32 %v10281_v39  ;;  %v10282_v9 = vmul.f32 0.7978846, %v10270_v8  ;;  %v10249_v53 = vmul.f32 %v10237_v40, %v16172_v30  ;;  %v10238_v56 = vmul.f32 %v16184_v46, %v16184_v46 }
0x467f   : > { %13117 = vtanh.f32 %v10284_v31  ;;  %v10263_v13 = vmul.f32 0.044715, %v10251_v5  ;;  %v10252_v52 = vmul.f32 %v10240_v59, %v16178_v45 }
0x4680   : > { %13119 = vtanh.f32 %v10282_v9  ;;  %v10261_v23 = vmul.f32 0.044715, %v10249_v53  ;;  %v10250_v20 = vmul.f32 %v10238_v56, %v16184_v46 }
0x4681   : > { %v10275_v44 = vadd.f32 %v10263_v13, %v16168_v22  ;;  %v10264_v25 = vmul.f32 0.044715, %v10252_v52 }
0x4682   : > { %v10273_v47 = vadd.f32 %v10261_v23, %v16172_v30  ;;  %v10262_v33 = vmul.f32 0.044715, %v10250_v20 }
0x4683   : > { %v10287_v12 = vmul.f32 0.7978846, %v10275_v44  ;;  %v10276_v57 = vadd.f32 %v10264_v25, %v16178_v45 }
0x4684   : > { %v10285_v2 = vmul.f32 0.7978846, %v10273_v47  ;;  %v10274_v42 = vadd.f32 %v10262_v33, %v16184_v46 }
0x4685   : > { %13121 = vtanh.f32 %v10287_v12  ;;  %v10288_v7 = vmul.f32 0.7978846, %v10276_v57 }
0x4686   : > { %13123 = vtanh.f32 %v10285_v2  ;;  %v10286_v19 = vmul.f32 0.7978846, %v10274_v42 }
0x4687   : > { %v13114_v51 = vpop.eup %13113  ;;  %13125 = vtanh.f32 %v10288_v7 }
0x4688   : > { %v13116_v38 = vpop.eup %13115  ;;  %v10307_v49 = vadd.f32 1.0, %v13114_v51  ;;  %13127 = vtanh.f32 %v10286_v19 }
0x4689   : > { %v13118_v50 = vpop.eup %13117  ;;  %v10305_v28 = vadd.f32 1.0, %v13116_v38 }
0x468a   : > { %v13120_v41 = vpop.eup %13119  ;;  %v10319_v61 = vmul.f32 0.5, %v10307_v49  ;;  %v10308_v10 = vadd.f32 1.0, %v13118_v50 }
0x468b   : > { %v10306_v43 = vadd.f32 1.0, %v13120_v41  ;;  %v10317_v17 = vmul.f32 0.5, %v10305_v28 }
0x468c   : > { %v10320_v15 = vmul.f32 0.5, %v10308_v10  ;;  %v10331_v18 = vmul.f32 %v10319_v61, %v16143_v48 }
0x468d   : > { %v10318_v55 = vmul.f32 0.5, %v10306_v43  ;;  %v10329_v4 = vmul.f32 %v10317_v17, %v16146_v32 }
0x468e   : > { %v10332_v14 = vmul.f32 %v10320_v15, %v16151_v58 }
0x468f   : > { %v13122_v16 = vpop.eup %13121  ;;  %v10330_v24 = vmul.f32 %v10318_v55, %v16156_v35 }
0x4690   : > { %v13124_v29 = vpop.eup %13123  ;;  %v10342_v26 = vpack.c.bf16 %v10332_v14, %v10331_v18  ;;  %v10311_v54 = vadd.f32 1.0, %v13122_v16 }
0x4691   : > { %v13126_v21 = vpop.eup %13125  ;;  %v10341_v0 = vpack.c.bf16 %v10330_v24, %v10329_v4  ;;  %v10309_v36 = vadd.f32 1.0, %v13124_v29 }
0x4692   : > { %v13128_v6 = vpop.eup %13127  ;;  %v10323_v34 = vmul.f32 0.5, %v10311_v54  ;;  %v10312_v11 = vadd.f32 1.0, %v13126_v21 }
0x4693   : > { %12412 = vmatprep.mubr.bf16.mxu1 %v10341_v0  ;;  %v10310_v60 = vadd.f32 1.0, %v13128_v6  ;;  %v10321_v39 = vmul.f32 0.5, %v10309_v36 }
0x4694   : > { %v10324_v48 = vmul.f32 0.5, %v10312_v11  ;;  %12413 = vmatmul.mubr.bf16.vlgmr.msra.gmra.mrb[0].mxu1 %v10342_v26  ;;  %v10335_v8 = vmul.f32 %v10323_v34, %v16168_v22 }
0x4695   : > { %v10322_v58 = vmul.f32 0.5, %v10310_v60  ;;  %v10333_v35 = vmul.f32 %v10321_v39, %v16172_v30 }
0x4696   : > { %v10336_v32 = vmul.f32 %v10324_v48, %v16178_v45  ;;  %v10947_v48 = vld [vmem:[%s16283_s2 + $0x12] ss:$0 sm:$0xff] }
0x4697   : > { %v10334_v40 = vmul.f32 %v10322_v58, %v16184_v46 }
0x4698   : > { %v10344_v31 = vpack.c.bf16 %v10336_v32, %v10335_v8 }
0x4699   : > { %v10343_v5 = vpack.c.bf16 %v10334_v40, %v10333_v35 }
0x469b   : > { %12416 = vmatprep.mubr.bf16.mxu1 %v10343_v5 }
0x469c   : > { %12417 = vmatmul.mubr.bf16.gmra.mrb[4].mxu1 %v10344_v31 }
0x46fc   : > { %v12394_v59 = vpop.f32.mrb[4].mxu0 }
0x46fd   : > { %v10227_v9 = vadd.f32 %v12394_v59, %v16140_v63  ;;  %v10218_v53 = vpop.f32.mrb[5].mxu0 }
0x46fe   : > { %v10219_v56 = vadd.f32 %v16140_v63, %v10218_v53  ;;  %v12395_v13 = vpop.f32.mrb[6].mxu0 }
0x46ff   : > { %v10243_v52 = vmul.f32 %v10227_v9, %v10227_v9  ;;  %v10230_v22 = vadd.f32 %v12395_v13, %v16140_v63  ;;  %v10221_v23 = vpop.f32.mrb[7].mxu0 }
0x4700   : > { %v10241_v45 = vmul.f32 %v10219_v56, %v10219_v56  ;;  %v10222_v30 = vadd.f32 %v16140_v63, %v10221_v23 }
0x4701   : > { %v10255_v20 = vmul.f32 %v10243_v52, %v10227_v9  ;;  %v10244_v46 = vmul.f32 %v10230_v22, %v10230_v22 }
0x4702   : > { %v10253_v44 = vmul.f32 %v10241_v45, %v10219_v56  ;;  %v10242_v25 = vmul.f32 %v10222_v30, %v10222_v30 }
0x4703   : > { %v10267_v47 = vmul.f32 0.044715, %v10255_v20  ;;  %v10256_v33 = vmul.f32 %v10244_v46, %v10230_v22 }
0x4704   : > { %v10265_v12 = vmul.f32 0.044715, %v10253_v44  ;;  %v10254_v57 = vmul.f32 %v10242_v25, %v10222_v30 }
0x4705   : > { %v10279_v2 = vadd.f32 %v10267_v47, %v10227_v9  ;;  %v10268_v42 = vmul.f32 0.044715, %v10256_v33 }
0x4706   : > { %v10277_v7 = vadd.f32 %v10265_v12, %v10219_v56  ;;  %v10266_v19 = vmul.f32 0.044715, %v10254_v57 }
0x4707   : > { %v10291_v51 = vmul.f32 0.7978846, %v10279_v2  ;;  %v10280_v38 = vadd.f32 %v10268_v42, %v10230_v22 }
0x4708   : > { %v10289_v49 = vmul.f32 0.7978846, %v10277_v7  ;;  %v10278_v50 = vadd.f32 %v10266_v19, %v10222_v30 }
0x4709   : > { %13129 = vtanh.f32 %v10291_v51  ;;  %v10292_v28 = vmul.f32 0.7978846, %v10280_v38  ;;  %v10956_v51 = vld [vmem:[%s16283_s2] ss:$0 sm:$0xff] }
0x470a   : > { %13131 = vtanh.f32 %v10289_v49  ;;  %v10290_v63 = vmul.f32 0.7978846, %v10278_v50 }
0x470b   : > { %13133 = vtanh.f32 %v10292_v28 }
0x470c   : > { %13135 = vtanh.f32 %v10290_v63  ;;  %v10958_v63 = vld [vmem:[%s16283_s2 + $0x2] ss:$0 sm:$0xff] }
0x4713   : > { %v13130_v41 = vpop.eup %13129 }
0x4714   : > { %v13132_v61 = vpop.eup %13131  ;;  %v10315_v10 = vadd.f32 1.0, %v13130_v41 }
0x4715   : > { %v13134_v43 = vpop.eup %13133  ;;  %v10313_v17 = vadd.f32 1.0, %v13132_v61 }
0x4716   : > { %v13136_v15 = vpop.eup %13135  ;;  %v10327_v55 = vmul.f32 0.5, %v10315_v10  ;;  %v10316_v18 = vadd.f32 1.0, %v13134_v43 }
0x4717   : > { %v10314_v14 = vadd.f32 1.0, %v13136_v15  ;;  %v10325_v16 = vmul.f32 0.5, %v10313_v17 }
0x4718   : > { %v10328_v4 = vmul.f32 0.5, %v10316_v18  ;;  %v10339_v29 = vmul.f32 %v10327_v55, %v10227_v9 }
0x4719   : > { %v10326_v24 = vmul.f32 0.5, %v10314_v14  ;;  %v10337_v54 = vmul.f32 %v10325_v16, %v10219_v56 }
0x471a   : > { %v10340_v26 = vmul.f32 %v10328_v4, %v10230_v22 }
0x471b   : > { %v10338_v21 = vmul.f32 %v10326_v24, %v10222_v30 }
0x471c   : > { %v10346_v0 = vpack.c.bf16 %v10340_v26, %v10339_v29 }
0x471d   : > { %v10345_v36 = vpack.c.bf16 %v10338_v21, %v10337_v54 }
0x471f   : > { %12420 = vmatprep.mubr.bf16.mxu1 %v10345_v36 }
0x4720   : > { %12421 = vmatmul.mubr.bf16.gmra.mrb[8].mxu1 %v10346_v0 }
0x4767   : > { %v12414_v6 = vpop.f32.mrb[0].mxu1 }
0x4768   : > { %v10433_v34 = vpop.f32.mrb[1].mxu1  ;;  %v10440_v35 = vadd.f32 %v12414_v6, %v10947_v48 }
0x4769   : > { %v12415_v11 = vpop.f32.mrb[2].mxu1 }
0x476a   : > { %v10435_v60 = vpop.f32.mrb[3].mxu1  ;;  %v10472_v5 = vadd.f32 %v10440_v35, %v15897_v62 }
0x476f   : > { %v12418_v39 = vpop.f32.mrb[4].mxu1 }
0x4770   : > { %v10446_v58 = vpop.f32.mrb[5].mxu1 }
0x4771   : > { %v12419_v8 = vpop.f32.mrb[6].mxu1 }
0x4772   : > { %v10448_v32 = vpop.f32.mrb[7].mxu1 }
0x4773   : > { %v10449_v40 = vadd.f32 %v10947_v48, %v10448_v32 }
0x4775   : > { %v10473_v31 = vadd.f32 %v10449_v40, %v15916_v3 }
0x4777   : > { %v10480_v59 = vrot.slane %v10473_v31, 7 }
0x4779   : > { %v10489_v9 = vsel %vm10488_vm7, %v10472_v5, %v10480_v59 }
0x47f3   : > { %v12422_v53 = vpop.f32.mrb[8].mxu1 }
0x47f4   : > { %v10459_v56 = vpop.f32.mrb[9].mxu1 }
0x47f5   : > { %v10460_v13 = vadd.f32 %v10947_v48, %v10459_v56  ;;  %v12423_v52 = vpop.f32.mrb[10].mxu1 }
0x47f6   : > { %v10469_v22 = vadd.f32 %v12423_v52, %v10947_v48  ;;  %v10462_v23 = vpop.f32.mrb[11].mxu1 }
0x47f7   : > { %v10474_v45 = vadd.f32 %v10460_v13, %v15937_v37  ;;  %v12607_v37 = vld [vmem:[%s16282_s1 + $0x18] sm:$0xff]  }
0x47f8   : > { %v10475_v30 = vadd.f32 %v10469_v22, %v15987_v1  ;;  %12425 = vmatpush3.bf16.msra.mxu0 %v12607_v37  ;;  %v12608_v1 = vld [vmem:[%s16282_s1 + $0x20] sm:$0xff]  }
0x47f9   : > { %v10483_v20 = vrot.slane %v10474_v45, 6  ;;  %12426 = vmatprep.subr.bf16.mxu0 %v13220_v27  ;;  %v10957_v27 = vld [vmem:[%s16283_s2 + $0x1] ss:$0 sm:$0xff] }
0x47fa   : > { %v10486_v46 = vrot.slane %v10475_v30, 5 }
0x47fb   : > { %v10491_v3 = vsel %vm10490_vm8, %v10489_v9, %v10483_v20 }
0x47fc   : > { %v10493_v44 = vsel %vm10492_vm9, %v10491_v3, %v10486_v46  ;;  %12427 = vmatpush3.bf16.msra.mxu0 %v12608_v1 }
0x47fd   : > { %v10495_v62 = vsel %vm10494_vm10, %v10493_v44, 0.0 }
0x47fe   : > { %10496 = vadd.xlane.f32.xlu0 %v10495_v62 }
0x488b   : > { %v10497_v25 = vpop.xlane.xlu0 %10496 }
0x488c   : > { %v10498_v47 = vmul.f32 0.03125, %v10497_v25 }
0x488e   : > { %v10499_v33 = vsub.f32 %v10493_v44, %v10498_v47 }
0x4890   : > { %v10500_v12 = vmul.f32 %v10499_v33, %v10499_v33 }
0x4892   : > { %v10501_v57 = vsel %vm10494_vm10, %v10500_v12, 0.0 }
0x4893   : > { %10502 = vadd.xlane.f32.xlu1 %v10501_v57 }
0x4920   : > { %v10503_v2 = vpop.xlane.xlu1 %10502 }
0x4921   : > { %v10504_v42 = vmul.f32 0.03125, %v10503_v2 }
0x4923   : > { %v10505_v7 = vadd.f32 1e-06, %v10504_v42 }
0x4925   : > { %13137 = vrsqrt.f32 %v10505_v7 }
0x492f   : > { %v13138_v19 = vpop.eup %13137 }
0x4930   : > { %v10507_v38 = vmul.f32 %v13138_v19, %v10499_v33 }
0x4932   : > { %v10512_v49 = vmul.f32 %v10956_v51, %v10507_v38 }
0x4934   : > { %v10517_v50 = vadd.f32 %v10957_v27, %v10512_v49 }
0x4936   : > { %v10518_v28 = vpack.c.bf16 %v10517_v50, %v10517_v50 }
0x4938   : > { %12429 = vmatmul.mubr.msk.bf16.vlgmr.msra.gmra.mrb[8].mxu0 %vm365_vm1, %v10518_v28 }
0x4a0b   : > { %v10572_v41 = vpop.f32.mrb[8].mxu0 }
0x4a0c   : > { %v10573_v61 = vadd.f32 %v10958_v63, %v10572_v41  ;;  %v12430_v10 = vpop.f32.mrb[9].mxu0 }
0x4a0d   : > { %v10575_v43 = vpop.f32.mrb[10].mxu0 }
0x4a0e   : > { %v12431_v17 = vpop.f32.mrb[11].mxu0  ;;  %10579 = vst.msk [vmem:[%s164_s26] sm:$0xf] %vm10578_vm11, %v10573_v61 }
0x4a0f   : > { %13162 = shalt.err (!%p13159_p3)
}
0x4a10   : > { %s13163_s19 = scalar_lea.hbm %s16239_s24, 64  ;;  %s13167_s7 = scalar_lea.hbm %s16284_s3, 128 }
0x4a11   : > { %p13164_p4 = scmp.ne.s32.totalorder %s16239_s24, %s13163_s19  ;;  %p13168_p9 = scmp.lt.u32.totalorder %s16239_s24, %s16284_s3 }
0x4a12   : > { %p13169_p10 = scmp.lt.u32.totalorder %s13167_s7, %s13163_s19  ;;  %p13171_p12 = scmp.lt.u32.totalorder %s13163_s19, %s16239_s24 }
0x4a13   : > { %p13165_p7 = pnand %p13164_p4, %p13285_p5 }
0x4a14   : > { %p13170_p11 = por %p13169_p10, %p13168_p9 }
0x4a15   : > { %p13166_p8 = pneg %p13165_p7 }
0x4a16   : > { %p13172_p13 = por %p13171_p12, %p13170_p11 }
0x4a18   : > { %p13173_p0 = pnand %p13172_p13, %p13166_p8 }
0x4a1a   : > { %13176 = shalt.err (!%p13173_p0)
}
0x4a1b   : > { %12528 = dma.vmem_to_hbm [thread:$0]  (%p13285_p5), %s16241_s27, 64, %s16239_s24, %s10581_s16  }
0x4a1c PF: > { %p12534_p1 = scmp.ge.s32.totalorder %s13211_s15, 2  ;;  %s10606_s10 = sand.u32 1, %s13199_s12  }
0x4a1d   : > { %s10607_s11 = scalar_lea.sflag [#allocation3], %s10606_s10 }
0x4a1e   : > { %p12531_p2 = pnand %p12534_p1, %p13289_p6 }
0x4a20   : > { %13194 = dma.done.wait (!%p12531_p2), %s10607_s11, 64  }
0x4a21   : > { %13196 = vsyncadd (!%p12531_p2), %s10607_s11, 4294967232  ;;  %p13_p3 = scmp.ge.s32.totalorder %s13272_s18, 4   ;;  %s16290_s12 = smov %s13203_s13 }
0x4a22   : > { %s16291_s13 = smov %s13207_s14  ;;  %s16292_s14 = smov %s13283_s21 }
0x4a23   : > { %s16293_s15 = smov %s13272_s18  ;;  %15 = sbr.rel (!%p13_p3) target bundleno = 3 (0x3), region = 67 }
0x4a2a   :  { %10612 = vsyncpa [#allocation3], 1 }
0x4a2b   :  { %10614 = vsyncpa [#allocation3 + $0x1], 1 }

</bundles_post_ra>
